<compile_context>
chip_gen: v7x
topology: tpu7x:2x2x1
jax: 0.10.0
libtpu: 0.0.40
codegen_flags: <defaults>
</compile_context>

<pallas_src>
import jax
import jax.numpy as jnp
from jax import lax
from jax.experimental import pallas as pl
from jax.experimental.pallas import tpu as pltpu

MAX_VAL = 1.0e7          # stand-in for the repo's MAX_VAL pad constant
SCATTER_VAL = -1.0e7     # value written by logits_mask.scatter(...)
NEG_INF = -1.0e30


def _sigmoid(x):
    # 0.5*(tanh(0.5*x)+1): one EUP op, no exp+divide chain.
    return 0.5 * jnp.tanh(0.5 * x) + 0.5


def _softmax_last(x):
    m = jnp.max(x, axis=-1, keepdims=True)
    e = jnp.exp(x - m)
    return e * pl.reciprocal(jnp.sum(e, axis=-1, keepdims=True), approx=True)


def _make_kernel(B, Se, He, Hd, Ed, N, Sd, Ke, Ve, Md, eos_id, sparce_rate):
    """Builds the Pallas kernel body (all sizes static; B is the padded batch)."""

    def kernel(enc_ref, h0_ref, c0_ref, encmask_ref,
               kmask_ref, vmask_ref, kemb_ref, vemb_ref,
               whf_ref, bf_ref,                 # fused LSTM recurrent weights / bias
               qmw_ref, qmb_ref,                # fused _dense_net + _read_memory
               akv_ref,                         # SelfAttentiveSum score vector
               m1wa_ref, m1wb_ref, m1b_ref,     # MLP layer 1 (split: He-part / Ed-part)
               m2w_ref, m2b_ref,                # MLP layer 2
               emb_ref, embakw_ref,             # label emb table / emb @ akw (pre-fused)
               out_ref, ids_ref, ksim_ref, vsim_ref):
        f32 = jnp.float32
        bf16 = jnp.bfloat16

        # TODO(synk): for production Se/Ke/Ve keep these as refs and index
        # per-tile inside the loop instead of hoisting full-array loads.
        enc = enc_ref[...]              # [B, Se, He] f32
        encmask = encmask_ref[...]      # [B, Se] (1.0 valid / 0.0 pad)
        kemb = kemb_ref[...]            # [B, Ke, Md] f32
        vemb = vemb_ref[...]            # [B, Ve, Md] f32
        emb_tbl = emb_ref[...]          # [N, Ed] bf16
        emb_akw = embakw_ref[...]       # [N, Ed] bf16 (= emb_tbl @ akw)

        wh_f = whf_ref[...]             # [Hd, 4*Hd] bf16
        qm_w = qmw_ref[...]             # [Hd, He+Md] bf16
        m1w_a, m1w_b = m1wa_ref[...], m1wb_ref[...]   # bf16
        m2w = m2w_ref[...]              # [D, N] bf16

        # ---- loop invariants (hoisted out of the fully unrolled decode loop) ----
        # Pre-broadcast biases to [B, .] once (JAX does not CSE broadcast_in_dim).
        b_f = jnp.broadcast_to(bf_ref[...], (B, 4 * Hd))
        qm_b = jnp.broadcast_to(qmb_ref[...], (B, He + Md))
        m1b = jnp.broadcast_to(m1b_ref[...], (B, Hd + Ed))
        m2b = jnp.broadcast_to(m2b_ref[...], (B, N))
        akv = jnp.broadcast_to(akv_ref[...], (B, Ed))

        pad_add = (1.0 - encmask) * (-MAX_VAL)                     # [B, Se]
        sent = enc[:, 0, :]                                        # [B, He] (eval: dropout=id)
        # Inverse key norms: used by the per-step cosine and the epilogue knorm.
        # (tiny clamp avoids NaN for all-zero rows; matches CosineSimilarity eps)
        inv_kn = lax.rsqrt(jnp.maximum(jnp.sum(kemb * kemb, axis=-1), 1e-16))  # [B, Ke]
        lane_n = lax.broadcasted_iota(jnp.int32, (B, N), 1)        # label-id lane index

        def body(step, carry):
            (h, c, in_lbl, logits_mask, ksim_run, m_run, l_run, acc_run) = carry

            # ---- LSTM cell: input is constant zeros (eval), so x@W_ih == 0.
            #      One fused recurrent bf16 matmul; PyTorch gate order (i,f,g,o). ----
            gates = jnp.dot(h.astype(bf16), wh_f, preferred_element_type=f32) + b_f
            i_g = _sigmoid(gates[:, 0 * Hd:1 * Hd])
            f_g = _sigmoid(gates[:, 1 * Hd:2 * Hd])
            g_g = jnp.tanh(gates[:, 2 * Hd:3 * Hd])
            o_g = _sigmoid(gates[:, 3 * Hd:4 * Hd])
            c_new = f_g * c + i_g * g_g
            h_new = o_g * jnp.tanh(c_new)                                  # [B, Hd]

            # ---- fused projections of h_new (_dense_net | _read_memory) ----
            qm = jnp.dot(h_new.astype(bf16), qm_w, preferred_element_type=f32) + qm_b
            q = qm[:, :He]                                                 # attention query
            q_mem = qm[:, He:]                                             # memory query

            # ---- attention over encoder hidden states (VPU, f32) ----
            scores = jnp.sum(enc * q[:, None, :], axis=-1) + pad_add       # [B, Se]
            w_enc = _softmax_last(scores)
            attn_enc = jnp.sum(enc * w_enc[:, :, None], axis=1)            # [B, He]

            # ---- SelfAttentiveSum over previously generated label embeddings
            #      (online-softmax running state; == 0 at step 0) ----
            attn_last = acc_run * pl.reciprocal(jnp.maximum(l_run, 1e-20),
                                                approx=True)               # [B, Ed]

            # ---- MLP head (lane concat avoided by splitting layer-1 weight) ----
            m1 = (sent + attn_enc).astype(bf16)                            # [B, He]
            m2 = (in_lbl + attn_last).astype(bf16)                         # [B, Ed]
            hmlp = jnp.maximum(
                jnp.dot(m1, m1w_a, preferred_element_type=f32)
                + jnp.dot(m2, m1w_b, preferred_element_type=f32) + m1b, 0.0)
            logits = (jnp.dot(hmlp.astype(bf16), m2w, preferred_element_type=f32)
                      + m2b + logits_mask)                                 # [B, N]

            # ---- greedy argmax (first max, like torch) + hard+soft label mix ----
            mx = jnp.max(logits, axis=-1, keepdims=True)
            amax = jnp.min(jnp.where(logits == mx, lane_n, N),
                           axis=-1, keepdims=True)                         # [B, 1] int32
            onehot = (lane_n == amax).astype(f32)                          # [B, N]
            p_bf = (_softmax_last(logits) + onehot).astype(bf16)           # [B, N]
            new_lbl = jnp.dot(p_bf, emb_tbl, preferred_element_type=f32)   # [B, Ed]

            # ---- per-step bookkeeping: direct lane-dense stores ----
            out_ref[pl.ds(step, 1), :, :] = logits[None, :, :]             # (Sd,B,N) slab
            ids_ref[:, pl.ds(step, 1), :] = amax[:, :, None]               # (B,Sd,1) slab

            # ---- logits mask scatter (chosen ids -> -1e7; eos column stays 0) ----
            logits_mask = jnp.where(onehot > 0, SCATTER_VAL, logits_mask)
            logits_mask = jnp.where(lane_n == eos_id, 0.0, logits_mask)

            # ---- push new label embedding into the online attention state.
            #      s_new uses the pre-fused emb_akw: tanh(new_lbl@akw) == tanh(p@emb_akw). ----
            s_new = jnp.sum(jnp.tanh(jnp.dot(p_bf, emb_akw,
                                             preferred_element_type=f32)) * akv,
                            axis=-1, keepdims=True)                        # [B, 1]
            m_new = jnp.maximum(m_run, s_new)
            alpha = jnp.exp(m_run - m_new)
            beta = jnp.exp(s_new - m_new)
            acc_run = alpha * acc_run + beta * new_lbl
            l_run = alpha * l_run + beta
            m_run = m_new

            # ---- memory-key cosine similarity (running max over steps) ----
            dot_qk = jnp.sum(q_mem[:, None, :] * kemb, axis=-1)            # [B, Ke]
            inv_qn = lax.rsqrt(jnp.maximum(
                jnp.sum(q_mem * q_mem, axis=-1, keepdims=True), 1e-16))    # [B, 1]
            cos = dot_qk * inv_qn * inv_kn
            ksim_run = jnp.maximum(ksim_run, cos)

            return (h_new, c_new, new_lbl, logits_mask, ksim_run,
                    m_run, l_run, acc_run)

        init = (h0_ref[...], c0_ref[...],
                jnp.zeros((B, Ed), f32),             # input_label_embeddings
                jnp.zeros((B, N), f32),              # logits_mask
                jnp.full((B, Ke), -2.0, f32),        # running max of key cos-sims
                jnp.full((B, 1), NEG_INF, f32),      # online-softmax max
                jnp.zeros((B, 1), f32),              # online-softmax denom
                jnp.zeros((B, Ed), f32))             # online-softmax weighted acc
        # Sd is a small static constant -> fully unroll for scheduler visibility.
        carry = lax.fori_loop(0, Sd, body, init, unroll=True)
        ksim_run = carry[4]

        # ---- final key/value similarity post-processing ----
        bf16 = jnp.bfloat16
        ksim = jnp.where(ksim_run < 0, 0.0, ksim_run)                      # [B, Ke]
        knorm = (kemb * inv_kn[:, :, None]).astype(bf16)                   # reuse hoisted rsqrt
        inv_vn = lax.rsqrt(jnp.maximum(
            jnp.sum(vemb * vemb, axis=-1, keepdims=True), 1e-16))
        vnorm = (vemb * inv_vn).astype(bf16)
        mw = jnp.einsum('bkm,bvm->bkv', knorm, vnorm,
                        preferred_element_type=jnp.float32)                # [B, Ke, Ve]
        mw_max = jnp.max(mw, axis=-1, keepdims=True)
        mw = jnp.where(mw < mw_max, 0.0, mw)
        mw = jnp.where(mw < sparce_rate, 0.0, mw)
        vsim = jnp.sum(ksim[:, :, None] * mw, axis=1)                      # [B, Ve]

        ksim_ref[...] = jnp.where(kmask_ref[...] > 0, ksim, -1.0)
        vsim_ref[...] = jnp.where(vmask_ref[...] > 0, vsim, -1.0)

    return kernel


def init_weights(key, He, Hd, Ed, N, Md):
    """Deterministic synthetic parameters (shapes follow the module's __init__).

    NOTE: the LSTM input-path weights (W_ih) are omitted: in eval mode the LSTM
    input is the constant-zero `input_embeddings`, so x @ W_ih == 0; the per-gate
    biases below stand for (b_ih + b_hh).  TODO(synk): restore W_ih if teacher
    forcing / non-zero inputs are added.
    """
    D = Hd + Ed           # MLP width
    names_shapes = [
        ("whi", (Hd, Hd)), ("whf", (Hd, Hd)), ("whg", (Hd, Hd)), ("who", (Hd, Hd)),
        ("bi", (1, Hd)), ("bf", (1, Hd)), ("bg", (1, Hd)), ("bo", (1, Hd)),
        ("dnw", (Hd, He)), ("dnb", (1, He)),          # _dense_net
        ("akw", (Ed, Ed)), ("akv", (1, Ed)),          # SelfAttentiveSum (tanh, no bias)
        ("m1w", (D, D)), ("m1b", (1, D)),             # _mlp layer 1
        ("m2w", (D, N)), ("m2b", (1, N)),             # _mlp layer 2
        ("rmw", (Hd, Md)), ("rmb", (1, Md)),          # _read_memory
        ("emb", (N, Ed)),                             # label embedding table
    ]
    keys = jax.random.split(key, len(names_shapes))
    return {n: 0.1 * jax.random.normal(k, s, jnp.float32)
            for (n, s), k in zip(names_shapes, keys)}


def _pad_batch(x, Bp):
    B = x.shape[0]
    if B == Bp:
        return x
    pad = [(0, Bp - B)] + [(0, 0)] * (x.ndim - 1)
    return jnp.pad(x, pad)


def seq2kv_decoder_forward(enc, hidden, cell, enc_mask, kmask, vmask, kemb, vemb, w,
                           *, decode_max_seq_len, eos_id, sparce_rate):
    B, Se, He = enc.shape
    Hd = hidden.shape[0] * hidden.shape[2]
    Ed = w["emb"].shape[1]
    N = w["m2w"].shape[1]
    Ke, Md = kemb.shape[1], kemb.shape[2]
    Ve = vemb.shape[1]
    Sd = decode_max_seq_len
    bf16 = jnp.bfloat16

    # replicate torch's (De,B,He) -> (B,1,De*He) -> (1,B,Hd) reshuffle, flattened to [B, Hd]
    h0 = jnp.transpose(hidden, (1, 0, 2)).reshape(B, Hd)
    c0 = jnp.transpose(cell, (1, 0, 2)).reshape(B, Hd)

    # Pad the batch to a multiple of 8 (sublane width) for full vreg occupancy;
    # padded rows are all-zero (eps clamps keep them NaN-free) and sliced away below.
    Bp = ((B + 7) // 8) * 8
    enc_p, h0_p, c0_p = _pad_batch(enc, Bp), _pad_batch(h0, Bp), _pad_batch(c0, Bp)
    encmask_p = _pad_batch(enc_mask, Bp)
    kmask_p, vmask_p = _pad_batch(kmask, Bp), _pad_batch(vmask, Bp)
    kemb_p, vemb_p = _pad_batch(kemb, Bp), _pad_batch(vemb, Bp)

    # Fuse the 4 recurrent gate matmuls into one [Hd, 4*Hd] (gate order i,f,g,o).
    wh_f = jnp.concatenate([w["whi"], w["whf"], w["whg"], w["who"]], axis=1).astype(bf16)
    b_f = jnp.concatenate([w["bi"], w["bf"], w["bg"], w["bo"]], axis=1)
    # Fuse _dense_net and _read_memory projections of h into one matmul.
    qm_w = jnp.concatenate([w["dnw"], w["rmw"]], axis=1).astype(bf16)
    qm_b = jnp.concatenate([w["dnb"], w["rmb"]], axis=1)
    # Split MLP layer-1 weight so the kernel avoids a lane concat of [m1, m2].
    m1w_a = w["m1w"][:Hd, :].astype(bf16)
    m1w_b = w["m1w"][Hd:, :].astype(bf16)
    m2w = w["m2w"].astype(bf16)
    # Pre-fuse the SelfAttentiveSum key projection with the label embedding table.
    emb_bf = w["emb"].astype(bf16)
    emb_akw = jnp.dot(w["emb"], w["akw"]).astype(bf16)

    kernel = _make_kernel(Bp, Se, He, Hd, Ed, N, Sd, Ke, Ve, Md, eos_id, sparce_rate)

    out_shapes = (
        jax.ShapeDtypeStruct((Sd, Bp, N), jnp.float32),  # per-step logits (lane-dense store)
        jax.ShapeDtypeStruct((Bp, Sd, 1), jnp.int32),    # next_input_ids
        jax.ShapeDtypeStruct((Bp, Ke), jnp.float32),     # key_similars
        jax.ShapeDtypeStruct((Bp, Ve), jnp.float32),     # value_similars
    )
    vspec = pl.BlockSpec(memory_space=pltpu.MemorySpace.VMEM)
    fn = pl.pallas_call(
        kernel,
        out_shape=out_shapes,
        in_specs=[vspec] * 20,
        out_specs=(vspec, vspec, vspec, vspec),
        # TODO(synk): for production shapes compute this from the actual tile
        # sizes (and keep it under ~48 MiB on v7x's 64 MiB VMEM).
        compiler_params=pltpu.CompilerParams(vmem_limit_bytes=32 * 1024 * 1024),
    )
    # TODO(synk): for large production batches add grid=(pl.cdiv(B, tb),) with
    #   dimension_semantics=("parallel",) so v7x's two TensorCores split the batch.
    out_sbn, ids_bs1, ksim, vsim = fn(
        enc_p, h0_p, c0_p, encmask_p, kmask_p, vmask_p, kemb_p, vemb_p,
        wh_f, b_f, qm_w, qm_b,
        w["akv"],
        m1w_a, m1w_b, w["m1b"], w["m2w"].astype(bf16).dtype and m2w, w["m2b"],
        emb_bf, emb_akw)

    outputs = jnp.transpose(out_sbn, (1, 0, 2))[:B]      # [B, Sd, N]
    next_ids = ids_bs1[:B, :, 0]                         # [B, Sd]
    return outputs, next_ids, ksim[:B], vsim[:B]


if __name__ == "__main__":
    # B batch, Se encoder len, He encoder hidden (=Hd decoder hidden, De=1),
    # Ed label embedding dim, N output_size (#seq labels), Sd decode steps,
    # Ke/Ve memory key/value lengths, Md memory dim.
    B, Se, He, Ed, N, Sd, Ke, Ve, Md = 2, 8, 32, 16, 12, 6, 8, 8, 16
    Hd = He
    eos_id, sparce_rate = 2, 0.8

    key = jax.random.PRNGKey(0)
    k_in, k_w = jax.random.split(key)
    ks = jax.random.split(k_in, 8)

    enc = jax.random.normal(ks[0], (B, Se, He), jnp.float32)
    hidden = jax.random.normal(ks[1], (1, B, He), jnp.float32)   # De = 1
    cell = jax.random.normal(ks[2], (1, B, He), jnp.float32)
    lengths = jnp.array([Se, Se - 3], jnp.int32)
    enc_mask = (jnp.arange(Se)[None, :] < lengths[:, None]).astype(jnp.float32)
    kemb = jax.random.normal(ks[3], (B, Ke, Md), jnp.float32)
    vemb = jax.random.normal(ks[4], (B, Ve, Md), jnp.float32)
    kmask = jnp.ones((B, Ke), jnp.float32).at[1, -1].set(0.0)
    vmask = jnp.ones((B, Ve), jnp.float32).at[0, -2:].set(0.0)

    w = init_weights(k_w, He, Hd, Ed, N, Md)

    outs = seq2kv_decoder_forward(enc, hidden, cell, enc_mask, kmask, vmask,
                                  kemb, vemb, w,
                                  decode_max_seq_len=Sd, eos_id=eos_id,
                                  sparce_rate=sparce_rate)
    outputs, next_ids, key_sims, value_sims = jax.block_until_ready(outs)

    assert outputs.shape == (B, Sd, N)
    assert next_ids.shape == (B, Sd)
    assert key_sims.shape == (B, Ke)
    assert value_sims.shape == (B, Ve)
    assert bool(jnp.all(jnp.isfinite(outputs)))
    print("KERNEL_OK")
</pallas_src>

<mosaic_0001>
module attributes {stable_mosaic.version = 11 : i64} {
  func.func @kernel(%arg0: memref<8x8x32xf32, #tpu.memory_space<vmem>>, %arg1: memref<8x32xf32, #tpu.memory_space<vmem>>, %arg2: memref<8x32xf32, #tpu.memory_space<vmem>>, %arg3: memref<8x8xf32, #tpu.memory_space<vmem>>, %arg4: memref<8x8xf32, #tpu.memory_space<vmem>>, %arg5: memref<8x8xf32, #tpu.memory_space<vmem>>, %arg6: memref<8x8x16xf32, #tpu.memory_space<vmem>>, %arg7: memref<8x8x16xf32, #tpu.memory_space<vmem>>, %arg8: memref<32x128xbf16, #tpu.memory_space<vmem>>, %arg9: memref<1x128xf32, #tpu.memory_space<vmem>>, %arg10: memref<32x48xbf16, #tpu.memory_space<vmem>>, %arg11: memref<1x48xf32, #tpu.memory_space<vmem>>, %arg12: memref<1x16xf32, #tpu.memory_space<vmem>>, %arg13: memref<32x48xbf16, #tpu.memory_space<vmem>>, %arg14: memref<16x48xbf16, #tpu.memory_space<vmem>>, %arg15: memref<1x48xf32, #tpu.memory_space<vmem>>, %arg16: memref<48x12xbf16, #tpu.memory_space<vmem>>, %arg17: memref<1x12xf32, #tpu.memory_space<vmem>>, %arg18: memref<12x16xbf16, #tpu.memory_space<vmem>>, %arg19: memref<12x16xbf16, #tpu.memory_space<vmem>>, %arg20: memref<6x8x12xf32, #tpu.memory_space<vmem>>, %arg21: memref<8x6x1xi32, #tpu.memory_space<vmem>>, %arg22: memref<8x8xf32, #tpu.memory_space<vmem>>, %arg23: memref<8x8xf32, #tpu.memory_space<vmem>>) attributes {dimension_semantics = [], scalar_prefetch = 0 : i64, scratch_operands = 0 : i64, tpu.core_type = #tpu.core_type<tc>} {
    %c0 = arith.constant 0 : index
    %c0_0 = arith.constant 0 : index
    %c0_1 = arith.constant 0 : index
    %0 = vector.load %arg0[%c0, %c0_0, %c0_1] : memref<8x8x32xf32, #tpu.memory_space<vmem>>, vector<8x8x32xf32>
    %c0_2 = arith.constant 0 : index
    %c0_3 = arith.constant 0 : index
    %1 = vector.load %arg3[%c0_2, %c0_3] : memref<8x8xf32, #tpu.memory_space<vmem>>, vector<8x8xf32>
    %c0_4 = arith.constant 0 : index
    %c0_5 = arith.constant 0 : index
    %c0_6 = arith.constant 0 : index
    %2 = vector.load %arg6[%c0_4, %c0_5, %c0_6] : memref<8x8x16xf32, #tpu.memory_space<vmem>>, vector<8x8x16xf32>
    %c0_7 = arith.constant 0 : index
    %c0_8 = arith.constant 0 : index
    %c0_9 = arith.constant 0 : index
    %3 = vector.load %arg7[%c0_7, %c0_8, %c0_9] : memref<8x8x16xf32, #tpu.memory_space<vmem>>, vector<8x8x16xf32>
    %c0_10 = arith.constant 0 : index
    %c0_11 = arith.constant 0 : index
    %4 = vector.load %arg18[%c0_10, %c0_11] : memref<12x16xbf16, #tpu.memory_space<vmem>>, vector<12x16xbf16>
    %c0_12 = arith.constant 0 : index
    %c0_13 = arith.constant 0 : index
    %5 = vector.load %arg19[%c0_12, %c0_13] : memref<12x16xbf16, #tpu.memory_space<vmem>>, vector<12x16xbf16>
    %c0_14 = arith.constant 0 : index
    %c0_15 = arith.constant 0 : index
    %6 = vector.load %arg8[%c0_14, %c0_15] : memref<32x128xbf16, #tpu.memory_space<vmem>>, vector<32x128xbf16>
    %c0_16 = arith.constant 0 : index
    %c0_17 = arith.constant 0 : index
    %7 = vector.load %arg10[%c0_16, %c0_17] : memref<32x48xbf16, #tpu.memory_space<vmem>>, vector<32x48xbf16>
    %c0_18 = arith.constant 0 : index
    %c0_19 = arith.constant 0 : index
    %8 = vector.load %arg13[%c0_18, %c0_19] : memref<32x48xbf16, #tpu.memory_space<vmem>>, vector<32x48xbf16>
    %c0_20 = arith.constant 0 : index
    %c0_21 = arith.constant 0 : index
    %9 = vector.load %arg14[%c0_20, %c0_21] : memref<16x48xbf16, #tpu.memory_space<vmem>>, vector<16x48xbf16>
    %c0_22 = arith.constant 0 : index
    %c0_23 = arith.constant 0 : index
    %10 = vector.load %arg16[%c0_22, %c0_23] : memref<48x12xbf16, #tpu.memory_space<vmem>>, vector<48x12xbf16>
    %c0_24 = arith.constant 0 : index
    %c0_25 = arith.constant 0 : index
    %11 = vector.load %arg9[%c0_24, %c0_25] : memref<1x128xf32, #tpu.memory_space<vmem>>, vector<1x128xf32>
    %12 = vector.shape_cast %11 : vector<1x128xf32> to vector<1x128xf32>
    %13 = vector.broadcast %12 : vector<1x128xf32> to vector<8x128xf32>
    %c0_26 = arith.constant 0 : index
    %c0_27 = arith.constant 0 : index
    %14 = vector.load %arg11[%c0_26, %c0_27] : memref<1x48xf32, #tpu.memory_space<vmem>>, vector<1x48xf32>
    %15 = vector.shape_cast %14 : vector<1x48xf32> to vector<1x48xf32>
    %16 = vector.broadcast %15 : vector<1x48xf32> to vector<8x48xf32>
    %c0_28 = arith.constant 0 : index
    %c0_29 = arith.constant 0 : index
    %17 = vector.load %arg15[%c0_28, %c0_29] : memref<1x48xf32, #tpu.memory_space<vmem>>, vector<1x48xf32>
    %18 = vector.shape_cast %17 : vector<1x48xf32> to vector<1x48xf32>
    %19 = vector.broadcast %18 : vector<1x48xf32> to vector<8x48xf32>
    %c0_30 = arith.constant 0 : index
    %c0_31 = arith.constant 0 : index
    %20 = vector.load %arg17[%c0_30, %c0_31] : memref<1x12xf32, #tpu.memory_space<vmem>>, vector<1x12xf32>
    %21 = vector.shape_cast %20 : vector<1x12xf32> to vector<1x12xf32>
    %22 = vector.broadcast %21 : vector<1x12xf32> to vector<8x12xf32>
    %c0_32 = arith.constant 0 : index
    %c0_33 = arith.constant 0 : index
    %23 = vector.load %arg12[%c0_32, %c0_33] : memref<1x16xf32, #tpu.memory_space<vmem>>, vector<1x16xf32>
    %24 = vector.shape_cast %23 : vector<1x16xf32> to vector<1x16xf32>
    %25 = vector.broadcast %24 : vector<1x16xf32> to vector<8x16xf32>
    %cst = arith.constant 1.000000e+00 : f32
    %26 = vector.broadcast %cst : f32 to vector<8x8xf32>
    %27 = arith.subf %26, %1 : vector<8x8xf32>
    %cst_34 = arith.constant -1.000000e+07 : f32
    %28 = vector.broadcast %cst_34 : f32 to vector<8x8xf32>
    %29 = arith.mulf %27, %28 : vector<8x8xf32>
    %30 = vector.extract_strided_slice %0 {offsets = [0, 0, 0], sizes = [8, 1, 32], strides = [1, 1, 1]} : vector<8x8x32xf32> to vector<8x1x32xf32>
    %31 = vector.shape_cast %30 : vector<8x1x32xf32> to vector<8x32xf32>
    %32 = arith.mulf %2, %2 : vector<8x8x16xf32>
    %cst_35 = arith.constant dense<0.000000e+00> : vector<8x8xf32>
    %33 = vector.multi_reduction <add>, %32, %cst_35 [2] : vector<8x8x16xf32> to vector<8x8xf32>
    %cst_36 = arith.constant 1.000000e-16 : f32
    %34 = vector.broadcast %cst_36 : f32 to vector<8x8xf32>
    %35 = arith.maximumf %33, %34 : vector<8x8xf32>
    %36 = math.rsqrt %35 : vector<8x8xf32>
    %37 = tpu.iota {dimensions = array<i32: 1>} : vector<8x12xi32>
    %c0_37 = arith.constant 0 : index
    %c0_38 = arith.constant 0 : index
    %38 = vector.load %arg1[%c0_37, %c0_38] : memref<8x32xf32, #tpu.memory_space<vmem>>, vector<8x32xf32>
    %c0_39 = arith.constant 0 : index
    %c0_40 = arith.constant 0 : index
    %39 = vector.load %arg2[%c0_39, %c0_40] : memref<8x32xf32, #tpu.memory_space<vmem>>, vector<8x32xf32>
    %cst_41 = arith.constant 0.000000e+00 : f32
    %40 = vector.broadcast %cst_41 : f32 to vector<8x16xf32>
    %cst_42 = arith.constant 0.000000e+00 : f32
    %41 = vector.broadcast %cst_42 : f32 to vector<8x12xf32>
    %cst_43 = arith.constant -2.000000e+00 : f32
    %42 = vector.broadcast %cst_43 : f32 to vector<8x8xf32>
    %cst_44 = arith.constant -1.000000e+30 : f32
    %43 = vector.broadcast %cst_44 : f32 to vector<8x1xf32>
    %cst_45 = arith.constant 0.000000e+00 : f32
    %44 = vector.broadcast %cst_45 : f32 to vector<8x1xf32>
    %cst_46 = arith.constant 0.000000e+00 : f32
    %45 = vector.broadcast %cst_46 : f32 to vector<8x16xf32>
    %c0_i32 = arith.constant 0 : i32
    %46 = arith.truncf %38 : vector<8x32xf32> to vector<8x32xbf16>
    %cst_47 = arith.constant dense<0.000000e+00> : vector<8x128xf32>
    %47 = tpu.matmul %46, %6, %cst_47 {dimension_numbers = #tpu.dot_dimension_numbers<[1], [0], [0], [1], [0, 0, 1, 1], [], []>} : vector<8x32xbf16>, vector<32x128xbf16>, vector<8x128xf32> -> vector<8x128xf32>
    %48 = arith.addf %47, %13 : vector<8x128xf32>
    %49 = vector.extract_strided_slice %48 {offsets = [0, 0], sizes = [8, 32], strides = [1, 1]} : vector<8x128xf32> to vector<8x32xf32>
    %cst_48 = arith.constant 5.000000e-01 : f32
    %50 = vector.broadcast %cst_48 : f32 to vector<8x32xf32>
    %51 = arith.mulf %50, %49 : vector<8x32xf32>
    %52 = math.tanh %51 : vector<8x32xf32>
    %cst_49 = arith.constant 5.000000e-01 : f32
    %53 = vector.broadcast %cst_49 : f32 to vector<8x32xf32>
    %54 = arith.mulf %53, %52 : vector<8x32xf32>
    %cst_50 = arith.constant 5.000000e-01 : f32
    %55 = vector.broadcast %cst_50 : f32 to vector<8x32xf32>
    %56 = arith.addf %54, %55 : vector<8x32xf32>
    %57 = vector.extract_strided_slice %48 {offsets = [0, 32], sizes = [8, 32], strides = [1, 1]} : vector<8x128xf32> to vector<8x32xf32>
    %cst_51 = arith.constant 5.000000e-01 : f32
    %58 = vector.broadcast %cst_51 : f32 to vector<8x32xf32>
    %59 = arith.mulf %58, %57 : vector<8x32xf32>
    %60 = math.tanh %59 : vector<8x32xf32>
    %cst_52 = arith.constant 5.000000e-01 : f32
    %61 = vector.broadcast %cst_52 : f32 to vector<8x32xf32>
    %62 = arith.mulf %61, %60 : vector<8x32xf32>
    %cst_53 = arith.constant 5.000000e-01 : f32
    %63 = vector.broadcast %cst_53 : f32 to vector<8x32xf32>
    %64 = arith.addf %62, %63 : vector<8x32xf32>
    %65 = vector.extract_strided_slice %48 {offsets = [0, 64], sizes = [8, 32], strides = [1, 1]} : vector<8x128xf32> to vector<8x32xf32>
    %66 = math.tanh %65 : vector<8x32xf32>
    %67 = vector.extract_strided_slice %48 {offsets = [0, 96], sizes = [8, 32], strides = [1, 1]} : vector<8x128xf32> to vector<8x32xf32>
    %cst_54 = arith.constant 5.000000e-01 : f32
    %68 = vector.broadcast %cst_54 : f32 to vector<8x32xf32>
    %69 = arith.mulf %68, %67 : vector<8x32xf32>
    %70 = math.tanh %69 : vector<8x32xf32>
    %cst_55 = arith.constant 5.000000e-01 : f32
    %71 = vector.broadcast %cst_55 : f32 to vector<8x32xf32>
    %72 = arith.mulf %71, %70 : vector<8x32xf32>
    %cst_56 = arith.constant 5.000000e-01 : f32
    %73 = vector.broadcast %cst_56 : f32 to vector<8x32xf32>
    %74 = arith.addf %72, %73 : vector<8x32xf32>
    %75 = arith.mulf %64, %39 : vector<8x32xf32>
    %76 = arith.mulf %56, %66 : vector<8x32xf32>
    %77 = arith.addf %75, %76 : vector<8x32xf32>
    %78 = math.tanh %77 : vector<8x32xf32>
    %79 = arith.mulf %74, %78 : vector<8x32xf32>
    %80 = arith.truncf %79 : vector<8x32xf32> to vector<8x32xbf16>
    %cst_57 = arith.constant dense<0.000000e+00> : vector<8x48xf32>
    %81 = tpu.matmul %80, %7, %cst_57 {dimension_numbers = #tpu.dot_dimension_numbers<[1], [0], [0], [1], [0, 0, 1, 1], [], []>} : vector<8x32xbf16>, vector<32x48xbf16>, vector<8x48xf32> -> vector<8x48xf32>
    %82 = arith.addf %81, %16 : vector<8x48xf32>
    %83 = vector.extract_strided_slice %82 {offsets = [0, 0], sizes = [8, 32], strides = [1, 1]} : vector<8x48xf32> to vector<8x32xf32>
    %84 = vector.extract_strided_slice %82 {offsets = [0, 32], sizes = [8, 16], strides = [1, 1]} : vector<8x48xf32> to vector<8x16xf32>
    %85 = vector.shape_cast %83 : vector<8x32xf32> to vector<8x1x32xf32>
    %86 = vector.broadcast %85 : vector<8x1x32xf32> to vector<8x8x32xf32>
    %87 = arith.mulf %0, %86 : vector<8x8x32xf32>
    %cst_58 = arith.constant dense<0.000000e+00> : vector<8x8xf32>
    %88 = vector.multi_reduction <add>, %87, %cst_58 [2] : vector<8x8x32xf32> to vector<8x8xf32>
    %89 = arith.addf %88, %29 : vector<8x8xf32>
    %cst_59 = arith.constant dense<0xFF800000> : vector<8xf32>
    %90 = vector.multi_reduction <maximumf>, %89, %cst_59 [1] : vector<8x8xf32> to vector<8xf32>
    %91 = vector.shape_cast %90 : vector<8xf32> to vector<8x1xf32>
    %92 = vector.broadcast %91 : vector<8x1xf32> to vector<8x8xf32>
    %93 = arith.subf %89, %92 : vector<8x8xf32>
    %94 = math.exp %93 : vector<8x8xf32>
    %cst_60 = arith.constant dense<0.000000e+00> : vector<8xf32>
    %95 = vector.multi_reduction <add>, %94, %cst_60 [1] : vector<8x8xf32> to vector<8xf32>
    %96 = vector.shape_cast %95 : vector<8xf32> to vector<8x1xf32>
    %97 = tpu.reciprocal %96 {approx = true} : vector<8x1xf32> -> vector<8x1xf32>
    %98 = vector.broadcast %97 : vector<8x1xf32> to vector<8x8xf32>
    %99 = arith.mulf %94, %98 : vector<8x8xf32>
    %100 = vector.shape_cast %99 : vector<8x8xf32> to vector<8x8x1xf32>
    %101 = vector.broadcast %100 : vector<8x8x1xf32> to vector<8x8x32xf32>
    %102 = arith.mulf %0, %101 : vector<8x8x32xf32>
    %cst_61 = arith.constant dense<0.000000e+00> : vector<8x32xf32>
    %103 = vector.multi_reduction <add>, %102, %cst_61 [1] : vector<8x8x32xf32> to vector<8x32xf32>
    %cst_62 = arith.constant 9.99999968E-21 : f32
    %104 = vector.broadcast %cst_62 : f32 to vector<8x1xf32>
    %105 = arith.maximumf %44, %104 : vector<8x1xf32>
    %106 = tpu.reciprocal %105 {approx = true} : vector<8x1xf32> -> vector<8x1xf32>
    %107 = vector.broadcast %106 : vector<8x1xf32> to vector<8x16xf32>
    %108 = arith.mulf %45, %107 : vector<8x16xf32>
    %109 = arith.addf %31, %103 : vector<8x32xf32>
    %110 = arith.truncf %109 : vector<8x32xf32> to vector<8x32xbf16>
    %111 = arith.addf %40, %108 : vector<8x16xf32>
    %112 = arith.truncf %111 : vector<8x16xf32> to vector<8x16xbf16>
    %cst_63 = arith.constant dense<0.000000e+00> : vector<8x48xf32>
    %113 = tpu.matmul %110, %8, %cst_63 {dimension_numbers = #tpu.dot_dimension_numbers<[1], [0], [0], [1], [0, 0, 1, 1], [], []>} : vector<8x32xbf16>, vector<32x48xbf16>, vector<8x48xf32> -> vector<8x48xf32>
    %cst_64 = arith.constant dense<0.000000e+00> : vector<8x48xf32>
    %114 = tpu.matmul %112, %9, %cst_64 {dimension_numbers = #tpu.dot_dimension_numbers<[1], [0], [0], [1], [0, 0, 1, 1], [], []>} : vector<8x16xbf16>, vector<16x48xbf16>, vector<8x48xf32> -> vector<8x48xf32>
    %115 = arith.addf %113, %114 : vector<8x48xf32>
    %116 = arith.addf %115, %19 : vector<8x48xf32>
    %cst_65 = arith.constant 0.000000e+00 : f32
    %117 = vector.broadcast %cst_65 : f32 to vector<8x48xf32>
    %118 = arith.maximumf %116, %117 : vector<8x48xf32>
    %119 = arith.truncf %118 : vector<8x48xf32> to vector<8x48xbf16>
    %cst_66 = arith.constant dense<0.000000e+00> : vector<8x12xf32>
    %120 = tpu.matmul %119, %10, %cst_66 {dimension_numbers = #tpu.dot_dimension_numbers<[1], [0], [0], [1], [0, 0, 1, 1], [], []>} : vector<8x48xbf16>, vector<48x12xbf16>, vector<8x12xf32> -> vector<8x12xf32>
    %121 = arith.addf %120, %22 : vector<8x12xf32>
    %122 = arith.addf %121, %41 : vector<8x12xf32>
    %cst_67 = arith.constant dense<0xFF800000> : vector<8xf32>
    %123 = vector.multi_reduction <maximumf>, %122, %cst_67 [1] : vector<8x12xf32> to vector<8xf32>
    %124 = vector.shape_cast %123 : vector<8xf32> to vector<8x1xf32>
    %125 = vector.broadcast %124 : vector<8x1xf32> to vector<8x12xf32>
    %126 = arith.cmpf oeq, %122, %125 : vector<8x12xf32>
    %c12_i32 = arith.constant 12 : i32
    %127 = vector.broadcast %c12_i32 : i32 to vector<8x12xi32>
    %128 = arith.select %126, %37, %127 : vector<8x12xi1>, vector<8x12xi32>
    %cst_68 = arith.constant dense<2147483647> : vector<8xi32>
    %129 = vector.multi_reduction <minsi>, %128, %cst_68 [1] : vector<8x12xi32> to vector<8xi32>
    %130 = vector.shape_cast %129 : vector<8xi32> to vector<8x1xi32>
    %131 = vector.broadcast %130 : vector<8x1xi32> to vector<8x12xi32>
    %132 = arith.cmpi eq, %37, %131 : vector<8x12xi32>
    %133 = arith.extui %132 : vector<8x12xi1> to vector<8x12xi32>
    %134 = arith.sitofp %133 : vector<8x12xi32> to vector<8x12xf32>
    %cst_69 = arith.constant dense<0xFF800000> : vector<8xf32>
    %135 = vector.multi_reduction <maximumf>, %122, %cst_69 [1] : vector<8x12xf32> to vector<8xf32>
    %136 = vector.shape_cast %135 : vector<8xf32> to vector<8x1xf32>
    %137 = vector.broadcast %136 : vector<8x1xf32> to vector<8x12xf32>
    %138 = arith.subf %122, %137 : vector<8x12xf32>
    %139 = math.exp %138 : vector<8x12xf32>
    %cst_70 = arith.constant dense<0.000000e+00> : vector<8xf32>
    %140 = vector.multi_reduction <add>, %139, %cst_70 [1] : vector<8x12xf32> to vector<8xf32>
    %141 = vector.shape_cast %140 : vector<8xf32> to vector<8x1xf32>
    %142 = tpu.reciprocal %141 {approx = true} : vector<8x1xf32> -> vector<8x1xf32>
    %143 = vector.broadcast %142 : vector<8x1xf32> to vector<8x12xf32>
    %144 = arith.mulf %139, %143 : vector<8x12xf32>
    %145 = arith.addf %144, %134 : vector<8x12xf32>
    %146 = arith.truncf %145 : vector<8x12xf32> to vector<8x12xbf16>
    %cst_71 = arith.constant dense<0.000000e+00> : vector<8x16xf32>
    %147 = tpu.matmul %146, %4, %cst_71 {dimension_numbers = #tpu.dot_dimension_numbers<[1], [0], [0], [1], [0, 0, 1, 1], [], []>} : vector<8x12xbf16>, vector<12x16xbf16>, vector<8x16xf32> -> vector<8x16xf32>
    %148 = vector.shape_cast %122 : vector<8x12xf32> to vector<1x8x12xf32>
    %149 = arith.index_cast %c0_i32 : i32 to index
    %c0_72 = arith.constant 0 : index
    %c0_73 = arith.constant 0 : index
    %150 = vector.load %arg20[%149, %c0_72, %c0_73] : memref<6x8x12xf32, #tpu.memory_space<vmem>>, vector<1x8x12xf32>
    tpu.vector_store %arg20[%149, %c0_72, %c0_73], %148 {strides = array<i32>} : memref<6x8x12xf32, #tpu.memory_space<vmem>>, vector<1x8x12xf32>,
    %151 = vector.shape_cast %130 : vector<8x1xi32> to vector<8x1x1xi32>
    %c0_74 = arith.constant 0 : index
    %152 = arith.index_cast %c0_i32 : i32 to index
    %c0_75 = arith.constant 0 : index
    %153 = vector.load %arg21[%c0_74, %152, %c0_75] : memref<8x6x1xi32, #tpu.memory_space<vmem>>, vector<8x1x1xi32>
    tpu.vector_store %arg21[%c0_74, %152, %c0_75], %151 {strides = array<i32>} : memref<8x6x1xi32, #tpu.memory_space<vmem>>, vector<8x1x1xi32>,
    %cst_76 = arith.constant 0.000000e+00 : f32
    %154 = vector.broadcast %cst_76 : f32 to vector<8x12xf32>
    %155 = arith.cmpf ogt, %134, %154 : vector<8x12xf32>
    %cst_77 = arith.constant -1.000000e+07 : f32
    %156 = vector.broadcast %cst_77 : f32 to vector<8x12xf32>
    %157 = arith.select %155, %156, %41 : vector<8x12xi1>, vector<8x12xf32>
    %c2_i32 = arith.constant 2 : i32
    %158 = vector.broadcast %c2_i32 : i32 to vector<8x12xi32>
    %159 = arith.cmpi eq, %37, %158 : vector<8x12xi32>
    %cst_78 = arith.constant 0.000000e+00 : f32
    %160 = vector.broadcast %cst_78 : f32 to vector<8x12xf32>
    %161 = arith.select %159, %160, %157 : vector<8x12xi1>, vector<8x12xf32>
    %cst_79 = arith.constant dense<0.000000e+00> : vector<8x16xf32>
    %162 = tpu.matmul %146, %5, %cst_79 {dimension_numbers = #tpu.dot_dimension_numbers<[1], [0], [0], [1], [0, 0, 1, 1], [], []>} : vector<8x12xbf16>, vector<12x16xbf16>, vector<8x16xf32> -> vector<8x16xf32>
    %163 = math.tanh %162 : vector<8x16xf32>
    %164 = arith.mulf %163, %25 : vector<8x16xf32>
    %cst_80 = arith.constant dense<0.000000e+00> : vector<8xf32>
    %165 = vector.multi_reduction <add>, %164, %cst_80 [1] : vector<8x16xf32> to vector<8xf32>
    %166 = vector.shape_cast %165 : vector<8xf32> to vector<8x1xf32>
    %167 = arith.maximumf %43, %166 : vector<8x1xf32>
    %168 = arith.subf %43, %167 : vector<8x1xf32>
    %169 = math.exp %168 : vector<8x1xf32>
    %170 = arith.subf %166, %167 : vector<8x1xf32>
    %171 = math.exp %170 : vector<8x1xf32>
    %172 = vector.broadcast %169 : vector<8x1xf32> to vector<8x16xf32>
    %173 = arith.mulf %172, %45 : vector<8x16xf32>
    %174 = vector.broadcast %171 : vector<8x1xf32> to vector<8x16xf32>
    %175 = arith.mulf %174, %147 : vector<8x16xf32>
    %176 = arith.addf %173, %175 : vector<8x16xf32>
    %177 = arith.mulf %169, %44 : vector<8x1xf32>
    %178 = arith.addf %177, %171 : vector<8x1xf32>
    %179 = vector.shape_cast %84 : vector<8x16xf32> to vector<8x1x16xf32>
    %180 = vector.broadcast %179 : vector<8x1x16xf32> to vector<8x8x16xf32>
    %181 = arith.mulf %180, %2 : vector<8x8x16xf32>
    %cst_81 = arith.constant dense<0.000000e+00> : vector<8x8xf32>
    %182 = vector.multi_reduction <add>, %181, %cst_81 [2] : vector<8x8x16xf32> to vector<8x8xf32>
    %183 = arith.mulf %84, %84 : vector<8x16xf32>
    %cst_82 = arith.constant dense<0.000000e+00> : vector<8xf32>
    %184 = vector.multi_reduction <add>, %183, %cst_82 [1] : vector<8x16xf32> to vector<8xf32>
    %185 = vector.shape_cast %184 : vector<8xf32> to vector<8x1xf32>
    %cst_83 = arith.constant 1.000000e-16 : f32
    %186 = vector.broadcast %cst_83 : f32 to vector<8x1xf32>
    %187 = arith.maximumf %185, %186 : vector<8x1xf32>
    %188 = math.rsqrt %187 : vector<8x1xf32>
    %189 = vector.broadcast %188 : vector<8x1xf32> to vector<8x8xf32>
    %190 = arith.mulf %182, %189 : vector<8x8xf32>
    %191 = arith.mulf %190, %36 : vector<8x8xf32>
    %192 = arith.maximumf %42, %191 : vector<8x8xf32>
    %c1_i32 = arith.constant 1 : i32
    %193 = arith.truncf %79 : vector<8x32xf32> to vector<8x32xbf16>
    %cst_84 = arith.constant dense<0.000000e+00> : vector<8x128xf32>
    %194 = tpu.matmul %193, %6, %cst_84 {dimension_numbers = #tpu.dot_dimension_numbers<[1], [0], [0], [1], [0, 0, 1, 1], [], []>} : vector<8x32xbf16>, vector<32x128xbf16>, vector<8x128xf32> -> vector<8x128xf32>
    %195 = arith.addf %194, %13 : vector<8x128xf32>
    %196 = vector.extract_strided_slice %195 {offsets = [0, 0], sizes = [8, 32], strides = [1, 1]} : vector<8x128xf32> to vector<8x32xf32>
    %cst_85 = arith.constant 5.000000e-01 : f32
    %197 = vector.broadcast %cst_85 : f32 to vector<8x32xf32>
    %198 = arith.mulf %197, %196 : vector<8x32xf32>
    %199 = math.tanh %198 : vector<8x32xf32>
    %cst_86 = arith.constant 5.000000e-01 : f32
    %200 = vector.broadcast %cst_86 : f32 to vector<8x32xf32>
    %201 = arith.mulf %200, %199 : vector<8x32xf32>
    %cst_87 = arith.constant 5.000000e-01 : f32
    %202 = vector.broadcast %cst_87 : f32 to vector<8x32xf32>
    %203 = arith.addf %201, %202 : vector<8x32xf32>
    %204 = vector.extract_strided_slice %195 {offsets = [0, 32], sizes = [8, 32], strides = [1, 1]} : vector<8x128xf32> to vector<8x32xf32>
    %cst_88 = arith.constant 5.000000e-01 : f32
    %205 = vector.broadcast %cst_88 : f32 to vector<8x32xf32>
    %206 = arith.mulf %205, %204 : vector<8x32xf32>
    %207 = math.tanh %206 : vector<8x32xf32>
    %cst_89 = arith.constant 5.000000e-01 : f32
    %208 = vector.broadcast %cst_89 : f32 to vector<8x32xf32>
    %209 = arith.mulf %208, %207 : vector<8x32xf32>
    %cst_90 = arith.constant 5.000000e-01 : f32
    %210 = vector.broadcast %cst_90 : f32 to vector<8x32xf32>
    %211 = arith.addf %209, %210 : vector<8x32xf32>
    %212 = vector.extract_strided_slice %195 {offsets = [0, 64], sizes = [8, 32], strides = [1, 1]} : vector<8x128xf32> to vector<8x32xf32>
    %213 = math.tanh %212 : vector<8x32xf32>
    %214 = vector.extract_strided_slice %195 {offsets = [0, 96], sizes = [8, 32], strides = [1, 1]} : vector<8x128xf32> to vector<8x32xf32>
    %cst_91 = arith.constant 5.000000e-01 : f32
    %215 = vector.broadcast %cst_91 : f32 to vector<8x32xf32>
    %216 = arith.mulf %215, %214 : vector<8x32xf32>
    %217 = math.tanh %216 : vector<8x32xf32>
    %cst_92 = arith.constant 5.000000e-01 : f32
    %218 = vector.broadcast %cst_92 : f32 to vector<8x32xf32>
    %219 = arith.mulf %218, %217 : vector<8x32xf32>
    %cst_93 = arith.constant 5.000000e-01 : f32
    %220 = vector.broadcast %cst_93 : f32 to vector<8x32xf32>
    %221 = arith.addf %219, %220 : vector<8x32xf32>
    %222 = arith.mulf %211, %77 : vector<8x32xf32>
    %223 = arith.mulf %203, %213 : vector<8x32xf32>
    %224 = arith.addf %222, %223 : vector<8x32xf32>
    %225 = math.tanh %224 : vector<8x32xf32>
    %226 = arith.mulf %221, %225 : vector<8x32xf32>
    %227 = arith.truncf %226 : vector<8x32xf32> to vector<8x32xbf16>
    %cst_94 = arith.constant dense<0.000000e+00> : vector<8x48xf32>
    %228 = tpu.matmul %227, %7, %cst_94 {dimension_numbers = #tpu.dot_dimension_numbers<[1], [0], [0], [1], [0, 0, 1, 1], [], []>} : vector<8x32xbf16>, vector<32x48xbf16>, vector<8x48xf32> -> vector<8x48xf32>
    %229 = arith.addf %228, %16 : vector<8x48xf32>
    %230 = vector.extract_strided_slice %229 {offsets = [0, 0], sizes = [8, 32], strides = [1, 1]} : vector<8x48xf32> to vector<8x32xf32>
    %231 = vector.extract_strided_slice %229 {offsets = [0, 32], sizes = [8, 16], strides = [1, 1]} : vector<8x48xf32> to vector<8x16xf32>
    %232 = vector.shape_cast %230 : vector<8x32xf32> to vector<8x1x32xf32>
    %233 = vector.broadcast %232 : vector<8x1x32xf32> to vector<8x8x32xf32>
    %234 = arith.mulf %0, %233 : vector<8x8x32xf32>
    %cst_95 = arith.constant dense<0.000000e+00> : vector<8x8xf32>
    %235 = vector.multi_reduction <add>, %234, %cst_95 [2] : vector<8x8x32xf32> to vector<8x8xf32>
    %236 = arith.addf %235, %29 : vector<8x8xf32>
    %cst_96 = arith.constant dense<0xFF800000> : vector<8xf32>
    %237 = vector.multi_reduction <maximumf>, %236, %cst_96 [1] : vector<8x8xf32> to vector<8xf32>
    %238 = vector.shape_cast %237 : vector<8xf32> to vector<8x1xf32>
    %239 = vector.broadcast %238 : vector<8x1xf32> to vector<8x8xf32>
    %240 = arith.subf %236, %239 : vector<8x8xf32>
    %241 = math.exp %240 : vector<8x8xf32>
    %cst_97 = arith.constant dense<0.000000e+00> : vector<8xf32>
    %242 = vector.multi_reduction <add>, %241, %cst_97 [1] : vector<8x8xf32> to vector<8xf32>
    %243 = vector.shape_cast %242 : vector<8xf32> to vector<8x1xf32>
    %244 = tpu.reciprocal %243 {approx = true} : vector<8x1xf32> -> vector<8x1xf32>
    %245 = vector.broadcast %244 : vector<8x1xf32> to vector<8x8xf32>
    %246 = arith.mulf %241, %245 : vector<8x8xf32>
    %247 = vector.shape_cast %246 : vector<8x8xf32> to vector<8x8x1xf32>
    %248 = vector.broadcast %247 : vector<8x8x1xf32> to vector<8x8x32xf32>
    %249 = arith.mulf %0, %248 : vector<8x8x32xf32>
    %cst_98 = arith.constant dense<0.000000e+00> : vector<8x32xf32>
    %250 = vector.multi_reduction <add>, %249, %cst_98 [1] : vector<8x8x32xf32> to vector<8x32xf32>
    %cst_99 = arith.constant 9.99999968E-21 : f32
    %251 = vector.broadcast %cst_99 : f32 to vector<8x1xf32>
    %252 = arith.maximumf %178, %251 : vector<8x1xf32>
    %253 = tpu.reciprocal %252 {approx = true} : vector<8x1xf32> -> vector<8x1xf32>
    %254 = vector.broadcast %253 : vector<8x1xf32> to vector<8x16xf32>
    %255 = arith.mulf %176, %254 : vector<8x16xf32>
    %256 = arith.addf %31, %250 : vector<8x32xf32>
    %257 = arith.truncf %256 : vector<8x32xf32> to vector<8x32xbf16>
    %258 = arith.addf %147, %255 : vector<8x16xf32>
    %259 = arith.truncf %258 : vector<8x16xf32> to vector<8x16xbf16>
    %cst_100 = arith.constant dense<0.000000e+00> : vector<8x48xf32>
    %260 = tpu.matmul %257, %8, %cst_100 {dimension_numbers = #tpu.dot_dimension_numbers<[1], [0], [0], [1], [0, 0, 1, 1], [], []>} : vector<8x32xbf16>, vector<32x48xbf16>, vector<8x48xf32> -> vector<8x48xf32>
    %cst_101 = arith.constant dense<0.000000e+00> : vector<8x48xf32>
    %261 = tpu.matmul %259, %9, %cst_101 {dimension_numbers = #tpu.dot_dimension_numbers<[1], [0], [0], [1], [0, 0, 1, 1], [], []>} : vector<8x16xbf16>, vector<16x48xbf16>, vector<8x48xf32> -> vector<8x48xf32>
    %262 = arith.addf %260, %261 : vector<8x48xf32>
    %263 = arith.addf %262, %19 : vector<8x48xf32>
    %cst_102 = arith.constant 0.000000e+00 : f32
    %264 = vector.broadcast %cst_102 : f32 to vector<8x48xf32>
    %265 = arith.maximumf %263, %264 : vector<8x48xf32>
    %266 = arith.truncf %265 : vector<8x48xf32> to vector<8x48xbf16>
    %cst_103 = arith.constant dense<0.000000e+00> : vector<8x12xf32>
    %267 = tpu.matmul %266, %10, %cst_103 {dimension_numbers = #tpu.dot_dimension_numbers<[1], [0], [0], [1], [0, 0, 1, 1], [], []>} : vector<8x48xbf16>, vector<48x12xbf16>, vector<8x12xf32> -> vector<8x12xf32>
    %268 = arith.addf %267, %22 : vector<8x12xf32>
    %269 = arith.addf %268, %161 : vector<8x12xf32>
    %cst_104 = arith.constant dense<0xFF800000> : vector<8xf32>
    %270 = vector.multi_reduction <maximumf>, %269, %cst_104 [1] : vector<8x12xf32> to vector<8xf32>
    %271 = vector.shape_cast %270 : vector<8xf32> to vector<8x1xf32>
    %272 = vector.broadcast %271 : vector<8x1xf32> to vector<8x12xf32>
    %273 = arith.cmpf oeq, %269, %272 : vector<8x12xf32>
    %c12_i32_105 = arith.constant 12 : i32
    %274 = vector.broadcast %c12_i32_105 : i32 to vector<8x12xi32>
    %275 = arith.select %273, %37, %274 : vector<8x12xi1>, vector<8x12xi32>
    %cst_106 = arith.constant dense<2147483647> : vector<8xi32>
    %276 = vector.multi_reduction <minsi>, %275, %cst_106 [1] : vector<8x12xi32> to vector<8xi32>
    %277 = vector.shape_cast %276 : vector<8xi32> to vector<8x1xi32>
    %278 = vector.broadcast %277 : vector<8x1xi32> to vector<8x12xi32>
    %279 = arith.cmpi eq, %37, %278 : vector<8x12xi32>
    %280 = arith.extui %279 : vector<8x12xi1> to vector<8x12xi32>
    %281 = arith.sitofp %280 : vector<8x12xi32> to vector<8x12xf32>
    %cst_107 = arith.constant dense<0xFF800000> : vector<8xf32>
    %282 = vector.multi_reduction <maximumf>, %269, %cst_107 [1] : vector<8x12xf32> to vector<8xf32>
    %283 = vector.shape_cast %282 : vector<8xf32> to vector<8x1xf32>
    %284 = vector.broadcast %283 : vector<8x1xf32> to vector<8x12xf32>
    %285 = arith.subf %269, %284 : vector<8x12xf32>
    %286 = math.exp %285 : vector<8x12xf32>
    %cst_108 = arith.constant dense<0.000000e+00> : vector<8xf32>
    %287 = vector.multi_reduction <add>, %286, %cst_108 [1] : vector<8x12xf32> to vector<8xf32>
    %288 = vector.shape_cast %287 : vector<8xf32> to vector<8x1xf32>
    %289 = tpu.reciprocal %288 {approx = true} : vector<8x1xf32> -> vector<8x1xf32>
    %290 = vector.broadcast %289 : vector<8x1xf32> to vector<8x12xf32>
    %291 = arith.mulf %286, %290 : vector<8x12xf32>
    %292 = arith.addf %291, %281 : vector<8x12xf32>
    %293 = arith.truncf %292 : vector<8x12xf32> to vector<8x12xbf16>
    %cst_109 = arith.constant dense<0.000000e+00> : vector<8x16xf32>
    %294 = tpu.matmul %293, %4, %cst_109 {dimension_numbers = #tpu.dot_dimension_numbers<[1], [0], [0], [1], [0, 0, 1, 1], [], []>} : vector<8x12xbf16>, vector<12x16xbf16>, vector<8x16xf32> -> vector<8x16xf32>
    %295 = vector.shape_cast %269 : vector<8x12xf32> to vector<1x8x12xf32>
    %296 = arith.index_cast %c1_i32 : i32 to index
    %c0_110 = arith.constant 0 : index
    %c0_111 = arith.constant 0 : index
    %297 = vector.load %arg20[%296, %c0_110, %c0_111] : memref<6x8x12xf32, #tpu.memory_space<vmem>>, vector<1x8x12xf32>
    tpu.vector_store %arg20[%296, %c0_110, %c0_111], %295 {strides = array<i32>} : memref<6x8x12xf32, #tpu.memory_space<vmem>>, vector<1x8x12xf32>,
    %298 = vector.shape_cast %277 : vector<8x1xi32> to vector<8x1x1xi32>
    %c0_112 = arith.constant 0 : index
    %299 = arith.index_cast %c1_i32 : i32 to index
    %c0_113 = arith.constant 0 : index
    %300 = vector.load %arg21[%c0_112, %299, %c0_113] : memref<8x6x1xi32, #tpu.memory_space<vmem>>, vector<8x1x1xi32>
    tpu.vector_store %arg21[%c0_112, %299, %c0_113], %298 {strides = array<i32>} : memref<8x6x1xi32, #tpu.memory_space<vmem>>, vector<8x1x1xi32>,
    %cst_114 = arith.constant 0.000000e+00 : f32
    %301 = vector.broadcast %cst_114 : f32 to vector<8x12xf32>
    %302 = arith.cmpf ogt, %281, %301 : vector<8x12xf32>
    %cst_115 = arith.constant -1.000000e+07 : f32
    %303 = vector.broadcast %cst_115 : f32 to vector<8x12xf32>
    %304 = arith.select %302, %303, %161 : vector<8x12xi1>, vector<8x12xf32>
    %c2_i32_116 = arith.constant 2 : i32
    %305 = vector.broadcast %c2_i32_116 : i32 to vector<8x12xi32>
    %306 = arith.cmpi eq, %37, %305 : vector<8x12xi32>
    %cst_117 = arith.constant 0.000000e+00 : f32
    %307 = vector.broadcast %cst_117 : f32 to vector<8x12xf32>
    %308 = arith.select %306, %307, %304 : vector<8x12xi1>, vector<8x12xf32>
    %cst_118 = arith.constant dense<0.000000e+00> : vector<8x16xf32>
    %309 = tpu.matmul %293, %5, %cst_118 {dimension_numbers = #tpu.dot_dimension_numbers<[1], [0], [0], [1], [0, 0, 1, 1], [], []>} : vector<8x12xbf16>, vector<12x16xbf16>, vector<8x16xf32> -> vector<8x16xf32>
    %310 = math.tanh %309 : vector<8x16xf32>
    %311 = arith.mulf %310, %25 : vector<8x16xf32>
    %cst_119 = arith.constant dense<0.000000e+00> : vector<8xf32>
    %312 = vector.multi_reduction <add>, %311, %cst_119 [1] : vector<8x16xf32> to vector<8xf32>
    %313 = vector.shape_cast %312 : vector<8xf32> to vector<8x1xf32>
    %314 = arith.maximumf %167, %313 : vector<8x1xf32>
    %315 = arith.subf %167, %314 : vector<8x1xf32>
    %316 = math.exp %315 : vector<8x1xf32>
    %317 = arith.subf %313, %314 : vector<8x1xf32>
    %318 = math.exp %317 : vector<8x1xf32>
    %319 = vector.broadcast %316 : vector<8x1xf32> to vector<8x16xf32>
    %320 = arith.mulf %319, %176 : vector<8x16xf32>
    %321 = vector.broadcast %318 : vector<8x1xf32> to vector<8x16xf32>
    %322 = arith.mulf %321, %294 : vector<8x16xf32>
    %323 = arith.addf %320, %322 : vector<8x16xf32>
    %324 = arith.mulf %316, %178 : vector<8x1xf32>
    %325 = arith.addf %324, %318 : vector<8x1xf32>
    %326 = vector.shape_cast %231 : vector<8x16xf32> to vector<8x1x16xf32>
    %327 = vector.broadcast %326 : vector<8x1x16xf32> to vector<8x8x16xf32>
    %328 = arith.mulf %327, %2 : vector<8x8x16xf32>
    %cst_120 = arith.constant dense<0.000000e+00> : vector<8x8xf32>
    %329 = vector.multi_reduction <add>, %328, %cst_120 [2] : vector<8x8x16xf32> to vector<8x8xf32>
    %330 = arith.mulf %231, %231 : vector<8x16xf32>
    %cst_121 = arith.constant dense<0.000000e+00> : vector<8xf32>
    %331 = vector.multi_reduction <add>, %330, %cst_121 [1] : vector<8x16xf32> to vector<8xf32>
    %332 = vector.shape_cast %331 : vector<8xf32> to vector<8x1xf32>
    %cst_122 = arith.constant 1.000000e-16 : f32
    %333 = vector.broadcast %cst_122 : f32 to vector<8x1xf32>
    %334 = arith.maximumf %332, %333 : vector<8x1xf32>
    %335 = math.rsqrt %334 : vector<8x1xf32>
    %336 = vector.broadcast %335 : vector<8x1xf32> to vector<8x8xf32>
    %337 = arith.mulf %329, %336 : vector<8x8xf32>
    %338 = arith.mulf %337, %36 : vector<8x8xf32>
    %339 = arith.maximumf %192, %338 : vector<8x8xf32>
    %c2_i32_123 = arith.constant 2 : i32
    %340 = arith.truncf %226 : vector<8x32xf32> to vector<8x32xbf16>
    %cst_124 = arith.constant dense<0.000000e+00> : vector<8x128xf32>
    %341 = tpu.matmul %340, %6, %cst_124 {dimension_numbers = #tpu.dot_dimension_numbers<[1], [0], [0], [1], [0, 0, 1, 1], [], []>} : vector<8x32xbf16>, vector<32x128xbf16>, vector<8x128xf32> -> vector<8x128xf32>
    %342 = arith.addf %341, %13 : vector<8x128xf32>
    %343 = vector.extract_strided_slice %342 {offsets = [0, 0], sizes = [8, 32], strides = [1, 1]} : vector<8x128xf32> to vector<8x32xf32>
    %cst_125 = arith.constant 5.000000e-01 : f32
    %344 = vector.broadcast %cst_125 : f32 to vector<8x32xf32>
    %345 = arith.mulf %344, %343 : vector<8x32xf32>
    %346 = math.tanh %345 : vector<8x32xf32>
    %cst_126 = arith.constant 5.000000e-01 : f32
    %347 = vector.broadcast %cst_126 : f32 to vector<8x32xf32>
    %348 = arith.mulf %347, %346 : vector<8x32xf32>
    %cst_127 = arith.constant 5.000000e-01 : f32
    %349 = vector.broadcast %cst_127 : f32 to vector<8x32xf32>
    %350 = arith.addf %348, %349 : vector<8x32xf32>
    %351 = vector.extract_strided_slice %342 {offsets = [0, 32], sizes = [8, 32], strides = [1, 1]} : vector<8x128xf32> to vector<8x32xf32>
    %cst_128 = arith.constant 5.000000e-01 : f32
    %352 = vector.broadcast %cst_128 : f32 to vector<8x32xf32>
    %353 = arith.mulf %352, %351 : vector<8x32xf32>
    %354 = math.tanh %353 : vector<8x32xf32>
    %cst_129 = arith.constant 5.000000e-01 : f32
    %355 = vector.broadcast %cst_129 : f32 to vector<8x32xf32>
    %356 = arith.mulf %355, %354 : vector<8x32xf32>
    %cst_130 = arith.constant 5.000000e-01 : f32
    %357 = vector.broadcast %cst_130 : f32 to vector<8x32xf32>
    %358 = arith.addf %356, %357 : vector<8x32xf32>
    %359 = vector.extract_strided_slice %342 {offsets = [0, 64], sizes = [8, 32], strides = [1, 1]} : vector<8x128xf32> to vector<8x32xf32>
    %360 = math.tanh %359 : vector<8x32xf32>
    %361 = vector.extract_strided_slice %342 {offsets = [0, 96], sizes = [8, 32], strides = [1, 1]} : vector<8x128xf32> to vector<8x32xf32>
    %cst_131 = arith.constant 5.000000e-01 : f32
    %362 = vector.broadcast %cst_131 : f32 to vector<8x32xf32>
    %363 = arith.mulf %362, %361 : vector<8x32xf32>
    %364 = math.tanh %363 : vector<8x32xf32>
    %cst_132 = arith.constant 5.000000e-01 : f32
    %365 = vector.broadcast %cst_132 : f32 to vector<8x32xf32>
    %366 = arith.mulf %365, %364 : vector<8x32xf32>
    %cst_133 = arith.constant 5.000000e-01 : f32
    %367 = vector.broadcast %cst_133 : f32 to vector<8x32xf32>
    %368 = arith.addf %366, %367 : vector<8x32xf32>
    %369 = arith.mulf %358, %224 : vector<8x32xf32>
    %370 = arith.mulf %350, %360 : vector<8x32xf32>
    %371 = arith.addf %369, %370 : vector<8x32xf32>
    %372 = math.tanh %371 : vector<8x32xf32>
    %373 = arith.mulf %368, %372 : vector<8x32xf32>
    %374 = arith.truncf %373 : vector<8x32xf32> to vector<8x32xbf16>
    %cst_134 = arith.constant dense<0.000000e+00> : vector<8x48xf32>
    %375 = tpu.matmul %374, %7, %cst_134 {dimension_numbers = #tpu.dot_dimension_numbers<[1], [0], [0], [1], [0, 0, 1, 1], [], []>} : vector<8x32xbf16>, vector<32x48xbf16>, vector<8x48xf32> -> vector<8x48xf32>
    %376 = arith.addf %375, %16 : vector<8x48xf32>
    %377 = vector.extract_strided_slice %376 {offsets = [0, 0], sizes = [8, 32], strides = [1, 1]} : vector<8x48xf32> to vector<8x32xf32>
    %378 = vector.extract_strided_slice %376 {offsets = [0, 32], sizes = [8, 16], strides = [1, 1]} : vector<8x48xf32> to vector<8x16xf32>
    %379 = vector.shape_cast %377 : vector<8x32xf32> to vector<8x1x32xf32>
    %380 = vector.broadcast %379 : vector<8x1x32xf32> to vector<8x8x32xf32>
    %381 = arith.mulf %0, %380 : vector<8x8x32xf32>
    %cst_135 = arith.constant dense<0.000000e+00> : vector<8x8xf32>
    %382 = vector.multi_reduction <add>, %381, %cst_135 [2] : vector<8x8x32xf32> to vector<8x8xf32>
    %383 = arith.addf %382, %29 : vector<8x8xf32>
    %cst_136 = arith.constant dense<0xFF800000> : vector<8xf32>
    %384 = vector.multi_reduction <maximumf>, %383, %cst_136 [1] : vector<8x8xf32> to vector<8xf32>
    %385 = vector.shape_cast %384 : vector<8xf32> to vector<8x1xf32>
    %386 = vector.broadcast %385 : vector<8x1xf32> to vector<8x8xf32>
    %387 = arith.subf %383, %386 : vector<8x8xf32>
    %388 = math.exp %387 : vector<8x8xf32>
    %cst_137 = arith.constant dense<0.000000e+00> : vector<8xf32>
    %389 = vector.multi_reduction <add>, %388, %cst_137 [1] : vector<8x8xf32> to vector<8xf32>
    %390 = vector.shape_cast %389 : vector<8xf32> to vector<8x1xf32>
    %391 = tpu.reciprocal %390 {approx = true} : vector<8x1xf32> -> vector<8x1xf32>
    %392 = vector.broadcast %391 : vector<8x1xf32> to vector<8x8xf32>
    %393 = arith.mulf %388, %392 : vector<8x8xf32>
    %394 = vector.shape_cast %393 : vector<8x8xf32> to vector<8x8x1xf32>
    %395 = vector.broadcast %394 : vector<8x8x1xf32> to vector<8x8x32xf32>
    %396 = arith.mulf %0, %395 : vector<8x8x32xf32>
    %cst_138 = arith.constant dense<0.000000e+00> : vector<8x32xf32>
    %397 = vector.multi_reduction <add>, %396, %cst_138 [1] : vector<8x8x32xf32> to vector<8x32xf32>
    %cst_139 = arith.constant 9.99999968E-21 : f32
    %398 = vector.broadcast %cst_139 : f32 to vector<8x1xf32>
    %399 = arith.maximumf %325, %398 : vector<8x1xf32>
    %400 = tpu.reciprocal %399 {approx = true} : vector<8x1xf32> -> vector<8x1xf32>
    %401 = vector.broadcast %400 : vector<8x1xf32> to vector<8x16xf32>
    %402 = arith.mulf %323, %401 : vector<8x16xf32>
    %403 = arith.addf %31, %397 : vector<8x32xf32>
    %404 = arith.truncf %403 : vector<8x32xf32> to vector<8x32xbf16>
    %405 = arith.addf %294, %402 : vector<8x16xf32>
    %406 = arith.truncf %405 : vector<8x16xf32> to vector<8x16xbf16>
    %cst_140 = arith.constant dense<0.000000e+00> : vector<8x48xf32>
    %407 = tpu.matmul %404, %8, %cst_140 {dimension_numbers = #tpu.dot_dimension_numbers<[1], [0], [0], [1], [0, 0, 1, 1], [], []>} : vector<8x32xbf16>, vector<32x48xbf16>, vector<8x48xf32> -> vector<8x48xf32>
    %cst_141 = arith.constant dense<0.000000e+00> : vector<8x48xf32>
    %408 = tpu.matmul %406, %9, %cst_141 {dimension_numbers = #tpu.dot_dimension_numbers<[1], [0], [0], [1], [0, 0, 1, 1], [], []>} : vector<8x16xbf16>, vector<16x48xbf16>, vector<8x48xf32> -> vector<8x48xf32>
    %409 = arith.addf %407, %408 : vector<8x48xf32>
    %410 = arith.addf %409, %19 : vector<8x48xf32>
    %cst_142 = arith.constant 0.000000e+00 : f32
    %411 = vector.broadcast %cst_142 : f32 to vector<8x48xf32>
    %412 = arith.maximumf %410, %411 : vector<8x48xf32>
    %413 = arith.truncf %412 : vector<8x48xf32> to vector<8x48xbf16>
    %cst_143 = arith.constant dense<0.000000e+00> : vector<8x12xf32>
    %414 = tpu.matmul %413, %10, %cst_143 {dimension_numbers = #tpu.dot_dimension_numbers<[1], [0], [0], [1], [0, 0, 1, 1], [], []>} : vector<8x48xbf16>, vector<48x12xbf16>, vector<8x12xf32> -> vector<8x12xf32>
    %415 = arith.addf %414, %22 : vector<8x12xf32>
    %416 = arith.addf %415, %308 : vector<8x12xf32>
    %cst_144 = arith.constant dense<0xFF800000> : vector<8xf32>
    %417 = vector.multi_reduction <maximumf>, %416, %cst_144 [1] : vector<8x12xf32> to vector<8xf32>
    %418 = vector.shape_cast %417 : vector<8xf32> to vector<8x1xf32>
    %419 = vector.broadcast %418 : vector<8x1xf32> to vector<8x12xf32>
    %420 = arith.cmpf oeq, %416, %419 : vector<8x12xf32>
    %c12_i32_145 = arith.constant 12 : i32
    %421 = vector.broadcast %c12_i32_145 : i32 to vector<8x12xi32>
    %422 = arith.select %420, %37, %421 : vector<8x12xi1>, vector<8x12xi32>
    %cst_146 = arith.constant dense<2147483647> : vector<8xi32>
    %423 = vector.multi_reduction <minsi>, %422, %cst_146 [1] : vector<8x12xi32> to vector<8xi32>
    %424 = vector.shape_cast %423 : vector<8xi32> to vector<8x1xi32>
    %425 = vector.broadcast %424 : vector<8x1xi32> to vector<8x12xi32>
    %426 = arith.cmpi eq, %37, %425 : vector<8x12xi32>
    %427 = arith.extui %426 : vector<8x12xi1> to vector<8x12xi32>
    %428 = arith.sitofp %427 : vector<8x12xi32> to vector<8x12xf32>
    %cst_147 = arith.constant dense<0xFF800000> : vector<8xf32>
    %429 = vector.multi_reduction <maximumf>, %416, %cst_147 [1] : vector<8x12xf32> to vector<8xf32>
    %430 = vector.shape_cast %429 : vector<8xf32> to vector<8x1xf32>
    %431 = vector.broadcast %430 : vector<8x1xf32> to vector<8x12xf32>
    %432 = arith.subf %416, %431 : vector<8x12xf32>
    %433 = math.exp %432 : vector<8x12xf32>
    %cst_148 = arith.constant dense<0.000000e+00> : vector<8xf32>
    %434 = vector.multi_reduction <add>, %433, %cst_148 [1] : vector<8x12xf32> to vector<8xf32>
    %435 = vector.shape_cast %434 : vector<8xf32> to vector<8x1xf32>
    %436 = tpu.reciprocal %435 {approx = true} : vector<8x1xf32> -> vector<8x1xf32>
    %437 = vector.broadcast %436 : vector<8x1xf32> to vector<8x12xf32>
    %438 = arith.mulf %433, %437 : vector<8x12xf32>
    %439 = arith.addf %438, %428 : vector<8x12xf32>
    %440 = arith.truncf %439 : vector<8x12xf32> to vector<8x12xbf16>
    %cst_149 = arith.constant dense<0.000000e+00> : vector<8x16xf32>
    %441 = tpu.matmul %440, %4, %cst_149 {dimension_numbers = #tpu.dot_dimension_numbers<[1], [0], [0], [1], [0, 0, 1, 1], [], []>} : vector<8x12xbf16>, vector<12x16xbf16>, vector<8x16xf32> -> vector<8x16xf32>
    %442 = vector.shape_cast %416 : vector<8x12xf32> to vector<1x8x12xf32>
    %443 = arith.index_cast %c2_i32_123 : i32 to index
    %c0_150 = arith.constant 0 : index
    %c0_151 = arith.constant 0 : index
    %444 = vector.load %arg20[%443, %c0_150, %c0_151] : memref<6x8x12xf32, #tpu.memory_space<vmem>>, vector<1x8x12xf32>
    tpu.vector_store %arg20[%443, %c0_150, %c0_151], %442 {strides = array<i32>} : memref<6x8x12xf32, #tpu.memory_space<vmem>>, vector<1x8x12xf32>,
    %445 = vector.shape_cast %424 : vector<8x1xi32> to vector<8x1x1xi32>
    %c0_152 = arith.constant 0 : index
    %446 = arith.index_cast %c2_i32_123 : i32 to index
    %c0_153 = arith.constant 0 : index
    %447 = vector.load %arg21[%c0_152, %446, %c0_153] : memref<8x6x1xi32, #tpu.memory_space<vmem>>, vector<8x1x1xi32>
    tpu.vector_store %arg21[%c0_152, %446, %c0_153], %445 {strides = array<i32>} : memref<8x6x1xi32, #tpu.memory_space<vmem>>, vector<8x1x1xi32>,
    %cst_154 = arith.constant 0.000000e+00 : f32
    %448 = vector.broadcast %cst_154 : f32 to vector<8x12xf32>
    %449 = arith.cmpf ogt, %428, %448 : vector<8x12xf32>
    %cst_155 = arith.constant -1.000000e+07 : f32
    %450 = vector.broadcast %cst_155 : f32 to vector<8x12xf32>
    %451 = arith.select %449, %450, %308 : vector<8x12xi1>, vector<8x12xf32>
    %c2_i32_156 = arith.constant 2 : i32
    %452 = vector.broadcast %c2_i32_156 : i32 to vector<8x12xi32>
    %453 = arith.cmpi eq, %37, %452 : vector<8x12xi32>
    %cst_157 = arith.constant 0.000000e+00 : f32
    %454 = vector.broadcast %cst_157 : f32 to vector<8x12xf32>
    %455 = arith.select %453, %454, %451 : vector<8x12xi1>, vector<8x12xf32>
    %cst_158 = arith.constant dense<0.000000e+00> : vector<8x16xf32>
    %456 = tpu.matmul %440, %5, %cst_158 {dimension_numbers = #tpu.dot_dimension_numbers<[1], [0], [0], [1], [0, 0, 1, 1], [], []>} : vector<8x12xbf16>, vector<12x16xbf16>, vector<8x16xf32> -> vector<8x16xf32>
    %457 = math.tanh %456 : vector<8x16xf32>
    %458 = arith.mulf %457, %25 : vector<8x16xf32>
    %cst_159 = arith.constant dense<0.000000e+00> : vector<8xf32>
    %459 = vector.multi_reduction <add>, %458, %cst_159 [1] : vector<8x16xf32> to vector<8xf32>
    %460 = vector.shape_cast %459 : vector<8xf32> to vector<8x1xf32>
    %461 = arith.maximumf %314, %460 : vector<8x1xf32>
    %462 = arith.subf %314, %461 : vector<8x1xf32>
    %463 = math.exp %462 : vector<8x1xf32>
    %464 = arith.subf %460, %461 : vector<8x1xf32>
    %465 = math.exp %464 : vector<8x1xf32>
    %466 = vector.broadcast %463 : vector<8x1xf32> to vector<8x16xf32>
    %467 = arith.mulf %466, %323 : vector<8x16xf32>
    %468 = vector.broadcast %465 : vector<8x1xf32> to vector<8x16xf32>
    %469 = arith.mulf %468, %441 : vector<8x16xf32>
    %470 = arith.addf %467, %469 : vector<8x16xf32>
    %471 = arith.mulf %463, %325 : vector<8x1xf32>
    %472 = arith.addf %471, %465 : vector<8x1xf32>
    %473 = vector.shape_cast %378 : vector<8x16xf32> to vector<8x1x16xf32>
    %474 = vector.broadcast %473 : vector<8x1x16xf32> to vector<8x8x16xf32>
    %475 = arith.mulf %474, %2 : vector<8x8x16xf32>
    %cst_160 = arith.constant dense<0.000000e+00> : vector<8x8xf32>
    %476 = vector.multi_reduction <add>, %475, %cst_160 [2] : vector<8x8x16xf32> to vector<8x8xf32>
    %477 = arith.mulf %378, %378 : vector<8x16xf32>
    %cst_161 = arith.constant dense<0.000000e+00> : vector<8xf32>
    %478 = vector.multi_reduction <add>, %477, %cst_161 [1] : vector<8x16xf32> to vector<8xf32>
    %479 = vector.shape_cast %478 : vector<8xf32> to vector<8x1xf32>
    %cst_162 = arith.constant 1.000000e-16 : f32
    %480 = vector.broadcast %cst_162 : f32 to vector<8x1xf32>
    %481 = arith.maximumf %479, %480 : vector<8x1xf32>
    %482 = math.rsqrt %481 : vector<8x1xf32>
    %483 = vector.broadcast %482 : vector<8x1xf32> to vector<8x8xf32>
    %484 = arith.mulf %476, %483 : vector<8x8xf32>
    %485 = arith.mulf %484, %36 : vector<8x8xf32>
    %486 = arith.maximumf %339, %485 : vector<8x8xf32>
    %c3_i32 = arith.constant 3 : i32
    %487 = arith.truncf %373 : vector<8x32xf32> to vector<8x32xbf16>
    %cst_163 = arith.constant dense<0.000000e+00> : vector<8x128xf32>
    %488 = tpu.matmul %487, %6, %cst_163 {dimension_numbers = #tpu.dot_dimension_numbers<[1], [0], [0], [1], [0, 0, 1, 1], [], []>} : vector<8x32xbf16>, vector<32x128xbf16>, vector<8x128xf32> -> vector<8x128xf32>
    %489 = arith.addf %488, %13 : vector<8x128xf32>
    %490 = vector.extract_strided_slice %489 {offsets = [0, 0], sizes = [8, 32], strides = [1, 1]} : vector<8x128xf32> to vector<8x32xf32>
    %cst_164 = arith.constant 5.000000e-01 : f32
    %491 = vector.broadcast %cst_164 : f32 to vector<8x32xf32>
    %492 = arith.mulf %491, %490 : vector<8x32xf32>
    %493 = math.tanh %492 : vector<8x32xf32>
    %cst_165 = arith.constant 5.000000e-01 : f32
    %494 = vector.broadcast %cst_165 : f32 to vector<8x32xf32>
    %495 = arith.mulf %494, %493 : vector<8x32xf32>
    %cst_166 = arith.constant 5.000000e-01 : f32
    %496 = vector.broadcast %cst_166 : f32 to vector<8x32xf32>
    %497 = arith.addf %495, %496 : vector<8x32xf32>
    %498 = vector.extract_strided_slice %489 {offsets = [0, 32], sizes = [8, 32], strides = [1, 1]} : vector<8x128xf32> to vector<8x32xf32>
    %cst_167 = arith.constant 5.000000e-01 : f32
    %499 = vector.broadcast %cst_167 : f32 to vector<8x32xf32>
    %500 = arith.mulf %499, %498 : vector<8x32xf32>
    %501 = math.tanh %500 : vector<8x32xf32>
    %cst_168 = arith.constant 5.000000e-01 : f32
    %502 = vector.broadcast %cst_168 : f32 to vector<8x32xf32>
    %503 = arith.mulf %502, %501 : vector<8x32xf32>
    %cst_169 = arith.constant 5.000000e-01 : f32
    %504 = vector.broadcast %cst_169 : f32 to vector<8x32xf32>
    %505 = arith.addf %503, %504 : vector<8x32xf32>
    %506 = vector.extract_strided_slice %489 {offsets = [0, 64], sizes = [8, 32], strides = [1, 1]} : vector<8x128xf32> to vector<8x32xf32>
    %507 = math.tanh %506 : vector<8x32xf32>
    %508 = vector.extract_strided_slice %489 {offsets = [0, 96], sizes = [8, 32], strides = [1, 1]} : vector<8x128xf32> to vector<8x32xf32>
    %cst_170 = arith.constant 5.000000e-01 : f32
    %509 = vector.broadcast %cst_170 : f32 to vector<8x32xf32>
    %510 = arith.mulf %509, %508 : vector<8x32xf32>
    %511 = math.tanh %510 : vector<8x32xf32>
    %cst_171 = arith.constant 5.000000e-01 : f32
    %512 = vector.broadcast %cst_171 : f32 to vector<8x32xf32>
    %513 = arith.mulf %512, %511 : vector<8x32xf32>
    %cst_172 = arith.constant 5.000000e-01 : f32
    %514 = vector.broadcast %cst_172 : f32 to vector<8x32xf32>
    %515 = arith.addf %513, %514 : vector<8x32xf32>
    %516 = arith.mulf %505, %371 : vector<8x32xf32>
    %517 = arith.mulf %497, %507 : vector<8x32xf32>
    %518 = arith.addf %516, %517 : vector<8x32xf32>
    %519 = math.tanh %518 : vector<8x32xf32>
    %520 = arith.mulf %515, %519 : vector<8x32xf32>
    %521 = arith.truncf %520 : vector<8x32xf32> to vector<8x32xbf16>
    %cst_173 = arith.constant dense<0.000000e+00> : vector<8x48xf32>
    %522 = tpu.matmul %521, %7, %cst_173 {dimension_numbers = #tpu.dot_dimension_numbers<[1], [0], [0], [1], [0, 0, 1, 1], [], []>} : vector<8x32xbf16>, vector<32x48xbf16>, vector<8x48xf32> -> vector<8x48xf32>
    %523 = arith.addf %522, %16 : vector<8x48xf32>
    %524 = vector.extract_strided_slice %523 {offsets = [0, 0], sizes = [8, 32], strides = [1, 1]} : vector<8x48xf32> to vector<8x32xf32>
    %525 = vector.extract_strided_slice %523 {offsets = [0, 32], sizes = [8, 16], strides = [1, 1]} : vector<8x48xf32> to vector<8x16xf32>
    %526 = vector.shape_cast %524 : vector<8x32xf32> to vector<8x1x32xf32>
    %527 = vector.broadcast %526 : vector<8x1x32xf32> to vector<8x8x32xf32>
    %528 = arith.mulf %0, %527 : vector<8x8x32xf32>
    %cst_174 = arith.constant dense<0.000000e+00> : vector<8x8xf32>
    %529 = vector.multi_reduction <add>, %528, %cst_174 [2] : vector<8x8x32xf32> to vector<8x8xf32>
    %530 = arith.addf %529, %29 : vector<8x8xf32>
    %cst_175 = arith.constant dense<0xFF800000> : vector<8xf32>
    %531 = vector.multi_reduction <maximumf>, %530, %cst_175 [1] : vector<8x8xf32> to vector<8xf32>
    %532 = vector.shape_cast %531 : vector<8xf32> to vector<8x1xf32>
    %533 = vector.broadcast %532 : vector<8x1xf32> to vector<8x8xf32>
    %534 = arith.subf %530, %533 : vector<8x8xf32>
    %535 = math.exp %534 : vector<8x8xf32>
    %cst_176 = arith.constant dense<0.000000e+00> : vector<8xf32>
    %536 = vector.multi_reduction <add>, %535, %cst_176 [1] : vector<8x8xf32> to vector<8xf32>
    %537 = vector.shape_cast %536 : vector<8xf32> to vector<8x1xf32>
    %538 = tpu.reciprocal %537 {approx = true} : vector<8x1xf32> -> vector<8x1xf32>
    %539 = vector.broadcast %538 : vector<8x1xf32> to vector<8x8xf32>
    %540 = arith.mulf %535, %539 : vector<8x8xf32>
    %541 = vector.shape_cast %540 : vector<8x8xf32> to vector<8x8x1xf32>
    %542 = vector.broadcast %541 : vector<8x8x1xf32> to vector<8x8x32xf32>
    %543 = arith.mulf %0, %542 : vector<8x8x32xf32>
    %cst_177 = arith.constant dense<0.000000e+00> : vector<8x32xf32>
    %544 = vector.multi_reduction <add>, %543, %cst_177 [1] : vector<8x8x32xf32> to vector<8x32xf32>
    %cst_178 = arith.constant 9.99999968E-21 : f32
    %545 = vector.broadcast %cst_178 : f32 to vector<8x1xf32>
    %546 = arith.maximumf %472, %545 : vector<8x1xf32>
    %547 = tpu.reciprocal %546 {approx = true} : vector<8x1xf32> -> vector<8x1xf32>
    %548 = vector.broadcast %547 : vector<8x1xf32> to vector<8x16xf32>
    %549 = arith.mulf %470, %548 : vector<8x16xf32>
    %550 = arith.addf %31, %544 : vector<8x32xf32>
    %551 = arith.truncf %550 : vector<8x32xf32> to vector<8x32xbf16>
    %552 = arith.addf %441, %549 : vector<8x16xf32>
    %553 = arith.truncf %552 : vector<8x16xf32> to vector<8x16xbf16>
    %cst_179 = arith.constant dense<0.000000e+00> : vector<8x48xf32>
    %554 = tpu.matmul %551, %8, %cst_179 {dimension_numbers = #tpu.dot_dimension_numbers<[1], [0], [0], [1], [0, 0, 1, 1], [], []>} : vector<8x32xbf16>, vector<32x48xbf16>, vector<8x48xf32> -> vector<8x48xf32>
    %cst_180 = arith.constant dense<0.000000e+00> : vector<8x48xf32>
    %555 = tpu.matmul %553, %9, %cst_180 {dimension_numbers = #tpu.dot_dimension_numbers<[1], [0], [0], [1], [0, 0, 1, 1], [], []>} : vector<8x16xbf16>, vector<16x48xbf16>, vector<8x48xf32> -> vector<8x48xf32>
    %556 = arith.addf %554, %555 : vector<8x48xf32>
    %557 = arith.addf %556, %19 : vector<8x48xf32>
    %cst_181 = arith.constant 0.000000e+00 : f32
    %558 = vector.broadcast %cst_181 : f32 to vector<8x48xf32>
    %559 = arith.maximumf %557, %558 : vector<8x48xf32>
    %560 = arith.truncf %559 : vector<8x48xf32> to vector<8x48xbf16>
    %cst_182 = arith.constant dense<0.000000e+00> : vector<8x12xf32>
    %561 = tpu.matmul %560, %10, %cst_182 {dimension_numbers = #tpu.dot_dimension_numbers<[1], [0], [0], [1], [0, 0, 1, 1], [], []>} : vector<8x48xbf16>, vector<48x12xbf16>, vector<8x12xf32> -> vector<8x12xf32>
    %562 = arith.addf %561, %22 : vector<8x12xf32>
    %563 = arith.addf %562, %455 : vector<8x12xf32>
    %cst_183 = arith.constant dense<0xFF800000> : vector<8xf32>
    %564 = vector.multi_reduction <maximumf>, %563, %cst_183 [1] : vector<8x12xf32> to vector<8xf32>
    %565 = vector.shape_cast %564 : vector<8xf32> to vector<8x1xf32>
    %566 = vector.broadcast %565 : vector<8x1xf32> to vector<8x12xf32>
    %567 = arith.cmpf oeq, %563, %566 : vector<8x12xf32>
    %c12_i32_184 = arith.constant 12 : i32
    %568 = vector.broadcast %c12_i32_184 : i32 to vector<8x12xi32>
    %569 = arith.select %567, %37, %568 : vector<8x12xi1>, vector<8x12xi32>
    %cst_185 = arith.constant dense<2147483647> : vector<8xi32>
    %570 = vector.multi_reduction <minsi>, %569, %cst_185 [1] : vector<8x12xi32> to vector<8xi32>
    %571 = vector.shape_cast %570 : vector<8xi32> to vector<8x1xi32>
    %572 = vector.broadcast %571 : vector<8x1xi32> to vector<8x12xi32>
    %573 = arith.cmpi eq, %37, %572 : vector<8x12xi32>
    %574 = arith.extui %573 : vector<8x12xi1> to vector<8x12xi32>
    %575 = arith.sitofp %574 : vector<8x12xi32> to vector<8x12xf32>
    %cst_186 = arith.constant dense<0xFF800000> : vector<8xf32>
    %576 = vector.multi_reduction <maximumf>, %563, %cst_186 [1] : vector<8x12xf32> to vector<8xf32>
    %577 = vector.shape_cast %576 : vector<8xf32> to vector<8x1xf32>
    %578 = vector.broadcast %577 : vector<8x1xf32> to vector<8x12xf32>
    %579 = arith.subf %563, %578 : vector<8x12xf32>
    %580 = math.exp %579 : vector<8x12xf32>
    %cst_187 = arith.constant dense<0.000000e+00> : vector<8xf32>
    %581 = vector.multi_reduction <add>, %580, %cst_187 [1] : vector<8x12xf32> to vector<8xf32>
    %582 = vector.shape_cast %581 : vector<8xf32> to vector<8x1xf32>
    %583 = tpu.reciprocal %582 {approx = true} : vector<8x1xf32> -> vector<8x1xf32>
    %584 = vector.broadcast %583 : vector<8x1xf32> to vector<8x12xf32>
    %585 = arith.mulf %580, %584 : vector<8x12xf32>
    %586 = arith.addf %585, %575 : vector<8x12xf32>
    %587 = arith.truncf %586 : vector<8x12xf32> to vector<8x12xbf16>
    %cst_188 = arith.constant dense<0.000000e+00> : vector<8x16xf32>
    %588 = tpu.matmul %587, %4, %cst_188 {dimension_numbers = #tpu.dot_dimension_numbers<[1], [0], [0], [1], [0, 0, 1, 1], [], []>} : vector<8x12xbf16>, vector<12x16xbf16>, vector<8x16xf32> -> vector<8x16xf32>
    %589 = vector.shape_cast %563 : vector<8x12xf32> to vector<1x8x12xf32>
    %590 = arith.index_cast %c3_i32 : i32 to index
    %c0_189 = arith.constant 0 : index
    %c0_190 = arith.constant 0 : index
    %591 = vector.load %arg20[%590, %c0_189, %c0_190] : memref<6x8x12xf32, #tpu.memory_space<vmem>>, vector<1x8x12xf32>
    tpu.vector_store %arg20[%590, %c0_189, %c0_190], %589 {strides = array<i32>} : memref<6x8x12xf32, #tpu.memory_space<vmem>>, vector<1x8x12xf32>,
    %592 = vector.shape_cast %571 : vector<8x1xi32> to vector<8x1x1xi32>
    %c0_191 = arith.constant 0 : index
    %593 = arith.index_cast %c3_i32 : i32 to index
    %c0_192 = arith.constant 0 : index
    %594 = vector.load %arg21[%c0_191, %593, %c0_192] : memref<8x6x1xi32, #tpu.memory_space<vmem>>, vector<8x1x1xi32>
    tpu.vector_store %arg21[%c0_191, %593, %c0_192], %592 {strides = array<i32>} : memref<8x6x1xi32, #tpu.memory_space<vmem>>, vector<8x1x1xi32>,
    %cst_193 = arith.constant 0.000000e+00 : f32
    %595 = vector.broadcast %cst_193 : f32 to vector<8x12xf32>
    %596 = arith.cmpf ogt, %575, %595 : vector<8x12xf32>
    %cst_194 = arith.constant -1.000000e+07 : f32
    %597 = vector.broadcast %cst_194 : f32 to vector<8x12xf32>
    %598 = arith.select %596, %597, %455 : vector<8x12xi1>, vector<8x12xf32>
    %c2_i32_195 = arith.constant 2 : i32
    %599 = vector.broadcast %c2_i32_195 : i32 to vector<8x12xi32>
    %600 = arith.cmpi eq, %37, %599 : vector<8x12xi32>
    %cst_196 = arith.constant 0.000000e+00 : f32
    %601 = vector.broadcast %cst_196 : f32 to vector<8x12xf32>
    %602 = arith.select %600, %601, %598 : vector<8x12xi1>, vector<8x12xf32>
    %cst_197 = arith.constant dense<0.000000e+00> : vector<8x16xf32>
    %603 = tpu.matmul %587, %5, %cst_197 {dimension_numbers = #tpu.dot_dimension_numbers<[1], [0], [0], [1], [0, 0, 1, 1], [], []>} : vector<8x12xbf16>, vector<12x16xbf16>, vector<8x16xf32> -> vector<8x16xf32>
    %604 = math.tanh %603 : vector<8x16xf32>
    %605 = arith.mulf %604, %25 : vector<8x16xf32>
    %cst_198 = arith.constant dense<0.000000e+00> : vector<8xf32>
    %606 = vector.multi_reduction <add>, %605, %cst_198 [1] : vector<8x16xf32> to vector<8xf32>
    %607 = vector.shape_cast %606 : vector<8xf32> to vector<8x1xf32>
    %608 = arith.maximumf %461, %607 : vector<8x1xf32>
    %609 = arith.subf %461, %608 : vector<8x1xf32>
    %610 = math.exp %609 : vector<8x1xf32>
    %611 = arith.subf %607, %608 : vector<8x1xf32>
    %612 = math.exp %611 : vector<8x1xf32>
    %613 = vector.broadcast %610 : vector<8x1xf32> to vector<8x16xf32>
    %614 = arith.mulf %613, %470 : vector<8x16xf32>
    %615 = vector.broadcast %612 : vector<8x1xf32> to vector<8x16xf32>
    %616 = arith.mulf %615, %588 : vector<8x16xf32>
    %617 = arith.addf %614, %616 : vector<8x16xf32>
    %618 = arith.mulf %610, %472 : vector<8x1xf32>
    %619 = arith.addf %618, %612 : vector<8x1xf32>
    %620 = vector.shape_cast %525 : vector<8x16xf32> to vector<8x1x16xf32>
    %621 = vector.broadcast %620 : vector<8x1x16xf32> to vector<8x8x16xf32>
    %622 = arith.mulf %621, %2 : vector<8x8x16xf32>
    %cst_199 = arith.constant dense<0.000000e+00> : vector<8x8xf32>
    %623 = vector.multi_reduction <add>, %622, %cst_199 [2] : vector<8x8x16xf32> to vector<8x8xf32>
    %624 = arith.mulf %525, %525 : vector<8x16xf32>
    %cst_200 = arith.constant dense<0.000000e+00> : vector<8xf32>
    %625 = vector.multi_reduction <add>, %624, %cst_200 [1] : vector<8x16xf32> to vector<8xf32>
    %626 = vector.shape_cast %625 : vector<8xf32> to vector<8x1xf32>
    %cst_201 = arith.constant 1.000000e-16 : f32
    %627 = vector.broadcast %cst_201 : f32 to vector<8x1xf32>
    %628 = arith.maximumf %626, %627 : vector<8x1xf32>
    %629 = math.rsqrt %628 : vector<8x1xf32>
    %630 = vector.broadcast %629 : vector<8x1xf32> to vector<8x8xf32>
    %631 = arith.mulf %623, %630 : vector<8x8xf32>
    %632 = arith.mulf %631, %36 : vector<8x8xf32>
    %633 = arith.maximumf %486, %632 : vector<8x8xf32>
    %c4_i32 = arith.constant 4 : i32
    %634 = arith.truncf %520 : vector<8x32xf32> to vector<8x32xbf16>
    %cst_202 = arith.constant dense<0.000000e+00> : vector<8x128xf32>
    %635 = tpu.matmul %634, %6, %cst_202 {dimension_numbers = #tpu.dot_dimension_numbers<[1], [0], [0], [1], [0, 0, 1, 1], [], []>} : vector<8x32xbf16>, vector<32x128xbf16>, vector<8x128xf32> -> vector<8x128xf32>
    %636 = arith.addf %635, %13 : vector<8x128xf32>
    %637 = vector.extract_strided_slice %636 {offsets = [0, 0], sizes = [8, 32], strides = [1, 1]} : vector<8x128xf32> to vector<8x32xf32>
    %cst_203 = arith.constant 5.000000e-01 : f32
    %638 = vector.broadcast %cst_203 : f32 to vector<8x32xf32>
    %639 = arith.mulf %638, %637 : vector<8x32xf32>
    %640 = math.tanh %639 : vector<8x32xf32>
    %cst_204 = arith.constant 5.000000e-01 : f32
    %641 = vector.broadcast %cst_204 : f32 to vector<8x32xf32>
    %642 = arith.mulf %641, %640 : vector<8x32xf32>
    %cst_205 = arith.constant 5.000000e-01 : f32
    %643 = vector.broadcast %cst_205 : f32 to vector<8x32xf32>
    %644 = arith.addf %642, %643 : vector<8x32xf32>
    %645 = vector.extract_strided_slice %636 {offsets = [0, 32], sizes = [8, 32], strides = [1, 1]} : vector<8x128xf32> to vector<8x32xf32>
    %cst_206 = arith.constant 5.000000e-01 : f32
    %646 = vector.broadcast %cst_206 : f32 to vector<8x32xf32>
    %647 = arith.mulf %646, %645 : vector<8x32xf32>
    %648 = math.tanh %647 : vector<8x32xf32>
    %cst_207 = arith.constant 5.000000e-01 : f32
    %649 = vector.broadcast %cst_207 : f32 to vector<8x32xf32>
    %650 = arith.mulf %649, %648 : vector<8x32xf32>
    %cst_208 = arith.constant 5.000000e-01 : f32
    %651 = vector.broadcast %cst_208 : f32 to vector<8x32xf32>
    %652 = arith.addf %650, %651 : vector<8x32xf32>
    %653 = vector.extract_strided_slice %636 {offsets = [0, 64], sizes = [8, 32], strides = [1, 1]} : vector<8x128xf32> to vector<8x32xf32>
    %654 = math.tanh %653 : vector<8x32xf32>
    %655 = vector.extract_strided_slice %636 {offsets = [0, 96], sizes = [8, 32], strides = [1, 1]} : vector<8x128xf32> to vector<8x32xf32>
    %cst_209 = arith.constant 5.000000e-01 : f32
    %656 = vector.broadcast %cst_209 : f32 to vector<8x32xf32>
    %657 = arith.mulf %656, %655 : vector<8x32xf32>
    %658 = math.tanh %657 : vector<8x32xf32>
    %cst_210 = arith.constant 5.000000e-01 : f32
    %659 = vector.broadcast %cst_210 : f32 to vector<8x32xf32>
    %660 = arith.mulf %659, %658 : vector<8x32xf32>
    %cst_211 = arith.constant 5.000000e-01 : f32
    %661 = vector.broadcast %cst_211 : f32 to vector<8x32xf32>
    %662 = arith.addf %660, %661 : vector<8x32xf32>
    %663 = arith.mulf %652, %518 : vector<8x32xf32>
    %664 = arith.mulf %644, %654 : vector<8x32xf32>
    %665 = arith.addf %663, %664 : vector<8x32xf32>
    %666 = math.tanh %665 : vector<8x32xf32>
    %667 = arith.mulf %662, %666 : vector<8x32xf32>
    %668 = arith.truncf %667 : vector<8x32xf32> to vector<8x32xbf16>
    %cst_212 = arith.constant dense<0.000000e+00> : vector<8x48xf32>
    %669 = tpu.matmul %668, %7, %cst_212 {dimension_numbers = #tpu.dot_dimension_numbers<[1], [0], [0], [1], [0, 0, 1, 1], [], []>} : vector<8x32xbf16>, vector<32x48xbf16>, vector<8x48xf32> -> vector<8x48xf32>
    %670 = arith.addf %669, %16 : vector<8x48xf32>
    %671 = vector.extract_strided_slice %670 {offsets = [0, 0], sizes = [8, 32], strides = [1, 1]} : vector<8x48xf32> to vector<8x32xf32>
    %672 = vector.extract_strided_slice %670 {offsets = [0, 32], sizes = [8, 16], strides = [1, 1]} : vector<8x48xf32> to vector<8x16xf32>
    %673 = vector.shape_cast %671 : vector<8x32xf32> to vector<8x1x32xf32>
    %674 = vector.broadcast %673 : vector<8x1x32xf32> to vector<8x8x32xf32>
    %675 = arith.mulf %0, %674 : vector<8x8x32xf32>
    %cst_213 = arith.constant dense<0.000000e+00> : vector<8x8xf32>
    %676 = vector.multi_reduction <add>, %675, %cst_213 [2] : vector<8x8x32xf32> to vector<8x8xf32>
    %677 = arith.addf %676, %29 : vector<8x8xf32>
    %cst_214 = arith.constant dense<0xFF800000> : vector<8xf32>
    %678 = vector.multi_reduction <maximumf>, %677, %cst_214 [1] : vector<8x8xf32> to vector<8xf32>
    %679 = vector.shape_cast %678 : vector<8xf32> to vector<8x1xf32>
    %680 = vector.broadcast %679 : vector<8x1xf32> to vector<8x8xf32>
    %681 = arith.subf %677, %680 : vector<8x8xf32>
    %682 = math.exp %681 : vector<8x8xf32>
    %cst_215 = arith.constant dense<0.000000e+00> : vector<8xf32>
    %683 = vector.multi_reduction <add>, %682, %cst_215 [1] : vector<8x8xf32> to vector<8xf32>
    %684 = vector.shape_cast %683 : vector<8xf32> to vector<8x1xf32>
    %685 = tpu.reciprocal %684 {approx = true} : vector<8x1xf32> -> vector<8x1xf32>
    %686 = vector.broadcast %685 : vector<8x1xf32> to vector<8x8xf32>
    %687 = arith.mulf %682, %686 : vector<8x8xf32>
    %688 = vector.shape_cast %687 : vector<8x8xf32> to vector<8x8x1xf32>
    %689 = vector.broadcast %688 : vector<8x8x1xf32> to vector<8x8x32xf32>
    %690 = arith.mulf %0, %689 : vector<8x8x32xf32>
    %cst_216 = arith.constant dense<0.000000e+00> : vector<8x32xf32>
    %691 = vector.multi_reduction <add>, %690, %cst_216 [1] : vector<8x8x32xf32> to vector<8x32xf32>
    %cst_217 = arith.constant 9.99999968E-21 : f32
    %692 = vector.broadcast %cst_217 : f32 to vector<8x1xf32>
    %693 = arith.maximumf %619, %692 : vector<8x1xf32>
    %694 = tpu.reciprocal %693 {approx = true} : vector<8x1xf32> -> vector<8x1xf32>
    %695 = vector.broadcast %694 : vector<8x1xf32> to vector<8x16xf32>
    %696 = arith.mulf %617, %695 : vector<8x16xf32>
    %697 = arith.addf %31, %691 : vector<8x32xf32>
    %698 = arith.truncf %697 : vector<8x32xf32> to vector<8x32xbf16>
    %699 = arith.addf %588, %696 : vector<8x16xf32>
    %700 = arith.truncf %699 : vector<8x16xf32> to vector<8x16xbf16>
    %cst_218 = arith.constant dense<0.000000e+00> : vector<8x48xf32>
    %701 = tpu.matmul %698, %8, %cst_218 {dimension_numbers = #tpu.dot_dimension_numbers<[1], [0], [0], [1], [0, 0, 1, 1], [], []>} : vector<8x32xbf16>, vector<32x48xbf16>, vector<8x48xf32> -> vector<8x48xf32>
    %cst_219 = arith.constant dense<0.000000e+00> : vector<8x48xf32>
    %702 = tpu.matmul %700, %9, %cst_219 {dimension_numbers = #tpu.dot_dimension_numbers<[1], [0], [0], [1], [0, 0, 1, 1], [], []>} : vector<8x16xbf16>, vector<16x48xbf16>, vector<8x48xf32> -> vector<8x48xf32>
    %703 = arith.addf %701, %702 : vector<8x48xf32>
    %704 = arith.addf %703, %19 : vector<8x48xf32>
    %cst_220 = arith.constant 0.000000e+00 : f32
    %705 = vector.broadcast %cst_220 : f32 to vector<8x48xf32>
    %706 = arith.maximumf %704, %705 : vector<8x48xf32>
    %707 = arith.truncf %706 : vector<8x48xf32> to vector<8x48xbf16>
    %cst_221 = arith.constant dense<0.000000e+00> : vector<8x12xf32>
    %708 = tpu.matmul %707, %10, %cst_221 {dimension_numbers = #tpu.dot_dimension_numbers<[1], [0], [0], [1], [0, 0, 1, 1], [], []>} : vector<8x48xbf16>, vector<48x12xbf16>, vector<8x12xf32> -> vector<8x12xf32>
    %709 = arith.addf %708, %22 : vector<8x12xf32>
    %710 = arith.addf %709, %602 : vector<8x12xf32>
    %cst_222 = arith.constant dense<0xFF800000> : vector<8xf32>
    %711 = vector.multi_reduction <maximumf>, %710, %cst_222 [1] : vector<8x12xf32> to vector<8xf32>
    %712 = vector.shape_cast %711 : vector<8xf32> to vector<8x1xf32>
    %713 = vector.broadcast %712 : vector<8x1xf32> to vector<8x12xf32>
    %714 = arith.cmpf oeq, %710, %713 : vector<8x12xf32>
    %c12_i32_223 = arith.constant 12 : i32
    %715 = vector.broadcast %c12_i32_223 : i32 to vector<8x12xi32>
    %716 = arith.select %714, %37, %715 : vector<8x12xi1>, vector<8x12xi32>
    %cst_224 = arith.constant dense<2147483647> : vector<8xi32>
    %717 = vector.multi_reduction <minsi>, %716, %cst_224 [1] : vector<8x12xi32> to vector<8xi32>
    %718 = vector.shape_cast %717 : vector<8xi32> to vector<8x1xi32>
    %719 = vector.broadcast %718 : vector<8x1xi32> to vector<8x12xi32>
    %720 = arith.cmpi eq, %37, %719 : vector<8x12xi32>
    %721 = arith.extui %720 : vector<8x12xi1> to vector<8x12xi32>
    %722 = arith.sitofp %721 : vector<8x12xi32> to vector<8x12xf32>
    %cst_225 = arith.constant dense<0xFF800000> : vector<8xf32>
    %723 = vector.multi_reduction <maximumf>, %710, %cst_225 [1] : vector<8x12xf32> to vector<8xf32>
    %724 = vector.shape_cast %723 : vector<8xf32> to vector<8x1xf32>
    %725 = vector.broadcast %724 : vector<8x1xf32> to vector<8x12xf32>
    %726 = arith.subf %710, %725 : vector<8x12xf32>
    %727 = math.exp %726 : vector<8x12xf32>
    %cst_226 = arith.constant dense<0.000000e+00> : vector<8xf32>
    %728 = vector.multi_reduction <add>, %727, %cst_226 [1] : vector<8x12xf32> to vector<8xf32>
    %729 = vector.shape_cast %728 : vector<8xf32> to vector<8x1xf32>
    %730 = tpu.reciprocal %729 {approx = true} : vector<8x1xf32> -> vector<8x1xf32>
    %731 = vector.broadcast %730 : vector<8x1xf32> to vector<8x12xf32>
    %732 = arith.mulf %727, %731 : vector<8x12xf32>
    %733 = arith.addf %732, %722 : vector<8x12xf32>
    %734 = arith.truncf %733 : vector<8x12xf32> to vector<8x12xbf16>
    %cst_227 = arith.constant dense<0.000000e+00> : vector<8x16xf32>
    %735 = tpu.matmul %734, %4, %cst_227 {dimension_numbers = #tpu.dot_dimension_numbers<[1], [0], [0], [1], [0, 0, 1, 1], [], []>} : vector<8x12xbf16>, vector<12x16xbf16>, vector<8x16xf32> -> vector<8x16xf32>
    %736 = vector.shape_cast %710 : vector<8x12xf32> to vector<1x8x12xf32>
    %737 = arith.index_cast %c4_i32 : i32 to index
    %c0_228 = arith.constant 0 : index
    %c0_229 = arith.constant 0 : index
    %738 = vector.load %arg20[%737, %c0_228, %c0_229] : memref<6x8x12xf32, #tpu.memory_space<vmem>>, vector<1x8x12xf32>
    tpu.vector_store %arg20[%737, %c0_228, %c0_229], %736 {strides = array<i32>} : memref<6x8x12xf32, #tpu.memory_space<vmem>>, vector<1x8x12xf32>,
    %739 = vector.shape_cast %718 : vector<8x1xi32> to vector<8x1x1xi32>
    %c0_230 = arith.constant 0 : index
    %740 = arith.index_cast %c4_i32 : i32 to index
    %c0_231 = arith.constant 0 : index
    %741 = vector.load %arg21[%c0_230, %740, %c0_231] : memref<8x6x1xi32, #tpu.memory_space<vmem>>, vector<8x1x1xi32>
    tpu.vector_store %arg21[%c0_230, %740, %c0_231], %739 {strides = array<i32>} : memref<8x6x1xi32, #tpu.memory_space<vmem>>, vector<8x1x1xi32>,
    %cst_232 = arith.constant 0.000000e+00 : f32
    %742 = vector.broadcast %cst_232 : f32 to vector<8x12xf32>
    %743 = arith.cmpf ogt, %722, %742 : vector<8x12xf32>
    %cst_233 = arith.constant -1.000000e+07 : f32
    %744 = vector.broadcast %cst_233 : f32 to vector<8x12xf32>
    %745 = arith.select %743, %744, %602 : vector<8x12xi1>, vector<8x12xf32>
    %c2_i32_234 = arith.constant 2 : i32
    %746 = vector.broadcast %c2_i32_234 : i32 to vector<8x12xi32>
    %747 = arith.cmpi eq, %37, %746 : vector<8x12xi32>
    %cst_235 = arith.constant 0.000000e+00 : f32
    %748 = vector.broadcast %cst_235 : f32 to vector<8x12xf32>
    %749 = arith.select %747, %748, %745 : vector<8x12xi1>, vector<8x12xf32>
    %cst_236 = arith.constant dense<0.000000e+00> : vector<8x16xf32>
    %750 = tpu.matmul %734, %5, %cst_236 {dimension_numbers = #tpu.dot_dimension_numbers<[1], [0], [0], [1], [0, 0, 1, 1], [], []>} : vector<8x12xbf16>, vector<12x16xbf16>, vector<8x16xf32> -> vector<8x16xf32>
    %751 = math.tanh %750 : vector<8x16xf32>
    %752 = arith.mulf %751, %25 : vector<8x16xf32>
    %cst_237 = arith.constant dense<0.000000e+00> : vector<8xf32>
    %753 = vector.multi_reduction <add>, %752, %cst_237 [1] : vector<8x16xf32> to vector<8xf32>
    %754 = vector.shape_cast %753 : vector<8xf32> to vector<8x1xf32>
    %755 = arith.maximumf %608, %754 : vector<8x1xf32>
    %756 = arith.subf %608, %755 : vector<8x1xf32>
    %757 = math.exp %756 : vector<8x1xf32>
    %758 = arith.subf %754, %755 : vector<8x1xf32>
    %759 = math.exp %758 : vector<8x1xf32>
    %760 = vector.broadcast %757 : vector<8x1xf32> to vector<8x16xf32>
    %761 = arith.mulf %760, %617 : vector<8x16xf32>
    %762 = vector.broadcast %759 : vector<8x1xf32> to vector<8x16xf32>
    %763 = arith.mulf %762, %735 : vector<8x16xf32>
    %764 = arith.addf %761, %763 : vector<8x16xf32>
    %765 = arith.mulf %757, %619 : vector<8x1xf32>
    %766 = arith.addf %765, %759 : vector<8x1xf32>
    %767 = vector.shape_cast %672 : vector<8x16xf32> to vector<8x1x16xf32>
    %768 = vector.broadcast %767 : vector<8x1x16xf32> to vector<8x8x16xf32>
    %769 = arith.mulf %768, %2 : vector<8x8x16xf32>
    %cst_238 = arith.constant dense<0.000000e+00> : vector<8x8xf32>
    %770 = vector.multi_reduction <add>, %769, %cst_238 [2] : vector<8x8x16xf32> to vector<8x8xf32>
    %771 = arith.mulf %672, %672 : vector<8x16xf32>
    %cst_239 = arith.constant dense<0.000000e+00> : vector<8xf32>
    %772 = vector.multi_reduction <add>, %771, %cst_239 [1] : vector<8x16xf32> to vector<8xf32>
    %773 = vector.shape_cast %772 : vector<8xf32> to vector<8x1xf32>
    %cst_240 = arith.constant 1.000000e-16 : f32
    %774 = vector.broadcast %cst_240 : f32 to vector<8x1xf32>
    %775 = arith.maximumf %773, %774 : vector<8x1xf32>
    %776 = math.rsqrt %775 : vector<8x1xf32>
    %777 = vector.broadcast %776 : vector<8x1xf32> to vector<8x8xf32>
    %778 = arith.mulf %770, %777 : vector<8x8xf32>
    %779 = arith.mulf %778, %36 : vector<8x8xf32>
    %780 = arith.maximumf %633, %779 : vector<8x8xf32>
    %c5_i32 = arith.constant 5 : i32
    %781 = arith.truncf %667 : vector<8x32xf32> to vector<8x32xbf16>
    %cst_241 = arith.constant dense<0.000000e+00> : vector<8x128xf32>
    %782 = tpu.matmul %781, %6, %cst_241 {dimension_numbers = #tpu.dot_dimension_numbers<[1], [0], [0], [1], [0, 0, 1, 1], [], []>} : vector<8x32xbf16>, vector<32x128xbf16>, vector<8x128xf32> -> vector<8x128xf32>
    %783 = arith.addf %782, %13 : vector<8x128xf32>
    %784 = vector.extract_strided_slice %783 {offsets = [0, 0], sizes = [8, 32], strides = [1, 1]} : vector<8x128xf32> to vector<8x32xf32>
    %cst_242 = arith.constant 5.000000e-01 : f32
    %785 = vector.broadcast %cst_242 : f32 to vector<8x32xf32>
    %786 = arith.mulf %785, %784 : vector<8x32xf32>
    %787 = math.tanh %786 : vector<8x32xf32>
    %cst_243 = arith.constant 5.000000e-01 : f32
    %788 = vector.broadcast %cst_243 : f32 to vector<8x32xf32>
    %789 = arith.mulf %788, %787 : vector<8x32xf32>
    %cst_244 = arith.constant 5.000000e-01 : f32
    %790 = vector.broadcast %cst_244 : f32 to vector<8x32xf32>
    %791 = arith.addf %789, %790 : vector<8x32xf32>
    %792 = vector.extract_strided_slice %783 {offsets = [0, 32], sizes = [8, 32], strides = [1, 1]} : vector<8x128xf32> to vector<8x32xf32>
    %cst_245 = arith.constant 5.000000e-01 : f32
    %793 = vector.broadcast %cst_245 : f32 to vector<8x32xf32>
    %794 = arith.mulf %793, %792 : vector<8x32xf32>
    %795 = math.tanh %794 : vector<8x32xf32>
    %cst_246 = arith.constant 5.000000e-01 : f32
    %796 = vector.broadcast %cst_246 : f32 to vector<8x32xf32>
    %797 = arith.mulf %796, %795 : vector<8x32xf32>
    %cst_247 = arith.constant 5.000000e-01 : f32
    %798 = vector.broadcast %cst_247 : f32 to vector<8x32xf32>
    %799 = arith.addf %797, %798 : vector<8x32xf32>
    %800 = vector.extract_strided_slice %783 {offsets = [0, 64], sizes = [8, 32], strides = [1, 1]} : vector<8x128xf32> to vector<8x32xf32>
    %801 = math.tanh %800 : vector<8x32xf32>
    %802 = vector.extract_strided_slice %783 {offsets = [0, 96], sizes = [8, 32], strides = [1, 1]} : vector<8x128xf32> to vector<8x32xf32>
    %cst_248 = arith.constant 5.000000e-01 : f32
    %803 = vector.broadcast %cst_248 : f32 to vector<8x32xf32>
    %804 = arith.mulf %803, %802 : vector<8x32xf32>
    %805 = math.tanh %804 : vector<8x32xf32>
    %cst_249 = arith.constant 5.000000e-01 : f32
    %806 = vector.broadcast %cst_249 : f32 to vector<8x32xf32>
    %807 = arith.mulf %806, %805 : vector<8x32xf32>
    %cst_250 = arith.constant 5.000000e-01 : f32
    %808 = vector.broadcast %cst_250 : f32 to vector<8x32xf32>
    %809 = arith.addf %807, %808 : vector<8x32xf32>
    %810 = arith.mulf %799, %665 : vector<8x32xf32>
    %811 = arith.mulf %791, %801 : vector<8x32xf32>
    %812 = arith.addf %810, %811 : vector<8x32xf32>
    %813 = math.tanh %812 : vector<8x32xf32>
    %814 = arith.mulf %809, %813 : vector<8x32xf32>
    %815 = arith.truncf %814 : vector<8x32xf32> to vector<8x32xbf16>
    %cst_251 = arith.constant dense<0.000000e+00> : vector<8x48xf32>
    %816 = tpu.matmul %815, %7, %cst_251 {dimension_numbers = #tpu.dot_dimension_numbers<[1], [0], [0], [1], [0, 0, 1, 1], [], []>} : vector<8x32xbf16>, vector<32x48xbf16>, vector<8x48xf32> -> vector<8x48xf32>
    %817 = arith.addf %816, %16 : vector<8x48xf32>
    %818 = vector.extract_strided_slice %817 {offsets = [0, 0], sizes = [8, 32], strides = [1, 1]} : vector<8x48xf32> to vector<8x32xf32>
    %819 = vector.extract_strided_slice %817 {offsets = [0, 32], sizes = [8, 16], strides = [1, 1]} : vector<8x48xf32> to vector<8x16xf32>
    %820 = vector.shape_cast %818 : vector<8x32xf32> to vector<8x1x32xf32>
    %821 = vector.broadcast %820 : vector<8x1x32xf32> to vector<8x8x32xf32>
    %822 = arith.mulf %0, %821 : vector<8x8x32xf32>
    %cst_252 = arith.constant dense<0.000000e+00> : vector<8x8xf32>
    %823 = vector.multi_reduction <add>, %822, %cst_252 [2] : vector<8x8x32xf32> to vector<8x8xf32>
    %824 = arith.addf %823, %29 : vector<8x8xf32>
    %cst_253 = arith.constant dense<0xFF800000> : vector<8xf32>
    %825 = vector.multi_reduction <maximumf>, %824, %cst_253 [1] : vector<8x8xf32> to vector<8xf32>
    %826 = vector.shape_cast %825 : vector<8xf32> to vector<8x1xf32>
    %827 = vector.broadcast %826 : vector<8x1xf32> to vector<8x8xf32>
    %828 = arith.subf %824, %827 : vector<8x8xf32>
    %829 = math.exp %828 : vector<8x8xf32>
    %cst_254 = arith.constant dense<0.000000e+00> : vector<8xf32>
    %830 = vector.multi_reduction <add>, %829, %cst_254 [1] : vector<8x8xf32> to vector<8xf32>
    %831 = vector.shape_cast %830 : vector<8xf32> to vector<8x1xf32>
    %832 = tpu.reciprocal %831 {approx = true} : vector<8x1xf32> -> vector<8x1xf32>
    %833 = vector.broadcast %832 : vector<8x1xf32> to vector<8x8xf32>
    %834 = arith.mulf %829, %833 : vector<8x8xf32>
    %835 = vector.shape_cast %834 : vector<8x8xf32> to vector<8x8x1xf32>
    %836 = vector.broadcast %835 : vector<8x8x1xf32> to vector<8x8x32xf32>
    %837 = arith.mulf %0, %836 : vector<8x8x32xf32>
    %cst_255 = arith.constant dense<0.000000e+00> : vector<8x32xf32>
    %838 = vector.multi_reduction <add>, %837, %cst_255 [1] : vector<8x8x32xf32> to vector<8x32xf32>
    %cst_256 = arith.constant 9.99999968E-21 : f32
    %839 = vector.broadcast %cst_256 : f32 to vector<8x1xf32>
    %840 = arith.maximumf %766, %839 : vector<8x1xf32>
    %841 = tpu.reciprocal %840 {approx = true} : vector<8x1xf32> -> vector<8x1xf32>
    %842 = vector.broadcast %841 : vector<8x1xf32> to vector<8x16xf32>
    %843 = arith.mulf %764, %842 : vector<8x16xf32>
    %844 = arith.addf %31, %838 : vector<8x32xf32>
    %845 = arith.truncf %844 : vector<8x32xf32> to vector<8x32xbf16>
    %846 = arith.addf %735, %843 : vector<8x16xf32>
    %847 = arith.truncf %846 : vector<8x16xf32> to vector<8x16xbf16>
    %cst_257 = arith.constant dense<0.000000e+00> : vector<8x48xf32>
    %848 = tpu.matmul %845, %8, %cst_257 {dimension_numbers = #tpu.dot_dimension_numbers<[1], [0], [0], [1], [0, 0, 1, 1], [], []>} : vector<8x32xbf16>, vector<32x48xbf16>, vector<8x48xf32> -> vector<8x48xf32>
    %cst_258 = arith.constant dense<0.000000e+00> : vector<8x48xf32>
    %849 = tpu.matmul %847, %9, %cst_258 {dimension_numbers = #tpu.dot_dimension_numbers<[1], [0], [0], [1], [0, 0, 1, 1], [], []>} : vector<8x16xbf16>, vector<16x48xbf16>, vector<8x48xf32> -> vector<8x48xf32>
    %850 = arith.addf %848, %849 : vector<8x48xf32>
    %851 = arith.addf %850, %19 : vector<8x48xf32>
    %cst_259 = arith.constant 0.000000e+00 : f32
    %852 = vector.broadcast %cst_259 : f32 to vector<8x48xf32>
    %853 = arith.maximumf %851, %852 : vector<8x48xf32>
    %854 = arith.truncf %853 : vector<8x48xf32> to vector<8x48xbf16>
    %cst_260 = arith.constant dense<0.000000e+00> : vector<8x12xf32>
    %855 = tpu.matmul %854, %10, %cst_260 {dimension_numbers = #tpu.dot_dimension_numbers<[1], [0], [0], [1], [0, 0, 1, 1], [], []>} : vector<8x48xbf16>, vector<48x12xbf16>, vector<8x12xf32> -> vector<8x12xf32>
    %856 = arith.addf %855, %22 : vector<8x12xf32>
    %857 = arith.addf %856, %749 : vector<8x12xf32>
    %cst_261 = arith.constant dense<0xFF800000> : vector<8xf32>
    %858 = vector.multi_reduction <maximumf>, %857, %cst_261 [1] : vector<8x12xf32> to vector<8xf32>
    %859 = vector.shape_cast %858 : vector<8xf32> to vector<8x1xf32>
    %860 = vector.broadcast %859 : vector<8x1xf32> to vector<8x12xf32>
    %861 = arith.cmpf oeq, %857, %860 : vector<8x12xf32>
    %c12_i32_262 = arith.constant 12 : i32
    %862 = vector.broadcast %c12_i32_262 : i32 to vector<8x12xi32>
    %863 = arith.select %861, %37, %862 : vector<8x12xi1>, vector<8x12xi32>
    %cst_263 = arith.constant dense<2147483647> : vector<8xi32>
    %864 = vector.multi_reduction <minsi>, %863, %cst_263 [1] : vector<8x12xi32> to vector<8xi32>
    %865 = vector.shape_cast %864 : vector<8xi32> to vector<8x1xi32>
    %866 = vector.broadcast %865 : vector<8x1xi32> to vector<8x12xi32>
    %867 = arith.cmpi eq, %37, %866 : vector<8x12xi32>
    %868 = arith.extui %867 : vector<8x12xi1> to vector<8x12xi32>
    %869 = arith.sitofp %868 : vector<8x12xi32> to vector<8x12xf32>
    %cst_264 = arith.constant dense<0xFF800000> : vector<8xf32>
    %870 = vector.multi_reduction <maximumf>, %857, %cst_264 [1] : vector<8x12xf32> to vector<8xf32>
    %871 = vector.shape_cast %870 : vector<8xf32> to vector<8x1xf32>
    %872 = vector.broadcast %871 : vector<8x1xf32> to vector<8x12xf32>
    %873 = arith.subf %857, %872 : vector<8x12xf32>
    %874 = math.exp %873 : vector<8x12xf32>
    %cst_265 = arith.constant dense<0.000000e+00> : vector<8xf32>
    %875 = vector.multi_reduction <add>, %874, %cst_265 [1] : vector<8x12xf32> to vector<8xf32>
    %876 = vector.shape_cast %875 : vector<8xf32> to vector<8x1xf32>
    %877 = tpu.reciprocal %876 {approx = true} : vector<8x1xf32> -> vector<8x1xf32>
    %878 = vector.broadcast %877 : vector<8x1xf32> to vector<8x12xf32>
    %879 = arith.mulf %874, %878 : vector<8x12xf32>
    %880 = arith.addf %879, %869 : vector<8x12xf32>
    %881 = arith.truncf %880 : vector<8x12xf32> to vector<8x12xbf16>
    %cst_266 = arith.constant dense<0.000000e+00> : vector<8x16xf32>
    %882 = tpu.matmul %881, %4, %cst_266 {dimension_numbers = #tpu.dot_dimension_numbers<[1], [0], [0], [1], [0, 0, 1, 1], [], []>} : vector<8x12xbf16>, vector<12x16xbf16>, vector<8x16xf32> -> vector<8x16xf32>
    %883 = vector.shape_cast %857 : vector<8x12xf32> to vector<1x8x12xf32>
    %884 = arith.index_cast %c5_i32 : i32 to index
    %c0_267 = arith.constant 0 : index
    %c0_268 = arith.constant 0 : index
    %885 = vector.load %arg20[%884, %c0_267, %c0_268] : memref<6x8x12xf32, #tpu.memory_space<vmem>>, vector<1x8x12xf32>
    tpu.vector_store %arg20[%884, %c0_267, %c0_268], %883 {strides = array<i32>} : memref<6x8x12xf32, #tpu.memory_space<vmem>>, vector<1x8x12xf32>,
    %886 = vector.shape_cast %865 : vector<8x1xi32> to vector<8x1x1xi32>
    %c0_269 = arith.constant 0 : index
    %887 = arith.index_cast %c5_i32 : i32 to index
    %c0_270 = arith.constant 0 : index
    %888 = vector.load %arg21[%c0_269, %887, %c0_270] : memref<8x6x1xi32, #tpu.memory_space<vmem>>, vector<8x1x1xi32>
    tpu.vector_store %arg21[%c0_269, %887, %c0_270], %886 {strides = array<i32>} : memref<8x6x1xi32, #tpu.memory_space<vmem>>, vector<8x1x1xi32>,
    %cst_271 = arith.constant 0.000000e+00 : f32
    %889 = vector.broadcast %cst_271 : f32 to vector<8x12xf32>
    %890 = arith.cmpf ogt, %869, %889 : vector<8x12xf32>
    %cst_272 = arith.constant -1.000000e+07 : f32
    %891 = vector.broadcast %cst_272 : f32 to vector<8x12xf32>
    %892 = arith.select %890, %891, %749 : vector<8x12xi1>, vector<8x12xf32>
    %c2_i32_273 = arith.constant 2 : i32
    %893 = vector.broadcast %c2_i32_273 : i32 to vector<8x12xi32>
    %894 = arith.cmpi eq, %37, %893 : vector<8x12xi32>
    %cst_274 = arith.constant 0.000000e+00 : f32
    %895 = vector.broadcast %cst_274 : f32 to vector<8x12xf32>
    %896 = arith.select %894, %895, %892 : vector<8x12xi1>, vector<8x12xf32>
    %cst_275 = arith.constant dense<0.000000e+00> : vector<8x16xf32>
    %897 = tpu.matmul %881, %5, %cst_275 {dimension_numbers = #tpu.dot_dimension_numbers<[1], [0], [0], [1], [0, 0, 1, 1], [], []>} : vector<8x12xbf16>, vector<12x16xbf16>, vector<8x16xf32> -> vector<8x16xf32>
    %898 = math.tanh %897 : vector<8x16xf32>
    %899 = arith.mulf %898, %25 : vector<8x16xf32>
    %cst_276 = arith.constant dense<0.000000e+00> : vector<8xf32>
    %900 = vector.multi_reduction <add>, %899, %cst_276 [1] : vector<8x16xf32> to vector<8xf32>
    %901 = vector.shape_cast %900 : vector<8xf32> to vector<8x1xf32>
    %902 = arith.maximumf %755, %901 : vector<8x1xf32>
    %903 = arith.subf %755, %902 : vector<8x1xf32>
    %904 = math.exp %903 : vector<8x1xf32>
    %905 = arith.subf %901, %902 : vector<8x1xf32>
    %906 = math.exp %905 : vector<8x1xf32>
    %907 = vector.broadcast %904 : vector<8x1xf32> to vector<8x16xf32>
    %908 = arith.mulf %907, %764 : vector<8x16xf32>
    %909 = vector.broadcast %906 : vector<8x1xf32> to vector<8x16xf32>
    %910 = arith.mulf %909, %882 : vector<8x16xf32>
    %911 = arith.addf %908, %910 : vector<8x16xf32>
    %912 = arith.mulf %904, %766 : vector<8x1xf32>
    %913 = arith.addf %912, %906 : vector<8x1xf32>
    %914 = vector.shape_cast %819 : vector<8x16xf32> to vector<8x1x16xf32>
    %915 = vector.broadcast %914 : vector<8x1x16xf32> to vector<8x8x16xf32>
    %916 = arith.mulf %915, %2 : vector<8x8x16xf32>
    %cst_277 = arith.constant dense<0.000000e+00> : vector<8x8xf32>
    %917 = vector.multi_reduction <add>, %916, %cst_277 [2] : vector<8x8x16xf32> to vector<8x8xf32>
    %918 = arith.mulf %819, %819 : vector<8x16xf32>
    %cst_278 = arith.constant dense<0.000000e+00> : vector<8xf32>
    %919 = vector.multi_reduction <add>, %918, %cst_278 [1] : vector<8x16xf32> to vector<8xf32>
    %920 = vector.shape_cast %919 : vector<8xf32> to vector<8x1xf32>
    %cst_279 = arith.constant 1.000000e-16 : f32
    %921 = vector.broadcast %cst_279 : f32 to vector<8x1xf32>
    %922 = arith.maximumf %920, %921 : vector<8x1xf32>
    %923 = math.rsqrt %922 : vector<8x1xf32>
    %924 = vector.broadcast %923 : vector<8x1xf32> to vector<8x8xf32>
    %925 = arith.mulf %917, %924 : vector<8x8xf32>
    %926 = arith.mulf %925, %36 : vector<8x8xf32>
    %927 = arith.maximumf %780, %926 : vector<8x8xf32>
    %c6_i32 = arith.constant 6 : i32
    %cst_280 = arith.constant 0.000000e+00 : f32
    %928 = vector.broadcast %cst_280 : f32 to vector<8x8xf32>
    %929 = arith.cmpf olt, %927, %928 : vector<8x8xf32>
    %cst_281 = arith.constant 0.000000e+00 : f32
    %930 = vector.broadcast %cst_281 : f32 to vector<8x8xf32>
    %931 = arith.select %929, %930, %927 : vector<8x8xi1>, vector<8x8xf32>
    %932 = vector.shape_cast %36 : vector<8x8xf32> to vector<8x8x1xf32>
    %933 = vector.broadcast %932 : vector<8x8x1xf32> to vector<8x8x16xf32>
    %934 = arith.mulf %2, %933 : vector<8x8x16xf32>
    %935 = arith.truncf %934 : vector<8x8x16xf32> to vector<8x8x16xbf16>
    %936 = arith.mulf %3, %3 : vector<8x8x16xf32>
    %cst_282 = arith.constant dense<0.000000e+00> : vector<8x8xf32>
    %937 = vector.multi_reduction <add>, %936, %cst_282 [2] : vector<8x8x16xf32> to vector<8x8xf32>
    %938 = vector.shape_cast %937 : vector<8x8xf32> to vector<8x8x1xf32>
    %cst_283 = arith.constant 1.000000e-16 : f32
    %939 = vector.broadcast %cst_283 : f32 to vector<8x8x1xf32>
    %940 = arith.maximumf %938, %939 : vector<8x8x1xf32>
    %941 = math.rsqrt %940 : vector<8x8x1xf32>
    %942 = vector.broadcast %941 : vector<8x8x1xf32> to vector<8x8x16xf32>
    %943 = arith.mulf %3, %942 : vector<8x8x16xf32>
    %944 = arith.truncf %943 : vector<8x8x16xf32> to vector<8x8x16xbf16>
    "tpu.trace_start"() <{level = 10 : i32, message = "bkm,bvm->bkv"}> : () -> ()
    %cst_284 = arith.constant dense<0.000000e+00> : vector<8x8x8xf32>
    %945 = tpu.matmul %935, %944, %cst_284 {dimension_numbers = #tpu.dot_dimension_numbers<[2], [2], [1], [1], [0, 0, 0, 1, 1, 1], [0], [0]>} : vector<8x8x16xbf16>, vector<8x8x16xbf16>, vector<8x8x8xf32> -> vector<8x8x8xf32>
    "tpu.trace_stop"() : () -> ()
    %cst_285 = arith.constant dense<0xFF800000> : vector<8x8xf32>
    %946 = vector.multi_reduction <maximumf>, %945, %cst_285 [2] : vector<8x8x8xf32> to vector<8x8xf32>
    %947 = vector.shape_cast %946 : vector<8x8xf32> to vector<8x8x1xf32>
    %948 = vector.broadcast %947 : vector<8x8x1xf32> to vector<8x8x8xf32>
    %949 = arith.cmpf olt, %945, %948 : vector<8x8x8xf32>
    %cst_286 = arith.constant 0.000000e+00 : f32
    %950 = vector.broadcast %cst_286 : f32 to vector<8x8x8xf32>
    %951 = arith.select %949, %950, %945 : vector<8x8x8xi1>, vector<8x8x8xf32>
    %cst_287 = arith.constant 8.000000e-01 : f32
    %952 = vector.broadcast %cst_287 : f32 to vector<8x8x8xf32>
    %953 = arith.cmpf olt, %951, %952 : vector<8x8x8xf32>
    %cst_288 = arith.constant 0.000000e+00 : f32
    %954 = vector.broadcast %cst_288 : f32 to vector<8x8x8xf32>
    %955 = arith.select %953, %954, %951 : vector<8x8x8xi1>, vector<8x8x8xf32>
    %956 = vector.shape_cast %931 : vector<8x8xf32> to vector<8x8x1xf32>
    %957 = vector.broadcast %956 : vector<8x8x1xf32> to vector<8x8x8xf32>
    %958 = arith.mulf %957, %955 : vector<8x8x8xf32>
    %cst_289 = arith.constant dense<0.000000e+00> : vector<8x8xf32>
    %959 = vector.multi_reduction <add>, %958, %cst_289 [1] : vector<8x8x8xf32> to vector<8x8xf32>
    %c0_290 = arith.constant 0 : index
    %c0_291 = arith.constant 0 : index
    %960 = vector.load %arg4[%c0_290, %c0_291] : memref<8x8xf32, #tpu.memory_space<vmem>>, vector<8x8xf32>
    %cst_292 = arith.constant 0.000000e+00 : f32
    %961 = vector.broadcast %cst_292 : f32 to vector<8x8xf32>
    %962 = arith.cmpf ogt, %960, %961 : vector<8x8xf32>
    %cst_293 = arith.constant -1.000000e+00 : f32
    %963 = vector.broadcast %cst_293 : f32 to vector<8x8xf32>
    %964 = arith.select %962, %931, %963 : vector<8x8xi1>, vector<8x8xf32>
    %c0_294 = arith.constant 0 : index
    %c0_295 = arith.constant 0 : index
    %965 = vector.load %arg22[%c0_294, %c0_295] : memref<8x8xf32, #tpu.memory_space<vmem>>, vector<8x8xf32>
    tpu.vector_store %arg22[%c0_294, %c0_295], %964 {strides = array<i32>} : memref<8x8xf32, #tpu.memory_space<vmem>>, vector<8x8xf32>,
    %c0_296 = arith.constant 0 : index
    %c0_297 = arith.constant 0 : index
    %966 = vector.load %arg5[%c0_296, %c0_297] : memref<8x8xf32, #tpu.memory_space<vmem>>, vector<8x8xf32>
    %cst_298 = arith.constant 0.000000e+00 : f32
    %967 = vector.broadcast %cst_298 : f32 to vector<8x8xf32>
    %968 = arith.cmpf ogt, %966, %967 : vector<8x8xf32>
    %cst_299 = arith.constant -1.000000e+00 : f32
    %969 = vector.broadcast %cst_299 : f32 to vector<8x8xf32>
    %970 = arith.select %968, %959, %969 : vector<8x8xi1>, vector<8x8xf32>
    %c0_300 = arith.constant 0 : index
    %c0_301 = arith.constant 0 : index
    %971 = vector.load %arg23[%c0_300, %c0_301] : memref<8x8xf32, #tpu.memory_space<vmem>>, vector<8x8xf32>
    tpu.vector_store %arg23[%c0_300, %c0_301], %970 {strides = array<i32>} : memref<8x8xf32, #tpu.memory_space<vmem>>, vector<8x8xf32>,
    return
  }
}

</mosaic_0001>

<bundles_post_ra>
// kernel: tpu_custom_call.1
= control target key start
LH: loop header
LB: loop body
LE: loop exit
PB: predicated region body
PF: predicated region fallthrough
CT: control target
= control target key end

     0   :  { %s12458_s0 = inlined_call_operand.hbm [shape: f32[8,8,32], index: 0, kind: input, shape index: {}]   ;;  %s12459_s1 = inlined_call_operand.hbm [shape: f32[8,32], index: 1, kind: input, shape index: {}]   ;;  %s12460_s2 = inlined_call_operand.hbm [shape: f32[8,32], index: 2, kind: input, shape index: {}]   ;;  %s12461_s3 = inlined_call_operand.hbm [shape: f32[8,8], index: 3, kind: input, shape index: {}]   ;;  %s12462_s4 = inlined_call_operand.hbm [shape: f32[8,8], index: 4, kind: input, shape index: {}]   ;;  %s12463_s5 = inlined_call_operand.hbm [shape: f32[8,8], index: 5, kind: input, shape index: {}]   ;;  %s12464_s6 = inlined_call_operand.hbm [shape: f32[8,8,16], index: 6, kind: input, shape index: {}]   ;;  %s12465_s7 = inlined_call_operand.hbm [shape: f32[8,8,16], index: 7, kind: input, shape index: {}]   ;;  %s12466_s8 = inlined_call_operand.vmem [shape: bf16[32,128], index: 8, kind: input, shape index: {}]   ;;  %s12467_s9 = inlined_call_operand.vmem [shape: f32[1,128], index: 9, kind: input, shape index: {}]   ;;  %s12468_s10 = inlined_call_operand.vmem [shape: bf16[32,48], index: 10, kind: input, shape index: {}]   ;;  %s12469_s11 = inlined_call_operand.hbm [shape: f32[1,48], index: 11, kind: input, shape index: {}]   ;;  %s12470_s12 = inlined_call_operand.hbm [shape: f32[1,16], index: 12, kind: input, shape index: {}]   ;;  %s12471_s13 = inlined_call_operand.vmem [shape: bf16[32,48], index: 13, kind: input, shape index: {}]   ;;  %s12472_s14 = inlined_call_operand.vmem [shape: bf16[16,48], index: 14, kind: input, shape index: {}]   ;;  %s12473_s15 = inlined_call_operand.vmem [shape: f32[1,48], index: 15, kind: input, shape index: {}]   ;;  %s12474_s16 = inlined_call_operand.vmem [shape: bf16[48,12], index: 16, kind: input, shape index: {}]   ;;  %s12475_s17 = inlined_call_operand.vmem [shape: f32[1,12], index: 17, kind: input, shape index: {}]   ;;  %s12476_s18 = inlined_call_operand.vmem [shape: bf16[12,16], index: 18, kind: input, shape index: {}]   ;;  %s12477_s19 = inlined_call_operand.vmem [shape: bf16[12,16], index: 19, kind: input, shape index: {}]   ;;  %s12478_s20 = inlined_call_operand.hbm [shape: f32[6,8,12], index: 20, kind: output, shape index: {0}]   ;;  %s12479_s21 = inlined_call_operand.vmem [shape: s32[8,6,1], index: 21, kind: output, shape index: {1}]   ;;  %s12480_s22 = inlined_call_operand.hbm [shape: f32[8,8], index: 22, kind: output, shape index: {2}]   ;;  %s12481_s23 = inlined_call_operand.hbm [shape: f32[8,8], index: 23, kind: output, shape index: {3}]  }
   0x1   :  { %12605 = sst [smem:[#allocation95_spill]] %s12458_s0 }
   0x2   :  { %12606 = sst [smem:[#allocation96_spill]] %s12459_s1 }
   0x3   :  { %12607 = sst [smem:[#allocation97_spill]] %s12460_s2 }
   0x4   :  { %12608 = sst [smem:[#allocation98_spill]] %s12461_s3 }
   0x5   :  { %12609 = sst [smem:[#allocation99_spill]] %s12462_s4 }
   0x6   :  { %12610 = sst [smem:[#allocation100_spill]] %s12463_s5 }
   0x7   :  { %12611 = sst [smem:[#allocation101_spill]] %s12464_s6 }
   0x8   :  { %12612 = sst [smem:[#allocation102_spill]] %s12465_s7 }
   0x9   :  { %12613 = sst [smem:[#allocation103_spill]] %s12478_s20 }
   0xa   :  { %12614 = sst [smem:[#allocation104_spill]] %s12480_s22 }
   0xb   :  { %12615 = sst [smem:[#allocation105_spill]] %s12481_s23 }
   0xc   :  { %29 = vsyncpa [#allocation3], 0 }
   0xd   :  { %30 = vsyncpa [#allocation6], 0 }
   0xe   :  { %31 = vsyncpa [#allocation9], 0 }
   0xf   :  { %32 = vsyncpa [#allocation12], 0 }
  0x10   :  { %33 = vsyncpa [#allocation15], 0 }
  0x11   :  { %34 = vsyncpa [#allocation18], 0 }
  0x12   :  { %35 = vsyncpa [#allocation4], 0 }
  0x13   :  { %36 = vsyncpa [#allocation21], 0  ;;  %s9008_s4 = smov [#allocation5]   ;;  %s9009_s24 = smov [#allocation8]  }
  0x14   :  { %s55_s30 = sshll.u32 %s9008_s4, 4  ;;  %s75_s25 = sshll.u32 %s9009_s24, 4  ;;  %s56_s30 = int_to_ptr.vmem [resolvable:$true] %s55_s30  ;;  %s76_s25 = int_to_ptr.vmem [resolvable:$true] %s75_s25 }
  0x15   :  { %s12616_s26 = sld [smem:[#allocation96_spill]] }
  0x1b   :  { %s8706_s2 = scalar_lea.hbm %s12616_s26, 128 }
  0x1c   :  { %p8707_p0 = scmp.ne.s32.totalorder %s12616_s26, %s8706_s2  ;;  %p8710_p1 = scmp.lt.u32.totalorder %s8706_s2, %s12616_s26 }
  0x1e   :  { %p8712_p2 = pnand %p8710_p1, %p8707_p0 }
  0x20   :  { %8715 = shalt.err (!%p8712_p2)
}
  0x21   :  { %s8716_s29 = scalar_lea.vmem %s56_s30, 128  ;;  %p8721_p4 = scmp.lt.s32.totalorder %s56_s30, %s56_s30 }
  0x22   :  { %p8717_p3 = scmp.ne.s32.totalorder %s56_s30, %s8716_s29  ;;  %p8722_p5 = scmp.lt.s32.totalorder %s8716_s29, %s8716_s29 }
  0x24   :  { %p8723_p6 = por %p8722_p5, %p8721_p4 }
  0x26   :  { %p8724_p7 = pnand %p8723_p6, %p8717_p3 }
  0x28   :  { %8727 = shalt.err (!%p8724_p7)
}
  0x29   :  { %58 = dma.hbm_to_vmem [thread:$0]  %s12616_s26, 128, %s56_s30, [#allocation6]  }
  0x2a   :  { %s12617_s5 = sld [smem:[#allocation98_spill]] }
  0x30   :  { %s8728_s1 = scalar_lea.hbm %s12617_s5, 128 }
  0x31   :  { %p8729_p8 = scmp.ne.s32.totalorder %s12617_s5, %s8728_s1  ;;  %p8732_p9 = scmp.lt.u32.totalorder %s8728_s1, %s12617_s5 }
  0x33   :  { %p8734_p10 = pnand %p8732_p9, %p8729_p8 }
  0x35   :  { %8737 = shalt.err (!%p8734_p10)
}
  0x36   :  { %s8738_s28 = scalar_lea.vmem %s76_s25, 128  ;;  %p8743_p12 = scmp.lt.s32.totalorder %s76_s25, %s76_s25 }
  0x37   :  { %p8739_p11 = scmp.ne.s32.totalorder %s76_s25, %s8738_s28  ;;  %p8744_p13 = scmp.lt.s32.totalorder %s8738_s28, %s8738_s28 }
  0x39   :  { %p8745_p0 = por %p8744_p13, %p8743_p12 }
  0x3b   :  { %p8746_p1 = pnand %p8745_p0, %p8739_p11 }
  0x3d   :  { %8749 = shalt.err (!%p8746_p1)
}
  0x3e   :  { %78 = dma.hbm_to_vmem [thread:$0]  %s12617_s5, 128, %s76_s25, [#allocation9]  }
  0x3f   :  { %s9010_s29 = smov [#allocation11]   ;;  %s12618_s24 = sld [smem:[#allocation100_spill]] }
  0x40   :  { %s95_s3 = sshll.u32 %s9010_s29, 4  ;;  %s96_s3 = int_to_ptr.vmem [resolvable:$true] %s95_s3 }
  0x45   :  { %s8750_s1 = scalar_lea.hbm %s12618_s24, 128 }
  0x46   :  { %p8751_p2 = scmp.ne.s32.totalorder %s12618_s24, %s8750_s1  ;;  %p8754_p3 = scmp.lt.u32.totalorder %s8750_s1, %s12618_s24 }
  0x48   :  { %p8756_p4 = pnand %p8754_p3, %p8751_p2 }
  0x4a   :  { %8759 = shalt.err (!%p8756_p4)
}
  0x4b   :  { %s8760_s28 = scalar_lea.vmem %s96_s3, 128  ;;  %p8765_p6 = scmp.lt.s32.totalorder %s96_s3, %s96_s3 }
  0x4c   :  { %p8761_p5 = scmp.ne.s32.totalorder %s96_s3, %s8760_s28  ;;  %p8766_p7 = scmp.lt.s32.totalorder %s8760_s28, %s8760_s28 }
  0x4e   :  { %p8767_p8 = por %p8766_p7, %p8765_p6 }
  0x50   :  { %p8768_p9 = pnand %p8767_p8, %p8761_p5 }
  0x52   :  { %8771 = shalt.err (!%p8768_p9)
}
  0x53   :  { %98 = dma.hbm_to_vmem [thread:$0]  %s12618_s24, 128, %s96_s3, [#allocation12]  }
  0x54   :  { %s9011_s30 = smov [#allocation14]   ;;  %s9012_s29 = smov [#allocation2]  }
  0x55   :  { %s116_s26 = sshll.u32 %s9011_s30, 4  ;;  %s42_s0 = sshll.u32 %s9012_s29, 4  ;;  %s117_s26 = int_to_ptr.vmem [resolvable:$true] %s116_s26  ;;  %s43_s0 = int_to_ptr.vmem [resolvable:$true] %s42_s0 }
  0x56   :  { %s12619_s6 = sld [smem:[#allocation102_spill]] }
  0x5c   :  { %s8772_s27 = scalar_lea.hbm %s12619_s6, 1024 }
  0x5d   :  { %p8773_p10 = scmp.ne.s32.totalorder %s12619_s6, %s8772_s27  ;;  %p8776_p11 = scmp.lt.u32.totalorder %s8772_s27, %s12619_s6 }
  0x5f   :  { %p8778_p12 = pnand %p8776_p11, %p8773_p10 }
  0x61   :  { %8781 = shalt.err (!%p8778_p12)
}
  0x62   :  { %s8782_s3 = scalar_lea.vmem %s117_s26, 1024  ;;  %p8787_p0 = scmp.lt.s32.totalorder %s117_s26, %s117_s26 }
  0x63   :  { %p8783_p13 = scmp.ne.s32.totalorder %s117_s26, %s8782_s3  ;;  %p8788_p1 = scmp.lt.s32.totalorder %s8782_s3, %s8782_s3 }
  0x65   :  { %p8789_p2 = por %p8788_p1, %p8787_p0 }
  0x67   :  { %p8790_p3 = pnand %p8789_p2, %p8783_p13 }
  0x69   :  { %8793 = shalt.err (!%p8790_p3)
}
  0x6a   :  { %s9013_s24 = smov 128   ;;  %s9014_s25 = smov 8  }
  0x6b   :  { %122 = dma.hbm_to_vmem [thread:$0]  %s12619_s6, 1024, %s117_s26, [#allocation15], %s9013_s24, %s9013_s24, %s9014_s25  }
  0x6c   :  { %s12620_s4 = sld [smem:[#allocation95_spill]] }
  0x72   :  { %s8794_s1 = scalar_lea.hbm %s12620_s4, 1024 }
  0x73   :  { %p8795_p4 = scmp.ne.s32.totalorder %s12620_s4, %s8794_s1  ;;  %p8798_p5 = scmp.lt.u32.totalorder %s8794_s1, %s12620_s4 }
  0x75   :  { %p8800_p6 = pnand %p8798_p5, %p8795_p4 }
  0x77   :  { %8803 = shalt.err (!%p8800_p6)
}
  0x78   :  { %s8804_s3 = scalar_lea.vmem %s43_s0, 1024  ;;  %p8809_p8 = scmp.lt.s32.totalorder %s43_s0, %s43_s0 }
  0x79   :  { %p8805_p7 = scmp.ne.s32.totalorder %s43_s0, %s8804_s3  ;;  %p8810_p9 = scmp.lt.s32.totalorder %s8804_s3, %s8804_s3 }
  0x7b   :  { %p8811_p10 = por %p8810_p9, %p8809_p8 }
  0x7d   :  { %p8812_p11 = pnand %p8811_p10, %p8805_p7 }
  0x7f   :  { %8815 = shalt.err (!%p8812_p11)
}
  0x80   :  { %48 = dma.hbm_to_vmem [thread:$0]  %s12620_s4, 1024, %s43_s0, [#allocation3], %s9013_s24, %s9013_s24, %s9014_s25  }
  0x81   :  { %s9015_s5 = smov [#allocation7]   ;;  %s9016_s23 = smov [#allocation10]  }
  0x82   :  { %s65_s30 = sshll.u32 %s9015_s5, 4  ;;  %s85_s29 = sshll.u32 %s9016_s23, 4  ;;  %s66_s30 = int_to_ptr.vmem [resolvable:$true] %s65_s30  ;;  %s86_s29 = int_to_ptr.vmem [resolvable:$true] %s85_s29 }
  0x83   :  { %s12621_s2 = sld [smem:[#allocation97_spill]] }
  0x89   :  { %s8816_s7 = scalar_lea.hbm %s12621_s2, 128 }
  0x8a   :  { %p8817_p12 = scmp.ne.s32.totalorder %s12621_s2, %s8816_s7  ;;  %p8820_p13 = scmp.lt.u32.totalorder %s8816_s7, %s12621_s2 }
  0x8c   :  { %p8822_p0 = pnand %p8820_p13, %p8817_p12 }
  0x8e   :  { %8825 = shalt.err (!%p8822_p0)
}
  0x8f   :  { %s8826_s0 = scalar_lea.vmem %s66_s30, 128  ;;  %p8831_p2 = scmp.lt.s32.totalorder %s66_s30, %s66_s30 }
  0x90   :  { %p8827_p1 = scmp.ne.s32.totalorder %s66_s30, %s8826_s0  ;;  %p8832_p3 = scmp.lt.s32.totalorder %s8826_s0, %s8826_s0 }
  0x92   :  { %p8833_p4 = por %p8832_p3, %p8831_p2 }
  0x94   :  { %p8834_p5 = pnand %p8833_p4, %p8827_p1 }
  0x96   :  { %8837 = shalt.err (!%p8834_p5)
}
  0x97   :  { %68 = dma.hbm_to_vmem [thread:$0]  %s12621_s2, 128, %s66_s30, [#allocation6]  }
  0x98   :  { %s12622_s23 = sld [smem:[#allocation99_spill]] }
  0x9e   :  { %s8838_s1 = scalar_lea.hbm %s12622_s23, 128 }
  0x9f   :  { %p8839_p6 = scmp.ne.s32.totalorder %s12622_s23, %s8838_s1  ;;  %p8842_p7 = scmp.lt.u32.totalorder %s8838_s1, %s12622_s23 }
  0xa1   :  { %p8844_p8 = pnand %p8842_p7, %p8839_p6 }
  0xa3   :  { %8847 = shalt.err (!%p8844_p8)
}
  0xa4   :  { %s8848_s28 = scalar_lea.vmem %s86_s29, 128  ;;  %p8853_p10 = scmp.lt.s32.totalorder %s86_s29, %s86_s29 }
  0xa5   :  { %p8849_p9 = scmp.ne.s32.totalorder %s86_s29, %s8848_s28  ;;  %p8854_p11 = scmp.lt.s32.totalorder %s8848_s28, %s8848_s28 }
  0xa7   :  { %p8855_p12 = por %p8854_p11, %p8853_p10 }
  0xa9   :  { %p8856_p13 = pnand %p8855_p12, %p8849_p9 }
  0xab   :  { %8859 = shalt.err (!%p8856_p13)
}
  0xac   :  { %88 = dma.hbm_to_vmem [thread:$0]  %s12622_s23, 128, %s86_s29, [#allocation9]  }
  0xad   :  { %s9017_s3 = smov [#allocation13]   ;;  %s9018_s4 = smov [#allocation16]  }
  0xae   :  { %s104_s0 = sshll.u32 %s9017_s3, 4  ;;  %s135_s26 = sshll.u32 %s9018_s4, 4  ;;  %s105_s0 = int_to_ptr.vmem [resolvable:$true] %s104_s0  ;;  %s136_s26 = int_to_ptr.vmem [resolvable:$true] %s135_s26 }
  0xaf   :  { %s12623_s1 = sld [smem:[#allocation101_spill]] }
  0xb5   :  { %s8860_s20 = scalar_lea.hbm %s12623_s1, 1024 }
  0xb6   :  { %p8861_p0 = scmp.ne.s32.totalorder %s12623_s1, %s8860_s20  ;;  %p8864_p1 = scmp.lt.u32.totalorder %s8860_s20, %s12623_s1 }
  0xb8   :  { %p8866_p2 = pnand %p8864_p1, %p8861_p0 }
  0xba   :  { %8869 = shalt.err (!%p8866_p2)
}
  0xbb   :  { %s8870_s29 = scalar_lea.vmem %s105_s0, 1024  ;;  %p8875_p4 = scmp.lt.s32.totalorder %s105_s0, %s105_s0 }
  0xbc   :  { %p8871_p3 = scmp.ne.s32.totalorder %s105_s0, %s8870_s29  ;;  %p8876_p5 = scmp.lt.s32.totalorder %s8870_s29, %s8870_s29 }
  0xbe   :  { %p8877_p6 = por %p8876_p5, %p8875_p4 }
  0xc0   :  { %p8878_p7 = pnand %p8877_p6, %p8871_p3 }
  0xc2   :  { %8881 = shalt.err (!%p8878_p7)
}
  0xc3   :  { %110 = dma.hbm_to_vmem [thread:$0]  %s12623_s1, 1024, %s105_s0, [#allocation12], %s9013_s24, %s9013_s24, %s9014_s25  }
  0xc4   :  { %s8882_s4 = scalar_lea.hbm %s12469_s11, 16 }
  0xc5   :  { %p8883_p8 = scmp.ne.s32.totalorder %s12469_s11, %s8882_s4  ;;  %p8886_p9 = scmp.lt.u32.totalorder %s8882_s4, %s12469_s11 }
  0xc7   :  { %p8888_p10 = pnand %p8886_p9, %p8883_p8 }
  0xc9   :  { %8891 = shalt.err (!%p8888_p10)
}
  0xca   :  { %s8892_s27 = scalar_lea.vmem %s136_s26, 16  ;;  %s8896_s7 = scalar_lea.vmem %s136_s26, 32 }
  0xcb   :  { %p8893_p11 = scmp.ne.s32.totalorder %s136_s26, %s8892_s27  ;;  %p8897_p12 = scmp.lt.s32.totalorder %s136_s26, %s136_s26 }
  0xcc   :  { %p8898_p13 = scmp.lt.s32.totalorder %s8896_s7, %s8892_s27 }
  0xce   :  { %p8899_p0 = por %p8898_p13, %p8897_p12 }
  0xd0   :  { %p8900_p1 = pnand %p8899_p0, %p8893_p11 }
  0xd2   :  { %8903 = shalt.err (!%p8900_p1)
}
  0xd3   :  { %138 = dma.hbm_to_vmem [thread:$0]  %s12469_s11, 16, %s136_s26, [#allocation15]  }
  0xd4   :  { %s9019_s28 = smov [#allocation17]   ;;  %s8904_s2 = scalar_lea.hbm %s12470_s12, 16 }
  0xd5   :  { %s145_s29 = sshll.u32 %s9019_s28, 4  ;;  %p8905_p2 = scmp.ne.s32.totalorder %s12470_s12, %s8904_s2  ;;  %s146_s29 = int_to_ptr.vmem [resolvable:$true] %s145_s29 }
  0xd6   :  { %p8908_p3 = scmp.lt.u32.totalorder %s8904_s2, %s12470_s12 }
  0xd8   :  { %p8910_p4 = pnand %p8908_p3, %p8905_p2 }
  0xda   :  { %8913 = shalt.err (!%p8910_p4)
}
  0xdb   :  { %s8914_s20 = scalar_lea.vmem %s146_s29, 16  ;;  %s8918_s11 = scalar_lea.vmem %s146_s29, 32 }
  0xdc   :  { %p8915_p5 = scmp.ne.s32.totalorder %s146_s29, %s8914_s20  ;;  %p8919_p6 = scmp.lt.s32.totalorder %s146_s29, %s146_s29 }
  0xdd   :  { %p8920_p7 = scmp.lt.s32.totalorder %s8918_s11, %s8914_s20 }
  0xdf   :  { %p8921_p8 = por %p8920_p7, %p8919_p6 }
  0xe1   :  { %p8922_p9 = pnand %p8921_p8, %p8915_p5 }
  0xe3   :  { %8925 = shalt.err (!%p8922_p9)
}
  0xe4   :  { %148 = dma.hbm_to_vmem [thread:$0]  %s12470_s12, 16, %s146_s29, [#allocation18]  }
  0xe5   :  { %8992 = dma.done.wait [#allocation3], 1024  }
  0xe6   :  { %8993 = vsyncadd [#allocation3], 4294966272 }
  0xe7   :  { %8994 = dma.done.wait [#allocation6], 256  }
  0xe8   :  { %8995 = vsyncadd [#allocation6], 4294967040 }
  0xe9   :  { %8996 = dma.done.wait [#allocation9], 256  }
  0xea   :  { %8997 = vsyncadd [#allocation9], 4294967040 }
  0xeb   :  { %8998 = dma.done.wait [#allocation12], 1152  }
  0xec   :  { %8999 = vsyncadd [#allocation12], 4294966144 }
  0xed   :  { %9000 = dma.done.wait [#allocation15], 1040  }
  0xee   :  { %9001 = vsyncadd [#allocation15], 4294966256 }
  0xef   :  { %9002 = dma.done.wait [#allocation18], 16  }
  0xf0   :  { %9003 = vsyncadd [#allocation18], 4294967280  ;;  %v12493_v0 = vmov 0.0   ;;  %vm9021_vm0 = vmmov 0   ;;  %v9289_v1 = vld [vmem:[%s12466_s8] sm:$0xff]   ;;  %v9295_v2 = vld [vmem:[%s12466_s8 + $0x8] sm:$0xff]   ;;  %v329_v27 = vlaneseq }
  0xf1   :  { %8005 = vmatprep.subr.bf16.mxu0 %v12493_v0  ;;  %8009 = vmatprep.mubr.msk.bf16.mxu0 %vm9021_vm0, %v12493_v0  ;;  %v331_v3 = vld [vmem:[#allocation5] sm:$0xff]  ;;  %vm346_vm1 = vcmask 261120   ;;  %s9022_s29 = smov 64   ;;  %v332_v12 = vld [vmem:[#allocation7] sm:$0xff]  ;;  %s9023_s23 = smov 32   ;;  %v202_v26 = vld [vmem:[#allocation8] sm:$0xff] }
  0xf2   :  { %8013 = vmatprep.subr.bf16.mxu1 %v12493_v0  ;;  %8017 = vmatprep.mubr.msk.bf16.mxu1 %vm9021_vm0, %v12493_v0  ;;  %v333_v4 = vpack.c.bf16 %v331_v3, %v331_v3  ;;  %v9306_v5 = vld [vmem:[%s12467_s9] ss:$0 sm:$0xff]  ;;  %v8381_v24 = vld [vmem:[%s12468_s10 + $0x8] sm:$0xff]   ;;  %v278_v28 = vsub.f32 1.0, %v202_v26  ;;  %v9325_v29 = vshrl.u32 %v329_v27, 7  ;;  %vm734_vm2 = vcmask 1041409  }
  0xf3   :  { %8006 = vmatpush3.bf16.msra.mxu0 %v9289_v1  ;;  %v8380_v23 = vld [vmem:[%s12468_s10] sm:$0xff]   ;;  %v9024_v47 = vmov 1966171168   ;;  %v7811_v50 = vld [vmem:[#allocation16] ss:$0 sm:$0xff]  ;;  %vm736_vm3 = vcmask 1042434  }
  0xf4   :  { %8007 = vmatprep.subr.bf16.mxu0 %v12493_v0  ;;  %8014 = vmatpush3.bf16.msra.mxu1 %v8380_v23  ;;  %v9327_v30 = vmul.f32 -10000000.0, %v278_v28  ;;  %v9330_v31 = vsub.s32 1, %v9325_v29  ;;  %v9333_v32 = vsub.s32 2, %v9325_v29  ;;  %v9340_v36 = vsub.s32 4, %v9325_v29  ;;  %v9377_v62 = vld [vmem:[#allocation2] sm:$0xff] }
  0xf5   :  { %8015 = vmatprep.subr.bf16.mxu1 %v12493_v0  ;;  %v9343_v38 = vsub.s32 0, %v9325_v29  ;;  %v9351_v42 = vsub.s32 3, %v9325_v29  ;;  %v9356_v44 = vsub.s32 5, %v9325_v29  ;;  %v478_v48 = vunpack.c.l.s4 %v9024_v47  ;;  %s9029_s22 = smov [#allocation19]  }
  0xf6   :  { %v608_v33 = vrot.slane %v9327_v30, %v9330_v31  ;;  %v615_v35 = vrot.slane %v9327_v30, %v9333_v32  ;;  %v629_v40 = vrot.slane %v9327_v30, %v9340_v36  ;;  %vm738_vm4 = vcmask 1043459   ;;  %s7762_s12 = sshll.u32 %s9029_s22, 4  ;;  %s12370_s12 = int_to_ptr.vmem [resolvable:$true] %s7762_s12 }
  0xf7   :  { %8008 = vmatpush3.bf16.msra.mxu0 %v9295_v2  ;;  %v601_v41 = vrot.slane %v9327_v30, %v9343_v38  ;;  %v622_v43 = vrot.slane %v9327_v30, %v9351_v42  ;;  %v636_v45 = vrot.slane %v9327_v30, %v9356_v44  ;;  %v479_v49 = vunpack.c.0.s8 %v478_v48 }
  0xf8   :  { %8021 = vmatprep.subr.bf16.mxu0 %v12493_v0  ;;  %8016 = vmatpush3.bf16.msra.mxu1 %v8381_v24  ;;  %vm740_vm5 = vcmask 1044484   ;;  %vm742_vm6 = vcmask 1045509   ;;  %vm744_vm7 = vcmask 1046534   ;;  %vm746_vm8 = vcmask 1047559  }
  0xf9   :  { %8027 = vmatprep.subr.bf16.mxu1 %v12493_v0  ;;  %v9367_v51 = vsub.s32 %v479_v49, %v9325_v29  ;;  %vm749_vm9 = vcmask 64512   ;;  %vm12561_vm10 = vcmask 392192   ;;  %vm1268_vm11 = vcmask 97280  }
  0xfa   :  { %8010 = vmatmul.mubr.msk.bf16.vlgmr.msra.gmra.mrb[0].mxu0 %vm346_vm1, %v333_v4  ;;  %vm1310_vm14 = vcmask 1045504   ;;  %vm1387_vm15 = vcmask 0  }
  0xfb   :  { %8023 = vmatprep.mubr.msk.bf16.mxu0 %vm9021_vm0, %v12493_v0 }
 0x1cd   :  { %v384_v6 = vpop.f32.mrb[0].mxu0 }
 0x1ce   :  { %v385_v7 = vadd.f32 %v9306_v5, %v384_v6  ;;  %v8011_v8 = vpop.f32.mrb[1].mxu0 }
 0x1cf   :  { %v387_v9 = vpop.f32.mrb[2].mxu0 }
 0x1d0   :  { %8390 = vtanh.f32 %v385_v7  ;;  %v8012_v10 = vpop.f32.mrb[3].mxu0  ;;  %v390_v13 = vmul.f32 0.5, %v385_v7  ;;  %v9383_v7 = vld [vmem:[#allocation2 + $0x8] sm:$0xff] }
 0x1d2   :  { %8392 = vtanh.f32 %v390_v13  ;;  %v9394_v13 = vld [vmem:[#allocation2 + $0x18] sm:$0xff] }
 0x1da   :  { %v8391_v11 = vpop.eup %8390 }
 0x1db   :  { %401 = vrot.lane.b32.xlu0 %v8391_v11, %s9022_s29 }
 0x1dc   :  { %v8393_v14 = vpop.eup %8392 }
 0x1dd   :  { %v392_v15 = vmul.f32 0.5, %v8393_v14  ;;  %v9396_v14 = vld [vmem:[#allocation2 + $0x10] sm:$0xff] }
 0x1df   :  { %396 = vrot.lane.b32.xlu0 %v332_v12, %s9023_s23  ;;  %v393_v16 = vadd.f32 0.5, %v392_v15 }
 0x24d   :  { %v402_v17 = vpop.permute.xlu0 %401 }
 0x24e   :  { %v404_v18 = vmul.f32 %v402_v17, %v393_v16 }
 0x250   :  { %406 = vrot.lane.b32.xlu1 %v404_v18, %s9023_s23 }
 0x251   :  { %v397_v19 = vpop.permute.xlu0 %396 }
 0x252   :  { %v399_v20 = vmul.f32 %v397_v19, %v393_v16  ;;  %v9405_v19 = vld [vmem:[#allocation2 + $0x28] sm:$0xff] }
 0x2c2   :  { %v407_v21 = vpop.permute.xlu1 %406 }
 0x2c3   :  { %v9312_v22 = vadd.f32 %v407_v21, %v399_v20 }
 0x2c5   :  { %8394 = vtanh.f32 %v9312_v22 }
 0x2cf   :  { %v8395_v25 = vpop.eup %8394 }
 0x2d0   :  { %412 = vrot.lane.b32.xlu1 %v8395_v25, %s9022_s29 }
 0x2d4   :  { %610 = vbcast.lane.b32.xlu1 %v608_v33, 256  ;;  %v9418_v33 = vld [vmem:[#allocation2 + $0x20] sm:$0xff] }
 0x2d8   :  { %617 = vbcast.lane.b32.xlu1 %v615_v35, 256 }
 0x2dc   :  { %631 = vbcast.lane.b32.xlu1 %v629_v40, 256 }
 0x342   :  { %v413_v34 = vpop.permute.xlu1 %412 }
 0x343   :  { %v415_v37 = vmul.f32 %v413_v34, %v393_v16 }
 0x345   :  { %v416_v39 = vpack.c.bf16 %v415_v37, %v415_v37 }
 0x347   :  { %418 = vrot.lane.b32.xlu0 %v416_v39, %s9023_s23  ;;  %v9426_v39 = vld [vmem:[#allocation2 + $0x38] sm:$0xff] }
 0x34b   :  { %603 = vbcast.lane.b32.xlu0 %v601_v41, 256 }
 0x34f   :  { %624 = vbcast.lane.b32.xlu0 %v622_v43, 256 }
 0x353   :  { %638 = vbcast.lane.b32.xlu0 %v636_v45, 256  ;;  %v9434_v45 = vld [vmem:[#allocation2 + $0x30] sm:$0xff] }
 0x3b9   :  { %v9360_v46 = vpop.permute.xlu0 %418 }
 0x3ba   :  { %8018 = vmatmul.mubr.msk.bf16.vlgmr.msra.gmra.mrb[0].mxu1 %vm346_vm1, %v9360_v46 }
 0x3bb   :  { %8031 = vmatprep.mubr.msk.bf16.mxu1 %vm9021_vm0, %v12493_v0 }
 0x48d   :  { %v469_v52 = vpop.f32.mrb[0].mxu1 }
 0x48e   :  { %v9369_v53 = vadd.f32 %v7811_v50, %v469_v52  ;;  %v8019_v54 = vpop.f32.mrb[1].mxu1 }
 0x48f   :  { %v472_v55 = vpop.f32.mrb[2].mxu1 }
 0x490   :  { %12624 = vst [vmem:[#allocation31_spill] sm:$0xff] %v9369_v53  ;;  %v476_v56 = vcombine.high %v9369_v53, %v9369_v53  ;;  %v483_v57 = vrot.slane %v9369_v53, %v9367_v51  ;;  %v8020_v58 = vpop.f32.mrb[3].mxu1  ;;  %v9025_v55 = vmov 0  }
 0x491   :  { %8376 = vset.pattern.permute.xlu1 %v9025_v55  ;;  %8377 = vset.pattern.permute.xlu0 %v9025_v55  ;;  %v9450_v58 = vsub.s32 7, %v9325_v29 }
 0x492   :  { %v490_v59 = vrot.slane %v476_v56, %v9367_v51  ;;  %v491_v60 = vcombine.high %v483_v57, %v483_v57  ;;  %v499_v61 = vrot.slane %v483_v57, %v9367_v51  ;;  %v9445_v56 = vsub.s32 6, %v9325_v29 }
 0x494   :  { %v9380_v63 = vrot.slane %v499_v61, %v9343_v38  ;;  %v513_v3 = vrot.slane %v491_v60, %v9367_v51  ;;  %v521_v4 = vcombine.high %v499_v61, %v499_v61  ;;  %v492_v6 = vcombine.high %v490_v59, %v490_v59  ;;  %v9454_v60 = vpop.permute.xlu1 %610  ;;  %v9456_v61 = vpop.permute.xlu0 %603 }
 0x495   :  { %v506_v8 = vrot.slane %v490_v59, %v9367_v51  ;;  %v643_v57 = vrot.slane %v9327_v30, %v9445_v56  ;;  %v650_v59 = vrot.slane %v9327_v30, %v9450_v58 }
 0x496   :  { %12625 = vst [vmem:[#allocation32_spill] sm:$0xff] %v9380_v63  ;;  %v565_v9 = vmul.f32 %v9380_v63, %v9377_v62  ;;  %v9389_v10 = vrot.slane %v513_v3, %v9343_v38  ;;  %v523_v11 = vcombine.high %v513_v3, %v513_v3  ;;  %v9392_v12 = vrot.slane %v521_v4, %v9343_v38 }
 0x497   :  { %v520_v15 = vrot.slane %v492_v6, %v9367_v51  ;;  %v9411_v21 = vrot.slane %v506_v8, %v9343_v38  ;;  %v522_v28 = vcombine.high %v506_v8, %v506_v8 }
 0x498   :  { %12626 = vst [vmem:[#allocation33_spill] sm:$0xff] %v9389_v10  ;;  %12627 = vst [vmem:[#allocation34_spill] sm:$0xff] %v9392_v12  ;;  %v573_v16 = vsel %vm346_vm1, %v565_v9, 0.0  ;;  %v566_v17 = vmul.f32 %v9389_v10, %v9383_v7  ;;  %v9403_v18 = vrot.slane %v523_v11, %v9343_v38  ;;  %v567_v26 = vmul.f32 %v9392_v12, %v9396_v14  ;;  %v9458_v3 = vpop.permute.xlu1 %617  ;;  %v9460_v4 = vpop.permute.xlu0 %624 }
 0x499   :  { %574 = vadd.xlane.f32.xlu1 %v573_v16  ;;  %v9408_v20 = vrot.slane %v520_v15, %v9343_v38  ;;  %12630 = vst [vmem:[#allocation37_spill] sm:$0xff] %v9411_v21  ;;  %v524_v23 = vcombine.high %v520_v15, %v520_v15  ;;  %v569_v41 = vmul.f32 %v9411_v21, %v9418_v33 }
 0x49a   :  { %12628 = vst [vmem:[#allocation35_spill] sm:$0xff] %v9403_v18  ;;  %v576_v24 = vsel %vm346_vm1, %v566_v17, 0.0  ;;  %v568_v25 = vmul.f32 %v9403_v18, %v9394_v13  ;;  %v579_v40 = vsel %vm346_vm1, %v567_v26, 0.0  ;;  %v9432_v43 = vrot.slane %v522_v28, %v9343_v38 }
 0x49b   :  { %12629 = vst [vmem:[#allocation36_spill] sm:$0xff] %v9408_v20  ;;  %577 = vadd.xlane.f32.xlu0 %v576_v24  ;;  %v570_v35 = vmul.f32 %v9408_v20, %v9405_v19  ;;  %v9424_v37 = vrot.slane %v524_v23, %v9343_v38  ;;  %v585_v49 = vsel %vm346_vm1, %v569_v41, 0.0 }
 0x49c   :  { %v582_v34 = vsel %vm346_vm1, %v568_v25, 0.0  ;;  %12632 = vst [vmem:[#allocation39_spill] sm:$0xff] %v9432_v43  ;;  %v571_v50 = vmul.f32 %v9432_v43, %v9434_v45  ;;  %v9462_v6 = vpop.permute.xlu1 %631  ;;  %v9464_v8 = vpop.permute.xlu0 %638 }
 0x49d   :  { %12631 = vst [vmem:[#allocation38_spill] sm:$0xff] %v9424_v37  ;;  %583 = vadd.xlane.f32.xlu1 %v582_v34  ;;  %v588_v47 = vsel %vm346_vm1, %v570_v35, 0.0  ;;  %v572_v48 = vmul.f32 %v9424_v37, %v9426_v39  ;;  %12633 = vst [vmem:[#allocation40_spill] sm:$0xff] %v9462_v6 }
 0x49e   :  { %v591_v54 = vsel %vm346_vm1, %v571_v50, 0.0  ;;  %12634 = vst [vmem:[#allocation41_spill] sm:$0xff] %v9464_v8  ;;  %v9503_v50 = vand.u32 127, %v329_v27 }
 0x49f   :  { %580 = vadd.xlane.f32.xlu0 %v579_v40  ;;  %v594_v52 = vsel %vm346_vm1, %v572_v48, 0.0 }
 0x4a0   :  { %12637 = vst [vmem:[#allocation44_spill] sm:$0xff] %v9503_v50  ;;  %v9507_v55 = vsub.s32 %v9503_v50, %v9325_v29 }
 0x4a1   :  { %589 = vadd.xlane.f32.xlu1 %v588_v47 }
 0x4a2   :  { %12638 = vst [vmem:[#allocation45_spill] sm:$0xff] %v9507_v55 }
 0x4a3   :  { %586 = vadd.xlane.f32.xlu0 %v585_v49 }
 0x4a5   :  { %595 = vadd.xlane.f32.xlu1 %v594_v52 }
 0x4a7   :  { %592 = vadd.xlane.f32.xlu0 %v591_v54 }
 0x4b6   :  { %645 = vbcast.lane.b32.xlu1 %v643_v57, 256 }
 0x4bd   :  { %652 = vbcast.lane.b32.xlu0 %v650_v59, 256 }
 0x526   :  { %v575_v9 = vpop.xlane.xlu1 %574 }
 0x527   :  { %v9467_v11 = vadd.f32 %v9456_v61, %v575_v9 }
 0x528   :  { %v578_v15 = vpop.xlane.xlu0 %577 }
 0x529   :  { %v9470_v30 = vadd.f32 %v9454_v60, %v578_v15  ;;  %679 = vperm.xlu1 %8376, %v9467_v11  }
 0x52a   :  { %v584_v16 = vpop.xlane.xlu1 %583 }
 0x52b   :  { %682 = vperm.xlu0 %8377, %v9470_v30   ;;  %v9479_v26 = vadd.f32 %v9460_v4, %v584_v16 }
 0x52c   :  { %v581_v17 = vpop.xlane.xlu0 %580 }
 0x52d   :  { %v9475_v23 = vadd.f32 %v9458_v3, %v581_v17 }
 0x52e   :  { %v590_v24 = vpop.xlane.xlu1 %589 }
 0x52f   :  { %685 = vperm.xlu1 %8376, %v9475_v23   ;;  %v9487_v40 = vadd.f32 %v9464_v8, %v590_v24 }
 0x530   :  { %v587_v25 = vpop.xlane.xlu0 %586 }
 0x531   :  { %v9482_v28 = vadd.f32 %v9462_v6, %v587_v25 }
 0x532   :  { %v596_v34 = vpop.xlane.xlu1 %595 }
 0x533   :  { %691 = vperm.xlu0 %8377, %v9482_v28   ;;  %688 = vperm.xlu1 %8376, %v9479_v26  }
 0x534   :  { %v593_v35 = vpop.xlane.xlu0 %592 }
 0x536   :  { %v9489_v41 = vpop.permute.xlu1 %645 }
 0x537   :  { %12635 = vst [vmem:[#allocation42_spill] sm:$0xff] %v9489_v41  ;;  %694 = vperm.xlu1 %8376, %v9487_v40   ;;  %v9493_v47 = vadd.f32 %v9489_v41, %v593_v35 }
 0x538   :  { %v9495_v48 = vpop.permute.xlu0 %652 }
 0x539   :  { %12636 = vst [vmem:[#allocation43_spill] sm:$0xff] %v9495_v48  ;;  %697 = vperm.xlu0 %8377, %v9493_v47   ;;  %v9499_v49 = vadd.f32 %v9495_v48, %v596_v34 }
 0x53b   :  { %700 = vperm.xlu1 %8376, %v9499_v49  }
 0x5a8   :  { %v680_v52 = vpop.permute.xlu1 %679 }
 0x5a9   :  { %v705_v15 = vrot.slane %v680_v52, %v9507_v55 }
 0x5aa   :  { %v683_v54 = vpop.permute.xlu0 %682 }
 0x5ab   :  { %v709_v59 = vrot.slane %v683_v54, %v9507_v55 }
 0x5ad   :  { %v735_v27 = vsel %vm734_vm2, %v709_v59, %v705_v15 }
 0x5ae   :  { %v686_v57 = vpop.permute.xlu1 %685 }
 0x5af   :  { %v713_v9 = vrot.slane %v686_v57, %v9507_v55 }
 0x5b1   :  { %v737_v25 = vsel %vm736_vm3, %v713_v9, %v735_v27 }
 0x5b2   :  { %v692_v16 = vpop.permute.xlu0 %691  ;;  %v689_v17 = vpop.permute.xlu1 %688 }
 0x5b3   :  { %v717_v24 = vrot.slane %v689_v17, %v9507_v55  ;;  %v721_v29 = vrot.slane %v692_v16, %v9507_v55 }
 0x5b5   :  { %v739_v34 = vsel %vm738_vm4, %v717_v24, %v737_v25 }
 0x5b6   :  { %v695_v35 = vpop.permute.xlu1 %694  ;;  %v741_v57 = vsel %vm740_vm5, %v721_v29, %v739_v34 }
 0x5b7   :  { %v725_v54 = vrot.slane %v695_v35, %v9507_v55 }
 0x5b8   :  { %v698_v52 = vpop.permute.xlu0 %697 }
 0x5b9   :  { %v729_v0 = vrot.slane %v698_v52, %v9507_v55  ;;  %v743_v59 = vsel %vm742_vm6, %v725_v54, %v741_v57 }
 0x5ba   :  { %v701_v15 = vpop.permute.xlu1 %700 }
 0x5bb   :  { %v733_v9 = vrot.slane %v701_v15, %v9507_v55  ;;  %v745_v16 = vsel %vm744_vm7, %v729_v0, %v743_v59 }
 0x5bd   :  { %v747_v17 = vsel %vm746_vm8, %v733_v9, %v745_v16 }
 0x5be   :  { %v750_v27 = vsel %vm749_vm9, %v747_v17, -inf }
 0x5bf   :  { %751 = vmax.xlane.f32.xlu0 %v750_v27 }
 0x64c   :  { %v752_v24 = vpop.xlane.xlu0 %751 }
 0x64d   :  { %v757_v25 = vrot.slane %v752_v24, %v9343_v38  ;;  %v761_v29 = vrot.slane %v752_v24, %v9330_v31  ;;  %v765_v34 = vrot.slane %v752_v24, %v9333_v32  ;;  %v769_v0 = vrot.slane %v752_v24, %v9351_v42 }
 0x64e   :  { %v773_v15 = vrot.slane %v752_v24, %v9340_v36  ;;  %v777_v17 = vrot.slane %v752_v24, %v9356_v44 }
 0x64f   :  { %v794_v35 = vsub.f32 %v9467_v11, %v757_v25  ;;  %v795_v54 = vsub.f32 %v9470_v30, %v761_v29  ;;  %v796_v59 = vsub.f32 %v9475_v23, %v765_v34  ;;  %v797_v16 = vsub.f32 %v9479_v26, %v769_v0 }
 0x650   :  { %v798_v11 = vsub.f32 %v9482_v28, %v773_v15  ;;  %v781_v25 = vrot.slane %v752_v24, %v9445_v56  ;;  %v799_v29 = vsub.f32 %v9487_v40, %v777_v17  ;;  %v785_v26 = vrot.slane %v752_v24, %v9450_v58 }
 0x651   :  { %v802_v52 = vmul.f32 1.442695, %v794_v35  ;;  %v804_v57 = vmul.f32 1.442695, %v795_v54  ;;  %v806_v9 = vmul.f32 1.442695, %v796_v59 }
 0x652   :  { %v808_v27 = vmul.f32 1.442695, %v797_v16  ;;  %v810_v23 = vmul.f32 1.442695, %v798_v11  ;;  %v812_v35 = vmul.f32 1.442695, %v799_v29  ;;  %v800_v54 = vsub.f32 %v9493_v47, %v781_v25 }
 0x653   :  { %8396 = vpow2.f32 %v802_v52  ;;  %v801_v0 = vsub.f32 %v9499_v49, %v785_v26 }
 0x654   :  { %8398 = vpow2.f32 %v804_v57  ;;  %v814_v28 = vmul.f32 1.442695, %v800_v54 }
 0x655   :  { %8400 = vpow2.f32 %v806_v9  ;;  %v816_v59 = vmul.f32 1.442695, %v801_v0 }
 0x656   :  { %8402 = vpow2.f32 %v808_v27 }
 0x657   :  { %8404 = vpow2.f32 %v810_v23 }
 0x658   :  { %8406 = vpow2.f32 %v812_v35 }
 0x659   :  { %8408 = vpow2.f32 %v814_v28 }
 0x65a   :  { %8410 = vpow2.f32 %v816_v59 }
 0x65d   :  { %v9536_v30 = vpop.eup %8396 }
 0x65e   :  { %827 = vperm.xlu1 %8376, %v9536_v30   ;;  %v8399_v34 = vpop.eup %8398 }
 0x65f   :  { %v8401_v52 = vpop.eup %8400 }
 0x660   :  { %v8403_v57 = vpop.eup %8402 }
 0x661   :  { %v8405_v15 = vpop.eup %8404 }
 0x662   :  { %830 = vperm.xlu1 %8376, %v8399_v34   ;;  %v8407_v40 = vpop.eup %8406 }
 0x663   :  { %v8409_v24 = vpop.eup %8408 }
 0x664   :  { %v8411_v9 = vpop.eup %8410 }
 0x666   :  { %833 = vperm.xlu1 %8376, %v8401_v52  }
 0x66a   :  { %836 = vperm.xlu1 %8376, %v8403_v57  }
 0x66e   :  { %839 = vperm.xlu1 %8376, %v8405_v15  }
 0x672   :  { %842 = vperm.xlu1 %8376, %v8407_v40  }
 0x676   :  { %845 = vperm.xlu1 %8376, %v8409_v24  }
 0x67a   :  { %848 = vperm.xlu1 %8376, %v8411_v9  }
 0x6dd   :  { %v828_v47 = vpop.permute.xlu1 %827 }
 0x6de   :  { %v853_v29 = vrot.slane %v828_v47, %v9507_v55 }
 0x6e1   :  { %v831_v16 = vpop.permute.xlu1 %830 }
 0x6e2   :  { %v857_v49 = vrot.slane %v831_v16, %v9507_v55 }
 0x6e4   :  { %v882_v28 = vsel %vm734_vm2, %v857_v49, %v853_v29 }
 0x6e5   :  { %v834_v17 = vpop.permute.xlu1 %833 }
 0x6e6   :  { %v861_v23 = vrot.slane %v834_v17, %v9507_v55 }
 0x6e8   :  { %v883_v59 = vsel %vm736_vm3, %v861_v23, %v882_v28 }
 0x6e9   :  { %v837_v27 = vpop.permute.xlu1 %836 }
 0x6ea   :  { %v865_v26 = vrot.slane %v837_v27, %v9507_v55 }
 0x6ec   :  { %v884_v37 = vsel %vm738_vm4, %v865_v26, %v883_v59 }
 0x6ed   :  { %v840_v11 = vpop.permute.xlu1 %839 }
 0x6ee   :  { %v869_v35 = vrot.slane %v840_v11, %v9507_v55 }
 0x6f0   :  { %v885_v16 = vsel %vm740_vm5, %v869_v35, %v884_v37 }
 0x6f1   :  { %v843_v25 = vpop.permute.xlu1 %842 }
 0x6f2   :  { %v873_v0 = vrot.slane %v843_v25, %v9507_v55 }
 0x6f4   :  { %v886_v27 = vsel %vm742_vm6, %v873_v0, %v885_v16 }
 0x6f5   :  { %v846_v54 = vpop.permute.xlu1 %845 }
 0x6f6   :  { %v877_v53 = vrot.slane %v846_v54, %v9507_v55 }
 0x6f8   :  { %v887_v11 = vsel %vm744_vm7, %v877_v53, %v886_v27 }
 0x6f9   :  { %v849_v17 = vpop.permute.xlu1 %848 }
 0x6fa   :  { %v881_v47 = vrot.slane %v849_v17, %v9507_v55 }
 0x6fc   :  { %v888_v20 = vsel %vm746_vm8, %v881_v47, %v887_v11 }
 0x6fd   :  { %v890_v49 = vsel %vm749_vm9, %v888_v20, 0.0 }
 0x6fe   :  { %891 = vadd.xlane.f32.xlu0 %v890_v49 }
 0x78b   :  { %v892_v25 = vpop.xlane.xlu0 %891 }
 0x78c   :  { %8412 = vrcp.f32 %v892_v25 }
 0x796   :  { %v8413_v23 = vpop.eup %8412 }
 0x797   :  { %v906_v29 = vrot.slane %v8413_v23, %v9333_v32  ;;  %v902_v26 = vrot.slane %v8413_v23, %v9330_v31  ;;  %v898_v54 = vrot.slane %v8413_v23, %v9343_v38  ;;  %v910_v28 = vrot.slane %v8413_v23, %v9351_v42 }
 0x798   :  { %v914_v0 = vrot.slane %v8413_v23, %v9340_v36  ;;  %v918_v16 = vrot.slane %v8413_v23, %v9356_v44  ;;  %v926_v47 = vrot.slane %v8413_v23, %v9450_v58 }
 0x799   :  { %v937_v37 = vmul.f32 %v8401_v52, %v906_v29  ;;  %v936_v35 = vmul.f32 %v8399_v34, %v902_v26  ;;  %v935_v53 = vmul.f32 %v9536_v30, %v898_v54  ;;  %v938_v20 = vmul.f32 %v8403_v57, %v910_v28  ;;  %v9572_v57 = vld [vmem:[%s12472_s14] sm:$0xff]  }
 0x79a   :  { %v939_v59 = vmul.f32 %v8405_v15, %v914_v0  ;;  %v940_v17 = vmul.f32 %v8407_v40, %v918_v16  ;;  %v922_v34 = vrot.slane %v8413_v23, %v9445_v56  ;;  %v942_v30 = vmul.f32 %v8411_v9, %v926_v47  ;;  %v9577_v15 = vld [vmem:[%s12471_s13] sm:$0xff]   ;;  %8022 = vmatpush3.bf16.msra.mxu0 %v9572_v57  ;;  %v9584_v40 = vld [vmem:[%s12471_s13 + $0x8] sm:$0xff]  }
 0x79b   :  { %955 = vperm.xlu0 %8377, %v937_v37   ;;  %950 = vperm.xlu1 %8376, %v936_v35   ;;  %v9026_v9 = vmov 0.0|0.0   ;;  %v9600_v28 = vld [vmem:[%s12474_s16] sm:$0xff]  }
 0x79c   :  { %v941_v52 = vmul.f32 %v8409_v24, %v922_v34  ;;  %8028 = vmatpush3.bf16.msra.mxu1 %v9577_v15  ;;  %v12639_v24 = vmov 0.0   ;;  %12640 = vst [vmem:[#allocation46_spill] sm:$0xff] %v9600_v28 }
 0x79d   :  { %8029 = vmatprep.subr.bf16.mxu1 %v12639_v24  ;;  %8035 = vmatprep.subr.bf16.mxu0 %v12639_v24 }
 0x79e   :  { %8024 = vmatmul.mubr.bf16.vlgmr.msra.gmra.mrb[4].mxu0 %v9026_v9 }
 0x79f   :  { %945 = vperm.xlu1 %8376, %v935_v53   ;;  %8041 = vmatprep.mubr.msk.bf16.mxu0 %vm9021_vm0, %v12639_v24 }
 0x7a0   :  { %8030 = vmatpush3.bf16.msra.mxu1 %v9584_v40  ;;  %8036 = vmatpush3.bf16.msra.mxu0 %v9600_v28 }
 0x7a1   :  { %8045 = vmatprep.subr.bf16.mxu1 %v12639_v24  ;;  %8037 = vmatprep.subr.bf16.mxu0 %v12639_v24 }
 0x7a3   :  { %960 = vperm.xlu1 %8376, %v938_v20  }
 0x7a7   :  { %965 = vperm.xlu1 %8376, %v939_v59  }
 0x7ab   :  { %970 = vperm.xlu1 %8376, %v940_v17  }
 0x7af   :  { %975 = vperm.xlu1 %8376, %v941_v52  }
 0x7b3   :  { %980 = vperm.xlu1 %8376, %v942_v30  }
 0x81a   :  { %v956_v27 = vpop.permute.xlu0 %955  ;;  %v951_v11 = vpop.permute.xlu1 %950 }
 0x81b   :  { %v985_v49 = vmul.f32 %v956_v27, %v9396_v14  ;;  %v984_v25 = vmul.f32 %v951_v11, %v9383_v7 }
 0x81d   :  { %v1005_v23 = vsel %vm346_vm1, %v985_v49, 0.0  ;;  %v998_v29 = vsel %vm346_vm1, %v984_v25, 0.0 }
 0x81e   :  { %v999_v26 = vrot.slane %v998_v29, 4  ;;  %v946_v37 = vpop.permute.xlu1 %945  ;;  %v1006_v35 = vrot.slane %v1005_v23, 4 }
 0x81f   :  { %v983_v54 = vmul.f32 %v946_v37, %v9377_v62 }
 0x820   :  { %v1000_v53 = vadd.f32 %v999_v26, %v998_v29  ;;  %v1007_v16 = vadd.f32 %v1006_v35, %v1005_v23 }
 0x821   :  { %v991_v20 = vsel %vm346_vm1, %v983_v54, 0.0 }
 0x822   :  { %v992_v0 = vrot.slane %v991_v20, 4  ;;  %v961_v59 = vpop.permute.xlu1 %960  ;;  %v1001_v34 = vrot.slane %v1000_v53, 2  ;;  %v1008_v11 = vrot.slane %v1007_v16, 2 }
 0x823   :  { %v986_v17 = vmul.f32 %v961_v59, %v9394_v13 }
 0x824   :  { %v993_v52 = vadd.f32 %v992_v0, %v991_v20  ;;  %v1002_v25 = vadd.f32 %v1001_v34, %v1000_v53  ;;  %v1009_v54 = vadd.f32 %v1008_v11, %v1007_v16 }
 0x825   :  { %v1012_v47 = vsel %vm346_vm1, %v986_v17, 0.0 }
 0x826   :  { %v994_v30 = vrot.slane %v993_v52, 2  ;;  %v1013_v9 = vrot.slane %v1012_v47, 4  ;;  %v966_v27 = vpop.permute.xlu1 %965  ;;  %v1003_v20 = vrot.slane %v1002_v25, 1 }
 0x827   :  { %v987_v49 = vmul.f32 %v966_v27, %v9418_v33  ;;  %v1010_v27 = vrot.slane %v1009_v54, 1 }
 0x828   :  { %v1014_v29 = vadd.f32 %v1013_v9, %v1012_v47  ;;  %v995_v37 = vadd.f32 %v994_v30, %v993_v52  ;;  %v1004_v52 = vadd.f32 %v1003_v20, %v1002_v25 }
 0x829   :  { %v1019_v26 = vsel %vm346_vm1, %v987_v49, 0.0 }
 0x82a   :  { %v1015_v23 = vrot.slane %v1014_v29, 2  ;;  %v971_v35 = vpop.permute.xlu1 %970  ;;  %v1020_v59 = vrot.slane %v1019_v26, 4  ;;  %v996_v21 = vrot.slane %v995_v37, 1  ;;  %v1050_v10 = vadd.f32 %v1004_v52, %v9383_v7 }
 0x82b   :  { %v988_v43 = vmul.f32 %v971_v35, %v9405_v19 }
 0x82c   :  { %v1016_v0 = vadd.f32 %v1015_v23, %v1014_v29  ;;  %v1021_v17 = vadd.f32 %v1020_v59, %v1019_v26  ;;  %v997_v11 = vadd.f32 %v996_v21, %v995_v37  ;;  %v1011_v26 = vadd.f32 %v1010_v27, %v1009_v54 }
 0x82d   :  { %v1026_v18 = vsel %vm346_vm1, %v988_v43, 0.0 }
 0x82e   :  { %v1017_v12 = vrot.slane %v1016_v0, 1  ;;  %v976_v63 = vpop.permute.xlu1 %975  ;;  %v1022_v53 = vrot.slane %v1021_v17, 2  ;;  %v1027_v34 = vrot.slane %v1026_v18, 4  ;;  %v1051_v37 = vadd.f32 %v1011_v26, %v9396_v14 }
 0x82f   :  { %v989_v47 = vmul.f32 %v976_v63, %v9434_v45 }
 0x830   :  { %v1023_v30 = vadd.f32 %v1022_v53, %v1021_v17  ;;  %v1028_v9 = vadd.f32 %v1027_v34, %v1026_v18  ;;  %v1018_v49 = vadd.f32 %v1017_v12, %v1016_v0  ;;  %v1049_v18 = vadd.f32 %v997_v11, %v9377_v62 }
 0x831   :  { %v1033_v16 = vsel %vm346_vm1, %v989_v47, 0.0  ;;  %v1058_v0 = vpack.c.bf16 %v1050_v10, %v1050_v10 }
 0x832   :  { %v1034_v35 = vrot.slane %v1033_v16, 4  ;;  %v981_v29 = vpop.permute.xlu1 %980  ;;  %v1024_v23 = vrot.slane %v1023_v30, 1  ;;  %v1029_v43 = vrot.slane %v1028_v9, 2  ;;  %v1052_v25 = vadd.f32 %v1018_v49, %v9394_v13 }
 0x833   :  { %v990_v59 = vmul.f32 %v981_v29, %v9426_v39  ;;  %v1057_v53 = vpack.c.bf16 %v1049_v18, %v1049_v18  ;;  %v1125_v13 = vunpack.c.l.b16 %v1058_v0 }
 0x834   :  { %v1035_v28 = vadd.f32 %v1034_v35, %v1033_v16  ;;  %v1025_v55 = vadd.f32 %v1024_v23, %v1023_v30  ;;  %v1030_v48 = vadd.f32 %v1029_v43, %v1028_v9  ;;  %v1060_v34 = vpack.c.bf16 %v1052_v25, %v1052_v25 }
 0x835   :  { %v1040_v63 = vsel %vm346_vm1, %v990_v59, 0.0  ;;  %v1059_v30 = vpack.c.bf16 %v1051_v37, %v1051_v37  ;;  %v1124_v35 = vunpack.c.l.b16 %v1057_v53 }
 0x836   :  { %v1036_v21 = vrot.slane %v1035_v28, 2  ;;  %v1041_v12 = vrot.slane %v1040_v63, 4  ;;  %v1053_v54 = vadd.f32 %v1025_v55, %v9418_v33  ;;  %v1031_v20 = vrot.slane %v1030_v48, 1 }
 0x837   :  { %v1127_v29 = vunpack.c.l.b16 %v1060_v34 }
 0x838   :  { %v1037_v17 = vadd.f32 %v1036_v21, %v1035_v28  ;;  %v1042_v27 = vadd.f32 %v1041_v12, %v1040_v63  ;;  %v1032_v7 = vadd.f32 %v1031_v20, %v1030_v48  ;;  %v1061_v9 = vpack.c.bf16 %v1053_v54, %v1053_v54 }
 0x839   :  { %v1126_v28 = vunpack.c.l.b16 %v1059_v30  ;;  %v1132_v48 = vrot.slane %v1125_v13, 7  ;;  %v1136_v18 = vrot.slane %v1127_v29, 5 }
 0x83a   :  { %v1038_v47 = vrot.slane %v1037_v17, 1  ;;  %v1043_v52 = vrot.slane %v1042_v27, 2  ;;  %v1054_v62 = vadd.f32 %v1032_v7, %v9405_v19  ;;  %v1128_v26 = vunpack.c.l.b16 %v1061_v9 }
 0x83b   :  { %v1133_v63 = vsel %vm734_vm2, %v1132_v48, %v1124_v35  ;;  %v1134_v21 = vrot.slane %v1126_v28, 6 }
 0x83c   :  { %v1039_v16 = vadd.f32 %v1038_v47, %v1037_v17  ;;  %v1044_v11 = vadd.f32 %v1043_v52, %v1042_v27  ;;  %v1062_v49 = vpack.c.bf16 %v1054_v62, %v1054_v62  ;;  %v1138_v12 = vrot.slane %v1128_v26, 4 }
 0x83d   :  { %v1135_v20 = vsel %vm736_vm3, %v1134_v21, %v1133_v63 }
 0x83e   :  { %v1055_v55 = vadd.f32 %v1039_v16, %v9434_v45  ;;  %v1045_v10 = vrot.slane %v1044_v11, 1  ;;  %v1129_v23 = vunpack.c.l.b16 %v1062_v49  ;;  %v1137_v17 = vsel %vm738_vm4, %v1136_v18, %v1135_v20  ;;  %v9636_v16 = vld [vmem:[%s12474_s16 + $0x8] sm:$0xff]   ;;  %v9650_v49 = vld [vmem:[%s12473_s15] ss:$0 sm:$0xff] }
 0x83f   :  { %v1139_v7 = vsel %vm740_vm5, %v1138_v12, %v1137_v17  ;;  %8038 = vmatpush3.bf16.msra.mxu0 %v9636_v16 }
 0x840   :  { %v1063_v43 = vpack.c.bf16 %v1055_v55, %v1055_v55  ;;  %v1046_v59 = vadd.f32 %v1045_v10, %v1044_v11  ;;  %v1140_v37 = vrot.slane %v1129_v23, 3  ;;  %v9642_v11 = vld [vmem:[%s12474_s16 + $0x10] sm:$0xff]   ;;  %8039 = vmatprep.subr.bf16.mxu0 %v12639_v24 }
 0x842   :  { %v1130_v25 = vunpack.c.l.b16 %v1063_v43  ;;  %v1056_v19 = vadd.f32 %v1046_v59, %v9426_v39  ;;  %v1141_v34 = vsel %vm742_vm6, %v1140_v37, %v1139_v7 }
 0x843   :  { %8040 = vmatpush3.bf16.msra.mxu0 %v9642_v11 }
 0x844   :  { %v1064_v54 = vpack.c.bf16 %v1056_v19, %v1056_v19  ;;  %v1142_v0 = vrot.slane %v1130_v25, 2  ;;  %8057 = vmatprep.subr.bf16.mxu0 %v12639_v24 }
 0x846   :  { %v1131_v27 = vunpack.c.l.b16 %v1064_v54  ;;  %v1143_v47 = vsel %vm744_vm7, %v1142_v0, %v1141_v34 }
 0x848   :  { %v1144_v53 = vrot.slane %v1131_v27, 1 }
 0x84a   :  { %v1145_v52 = vsel %vm746_vm8, %v1144_v53, %v1143_v47 }
 0x84b   :  { %v1146_v39 = vpack.c.b16 %v1145_v52, %v1145_v52 }
 0x84d   :  { %8032 = vmatmul.mubr.msk.bf16.vlgmr.msra.gmra.mrb[4].mxu1 %vm346_vm1, %v1146_v39 }
 0x84e   :  { %8047 = vmatprep.mubr.msk.bf16.mxu1 %vm9021_vm0, %v12639_v24 }
 0x871   :  { %v1110_v30 = vpop.f32.mrb[4].mxu0 }
 0x872   :  { %v8025_v9 = vpop.f32.mrb[5].mxu0 }
 0x873   :  { %v1113_v62 = vpop.f32.mrb[6].mxu0 }
 0x874   :  { %v8026_v13 = vpop.f32.mrb[7].mxu0 }
 0x920   :  { %v1196_v35 = vpop.f32.mrb[4].mxu1 }
 0x921   :  { %v1197_v29 = vadd.f32 %v1196_v35, %v1110_v30  ;;  %v8033_v55 = vpop.f32.mrb[5].mxu1 }
 0x922   :  { %v1199_v10 = vpop.f32.mrb[6].mxu1 }
 0x923   :  { %v1202_v28 = vadd.f32 %v9650_v49, %v1197_v29  ;;  %v8034_v26 = vpop.f32.mrb[7].mxu1 }
 0x925   :  { %v1203_v48 = vmax.f32 %v1202_v28, 0.0 }
 0x927   :  { %v1204_v23 = vpack.c.bf16 %v1203_v48, %v1203_v48 }
 0x929   :  { %8042 = vmatmul.mubr.msk.bf16.vlgmr.msra.gmra.mrb[8].mxu0 %vm12561_vm10, %v1204_v23  ;;  %v8388_v23 = vld [vmem:[%s12476_s18] sm:$0x3f]  }
 0x92a   :  { %8058 = vmatpush3.bf16.msra.mxu0 %v9289_v1  ;;  %8061 = vmatprep.mubr.msk.bf16.mxu0 %vm9021_vm0, %v12639_v24  ;;  %v9669_v1 = vld [vmem:[%s12475_s17] ss:$0 sm:$0xff] }
 0x92b   :  { %8059 = vmatprep.subr.bf16.mxu0 %v12639_v24 }
 0x92e   :  { %8060 = vmatpush3.bf16.msra.mxu0 %v9295_v2 }
 0x92f   :  { %8073 = vmatprep.subr.bf16.mxu0 %v12639_v24 }
 0x931   :  { %8062 = vmatmul.mubr.msk.bf16.vlgmr.msra.gmra.mrb[12].mxu0 %vm346_vm1, %v9360_v46 }
 0x932   :  { %8074 = vmatpush3.bf16.msra.mxu0 %v9572_v57  ;;  %8075 = vmatprep.mubr.msk.bf16.mxu0 %vm9021_vm0, %v12639_v24 }
 0x933   :  { %8087 = vmatprep.subr.bf16.mxu0 %v12639_v24 }
 0x9fc   :  { %v1261_v43 = vpop.f32.mrb[8].mxu0 }
 0x9fd   :  { %v1262_v2 = vadd.f32 %v9669_v1, %v1261_v43  ;;  %v8043_v59 = vpop.f32.mrb[9].mxu0 }
 0x9fe   :  { %v1264_v63 = vpop.f32.mrb[10].mxu0 }
 0x9ff   :  { %1354 = vst.msk [vmem:[#allocation19] sm:$0xff] %vm1268_vm11, %v1262_v2  ;;  %v8044_v46 = vpop.f32.mrb[11].mxu0  ;;  %v1269_v57 = vsel %vm1268_vm11, %v1262_v2, -inf }
 0xa00   :  { %1270 = vmax.xlane.f32.xlu0 %v1269_v57 }
 0xa04   :  { %v1669_v18 = vpop.f32.mrb[12].mxu0 }
 0xa05   :  { %v1670_v25 = vadd.f32 %v9306_v5, %v1669_v18  ;;  %v8063_v19 = vpop.f32.mrb[13].mxu0 }
 0xa06   :  { %v1672_v21 = vpop.f32.mrb[14].mxu0 }
 0xa07   :  { %8414 = vtanh.f32 %v1670_v25  ;;  %v8064_v12 = vpop.f32.mrb[15].mxu0  ;;  %v1675_v54 = vmul.f32 0.5, %v1670_v25 }
 0xa09   :  { %8416 = vtanh.f32 %v1675_v54 }
 0xa11   :  { %v8415_v37 = vpop.eup %8414 }
 0xa12   :  { %1682 = vrot.lane.b32.xlu1 %v8415_v37, %s9022_s29 }
 0xa13   :  { %v8417_v20 = vpop.eup %8416 }
 0xa14   :  { %v1677_v0 = vmul.f32 0.5, %v8417_v20 }
 0xa16   :  { %v1678_v17 = vadd.f32 0.5, %v1677_v0 }
 0xa18   :  { %v1680_v13 = vmul.f32 %v1678_v17, %v9312_v22  ;;  %v9689_v22 = vsel %vm1310_vm14, %v8388_v23, 0 }
 0xa19   :  { %8046 = vmatpush3.bf16.msra.mxu1 %v9689_v22 }
 0xa1a   :  { %8051 = vmatprep.subr.bf16.mxu1 %v12639_v24 }
 0xa84   :  { %v1683_v27 = vpop.permute.xlu1 %1682 }
 0xa85   :  { %v1685_v7 = vmul.f32 %v1683_v27, %v1678_v17 }
 0xa87   :  { %1687 = vrot.lane.b32.xlu1 %v1685_v7, %s9023_s23 }
 0xa8d   :  { %v1271_v53 = vpop.xlane.xlu0 %1270 }
 0xa8e   :  { %v1292_v34 = vsub.f32 %v1262_v2, %v1271_v53  ;;  %vm1272_vm12 = vcmp.eq.f32.partialorder %v1262_v2, %v1271_v53 }
 0xa8f   :  { %v1273_v47 = vsel %vm1272_vm12, %v9503_v50, 12 }
 0xa90   :  { %v1293_v5 = vmul.f32 1.442695, %v1292_v34  ;;  %v1274_v52 = vsel %vm1268_vm11, %v1273_v47, 2147483647  ;;  %v8389_v34 = vld [vmem:[%s12477_s19] sm:$0x3f]  }
 0xa91   :  { %v1276_v39 = vshra.s32 %v1274_v52, 16  ;;  %v1275_v10 = vand.u32 65535, %v1274_v52 }
 0xa92   :  { %8418 = vpow2.f32 %v1293_v5 }
 0xa93   :  { %v1278_v30 = vcvt.s32.f32 %v1276_v39  ;;  %v1277_v26 = vcvt.s32.f32 %v1275_v10  ;;  %v9743_v39 = vsel %vm1310_vm14, %v8389_v34, 0 }
 0xa9c   :  { %v8419_v9 = vpop.eup %8418 }
 0xa9d   :  { %v1295_v62 = vsel %vm1268_vm11, %v8419_v9, 0.0 }
 0xaab   :  { %1279 = vmin.xlane.f32.xlu1 %v1278_v30 }
 0xaaf   :  { %1296 = vadd.xlane.f32.xlu1 %v1295_v62 }
 0xaf9   :  { %v1688_v35 = vpop.permute.xlu1 %1687 }
 0xafa   :  { %v9681_v29 = vadd.f32 %v1688_v35, %v1680_v13 }
 0xafc   :  { %8420 = vtanh.f32 %v9681_v29 }
 0xb06   :  { %v8421_v55 = vpop.eup %8420 }
 0xb07   :  { %1693 = vrot.lane.b32.xlu0 %v8421_v55, %s9022_s29 }
 0xb38   :  { %v1280_v28 = vpop.xlane.xlu1 %1279 }
 0xb39   :  { %vm1281_vm13 = vcmp.eq.f32.partialorder %v1278_v30, %v1280_v28  ;;  %v1286_v46 = vcvt.f32.s32 %v1280_v28  ;;  %v9754_v30 = vld [vmem:[%s12468_s10] sm:$0xff]  }
 0xb3a   :  { %v1282_v48 = vsel %vm1281_vm13, %v1277_v26, inf  ;;  %vm288_vm13 = vcmask 130048  }
 0xb3b   :  { %1283 = vmin.xlane.f32.xlu1 %v1282_v48  ;;  %v1287_v18 = vshll.u32 %v1286_v46, 16 }
 0xb3c   :  { %v1297_v63 = vpop.xlane.xlu1 %1296 }
 0xb3d   :  { %8422 = vrcp.f32 %v1297_v63 }
 0xb47   :  { %v8423_v21 = vpop.eup %8422 }
 0xb48   :  { %v1299_v53 = vmul.f32 %v8423_v21, %v8419_v9  ;;  %v9763_v9 = vld [vmem:[%s12468_s10 + $0x8] sm:$0xff]  }
 0xb79   :  { %v1694_v43 = vpop.permute.xlu0 %1693 }
 0xb7a   :  { %v1696_v2 = vmul.f32 %v1694_v43, %v1678_v17  ;;  %v9781_v43 = vld [vmem:[#allocation16] ss:$0 sm:$0xff] }
 0xb7c   :  { %v1697_v59 = vpack.c.bf16 %v1696_v2, %v1696_v2 }
 0xb7e   :  { %1699 = vrot.lane.b32.xlu0 %v1697_v59, %s9023_s23 }
 0xbc8   :  { %v1284_v57 = vpop.xlane.xlu1 %1283 }
 0xbc9   :  { %v1285_v25 = vcvt.f32.s32 %v1284_v57 }
 0xbcb   :  { %v1288_v19 = vadd.s32 %v1287_v18, %v1285_v25 }
 0xbcd   :  { %v1358_v12 = vrot.slane %v1288_v19, %v9343_v38  ;;  %v1362_v37 = vrot.slane %v1288_v19, %v9330_v31  ;;  %v1366_v54 = vrot.slane %v1288_v19, %v9333_v32  ;;  %v1370_v20 = vrot.slane %v1288_v19, %v9351_v42 }
 0xbce   :  { %v1374_v0 = vrot.slane %v1288_v19, %v9340_v36  ;;  %v1378_v17 = vrot.slane %v1288_v19, %v9356_v44  ;;  %v1382_v27 = vrot.slane %v1288_v19, %v9445_v56  ;;  %v1386_v7 = vrot.slane %v1288_v19, %v9450_v58 }
 0xbcf   :  { %1388 = vst.msk [vmem:[%s12479_s21] sm:$0x1] %vm1387_vm15, %v1358_v12  ;;  %1389 = vst.msk [vmem:[%s12479_s21 + $0x8] sm:$0x1] %vm1387_vm15, %v1362_v37  ;;  %vm1289_vm12 = vcmp.eq.s32.totalorder %v9503_v50, %v1288_v19 }
 0xbd0   :  { %1390 = vst.msk [vmem:[%s12479_s21 + $0x10] sm:$0x1] %vm1387_vm15, %v1366_v54  ;;  %1391 = vst.msk [vmem:[%s12479_s21 + $0x18] sm:$0x1] %vm1387_vm15, %v1370_v20  ;;  %v9739_v5 = vsel %vm1289_vm12, 1.0, %v12639_v24  ;;  %v9797_v20 = vld [vmem:[#allocation2] sm:$0xff] }
 0xbd1   :  { %1392 = vst.msk [vmem:[%s12479_s21 + $0x20] sm:$0x1] %vm1387_vm15, %v1374_v0  ;;  %1393 = vst.msk [vmem:[%s12479_s21 + $0x28] sm:$0x1] %vm1387_vm15, %v1378_v17  ;;  %v1300_v47 = vadd.f32 %v9739_v5, %v1299_v53  ;;  %vm1396_vm14 = vcmp.gt.f32.partialorder %v9739_v5, 0.0  ;;  %vm12527_vm12 = vcmp.eq.s32.totalorder %v9503_v50, 2 }
 0xbd2   :  { %1394 = vst.msk [vmem:[%s12479_s21 + $0x30] sm:$0x1] %vm1387_vm15, %v1382_v27  ;;  %1395 = vst.msk [vmem:[%s12479_s21 + $0x38] sm:$0x1] %vm1387_vm15, %v1386_v7 }
 0xbd3   :  { %v1301_v52 = vpack.c.bf16 %v1300_v47, %v1300_v47  ;;  %v9811_v47 = vld [vmem:[#allocation2 + $0x8] sm:$0xff] }
 0xbd5   :  { %8048 = vmatmul.mubr.msk.bf16.vlgmr.msra.gmra.mrb[8].mxu1 %vm1268_vm11, %v1301_v52 }
 0xbd6   :  { %8052 = vmatpush3.bf16.msra.mxu1 %v9743_v39  ;;  %8053 = vmatprep.mubr.msk.bf16.mxu1 %vm9021_vm0, %v12639_v24 }
 0xbd7   :  { %8065 = vmatprep.subr.bf16.mxu1 %v12639_v24 }
 0xbdd   :  { %8054 = vmatmul.mubr.msk.bf16.vlgmr.msra.gmra.mrb[12].mxu1 %vm1268_vm11, %v1301_v52 }
 0xbde   :  { %8066 = vmatpush3.bf16.msra.mxu1 %v9754_v30  ;;  %8069 = vmatprep.mubr.msk.bf16.mxu1 %vm9021_vm0, %v12639_v24 }
 0xbdf   :  { %8067 = vmatprep.subr.bf16.mxu1 %v12639_v24 }
 0xbe2   :  { %8068 = vmatpush3.bf16.msra.mxu1 %v9763_v9 }
 0xbe3   :  { %8079 = vmatprep.subr.bf16.mxu1 %v12639_v24 }
 0xbf0   :  { %v9767_v62 = vpop.permute.xlu0 %1699 }
 0xbf1   :  { %8070 = vmatmul.mubr.msk.bf16.vlgmr.msra.gmra.mrb[16].mxu1 %vm346_vm1, %v9767_v62 }
 0xbf2   :  { %8080 = vmatpush3.bf16.msra.mxu1 %v9577_v15  ;;  %8083 = vmatprep.mubr.msk.bf16.mxu1 %vm9021_vm0, %v12639_v24 }
 0xbf3   :  { %8081 = vmatprep.subr.bf16.mxu1 %v12639_v24 }
 0xbf6   :  { %8082 = vmatpush3.bf16.msra.mxu1 %v9584_v40 }
 0xbf7   :  { %8097 = vmatprep.subr.bf16.mxu1 %v12639_v24 }
 0xca8   :  { %v9777_v13 = vpop.f32.mrb[8].mxu1 }
 0xca9   :  { %v8049_v35 = vpop.f32.mrb[9].mxu1 }
 0xcaa   :  { %v1351_v55 = vpop.f32.mrb[10].mxu1 }
 0xcab   :  { %v8050_v10 = vpop.f32.mrb[11].mxu1 }
 0xcb0   :  { %v9779_v28 = vpop.f32.mrb[12].mxu1 }
 0xcb1   :  { %v8055_v26 = vpop.f32.mrb[13].mxu1  ;;  %8424 = vtanh.f32 %v9779_v28 }
 0xcb2   :  { %v1445_v48 = vpop.f32.mrb[14].mxu1 }
 0xcb3   :  { %v8056_v23 = vpop.f32.mrb[15].mxu1 }
 0xcc4   :  { %v1738_v15 = vpop.f32.mrb[16].mxu1 }
 0xcc5   :  { %v9784_v2 = vadd.f32 %v9781_v43, %v1738_v15  ;;  %v8071_v59 = vpop.f32.mrb[17].mxu1 }
 0xcc6   :  { %v1741_v40 = vpop.f32.mrb[18].mxu1 }
 0xcc7   :  { %12641 = vst [vmem:[#allocation47_spill] sm:$0xff] %v9784_v2  ;;  %v1745_v63 = vcombine.high %v9784_v2, %v9784_v2  ;;  %v1752_v46 = vrot.slane %v9784_v2, %v9367_v51  ;;  %v8072_v57 = vpop.f32.mrb[19].mxu1  ;;  %v9826_v40 = vld [vmem:[#allocation2 + $0x18] sm:$0xff] }
 0xcc8   :  { %v9834_v57 = vld [vmem:[#allocation2 + $0x28] sm:$0xff] }
 0xcc9   :  { %v1759_v18 = vrot.slane %v1745_v63, %v9367_v51  ;;  %v1760_v25 = vcombine.high %v1752_v46, %v1752_v46  ;;  %v1768_v19 = vrot.slane %v1752_v46, %v9367_v51 }
 0xccb   :  { %v9793_v21 = vrot.slane %v1768_v19, %v9343_v38  ;;  %v1782_v12 = vrot.slane %v1760_v25, %v9367_v51  ;;  %v1790_v37 = vcombine.high %v1768_v19, %v1768_v19  ;;  %v1775_v54 = vrot.slane %v1759_v18, %v9367_v51 }
 0xccc   :  { %v1761_v53 = vcombine.high %v1759_v18, %v1759_v18 }
 0xccd   :  { %12642 = vst [vmem:[#allocation48_spill] sm:$0xff] %v9793_v21  ;;  %v1834_v0 = vmul.f32 %v9797_v20, %v9793_v21  ;;  %v9802_v17 = vrot.slane %v1782_v12, %v9343_v38  ;;  %v9805_v27 = vrot.slane %v1790_v37, %v9343_v38  ;;  %v9808_v7 = vrot.slane %v1775_v54, %v9343_v38 }
 0xcce   :  { %v1792_v55 = vcombine.high %v1782_v12, %v1782_v12  ;;  %v1789_v15 = vrot.slane %v1761_v53, %v9367_v51  ;;  %v1791_v46 = vcombine.high %v1775_v54, %v1775_v54  ;;  %v9848_v53 = vld [vmem:[#allocation2 + $0x38] sm:$0xff] }
 0xccf   :  { %12643 = vst [vmem:[#allocation49_spill] sm:$0xff] %v9802_v17  ;;  %12644 = vst [vmem:[#allocation50_spill] sm:$0xff] %v9805_v27  ;;  %v1842_v34 = vsel %vm346_vm1, %v1834_v0, 0.0  ;;  %v1835_v52 = vmul.f32 %v9811_v47, %v9802_v17  ;;  %v1836_v35 = vmul.f32 %v9805_v27, %v9396_v14  ;;  %v1838_v48 = vmul.f32 %v9808_v7, %v9418_v33 }
 0xcd0   :  { %12645 = vst [vmem:[#allocation51_spill] sm:$0xff] %v9808_v7  ;;  %1843 = vadd.xlane.f32.xlu1 %v1842_v34  ;;  %v9822_v23 = vrot.slane %v1792_v55, %v9343_v38  ;;  %v9831_v63 = vrot.slane %v1789_v15, %v9343_v38  ;;  %v9839_v25 = vrot.slane %v1791_v46, %v9343_v38 }
 0xcd1   :  { %v1845_v10 = vsel %vm346_vm1, %v1835_v52, 0.0  ;;  %v1848_v26 = vsel %vm346_vm1, %v1836_v35, 0.0  ;;  %v1854_v59 = vsel %vm346_vm1, %v1838_v48, 0.0  ;;  %v1793_v19 = vcombine.high %v1789_v15, %v1789_v15 }
 0xcd2   :  { %1846 = vadd.xlane.f32.xlu0 %v1845_v10  ;;  %12646 = vst [vmem:[#allocation52_spill] sm:$0xff] %v9822_v23  ;;  %v1837_v14 = vmul.f32 %v9826_v40, %v9822_v23  ;;  %12647 = vst [vmem:[#allocation53_spill] sm:$0xff] %v9831_v63  ;;  %v1839_v18 = vmul.f32 %v9834_v57, %v9831_v63  ;;  %v1840_v37 = vmul.f32 %v9839_v25, %v9434_v45 }
 0xcd3   :  { %12648 = vst [vmem:[#allocation54_spill] sm:$0xff] %v9839_v25  ;;  %v9845_v54 = vrot.slane %v1793_v19, %v9343_v38 }
 0xcd4   :  { %1849 = vadd.xlane.f32.xlu1 %v1848_v26  ;;  %v1851_v33 = vsel %vm346_vm1, %v1837_v14, 0.0  ;;  %v1857_v12 = vsel %vm346_vm1, %v1839_v18, 0.0  ;;  %v1860_v0 = vsel %vm346_vm1, %v1840_v37, 0.0 }
 0xcd5   :  { %12649 = vst [vmem:[#allocation55_spill] sm:$0xff] %v9845_v54  ;;  %v1841_v34 = vmul.f32 %v9848_v53, %v9845_v54 }
 0xcd7   :  { %v1863_v52 = vsel %vm346_vm1, %v1841_v34, 0.0 }
 0xcd8   :  { %1855 = vadd.xlane.f32.xlu1 %v1854_v59 }
 0xcdc   :  { %1852 = vadd.xlane.f32.xlu1 %v1851_v33 }
 0xce0   :  { %1858 = vadd.xlane.f32.xlu1 %v1857_v12 }
 0xce4   :  { %1861 = vadd.xlane.f32.xlu1 %v1860_v0  ;;  %v12650_v0 = vld [vmem:[#allocation43_spill] sm:$0xff] }
 0xce8   :  { %1864 = vadd.xlane.f32.xlu1 %v1863_v52 }
 0xd5d   :  { %v1844_v35 = vpop.xlane.xlu1 %1843 }
 0xd5e   :  { %v1866_v55 = vadd.f32 %v1844_v35, %v9456_v61 }
 0xd5f   :  { %v1847_v10 = vpop.xlane.xlu0 %1846 }
 0xd60   :  { %v1867_v45 = vadd.f32 %v1847_v10, %v9454_v60  ;;  %1883 = vperm.xlu1 %8376, %v1866_v55  }
 0xd61   :  { %v1850_v26 = vpop.xlane.xlu1 %1849 }
 0xd62   :  { %v9856_v48 = vadd.f32 %v1850_v26, %v9458_v3  ;;  %1886 = vperm.xlu0 %8377, %v1867_v45  }
 0xd64   :  { %1889 = vperm.xlu1 %8376, %v9856_v48  }
 0xd65   :  { %v1856_v15 = vpop.xlane.xlu1 %1855 }
 0xd66   :  { %v9860_v59 = vadd.f32 %v1856_v15, %v9462_v6  ;;  %v12651_v15 = vld [vmem:[#allocation45_spill] sm:$0xff] }
 0xd68   :  { %1895 = vperm.xlu1 %8376, %v9860_v59  }
 0xd69   :  { %v1853_v14 = vpop.xlane.xlu1 %1852 }
 0xd6a   :  { %v9864_v46 = vadd.f32 %v1853_v14, %v9460_v4 }
 0xd6c   :  { %1892 = vperm.xlu1 %8376, %v9864_v46  }
 0xd6d   :  { %v1859_v33 = vpop.xlane.xlu1 %1858 }
 0xd6e   :  { %v9868_v18 = vadd.f32 %v1859_v33, %v9464_v8 }
 0xd70   :  { %1898 = vperm.xlu0 %8377, %v9868_v18  }
 0xd71   :  { %v1862_v19 = vpop.xlane.xlu1 %1861 }
 0xd72   :  { %v9872_v12 = vadd.f32 %v1862_v19, %v9489_v41 }
 0xd74   :  { %1901 = vperm.xlu1 %8376, %v9872_v12  }
 0xd75   :  { %v1865_v37 = vpop.xlane.xlu1 %1864 }
 0xd76   :  { %v9876_v34 = vadd.f32 %v1865_v37, %v12650_v0 }
 0xd78   :  { %1904 = vperm.xlu0 %8377, %v9876_v34  }
 0xddf   :  { %v1884_v52 = vpop.permute.xlu1 %1883 }
 0xde0   :  { %v1909_v19 = vrot.slane %v1884_v52, %v12651_v15 }
 0xde1   :  { %v1887_v26 = vpop.permute.xlu0 %1886 }
 0xde2   :  { %v1913_v14 = vrot.slane %v1887_v26, %v12651_v15 }
 0xde3   :  { %v1890_v35 = vpop.permute.xlu1 %1889 }
 0xde4   :  { %v1917_v2 = vrot.slane %v1890_v35, %v12651_v15  ;;  %v1938_v25 = vsel %vm734_vm2, %v1913_v14, %v1909_v19  ;;  %v8425_v35 = vpop.eup %8424  ;;  %v7814_v19 = vld [vmem:[#allocation17] ss:$0 sm:$0xff] }
 0xde6   :  { %v1939_v21 = vsel %vm736_vm3, %v1917_v2, %v1938_v25 }
 0xde7   :  { %v1896_v10 = vpop.permute.xlu1 %1895 }
 0xde8   :  { %v1925_v26 = vrot.slane %v1896_v10, %v12651_v15 }
 0xdeb   :  { %v1893_v33 = vpop.permute.xlu1 %1892 }
 0xdec   :  { %v1921_v37 = vrot.slane %v1893_v33, %v12651_v15 }
 0xdee   :  { %v1940_v63 = vsel %vm738_vm4, %v1921_v37, %v1939_v21 }
 0xdef   :  { %v1899_v7 = vpop.permute.xlu0 %1898  ;;  %v1941_v52 = vsel %vm740_vm5, %v1925_v26, %v1940_v63 }
 0xdf0   :  { %v1929_v23 = vrot.slane %v1899_v7, %v12651_v15  ;;  %v1449_v7 = vmul.f32 %v8425_v35, %v7814_v19 }
 0xdf2   :  { %v1942_v33 = vsel %vm742_vm6, %v1929_v23, %v1941_v52 }
 0xdf3   :  { %v1902_v54 = vpop.permute.xlu1 %1901 }
 0xdf4   :  { %v1933_v28 = vrot.slane %v1902_v54, %v12651_v15  ;;  %v1450_v54 = vsel %vm288_vm13, %v1449_v7, 0.0 }
 0xdf6   :  { %v1943_v2 = vsel %vm744_vm7, %v1933_v28, %v1942_v33 }
 0xdf7   :  { %v1905_v27 = vpop.permute.xlu0 %1904 }
 0xdf8   :  { %v1937_v14 = vrot.slane %v1905_v27, %v12651_v15 }
 0xdfa   :  { %v1944_v25 = vsel %vm746_vm8, %v1937_v14, %v1943_v2 }
 0xdfb   :  { %v1946_v21 = vsel %vm749_vm9, %v1944_v25, -inf }
 0xdfc   :  { %1947 = vmax.xlane.f32.xlu1 %v1946_v21 }
 0xe00   :  { %1451 = vadd.xlane.f32.xlu1 %v1450_v54 }
 0xe89   :  { %v1948_v10 = vpop.xlane.xlu1 %1947 }
 0xe8a   :  { %v1953_v63 = vrot.slane %v1948_v10, %v9343_v38  ;;  %v1957_v27 = vrot.slane %v1948_v10, %v9330_v31  ;;  %v1961_v23 = vrot.slane %v1948_v10, %v9333_v32  ;;  %v1965_v35 = vrot.slane %v1948_v10, %v9351_v42 }
 0xe8c   :  { %v1990_v37 = vsub.f32 %v1866_v55, %v1953_v63  ;;  %v1991_v26 = vsub.f32 %v1867_v45, %v1957_v27  ;;  %v1992_v25 = vsub.f32 %v9856_v48, %v1961_v23  ;;  %v1969_v55 = vrot.slane %v1948_v10, %v9340_v36 }
 0xe8d   :  { %v1452_v28 = vpop.xlane.xlu1 %1451  ;;  %v1993_v54 = vsub.f32 %v9864_v46, %v1965_v35  ;;  %v1973_v63 = vrot.slane %v1948_v10, %v9356_v44  ;;  %v1977_v48 = vrot.slane %v1948_v10, %v9445_v56 }
 0xe8e   :  { %v9900_v52 = vmax.f32 %v1452_v28, -1e+30  ;;  %v1998_v14 = vmul.f32 1.442695, %v1990_v37  ;;  %v2000_v33 = vmul.f32 1.442695, %v1991_v26  ;;  %v1994_v37 = vsub.f32 %v9860_v59, %v1969_v55 }
 0xe8f   :  { %v2002_v45 = vmul.f32 1.442695, %v1992_v25  ;;  %v2004_v27 = vmul.f32 1.442695, %v1993_v54 }
 0xe90   :  { %12652 = vst [vmem:[#allocation56_spill] sm:$0xff] %v9900_v52  ;;  %v1454_v19 = vsub.f32 -1e+30, %v9900_v52  ;;  %v1457_v2 = vsub.f32 %v1452_v28, %v9900_v52  ;;  %8426 = vpow2.f32 %v1998_v14  ;;  %v2006_v23 = vmul.f32 1.442695, %v1994_v37 }
 0xe91   :  { %8428 = vpow2.f32 %v2000_v33  ;;  %v1995_v28 = vsub.f32 %v9868_v18, %v1973_v63 }
 0xe92   :  { %v1455_v21 = vmul.f32 1.442695, %v1454_v19  ;;  %v1458_v7 = vmul.f32 1.442695, %v1457_v2  ;;  %v1981_v19 = vrot.slane %v1948_v10, %v9450_v58  ;;  %v1996_v2 = vsub.f32 %v9872_v12, %v1977_v48 }
 0xe93   :  { %v2008_v59 = vmul.f32 1.442695, %v1995_v28 }
 0xe94   :  { %8430 = vpow2.f32 %v1455_v21  ;;  %v2010_v18 = vmul.f32 1.442695, %v1996_v2  ;;  %v1997_v55 = vsub.f32 %v9876_v34, %v1981_v19 }
 0xe95   :  { %8432 = vpow2.f32 %v1458_v7 }
 0xe96   :  { %8434 = vpow2.f32 %v2002_v45  ;;  %v2012_v10 = vmul.f32 1.442695, %v1997_v55 }
 0xe97   :  { %8436 = vpow2.f32 %v2004_v27 }
 0xe98   :  { %8438 = vpow2.f32 %v2006_v23 }
 0xe99   :  { %8440 = vpow2.f32 %v2008_v59 }
 0xe9a   :  { %v9910_v26 = vpop.eup %8426 }
 0xe9b   :  { %2023 = vperm.xlu0 %8377, %v9910_v26   ;;  %v9915_v14 = vpop.eup %8428 }
 0xe9e   :  { %v8431_v46 = vpop.eup %8430 }
 0xe9f   :  { %v1460_v35 = vmul.f32 0.0, %v8431_v46  ;;  %2026 = vperm.xlu0 %8377, %v9915_v14   ;;  %v8433_v33 = vpop.eup %8432 }
 0xea0   :  { %v9922_v21 = vpop.eup %8434  ;;  %v1461_v12 = vmul.f32 %v8433_v33, %v9777_v13 }
 0xea1   :  { %v9920_v25 = vadd.f32 %v8433_v33, %v1460_v35  ;;  %v8437_v45 = vpop.eup %8436 }
 0xea2   :  { %v9927_v54 = vpop.eup %8438  ;;  %v9933_v27 = vadd.f32 %v1461_v12, %v1460_v35  ;;  %v12655_v35 = vld [vmem:[#allocation46_spill] sm:$0xff] }
 0xea3   :  { %12653 = vst [vmem:[#allocation57_spill] sm:$0xff] %v9920_v25  ;;  %v2243_v7 = vmax.f32 %v9920_v25, 1e-20  ;;  %2029 = vperm.xlu0 %8377, %v9922_v21   ;;  %v9931_v63 = vpop.eup %8440 }
 0xea4   :  { %12654 = vst [vmem:[#allocation58_spill] sm:$0xff] %v9933_v27 }
 0xea5   :  { %8442 = vrcp.f32 %v2243_v7 }
 0xea6   :  { %8444 = vpow2.f32 %v2010_v18 }
 0xea7   :  { %2032 = vperm.xlu0 %8377, %v8437_v45   ;;  %8446 = vpow2.f32 %v2012_v10 }
 0xeab   :  { %2035 = vperm.xlu0 %8377, %v9927_v54  }
 0xeaf   :  { %v8443_v37 = vpop.eup %8442  ;;  %2038 = vperm.xlu0 %8377, %v9931_v63  }
 0xeb0   :  { %v2245_v34 = vmul.f32 %v8443_v37, %v9933_v27  ;;  %v9937_v48 = vpop.eup %8444 }
 0xeb1   :  { %v9941_v46 = vpop.eup %8446 }
 0xeb2   :  { %v2262_v23 = vadd.f32 %v2245_v34, %v9777_v13 }
 0xeb3   :  { %2041 = vperm.xlu0 %8377, %v9937_v48  }
 0xeb4   :  { %v2263_v28 = vpack.c.bf16 %v2262_v23, %v2262_v23 }
 0xeb6   :  { %8076 = vmatmul.mubr.msk.bf16.vlgmr.msra.gmra.mrb[16].mxu0 %vm288_vm13, %v2263_v28 }
 0xeb7   :  { %2044 = vperm.xlu0 %8377, %v9941_v46   ;;  %8088 = vmatpush3.bf16.msra.mxu0 %v12655_v35 }
 0xeb8   :  { %8089 = vmatprep.subr.bf16.mxu0 %v12639_v24  ;;  %8093 = vmatprep.mubr.msk.bf16.mxu0 %vm9021_vm0, %v12639_v24 }
 0xebb   :  { %8090 = vmatpush3.bf16.msra.mxu0 %v9636_v16 }
 0xebc   :  { %8091 = vmatprep.subr.bf16.mxu0 %v12639_v24 }
 0xebf   :  { %8092 = vmatpush3.bf16.msra.mxu0 %v9642_v11 }
 0xec0   :  { %8103 = vmatprep.subr.bf16.mxu0 %v12639_v24 }
 0xf1a   :  { %v2024_v13 = vpop.permute.xlu0 %2023 }
 0xf1b   :  { %v2049_v10 = vrot.slane %v2024_v13, %v12651_v15 }
 0xf1e   :  { %v2027_v33 = vpop.permute.xlu0 %2026 }
 0xf1f   :  { %v2053_v18 = vrot.slane %v2027_v33, %v12651_v15 }
 0xf21   :  { %v2078_v11 = vsel %vm734_vm2, %v2053_v18, %v2049_v10 }
 0xf22   :  { %v2030_v19 = vpop.permute.xlu0 %2029 }
 0xf23   :  { %v2057_v55 = vrot.slane %v2030_v19, %v12651_v15 }
 0xf25   :  { %v2079_v23 = vsel %vm736_vm3, %v2057_v55, %v2078_v11 }
 0xf26   :  { %v2033_v59 = vpop.permute.xlu0 %2032 }
 0xf27   :  { %v2061_v16 = vrot.slane %v2033_v59, %v12651_v15 }
 0xf29   :  { %v2080_v35 = vsel %vm738_vm4, %v2061_v16, %v2079_v23 }
 0xf2a   :  { %v2036_v2 = vpop.permute.xlu0 %2035 }
 0xf2b   :  { %v2065_v12 = vrot.slane %v2036_v2, %v12651_v15 }
 0xf2d   :  { %v2081_v33 = vsel %vm740_vm5, %v2065_v12, %v2080_v35 }
 0xf2e   :  { %v2039_v7 = vpop.permute.xlu0 %2038 }
 0xf2f   :  { %v2069_v34 = vrot.slane %v2039_v7, %v12651_v15 }
 0xf31   :  { %v2082_v59 = vsel %vm742_vm6, %v2069_v34, %v2081_v33 }
 0xf32   :  { %v2042_v37 = vpop.permute.xlu0 %2041 }
 0xf33   :  { %v2073_v28 = vrot.slane %v2042_v37, %v12651_v15 }
 0xf35   :  { %v2083_v2 = vsel %vm744_vm7, %v2073_v28, %v2082_v59 }
 0xf36   :  { %v2045_v19 = vpop.permute.xlu0 %2044 }
 0xf37   :  { %v2077_v13 = vrot.slane %v2045_v19, %v12651_v15 }
 0xf39   :  { %v2084_v17 = vsel %vm746_vm8, %v2077_v13, %v2083_v2 }
 0xf3a   :  { %v2086_v18 = vsel %vm749_vm9, %v2084_v17, 0.0 }
 0xf3b   :  { %2087 = vadd.xlane.f32.xlu0 %v2086_v18 }
 0xf89   :  { %v9969_v7 = vpop.f32.mrb[16].mxu0 }
 0xf8a   :  { %v8077_v55 = vpop.f32.mrb[17].mxu0 }
 0xf8b   :  { %v2304_v10 = vpop.f32.mrb[18].mxu0 }
 0xf8c   :  { %v8078_v37 = vpop.f32.mrb[19].mxu0 }
 0xfc8   :  { %v2088_v16 = vpop.xlane.xlu0 %2087 }
 0xfc9   :  { %8448 = vrcp.f32 %v2088_v16 }
 0xfd3   :  { %v8449_v12 = vpop.eup %8448 }
 0xfd4   :  { %v2106_v11 = vrot.slane %v8449_v12, %v9351_v42  ;;  %v2098_v23 = vrot.slane %v8449_v12, %v9330_v31  ;;  %v2102_v35 = vrot.slane %v8449_v12, %v9333_v32  ;;  %v2094_v33 = vrot.slane %v8449_v12, %v9343_v38 }
 0xfd5   :  { %v2110_v13 = vrot.slane %v8449_v12, %v9340_v36  ;;  %v2118_v2 = vrot.slane %v8449_v12, %v9445_v56  ;;  %v2122_v18 = vrot.slane %v8449_v12, %v9450_v58 }
 0xfd6   :  { %v2134_v34 = vmul.f32 %v8437_v45, %v2106_v11  ;;  %v2132_v28 = vmul.f32 %v9915_v14, %v2098_v23  ;;  %v2133_v17 = vmul.f32 %v9922_v21, %v2102_v35  ;;  %v2131_v19 = vmul.f32 %v9910_v26, %v2094_v33 }
 0xfd7   :  { %v2135_v59 = vmul.f32 %v9927_v54, %v2110_v13  ;;  %v2114_v45 = vrot.slane %v8449_v12, %v9356_v44  ;;  %v2137_v21 = vmul.f32 %v9937_v48, %v2118_v2  ;;  %v2138_v26 = vmul.f32 %v9941_v46, %v2122_v18  ;;  %v9990_v48 = vld [vmem:[#allocation2 + $0x10] sm:$0xff] }
 0xfd8   :  { %2156 = vperm.xlu0 %8377, %v2134_v34   ;;  %2146 = vperm.xlu1 %8376, %v2132_v28  }
 0xfd9   :  { %v2136_v14 = vmul.f32 %v9931_v63, %v2114_v45 }
 0xfdc   :  { %2151 = vperm.xlu1 %8376, %v2133_v17  }
 0xfe0   :  { %2141 = vperm.xlu1 %8376, %v2131_v19  }
 0xfe4   :  { %2161 = vperm.xlu1 %8376, %v2135_v59  }
 0xfe8   :  { %2166 = vperm.xlu1 %8376, %v2136_v14  }
 0xfec   :  { %2171 = vperm.xlu1 %8376, %v2137_v21  }
 0xff0   :  { %2176 = vperm.xlu1 %8376, %v2138_v26  }
0x1057   :  { %v2157_v55 = vpop.permute.xlu0 %2156  ;;  %v2147_v10 = vpop.permute.xlu1 %2146 }
0x1058   :  { %v2182_v54 = vmul.f32 %v9826_v40, %v2157_v55  ;;  %v2180_v37 = vmul.f32 %v9811_v47, %v2147_v10  ;;  %v9996_v55 = vld [vmem:[#allocation2 + $0x20] sm:$0xff] }
0x105a   :  { %v2208_v16 = vsel %vm346_vm1, %v2182_v54, 0.0  ;;  %v2194_v63 = vsel %vm346_vm1, %v2180_v37, 0.0 }
0x105b   :  { %v2195_v11 = vrot.slane %v2194_v63, 4  ;;  %v2152_v23 = vpop.permute.xlu1 %2151  ;;  %v2209_v34 = vrot.slane %v2208_v16, 4 }
0x105c   :  { %v2181_v12 = vmul.f32 %v9990_v48, %v2152_v23 }
0x105d   :  { %v2196_v28 = vadd.f32 %v2195_v11, %v2194_v63  ;;  %v2210_v19 = vadd.f32 %v2209_v34, %v2208_v16 }
0x105e   :  { %v2201_v46 = vsel %vm346_vm1, %v2181_v12, 0.0 }
0x105f   :  { %v2197_v35 = vrot.slane %v2196_v28, 2  ;;  %v2202_v17 = vrot.slane %v2201_v46, 4  ;;  %v2142_v33 = vpop.permute.xlu1 %2141  ;;  %v2211_v26 = vrot.slane %v2210_v19, 2 }
0x1060   :  { %v2179_v13 = vmul.f32 %v9797_v20, %v2142_v33 }
0x1061   :  { %v2203_v59 = vadd.f32 %v2202_v17, %v2201_v46  ;;  %v2198_v14 = vadd.f32 %v2197_v35, %v2196_v28  ;;  %v2212_v34 = vadd.f32 %v2211_v26, %v2210_v19 }
0x1062   :  { %v2187_v45 = vsel %vm346_vm1, %v2179_v13, 0.0 }
0x1063   :  { %v2204_v2 = vrot.slane %v2203_v59, 2  ;;  %v2188_v21 = vrot.slane %v2187_v45, 4  ;;  %v2162_v18 = vpop.permute.xlu1 %2161  ;;  %v2199_v11 = vrot.slane %v2198_v14, 1 }
0x1064   :  { %v2183_v10 = vmul.f32 %v9996_v55, %v2162_v18  ;;  %v2213_v18 = vrot.slane %v2212_v34, 1 }
0x1065   :  { %v2189_v54 = vadd.f32 %v2188_v21, %v2187_v45  ;;  %v2205_v37 = vadd.f32 %v2204_v2, %v2203_v59  ;;  %v2200_v13 = vadd.f32 %v2199_v11, %v2198_v14  ;;  %v10002_v2 = vld [vmem:[#allocation2 + $0x30] sm:$0xff] }
0x1066   :  { %v2215_v63 = vsel %vm346_vm1, %v2183_v10, 0.0  ;;  %v2214_v14 = vadd.f32 %v2213_v18, %v2212_v34 }
0x1067   :  { %v2190_v16 = vrot.slane %v2189_v54, 2  ;;  %v2167_v23 = vpop.permute.xlu1 %2166  ;;  %v2216_v12 = vrot.slane %v2215_v63, 4  ;;  %v2206_v35 = vrot.slane %v2205_v37, 1 }
0x1068   :  { %v2184_v46 = vmul.f32 %v9834_v57, %v2167_v23 }
0x1069   :  { %v2191_v28 = vadd.f32 %v2190_v16, %v2189_v54  ;;  %v2217_v17 = vadd.f32 %v2216_v12, %v2215_v63  ;;  %v2207_v19 = vadd.f32 %v2206_v35, %v2205_v37  ;;  %v2247_v63 = vadd.f32 %v9811_v47, %v2200_v13 }
0x106a   :  { %v2222_v33 = vsel %vm346_vm1, %v2184_v46, 0.0  ;;  %v2249_v13 = vadd.f32 %v9826_v40, %v2214_v14 }
0x106b   :  { %v2192_v27 = vrot.slane %v2191_v28, 1  ;;  %v2172_v25 = vpop.permute.xlu1 %2171  ;;  %v2218_v45 = vrot.slane %v2217_v17, 2  ;;  %v2223_v59 = vrot.slane %v2222_v33, 4  ;;  %v2255_v35 = vpack.c.bf16 %v2247_v63, %v2247_v63 }
0x106c   :  { %v2185_v21 = vmul.f32 %v10002_v2, %v2172_v25  ;;  %v2248_v25 = vadd.f32 %v9990_v48, %v2207_v19 }
0x106d   :  { %v2193_v10 = vadd.f32 %v2192_v27, %v2191_v28  ;;  %v2219_v26 = vadd.f32 %v2218_v45, %v2217_v17  ;;  %v2224_v52 = vadd.f32 %v2223_v59, %v2222_v33 }
0x106e   :  { %v2229_v54 = vsel %vm346_vm1, %v2185_v21, 0.0 }
0x106f   :  { %v2230_v16 = vrot.slane %v2229_v54, 4  ;;  %v2177_v23 = vpop.permute.xlu1 %2176  ;;  %v2220_v11 = vrot.slane %v2219_v26, 1  ;;  %v2225_v12 = vrot.slane %v2224_v52, 2  ;;  %v2246_v15 = vadd.f32 %v9797_v20, %v2193_v10 }
0x1070   :  { %v2186_v46 = vmul.f32 %v9848_v53, %v2177_v23  ;;  %v2256_v23 = vpack.c.bf16 %v2248_v25, %v2248_v25 }
0x1071   :  { %v2231_v0 = vadd.f32 %v2230_v16, %v2229_v54  ;;  %v2221_v27 = vadd.f32 %v2220_v11, %v2219_v26  ;;  %v2226_v37 = vadd.f32 %v2225_v12, %v2224_v52  ;;  %v2254_v45 = vpack.c.bf16 %v2246_v15, %v2246_v15 }
0x1072   :  { %v2236_v28 = vsel %vm346_vm1, %v2186_v46, 0.0  ;;  %v2316_v54 = vunpack.c.l.b16 %v2255_v35  ;;  %v2257_v26 = vpack.c.bf16 %v2249_v13, %v2249_v13  ;;  %v2317_v8 = vunpack.c.l.b16 %v2256_v23 }
0x1073   :  { %v2232_v17 = vrot.slane %v2231_v0, 2  ;;  %v2237_v33 = vrot.slane %v2236_v28, 4  ;;  %v2250_v34 = vadd.f32 %v9996_v55, %v2221_v27  ;;  %v2227_v18 = vrot.slane %v2226_v37, 1 }
0x1074   :  { %v2315_v63 = vunpack.c.l.b16 %v2254_v45  ;;  %v2323_v41 = vrot.slane %v2316_v54, 7 }
0x1075   :  { %v2233_v59 = vadd.f32 %v2232_v17, %v2231_v0  ;;  %v2238_v21 = vadd.f32 %v2237_v33, %v2236_v28  ;;  %v2228_v10 = vadd.f32 %v2227_v18, %v2226_v37  ;;  %v2258_v52 = vpack.c.bf16 %v2250_v34, %v2250_v34 }
0x1076   :  { %v2318_v0 = vunpack.c.l.b16 %v2257_v26  ;;  %v2324_v25 = vsel %vm734_vm2, %v2323_v41, %v2315_v63  ;;  %v2325_v33 = vrot.slane %v2317_v8, 6 }
0x1077   :  { %v2234_v16 = vrot.slane %v2233_v59, 1  ;;  %v2239_v19 = vrot.slane %v2238_v21, 2  ;;  %v2251_v11 = vadd.f32 %v9834_v57, %v2228_v10  ;;  %v2319_v28 = vunpack.c.l.b16 %v2258_v52 }
0x1078   :  { %v2326_v18 = vsel %vm736_vm3, %v2325_v33, %v2324_v25 }
0x1079   :  { %v2235_v12 = vadd.f32 %v2234_v16, %v2233_v59  ;;  %v2240_v46 = vadd.f32 %v2239_v19, %v2238_v21  ;;  %v2259_v14 = vpack.c.bf16 %v2251_v11, %v2251_v11  ;;  %v2329_v45 = vrot.slane %v2319_v28, 4 }
0x107a   :  { %v2327_v59 = vrot.slane %v2318_v0, 5 }
0x107b   :  { %v2252_v27 = vadd.f32 %v10002_v2, %v2235_v12  ;;  %v2241_v15 = vrot.slane %v2240_v46, 1  ;;  %v2320_v37 = vunpack.c.l.b16 %v2259_v14 }
0x107c   :  { %v2328_v54 = vsel %vm738_vm4, %v2327_v59, %v2326_v18 }
0x107d   :  { %v2260_v35 = vpack.c.bf16 %v2252_v27, %v2252_v27  ;;  %v2242_v17 = vadd.f32 %v2241_v15, %v2240_v46  ;;  %v2331_v21 = vrot.slane %v2320_v37, 3  ;;  %v2330_v19 = vsel %vm740_vm5, %v2329_v45, %v2328_v54 }
0x107f   :  { %v2321_v13 = vunpack.c.l.b16 %v2260_v35  ;;  %v2253_v34 = vadd.f32 %v9848_v53, %v2242_v17  ;;  %v2332_v26 = vsel %vm742_vm6, %v2331_v21, %v2330_v19 }
0x1081   :  { %v2261_v23 = vpack.c.bf16 %v2253_v34, %v2253_v34  ;;  %v2333_v10 = vrot.slane %v2321_v13, 2 }
0x1083   :  { %v2322_v16 = vunpack.c.l.b16 %v2261_v23  ;;  %v2334_v8 = vsel %vm744_vm7, %v2333_v10, %v2332_v26 }
0x1085   :  { %v2335_v41 = vrot.slane %v2322_v16, 1 }
0x1087   :  { %v2336_v52 = vsel %vm746_vm8, %v2335_v41, %v2334_v8 }
0x1088   :  { %v2337_v11 = vpack.c.b16 %v2336_v52, %v2336_v52 }
0x108a   :  { %8084 = vmatmul.mubr.msk.bf16.vlgmr.msra.gmra.mrb[20].mxu1 %vm346_vm1, %v2337_v11 }
0x108b   :  { %8098 = vmatpush3.bf16.msra.mxu1 %v9689_v22  ;;  %8099 = vmatprep.mubr.msk.bf16.mxu1 %vm9021_vm0, %v12639_v24 }
0x108c   :  { %8109 = vmatprep.subr.bf16.mxu1 %v12639_v24 }
0x115d   :  { %v2375_v63 = vpop.f32.mrb[20].mxu1 }
0x115e   :  { %v2376_v12 = vadd.f32 %v2375_v63, %v9969_v7  ;;  %v8085_v46 = vpop.f32.mrb[21].mxu1  ;;  %v1397_v7 = vsel %vm1396_vm14, -10000000.0, %v12639_v24 }
0x115f   :  { %v2378_v14 = vpop.f32.mrb[22].mxu1  ;;  %v10041_v35 = vsel %vm12527_vm12, 0.0, %v1397_v7 }
0x1160   :  { %v2381_v27 = vadd.f32 %v9650_v49, %v2376_v12  ;;  %v8086_v15 = vpop.f32.mrb[23].mxu1 }
0x1162   :  { %v2382_v0 = vmax.f32 %v2381_v27, 0.0 }
0x1164   :  { %v2383_v28 = vpack.c.bf16 %v2382_v0, %v2382_v0 }
0x1166   :  { %8094 = vmatmul.mubr.msk.bf16.vlgmr.msra.gmra.mrb[20].mxu0 %vm12561_vm10, %v2383_v28 }
0x1167   :  { %8104 = vmatpush3.bf16.msra.mxu0 %v9743_v39  ;;  %8105 = vmatprep.mubr.msk.bf16.mxu0 %vm9021_vm0, %v12639_v24 }
0x1168   :  { %8117 = vmatprep.subr.bf16.mxu0 %v12639_v24 }
0x1239   :  { %v2421_v25 = vpop.f32.mrb[20].mxu0 }
0x123a   :  { %v2422_v49 = vadd.f32 %v9669_v1, %v2421_v25  ;;  %v8095_v37 = vpop.f32.mrb[21].mxu0 }
0x123b   :  { %v2424_v17 = vpop.f32.mrb[22].mxu0 }
0x123c   :  { %v2427_v33 = vadd.f32 %v2422_v49, %v10041_v35  ;;  %v8096_v13 = vpop.f32.mrb[23].mxu0 }
0x123e   :  { %2505 = vst.msk [vmem:[#allocation19 + $0x8] sm:$0xff] %vm1268_vm11, %v2427_v33  ;;  %v2428_v5 = vsel %vm1268_vm11, %v2427_v33, -inf }
0x123f   :  { %2429 = vmax.xlane.f32.xlu1 %v2428_v5 }
0x12cc   :  { %v2430_v34 = vpop.xlane.xlu1 %2429 }
0x12cd   :  { %vm2431_vm14 = vcmp.eq.f32.partialorder %v2427_v33, %v2430_v34  ;;  %v2451_v18 = vsub.f32 %v2427_v33, %v2430_v34  ;;  %v10099_v34 = vld [vmem:[%s12466_s8] sm:$0xff]  }
0x12ce   :  { %v2432_v45 = vsel %vm2431_vm14, %v9503_v50, 12 }
0x12cf   :  { %v2452_v1 = vmul.f32 1.442695, %v2451_v18  ;;  %v2433_v59 = vsel %vm1268_vm11, %v2432_v45, 2147483647  ;;  %v10112_v18 = vld [vmem:[%s12466_s8 + $0x8] sm:$0xff]  }
0x12d0   :  { %v2435_v21 = vshra.s32 %v2433_v59, 16  ;;  %v2434_v16 = vand.u32 65535, %v2433_v59 }
0x12d1   :  { %8450 = vpow2.f32 %v2452_v1 }
0x12d2   :  { %v2437_v23 = vcvt.s32.f32 %v2435_v21  ;;  %v2436_v41 = vcvt.s32.f32 %v2434_v16  ;;  %v10136_v16 = vld [vmem:[%s12467_s9] ss:$0 sm:$0xff] }
0x12d4   :  { %2438 = vmin.xlane.f32.xlu0 %v2437_v23 }
0x12db   :  { %v8451_v10 = vpop.eup %8450 }
0x12dc   :  { %v2454_v54 = vsel %vm1268_vm11, %v8451_v10, 0.0 }
0x12dd   :  { %2455 = vadd.xlane.f32.xlu1 %v2454_v54 }
0x1361   :  { %v2439_v19 = vpop.xlane.xlu0 %2438 }
0x1362   :  { %vm2440_vm12 = vcmp.eq.f32.partialorder %v2437_v23, %v2439_v19  ;;  %v2445_v52 = vcvt.f32.s32 %v2439_v19 }
0x1363   :  { %v2441_v26 = vsel %vm2440_vm12, %v2436_v41, inf }
0x1364   :  { %2442 = vmin.xlane.f32.xlu0 %v2441_v26  ;;  %v2446_v63 = vshll.u32 %v2445_v52, 16 }
0x136a   :  { %v2456_v8 = vpop.xlane.xlu1 %2455 }
0x136b   :  { %8452 = vrcp.f32 %v2456_v8 }
0x1375   :  { %v8453_v14 = vpop.eup %8452 }
0x1376   :  { %v2458_v17 = vmul.f32 %v8453_v14, %v8451_v10 }
0x13f1   :  { %v2443_v11 = vpop.xlane.xlu0 %2442 }
0x13f2   :  { %v2444_v12 = vcvt.f32.s32 %v2443_v11 }
0x13f4   :  { %v2447_v46 = vadd.s32 %v2446_v63, %v2444_v12 }
0x13f6   :  { %v2509_v27 = vrot.slane %v2447_v46, %v9343_v38  ;;  %v2513_v15 = vrot.slane %v2447_v46, %v9330_v31  ;;  %v2517_v0 = vrot.slane %v2447_v46, %v9333_v32  ;;  %v2521_v28 = vrot.slane %v2447_v46, %v9351_v42 }
0x13f7   :  { %v2525_v7 = vrot.slane %v2447_v46, %v9340_v36  ;;  %v2529_v25 = vrot.slane %v2447_v46, %v9356_v44  ;;  %v2533_v49 = vrot.slane %v2447_v46, %v9445_v56  ;;  %v2537_v37 = vrot.slane %v2447_v46, %v9450_v58 }
0x13f8   :  { %2538 = vst.msk [vmem:[%s12479_s21 + $0x1] sm:$0x1] %vm1387_vm15, %v2509_v27  ;;  %2539 = vst.msk [vmem:[%s12479_s21 + $0x9] sm:$0x1] %vm1387_vm15, %v2513_v15  ;;  %vm2448_vm12 = vcmp.eq.s32.totalorder %v9503_v50, %v2447_v46 }
0x13f9   :  { %2540 = vst.msk [vmem:[%s12479_s21 + $0x11] sm:$0x1] %vm1387_vm15, %v2517_v0  ;;  %2541 = vst.msk [vmem:[%s12479_s21 + $0x19] sm:$0x1] %vm1387_vm15, %v2521_v28  ;;  %v10091_v33 = vsel %vm2448_vm12, 1.0, %v12639_v24  ;;  %vm12679_vm12 = vcmp.eq.s32.totalorder %v9503_v50, 2 }
0x13fa   :  { %2542 = vst.msk [vmem:[%s12479_s21 + $0x21] sm:$0x1] %vm1387_vm15, %v2525_v7  ;;  %2543 = vst.msk [vmem:[%s12479_s21 + $0x29] sm:$0x1] %vm1387_vm15, %v2529_v25  ;;  %v2459_v13 = vadd.f32 %v10091_v33, %v2458_v17  ;;  %vm2546_vm14 = vcmp.gt.f32.partialorder %v10091_v33, 0.0 }
0x13fb   :  { %2544 = vst.msk [vmem:[%s12479_s21 + $0x31] sm:$0x1] %vm1387_vm15, %v2533_v49  ;;  %2545 = vst.msk [vmem:[%s12479_s21 + $0x39] sm:$0x1] %vm1387_vm15, %v2537_v37 }
0x13fc   :  { %v2460_v5 = vpack.c.bf16 %v2459_v13, %v2459_v13  ;;  %v10163_v13 = vld [vmem:[%s12471_s13 + $0x8] sm:$0xff]  }
0x13fe   :  { %8100 = vmatmul.mubr.msk.bf16.vlgmr.msra.gmra.mrb[24].mxu1 %vm1268_vm11, %v2460_v5  ;;  %8106 = vmatmul.mubr.msk.bf16.vlgmr.msra.gmra.mrb[24].mxu0 %vm1268_vm11, %v2460_v5 }
0x13ff   :  { %8110 = vmatpush3.bf16.msra.mxu1 %v10099_v34  ;;  %8113 = vmatprep.mubr.msk.bf16.mxu1 %vm9021_vm0, %v12639_v24 }
0x1400   :  { %8111 = vmatprep.subr.bf16.mxu1 %v12639_v24  ;;  %8118 = vmatpush3.bf16.msra.mxu0 %v9754_v30  ;;  %v10123_v30 = vld [vmem:[%s12472_s14] sm:$0xff]  }
0x1401   :  { %8119 = vmatprep.subr.bf16.mxu0 %v12639_v24  ;;  %8121 = vmatprep.mubr.msk.bf16.mxu0 %vm9021_vm0, %v12639_v24 }
0x1403   :  { %8112 = vmatpush3.bf16.msra.mxu1 %v10112_v18 }
0x1404   :  { %8120 = vmatpush3.bf16.msra.mxu0 %v9763_v9  ;;  %8125 = vmatprep.subr.bf16.mxu1 %v12639_v24 }
0x1405   :  { %8131 = vmatprep.subr.bf16.mxu0 %v12639_v24 }
0x1406   :  { %8114 = vmatmul.mubr.msk.bf16.vlgmr.msra.gmra.mrb[28].mxu1 %vm346_vm1, %v9767_v62 }
0x1407   :  { %8126 = vmatpush3.bf16.msra.mxu1 %v10123_v30  ;;  %8127 = vmatprep.mubr.msk.bf16.mxu1 %vm9021_vm0, %v12639_v24 }
0x1408   :  { %8139 = vmatprep.subr.bf16.mxu1 %v12639_v24 }
0x14d1   :  { %v10129_v9 = vpop.f32.mrb[24].mxu1  ;;  %v10131_v45 = vpop.f32.mrb[24].mxu0 }
0x14d2   :  { %v8101_v1 = vpop.f32.mrb[25].mxu1  ;;  %v8107_v59 = vpop.f32.mrb[25].mxu0 }
0x14d3   :  { %v2501_v21 = vpop.f32.mrb[26].mxu1  ;;  %v2586_v62 = vpop.f32.mrb[26].mxu0 }
0x14d4   :  { %v8102_v23 = vpop.f32.mrb[27].mxu1  ;;  %v8108_v10 = vpop.f32.mrb[27].mxu0 }
0x14d9   :  { %v2779_v54 = vpop.f32.mrb[28].mxu1 }
0x14da   :  { %v2780_v19 = vadd.f32 %v10136_v16, %v2779_v54  ;;  %v8115_v41 = vpop.f32.mrb[29].mxu1 }
0x14db   :  { %v2782_v26 = vpop.f32.mrb[30].mxu1 }
0x14dc   :  { %8454 = vtanh.f32 %v2780_v19  ;;  %v8116_v8 = vpop.f32.mrb[31].mxu1  ;;  %v2785_v11 = vmul.f32 0.5, %v2780_v19 }
0x14de   :  { %8456 = vtanh.f32 %v2785_v11 }
0x14e6   :  { %v8455_v52 = vpop.eup %8454 }
0x14e7   :  { %2792 = vrot.lane.b32.xlu1 %v8455_v52, %s9022_s29 }
0x14e8   :  { %v8457_v63 = vpop.eup %8456 }
0x14e9   :  { %v2787_v12 = vmul.f32 0.5, %v8457_v63 }
0x14eb   :  { %v2788_v46 = vadd.f32 0.5, %v2787_v12 }
0x14ed   :  { %v2790_v15 = vmul.f32 %v2788_v46, %v9681_v29  ;;  %v10154_v29 = vld [vmem:[%s12471_s13] sm:$0xff]  }
0x1559   :  { %v2793_v14 = vpop.permute.xlu1 %2792 }
0x155a   :  { %v2795_v27 = vmul.f32 %v2793_v14, %v2788_v46 }
0x155c   :  { %2797 = vrot.lane.b32.xlu0 %v2795_v27, %s9023_s23 }
0x15ce   :  { %v2798_v0 = vpop.permute.xlu0 %2797 }
0x15cf   :  { %v10142_v28 = vadd.f32 %v2798_v0, %v2790_v15 }
0x15d1   :  { %8458 = vtanh.f32 %v10142_v28 }
0x15db   :  { %v8459_v7 = vpop.eup %8458 }
0x15dc   :  { %2803 = vrot.lane.b32.xlu1 %v8459_v7, %s9022_s29 }
0x164e   :  { %v2804_v25 = vpop.permute.xlu1 %2803 }
0x164f   :  { %v2806_v49 = vmul.f32 %v2804_v25, %v2788_v46 }
0x1651   :  { %v2807_v37 = vpack.c.bf16 %v2806_v49, %v2806_v49 }
0x1653   :  { %2809 = vrot.lane.b32.xlu1 %v2807_v37, %s9023_s23 }
0x16c5   :  { %v10147_v17 = vpop.permute.xlu1 %2809 }
0x16c6   :  { %8122 = vmatmul.mubr.msk.bf16.vlgmr.msra.gmra.mrb[28].mxu0 %vm346_vm1, %v10147_v17 }
0x16c7   :  { %8132 = vmatpush3.bf16.msra.mxu0 %v10154_v29  ;;  %8135 = vmatprep.mubr.msk.bf16.mxu0 %vm9021_vm0, %v12639_v24 }
0x16c8   :  { %8133 = vmatprep.subr.bf16.mxu0 %v12639_v24 }
0x16cb   :  { %8134 = vmatpush3.bf16.msra.mxu0 %v10163_v13 }
0x16cc   :  { %8149 = vmatprep.subr.bf16.mxu0 %v12639_v24 }
0x1799   :  { %v2848_v5 = vpop.f32.mrb[28].mxu0 }
0x179a   :  { %v10168_v1 = vadd.f32 %v9781_v43, %v2848_v5  ;;  %v8123_v59 = vpop.f32.mrb[29].mxu0 }
0x179b   :  { %v2851_v21 = vpop.f32.mrb[30].mxu0 }
0x179c   :  { %12656 = vst [vmem:[#allocation46_spill] sm:$0xff] %v10168_v1  ;;  %v2855_v62 = vcombine.high %v10168_v1, %v10168_v1  ;;  %v2862_v23 = vrot.slane %v10168_v1, %v9367_v51  ;;  %v8124_v10 = vpop.f32.mrb[31].mxu0 }
0x179e   :  { %v2869_v54 = vrot.slane %v2855_v62, %v9367_v51  ;;  %v2870_v19 = vcombine.high %v2862_v23, %v2862_v23  ;;  %v2878_v41 = vrot.slane %v2862_v23, %v9367_v51 }
0x17a0   :  { %v10177_v26 = vrot.slane %v2878_v41, %v9343_v38  ;;  %v2892_v43 = vrot.slane %v2870_v19, %v9367_v51  ;;  %v2900_v8 = vcombine.high %v2878_v41, %v2878_v41  ;;  %v2885_v52 = vrot.slane %v2869_v54, %v9367_v51 }
0x17a1   :  { %v2871_v11 = vcombine.high %v2869_v54, %v2869_v54 }
0x17a2   :  { %12657 = vst [vmem:[#allocation59_spill] sm:$0xff] %v10177_v26  ;;  %v2944_v63 = vmul.f32 %v9797_v20, %v10177_v26  ;;  %v10184_v12 = vrot.slane %v2892_v43, %v9343_v38  ;;  %v10187_v46 = vrot.slane %v2900_v8, %v9343_v38  ;;  %v10190_v14 = vrot.slane %v2885_v52, %v9343_v38 }
0x17a3   :  { %v2902_v27 = vcombine.high %v2892_v43, %v2892_v43  ;;  %v2901_v15 = vcombine.high %v2885_v52, %v2885_v52  ;;  %v2899_v20 = vrot.slane %v2871_v11, %v9367_v51 }
0x17a4   :  { %12658 = vst [vmem:[#allocation60_spill] sm:$0xff] %v10184_v12  ;;  %12659 = vst [vmem:[#allocation61_spill] sm:$0xff] %v10187_v46  ;;  %v2952_v0 = vsel %vm346_vm1, %v2944_v63, 0.0  ;;  %v2945_v7 = vmul.f32 %v9811_v47, %v10184_v12  ;;  %v2946_v25 = vmul.f32 %v9990_v48, %v10187_v46  ;;  %v2948_v5 = vmul.f32 %v9996_v55, %v10190_v14 }
0x17a5   :  { %12660 = vst [vmem:[#allocation62_spill] sm:$0xff] %v10190_v14  ;;  %2953 = vadd.xlane.f32.xlu0 %v2952_v0  ;;  %v10199_v49 = vrot.slane %v2902_v27, %v9343_v38  ;;  %v10205_v59 = vrot.slane %v2901_v15, %v9343_v38  ;;  %v10211_v62 = vrot.slane %v2899_v20, %v9343_v38 }
0x17a6   :  { %v2955_v37 = vsel %vm346_vm1, %v2945_v7, 0.0  ;;  %v2958_v47 = vsel %vm346_vm1, %v2946_v25, 0.0  ;;  %v2903_v23 = vcombine.high %v2899_v20, %v2899_v20  ;;  %v2964_v10 = vsel %vm346_vm1, %v2948_v5, 0.0 }
0x17a7   :  { %12661 = vst [vmem:[#allocation63_spill] sm:$0xff] %v10199_v49  ;;  %12662 = vst [vmem:[#allocation64_spill] sm:$0xff] %v10205_v59  ;;  %2956 = vadd.xlane.f32.xlu1 %v2955_v37  ;;  %v2947_v21 = vmul.f32 %v9826_v40, %v10199_v49  ;;  %v2950_v54 = vmul.f32 %v10002_v2, %v10205_v59  ;;  %v2949_v41 = vmul.f32 %v9834_v57, %v10211_v62 }
0x17a8   :  { %12663 = vst [vmem:[#allocation65_spill] sm:$0xff] %v10211_v62  ;;  %v10220_v43 = vrot.slane %v2903_v23, %v9343_v38 }
0x17a9   :  { %2959 = vadd.xlane.f32.xlu0 %v2958_v47  ;;  %v2961_v19 = vsel %vm346_vm1, %v2947_v21, 0.0  ;;  %v2970_v40 = vsel %vm346_vm1, %v2950_v54, 0.0  ;;  %v2967_v8 = vsel %vm346_vm1, %v2949_v41, 0.0  ;;  %v12665_v47 = vld [vmem:[#allocation42_spill] sm:$0xff]  ;;  %v12667_v41 = vld [vmem:[#allocation43_spill] sm:$0xff] }
0x17aa   :  { %12664 = vst [vmem:[#allocation66_spill] sm:$0xff] %v10220_v43  ;;  %v2951_v52 = vmul.f32 %v9848_v53, %v10220_v43 }
0x17ab   :  { %2965 = vadd.xlane.f32.xlu1 %v2964_v10  ;;  %v12666_v10 = vld [vmem:[#allocation41_spill] sm:$0xff] }
0x17ac   :  { %v2973_v11 = vsel %vm346_vm1, %v2951_v52, 0.0 }
0x17ad   :  { %2962 = vadd.xlane.f32.xlu0 %v2961_v19 }
0x17af   :  { %2971 = vadd.xlane.f32.xlu1 %v2970_v40 }
0x17b1   :  { %2968 = vadd.xlane.f32.xlu0 %v2967_v8 }
0x17b5   :  { %2974 = vadd.xlane.f32.xlu0 %v2973_v11  ;;  %v12668_v11 = vld [vmem:[#allocation45_spill] sm:$0xff] }
0x1832   :  { %v2954_v63 = vpop.xlane.xlu0 %2953 }
0x1833   :  { %v2976_v27 = vadd.f32 %v2954_v63, %v9456_v61 }
0x1834   :  { %v2957_v57 = vpop.xlane.xlu1 %2956 }
0x1835   :  { %v2977_v15 = vadd.f32 %v2957_v57, %v9454_v60  ;;  %2993 = vperm.xlu1 %8376, %v2976_v27  }
0x1836   :  { %v2960_v0 = vpop.xlane.xlu0 %2959 }
0x1837   :  { %v2978_v7 = vadd.f32 %v2960_v0, %v9458_v3  ;;  %2996 = vperm.xlu0 %8377, %v2977_v15  }
0x1838   :  { %v2966_v25 = vpop.xlane.xlu1 %2965 }
0x1839   :  { %v2980_v20 = vadd.f32 %v2966_v25, %v9462_v6  ;;  %2999 = vperm.xlu1 %8376, %v2978_v7  }
0x183a   :  { %v2963_v53 = vpop.xlane.xlu0 %2962 }
0x183b   :  { %v2979_v37 = vadd.f32 %v2963_v53, %v9460_v4  ;;  %3005 = vperm.xlu0 %8377, %v2980_v20  }
0x183c   :  { %v2972_v5 = vpop.xlane.xlu1 %2971 }
0x183d   :  { %v2982_v21 = vadd.f32 %v2972_v5, %v12665_v47  ;;  %3002 = vperm.xlu1 %8376, %v2979_v37  }
0x183e   :  { %v2969_v23 = vpop.xlane.xlu0 %2968 }
0x183f   :  { %v2981_v54 = vadd.f32 %v2969_v23, %v12666_v10  ;;  %3011 = vperm.xlu0 %8377, %v2982_v21  }
0x1841   :  { %3008 = vperm.xlu1 %8376, %v2981_v54  }
0x1842   :  { %v2975_v19 = vpop.xlane.xlu0 %2974 }
0x1843   :  { %v2983_v40 = vadd.f32 %v2975_v19, %v12667_v41 }
0x1845   :  { %3014 = vperm.xlu1 %8376, %v2983_v40  }
0x18b4   :  { %v2994_v8 = vpop.permute.xlu1 %2993 }
0x18b5   :  { %v3019_v0 = vrot.slane %v2994_v8, %v12668_v11 }
0x18b6   :  { %v2997_v52 = vpop.permute.xlu0 %2996 }
0x18b7   :  { %v3023_v63 = vrot.slane %v2997_v52, %v12668_v11 }
0x18b8   :  { %v3000_v57 = vpop.permute.xlu1 %2999 }
0x18b9   :  { %v3027_v25 = vrot.slane %v3000_v57, %v12668_v11  ;;  %v3048_v53 = vsel %vm734_vm2, %v3023_v63, %v3019_v0 }
0x18ba   :  { %v3006_v5 = vpop.permute.xlu0 %3005 }
0x18bb   :  { %v3049_v59 = vsel %vm736_vm3, %v3027_v25, %v3048_v53  ;;  %v3035_v14 = vrot.slane %v3006_v5, %v12668_v11 }
0x18bc   :  { %v3003_v1 = vpop.permute.xlu1 %3002 }
0x18bd   :  { %v3031_v23 = vrot.slane %v3003_v1, %v12668_v11 }
0x18be   :  { %v3012_v43 = vpop.permute.xlu0 %3011 }
0x18bf   :  { %v3050_v19 = vsel %vm738_vm4, %v3031_v23, %v3049_v59  ;;  %v3043_v63 = vrot.slane %v3012_v43, %v12668_v11 }
0x18c0   :  { %v3009_v26 = vpop.permute.xlu1 %3008  ;;  %v3051_v8 = vsel %vm740_vm5, %v3035_v14, %v3050_v19 }
0x18c1   :  { %v3039_v52 = vrot.slane %v3009_v26, %v12668_v11 }
0x18c3   :  { %v3052_v57 = vsel %vm742_vm6, %v3039_v52, %v3051_v8 }
0x18c4   :  { %v3015_v0 = vpop.permute.xlu1 %3014  ;;  %v3053_v1 = vsel %vm744_vm7, %v3043_v63, %v3052_v57 }
0x18c5   :  { %v3047_v62 = vrot.slane %v3015_v0, %v12668_v11 }
0x18c7   :  { %v3054_v25 = vsel %vm746_vm8, %v3047_v62, %v3053_v1 }
0x18c8   :  { %v3056_v59 = vsel %vm749_vm9, %v3054_v25, -inf }
0x18c9   :  { %3057 = vmax.xlane.f32.xlu0 %v3056_v59 }
0x1956   :  { %v3058_v53 = vpop.xlane.xlu0 %3057 }
0x1957   :  { %v3063_v5 = vrot.slane %v3058_v53, %v9343_v38  ;;  %v3067_v26 = vrot.slane %v3058_v53, %v9330_v31  ;;  %v3071_v14 = vrot.slane %v3058_v53, %v9333_v32  ;;  %v3075_v52 = vrot.slane %v3058_v53, %v9351_v42 }
0x1958   :  { %v3079_v62 = vrot.slane %v3058_v53, %v9340_v36  ;;  %v3083_v1 = vrot.slane %v3058_v53, %v9356_v44 }
0x1959   :  { %v3100_v23 = vsub.f32 %v2976_v27, %v3063_v5  ;;  %v3101_v19 = vsub.f32 %v2977_v15, %v3067_v26  ;;  %v3102_v8 = vsub.f32 %v2978_v7, %v3071_v14  ;;  %v3103_v63 = vsub.f32 %v2979_v37, %v3075_v52 }
0x195a   :  { %v3104_v25 = vsub.f32 %v2980_v20, %v3079_v62  ;;  %v3087_v27 = vrot.slane %v3058_v53, %v9445_v56  ;;  %v3105_v15 = vsub.f32 %v2981_v54, %v3083_v1  ;;  %v3091_v37 = vrot.slane %v3058_v53, %v9450_v58 }
0x195b   :  { %v3108_v43 = vmul.f32 1.442695, %v3100_v23  ;;  %v3110_v57 = vmul.f32 1.442695, %v3101_v19  ;;  %v3112_v0 = vmul.f32 1.442695, %v3102_v8 }
0x195c   :  { %v3114_v59 = vmul.f32 1.442695, %v3103_v63  ;;  %v3116_v7 = vmul.f32 1.442695, %v3104_v25  ;;  %v3106_v26 = vsub.f32 %v2982_v21, %v3087_v27  ;;  %v3118_v20 = vmul.f32 1.442695, %v3105_v15 }
0x195d   :  { %8460 = vpow2.f32 %v3108_v43  ;;  %v3107_v23 = vsub.f32 %v2983_v40, %v3091_v37 }
0x195e   :  { %8462 = vpow2.f32 %v3110_v57  ;;  %v3120_v19 = vmul.f32 1.442695, %v3106_v26  ;;  %v10284_v57 = vld [vmem:[#allocation17] ss:$0 sm:$0xff] }
0x195f   :  { %8464 = vpow2.f32 %v3112_v0  ;;  %v3122_v54 = vmul.f32 1.442695, %v3107_v23  ;;  %12669 = vst [vmem:[#allocation67_spill] sm:$0xff] %v10284_v57 }
0x1960   :  { %8466 = vpow2.f32 %v3114_v59 }
0x1961   :  { %8468 = vpow2.f32 %v3116_v7 }
0x1962   :  { %8470 = vpow2.f32 %v3118_v20 }
0x1963   :  { %8472 = vpow2.f32 %v3120_v19 }
0x1964   :  { %8474 = vpow2.f32 %v3122_v54 }
0x1965   :  { %8476 = vtanh.f32 %v10131_v45 }
0x1967   :  { %v10257_v49 = vpop.eup %8460 }
0x1968   :  { %3133 = vperm.xlu1 %8376, %v10257_v49   ;;  %v10261_v5 = vpop.eup %8462 }
0x1969   :  { %v10265_v14 = vpop.eup %8464 }
0x196a   :  { %v10268_v43 = vpop.eup %8466 }
0x196b   :  { %v10271_v52 = vpop.eup %8468 }
0x196c   :  { %3136 = vperm.xlu1 %8376, %v10261_v5   ;;  %v10274_v21 = vpop.eup %8470 }
0x196d   :  { %v10277_v53 = vpop.eup %8472 }
0x196e   :  { %v10280_v40 = vpop.eup %8474 }
0x196f   :  { %v8477_v8 = vpop.eup %8476 }
0x1970   :  { %3139 = vperm.xlu1 %8376, %v10265_v14   ;;  %v2590_v62 = vmul.f32 %v10284_v57, %v8477_v8 }
0x1972   :  { %v2591_v63 = vsel %vm288_vm13, %v2590_v62, 0.0 }
0x1974   :  { %3142 = vperm.xlu1 %8376, %v10268_v43  }
0x1978   :  { %3145 = vperm.xlu1 %8376, %v10271_v52  }
0x197c   :  { %3148 = vperm.xlu1 %8376, %v10274_v21  }
0x1980   :  { %3151 = vperm.xlu1 %8376, %v10277_v53  }
0x1984   :  { %3154 = vperm.xlu1 %8376, %v10280_v40  }
0x19a8   :  { %2592 = vadd.xlane.f32.xlu1 %v2591_v63 }
0x19e7   :  { %v3134_v0 = vpop.permute.xlu1 %3133 }
0x19e8   :  { %v3159_v45 = vrot.slane %v3134_v0, %v12668_v11 }
0x19eb   :  { %v3137_v1 = vpop.permute.xlu1 %3136 }
0x19ec   :  { %v3163_v7 = vrot.slane %v3137_v1, %v12668_v11 }
0x19ee   :  { %v3188_v19 = vsel %vm734_vm2, %v3163_v7, %v3159_v45 }
0x19ef   :  { %v3140_v25 = vpop.permute.xlu1 %3139 }
0x19f0   :  { %v3167_v37 = vrot.slane %v3140_v25, %v12668_v11 }
0x19f2   :  { %v3189_v8 = vsel %vm736_vm3, %v3167_v37, %v3188_v19  ;;  %v12670_v37 = vld [vmem:[#allocation56_spill] sm:$0xff] }
0x19f3   :  { %v3143_v59 = vpop.permute.xlu1 %3142 }
0x19f4   :  { %v3171_v26 = vrot.slane %v3143_v59, %v12668_v11 }
0x19f6   :  { %v3190_v63 = vsel %vm738_vm4, %v3171_v26, %v3189_v8  ;;  %v12672_v8 = vld [vmem:[#allocation57_spill] sm:$0xff] }
0x19f7   :  { %v3146_v27 = vpop.permute.xlu1 %3145 }
0x19f8   :  { %v3175_v20 = vrot.slane %v3146_v27, %v12668_v11 }
0x19fa   :  { %v3191_v1 = vsel %vm740_vm5, %v3175_v20, %v3190_v63 }
0x19fb   :  { %v3149_v15 = vpop.permute.xlu1 %3148 }
0x19fc   :  { %v3179_v54 = vrot.slane %v3149_v15, %v12668_v11 }
0x19fe   :  { %v3192_v59 = vsel %vm742_vm6, %v3179_v54, %v3191_v1 }
0x19ff   :  { %v3152_v23 = vpop.permute.xlu1 %3151 }
0x1a00   :  { %v3183_v62 = vrot.slane %v3152_v23, %v12668_v11 }
0x1a02   :  { %v3193_v27 = vsel %vm744_vm7, %v3183_v62, %v3192_v59 }
0x1a03   :  { %v3155_v25 = vpop.permute.xlu1 %3154 }
0x1a04   :  { %v3187_v0 = vrot.slane %v3155_v25, %v12668_v11 }
0x1a06   :  { %v3194_v46 = vsel %vm746_vm8, %v3187_v0, %v3193_v27  ;;  %v12674_v0 = vld [vmem:[#allocation58_spill] sm:$0xff] }
0x1a07   :  { %v3196_v7 = vsel %vm749_vm9, %v3194_v46, 0.0 }
0x1a08   :  { %3197 = vadd.xlane.f32.xlu0 %v3196_v7 }
0x1a35   :  { %v2593_v15 = vpop.xlane.xlu1 %2592 }
0x1a36   :  { %v10305_v45 = vmax.f32 %v12670_v37, %v2593_v15 }
0x1a38   :  { %12671 = vst [vmem:[#allocation56_spill] sm:$0xff] %v10305_v45  ;;  %v2595_v26 = vsub.f32 %v12670_v37, %v10305_v45  ;;  %v2598_v20 = vsub.f32 %v2593_v15, %v10305_v45 }
0x1a3a   :  { %v2596_v23 = vmul.f32 1.442695, %v2595_v26  ;;  %v2599_v19 = vmul.f32 1.442695, %v2598_v20  ;;  %v10324_v20 = vld [vmem:[%s12474_s16] sm:$0xff]  }
0x1a3b   :  { %12676 = vst [vmem:[#allocation68_spill] sm:$0xff] %v10324_v20 }
0x1a3c   :  { %8478 = vpow2.f32 %v2596_v23  ;;  %v10333_v23 = vld [vmem:[%s12474_s16 + $0x8] sm:$0xff]  }
0x1a3d   :  { %8480 = vpow2.f32 %v2599_v19  ;;  %12677 = vst [vmem:[#allocation69_spill] sm:$0xff] %v10333_v23 }
0x1a46   :  { %v8479_v54 = vpop.eup %8478 }
0x1a47   :  { %v2604_v62 = vmul.f32 %v8479_v54, %v12672_v8  ;;  %v8481_v63 = vpop.eup %8480  ;;  %v2601_v59 = vmul.f32 %v8479_v54, %v12674_v0 }
0x1a48   :  { %v2602_v25 = vmul.f32 %v8481_v63, %v10129_v9 }
0x1a49   :  { %v10311_v1 = vadd.f32 %v8481_v63, %v2604_v62 }
0x1a4a   :  { %v10316_v27 = vadd.f32 %v2602_v25, %v2601_v59 }
0x1a4b   :  { %12673 = vst [vmem:[#allocation57_spill] sm:$0xff] %v10311_v1  ;;  %v3353_v46 = vmax.f32 %v10311_v1, 1e-20 }
0x1a4c   :  { %12675 = vst [vmem:[#allocation58_spill] sm:$0xff] %v10316_v27 }
0x1a4d   :  { %8482 = vrcp.f32 %v3353_v46 }
0x1a57   :  { %v8483_v7 = vpop.eup %8482 }
0x1a58   :  { %v3355_v15 = vmul.f32 %v8483_v7, %v10316_v27 }
0x1a5a   :  { %v3372_v37 = vadd.f32 %v3355_v15, %v10129_v9  ;;  %v10340_v9 = vld [vmem:[%s12474_s16 + $0x10] sm:$0xff]  }
0x1a5b   :  { %12678 = vst [vmem:[#allocation70_spill] sm:$0xff] %v10340_v9 }
0x1a5c   :  { %v3373_v26 = vpack.c.bf16 %v3372_v37, %v3372_v37 }
0x1a5e   :  { %8128 = vmatmul.mubr.msk.bf16.vlgmr.msra.gmra.mrb[32].mxu1 %vm288_vm13, %v3373_v26 }
0x1a5f   :  { %8140 = vmatpush3.bf16.msra.mxu1 %v10324_v20  ;;  %8145 = vmatprep.mubr.msk.bf16.mxu1 %vm9021_vm0, %v12639_v24 }
0x1a60   :  { %8141 = vmatprep.subr.bf16.mxu1 %v12639_v24 }
0x1a63   :  { %8142 = vmatpush3.bf16.msra.mxu1 %v10333_v23 }
0x1a64   :  { %8143 = vmatprep.subr.bf16.mxu1 %v12639_v24 }
0x1a67   :  { %8144 = vmatpush3.bf16.msra.mxu1 %v10340_v9 }
0x1a68   :  { %8155 = vmatprep.subr.bf16.mxu1 %v12639_v24 }
0x1a95   :  { %v3198_v19 = vpop.xlane.xlu0 %3197 }
0x1a96   :  { %8484 = vrcp.f32 %v3198_v19 }
0x1aa0   :  { %v8485_v54 = vpop.eup %8484 }
0x1aa1   :  { %v3224_v8 = vrot.slane %v8485_v54, %v9356_v44  ;;  %v3208_v62 = vrot.slane %v8485_v54, %v9330_v31  ;;  %v3212_v25 = vrot.slane %v8485_v54, %v9333_v32  ;;  %v3204_v59 = vrot.slane %v8485_v54, %v9343_v38 }
0x1aa2   :  { %v3216_v15 = vrot.slane %v8485_v54, %v9351_v42  ;;  %v3228_v26 = vrot.slane %v8485_v54, %v9445_v56  ;;  %v3232_v19 = vrot.slane %v8485_v54, %v9450_v58 }
0x1aa3   :  { %v3246_v63 = vmul.f32 %v10274_v21, %v3224_v8  ;;  %v3242_v46 = vmul.f32 %v10261_v5, %v3208_v62  ;;  %v3243_v0 = vmul.f32 %v10265_v14, %v3212_v25  ;;  %v3241_v7 = vmul.f32 %v10257_v49, %v3204_v59 }
0x1aa4   :  { %v3244_v37 = vmul.f32 %v10268_v43, %v3216_v15  ;;  %v3220_v21 = vrot.slane %v8485_v54, %v9340_v36  ;;  %v3247_v14 = vmul.f32 %v10277_v53, %v3228_v26  ;;  %v3248_v49 = vmul.f32 %v10280_v40, %v3232_v19  ;;  %v10370_v26 = vld [vmem:[#allocation2] sm:$0xff] }
0x1aa5   :  { %3276 = vperm.xlu1 %8376, %v3246_v63   ;;  %3256 = vperm.xlu0 %8377, %v3242_v46   ;;  %v10360_v63 = vld [vmem:[#allocation2 + $0x8] sm:$0xff] }
0x1aa6   :  { %v3245_v5 = vmul.f32 %v10271_v52, %v3220_v21  ;;  %v10363_v46 = vld [vmem:[#allocation2 + $0x28] sm:$0xff] }
0x1aa9   :  { %3261 = vperm.xlu0 %8377, %v3243_v0  }
0x1aad   :  { %3251 = vperm.xlu0 %8377, %v3241_v7  }
0x1ab1   :  { %3266 = vperm.xlu0 %8377, %v3244_v37  }
0x1ab5   :  { %3271 = vperm.xlu0 %8377, %v3245_v5  }
0x1ab9   :  { %3281 = vperm.xlu0 %8377, %v3247_v14  }
0x1abd   :  { %3286 = vperm.xlu0 %8377, %v3248_v49  }
0x1b24   :  { %v3257_v8 = vpop.permute.xlu0 %3256  ;;  %v3277_v62 = vpop.permute.xlu1 %3276 }
0x1b25   :  { %v3290_v43 = vmul.f32 %v10360_v63, %v3257_v8  ;;  %v3294_v52 = vmul.f32 %v10363_v46, %v3277_v62 }
0x1b27   :  { %v3304_v25 = vsel %vm346_vm1, %v3290_v43, 0.0  ;;  %v3332_v54 = vsel %vm346_vm1, %v3294_v52, 0.0 }
0x1b28   :  { %v3305_v0 = vrot.slane %v3304_v25, 4  ;;  %v3262_v53 = vpop.permute.xlu0 %3261  ;;  %v3333_v37 = vrot.slane %v3332_v54, 4 }
0x1b29   :  { %v3291_v59 = vmul.f32 %v9990_v48, %v3262_v53  ;;  %v10374_v48 = vld [vmem:[#allocation2 + $0x18] sm:$0xff] }
0x1b2a   :  { %v3306_v40 = vadd.f32 %v3305_v0, %v3304_v25  ;;  %v3334_v62 = vadd.f32 %v3333_v37, %v3332_v54 }
0x1b2b   :  { %v3311_v7 = vsel %vm346_vm1, %v3291_v59, 0.0 }
0x1b2c   :  { %v3307_v15 = vrot.slane %v3306_v40, 2  ;;  %v3312_v21 = vrot.slane %v3311_v7, 4  ;;  %v3252_v5 = vpop.permute.xlu0 %3251 }
0x1b2d   :  { %v3289_v14 = vmul.f32 %v10370_v26, %v3252_v5 }
0x1b2e   :  { %v3313_v19 = vadd.f32 %v3312_v21, %v3311_v7  ;;  %v3308_v8 = vadd.f32 %v3307_v15, %v3306_v40  ;;  %v3335_v21 = vrot.slane %v3334_v62, 2 }
0x1b2f   :  { %v3297_v49 = vsel %vm346_vm1, %v3289_v14, 0.0 }
0x1b30   :  { %v3314_v43 = vrot.slane %v3313_v19, 2  ;;  %v3298_v52 = vrot.slane %v3297_v49, 4  ;;  %v3267_v12 = vpop.permute.xlu0 %3266  ;;  %v3309_v7 = vrot.slane %v3308_v8, 1 }
0x1b31   :  { %v3292_v25 = vmul.f32 %v10374_v48, %v3267_v12  ;;  %v10377_v0 = vpop.f32.mrb[32].mxu1 }
0x1b32   :  { %v3299_v53 = vadd.f32 %v3298_v52, %v3297_v49  ;;  %v8129_v59 = vpop.f32.mrb[33].mxu1  ;;  %v3315_v9 = vadd.f32 %v3314_v43, %v3313_v19  ;;  %v3310_v45 = vadd.f32 %v3309_v7, %v3308_v8  ;;  %v3336_v49 = vadd.f32 %v3335_v21, %v3334_v62  ;;  %v10385_v62 = vld [vmem:[#allocation2 + $0x38] sm:$0xff] }
0x1b33   :  { %v3318_v23 = vsel %vm346_vm1, %v3292_v25, 0.0  ;;  %v3414_v5 = vpop.f32.mrb[34].mxu1 }
0x1b34   :  { %v3300_v14 = vrot.slane %v3299_v53, 2  ;;  %v3272_v40 = vpop.permute.xlu0 %3271  ;;  %v8130_v54 = vpop.f32.mrb[35].mxu1  ;;  %v3319_v15 = vrot.slane %v3318_v23, 4  ;;  %v3316_v27 = vrot.slane %v3315_v9, 1 }
0x1b35   :  { %v3293_v37 = vmul.f32 %v9996_v55, %v3272_v40  ;;  %v3357_v55 = vadd.f32 %v10360_v63, %v3310_v45 }
0x1b36   :  { %v3301_v20 = vadd.f32 %v3300_v14, %v3299_v53  ;;  %v3320_v1 = vadd.f32 %v3319_v15, %v3318_v23  ;;  %v3317_v57 = vadd.f32 %v3316_v27, %v3315_v9  ;;  %v3337_v53 = vrot.slane %v3336_v49, 1 }
0x1b37   :  { %v3325_v12 = vsel %vm346_vm1, %v3293_v37, 0.0  ;;  %v3365_v15 = vpack.c.bf16 %v3357_v55, %v3357_v55 }
0x1b38   :  { %v3302_v52 = vrot.slane %v3301_v20, 1  ;;  %v3282_v19 = vpop.permute.xlu0 %3281  ;;  %v3321_v43 = vrot.slane %v3320_v1, 2  ;;  %v3326_v25 = vrot.slane %v3325_v12, 4  ;;  %v3338_v37 = vadd.f32 %v3337_v53, %v3336_v49 }
0x1b39   :  { %v3295_v59 = vmul.f32 %v10002_v2, %v3282_v19  ;;  %v3426_v41 = vunpack.c.l.b16 %v3365_v15 }
0x1b3a   :  { %v3303_v5 = vadd.f32 %v3302_v52, %v3301_v20  ;;  %v3322_v11 = vadd.f32 %v3321_v43, %v3320_v1  ;;  %v3327_v54 = vadd.f32 %v3326_v25, %v3325_v12  ;;  %v10389_v20 = vld [vmem:[#allocation2 + $0x10] sm:$0xff] }
0x1b3b   :  { %v3339_v47 = vsel %vm346_vm1, %v3295_v59, 0.0  ;;  %v3358_v1 = vadd.f32 %v10389_v20, %v3317_v57  ;;  %v3361_v57 = vadd.f32 %v10363_v46, %v3338_v37 }
0x1b3c   :  { %v3340_v23 = vrot.slane %v3339_v47, 4  ;;  %v3287_v14 = vpop.permute.xlu0 %3286  ;;  %v3323_v40 = vrot.slane %v3322_v11, 1  ;;  %v3328_v8 = vrot.slane %v3327_v54, 2  ;;  %v3356_v21 = vadd.f32 %v10370_v26, %v3303_v5 }
0x1b3d   :  { %v3296_v7 = vmul.f32 %v10385_v62, %v3287_v14  ;;  %v3366_v5 = vpack.c.bf16 %v3358_v1, %v3358_v1  ;;  %v10398_v1 = vld [vmem:[#allocation2 + $0x30] sm:$0xff] }
0x1b3e   :  { %v3341_v2 = vadd.f32 %v3340_v23, %v3339_v47  ;;  %v3324_v27 = vadd.f32 %v3323_v40, %v3322_v11  ;;  %v3329_v9 = vadd.f32 %v3328_v8, %v3327_v54  ;;  %v3364_v25 = vpack.c.bf16 %v3356_v21, %v3356_v21  ;;  %v10395_v40 = vld [vmem:[#allocation2 + $0x20] sm:$0xff] }
0x1b3f   :  { %v3346_v45 = vsel %vm346_vm1, %v3296_v7, 0.0 }
0x1b40   :  { %v3342_v12 = vrot.slane %v3341_v2, 2  ;;  %v3347_v52 = vrot.slane %v3346_v45, 4  ;;  %v3359_v19 = vadd.f32 %v10374_v48, %v3324_v27  ;;  %v3330_v43 = vrot.slane %v3329_v9, 1 }
0x1b41   :  { %v3425_v55 = vunpack.c.l.b16 %v3364_v25  ;;  %v3427_v27 = vunpack.c.l.b16 %v3366_v5 }
0x1b42   :  { %v3343_v59 = vadd.f32 %v3342_v12, %v3341_v2  ;;  %v3348_v14 = vadd.f32 %v3347_v52, %v3346_v45  ;;  %v3367_v47 = vpack.c.bf16 %v3359_v19, %v3359_v19  ;;  %v3331_v23 = vadd.f32 %v3330_v43, %v3329_v9 }
0x1b43   :  { %v3433_v2 = vrot.slane %v3426_v41, 7  ;;  %v3369_v45 = vpack.c.bf16 %v3361_v57, %v3361_v57 }
0x1b44   :  { %v3344_v11 = vrot.slane %v3343_v59, 1  ;;  %v3349_v54 = vrot.slane %v3348_v14, 2  ;;  %v3360_v49 = vadd.f32 %v10395_v40, %v3331_v23  ;;  %v3428_v53 = vunpack.c.l.b16 %v3367_v47 }
0x1b45   :  { %v3434_v12 = vsel %vm734_vm2, %v3433_v2, %v3425_v55  ;;  %v3435_v23 = vrot.slane %v3427_v27, 6  ;;  %v3430_v47 = vunpack.c.l.b16 %v3369_v45 }
0x1b46   :  { %v3345_v8 = vadd.f32 %v3344_v11, %v3343_v59  ;;  %v3350_v7 = vadd.f32 %v3349_v54, %v3348_v14  ;;  %v3368_v21 = vpack.c.bf16 %v3360_v49, %v3360_v49  ;;  %v3437_v52 = vrot.slane %v3428_v53, 5 }
0x1b47   :  { %v3436_v41 = vsel %vm736_vm3, %v3435_v23, %v3434_v12  ;;  %v3441_v49 = vrot.slane %v3430_v47, 3 }
0x1b48   :  { %v3362_v9 = vadd.f32 %v10398_v1, %v3345_v8  ;;  %v3351_v15 = vrot.slane %v3350_v7, 1  ;;  %v3429_v37 = vunpack.c.l.b16 %v3368_v21  ;;  %v3438_v5 = vsel %vm738_vm4, %v3437_v52, %v3436_v41 }
0x1b4a   :  { %v3370_v19 = vpack.c.bf16 %v3362_v9, %v3362_v9  ;;  %v3352_v43 = vadd.f32 %v3351_v15, %v3350_v7  ;;  %v3439_v25 = vrot.slane %v3429_v37, 4  ;;  %v10418_v37 = vld [vmem:[%s12473_s15] ss:$0 sm:$0xff] }
0x1b4c   :  { %v3431_v59 = vunpack.c.l.b16 %v3370_v19  ;;  %v3363_v14 = vadd.f32 %v10385_v62, %v3352_v43  ;;  %v3440_v11 = vsel %vm740_vm5, %v3439_v25, %v3438_v5  ;;  %v10431_v25 = vld [vmem:[%s12475_s17] ss:$0 sm:$0xff] }
0x1b4d   :  { %v3442_v53 = vsel %vm742_vm6, %v3441_v49, %v3440_v11 }
0x1b4e   :  { %v3371_v57 = vpack.c.bf16 %v3363_v14, %v3363_v14  ;;  %v3443_v54 = vrot.slane %v3431_v59, 2 }
0x1b50   :  { %v3432_v8 = vunpack.c.l.b16 %v3371_v57  ;;  %v3444_v7 = vsel %vm744_vm7, %v3443_v54, %v3442_v53 }
0x1b52   :  { %v3445_v55 = vrot.slane %v3432_v8, 1 }
0x1b54   :  { %v3446_v27 = vsel %vm746_vm8, %v3445_v55, %v3444_v7 }
0x1b55   :  { %v3447_v21 = vpack.c.b16 %v3446_v27, %v3446_v27 }
0x1b57   :  { %8136 = vmatmul.mubr.msk.bf16.vlgmr.msra.gmra.mrb[32].mxu0 %vm346_vm1, %v3447_v21 }
0x1b58   :  { %8150 = vmatpush3.bf16.msra.mxu0 %v9689_v22  ;;  %8151 = vmatprep.mubr.msk.bf16.mxu0 %vm9021_vm0, %v12639_v24 }
0x1b59   :  { %8161 = vmatprep.subr.bf16.mxu0 %v12639_v24 }
0x1c2a   :  { %v3485_v2 = vpop.f32.mrb[32].mxu0 }
0x1c2b   :  { %v3486_v45 = vadd.f32 %v3485_v2, %v10377_v0  ;;  %v8137_v9 = vpop.f32.mrb[33].mxu0  ;;  %v2547_v0 = vsel %vm2546_vm14, -10000000.0, %v10041_v35 }
0x1c2c   :  { %v3488_v15 = vpop.f32.mrb[34].mxu0  ;;  %v10436_v14 = vsel %vm12679_vm12, 0.0, %v2547_v0 }
0x1c2d   :  { %v3491_v12 = vadd.f32 %v10418_v37, %v3486_v45  ;;  %v8138_v52 = vpop.f32.mrb[35].mxu0 }
0x1c2f   :  { %v3492_v19 = vmax.f32 %v3491_v12, 0.0 }
0x1c31   :  { %v3493_v43 = vpack.c.bf16 %v3492_v19, %v3492_v19 }
0x1c33   :  { %8146 = vmatmul.mubr.msk.bf16.vlgmr.msra.gmra.mrb[36].mxu1 %vm12561_vm10, %v3493_v43 }
0x1c34   :  { %8156 = vmatpush3.bf16.msra.mxu1 %v9743_v39  ;;  %8157 = vmatprep.mubr.msk.bf16.mxu1 %vm9021_vm0, %v12639_v24 }
0x1c35   :  { %8169 = vmatprep.subr.bf16.mxu1 %v12639_v24 }
0x1d06   :  { %v3531_v23 = vpop.f32.mrb[36].mxu1 }
0x1d07   :  { %v3532_v47 = vadd.f32 %v10431_v25, %v3531_v23  ;;  %v8147_v59 = vpop.f32.mrb[37].mxu1 }
0x1d08   :  { %v3534_v41 = vpop.f32.mrb[38].mxu1 }
0x1d09   :  { %v3537_v5 = vadd.f32 %v3532_v47, %v10436_v14  ;;  %v8148_v57 = vpop.f32.mrb[39].mxu1 }
0x1d0b   :  { %3615 = vst.msk [vmem:[#allocation19 + $0x10] sm:$0xff] %vm1268_vm11, %v3537_v5  ;;  %v3538_v35 = vsel %vm1268_vm11, %v3537_v5, -inf }
0x1d0c   :  { %3539 = vmax.xlane.f32.xlu0 %v3538_v35 }
0x1d99   :  { %v3540_v33 = vpop.xlane.xlu0 %3539 }
0x1d9a   :  { %vm3541_vm14 = vcmp.eq.f32.partialorder %v3537_v5, %v3540_v33  ;;  %v3561_v11 = vsub.f32 %v3537_v5, %v3540_v33 }
0x1d9b   :  { %v3542_v54 = vsel %vm3541_vm14, %v9503_v50, 12 }
0x1d9c   :  { %v3562_v49 = vmul.f32 1.442695, %v3561_v11  ;;  %v3543_v8 = vsel %vm1268_vm11, %v3542_v54, 2147483647 }
0x1d9d   :  { %v3545_v55 = vshra.s32 %v3543_v8, 16  ;;  %v3544_v21 = vand.u32 65535, %v3543_v8 }
0x1d9e   :  { %8486 = vpow2.f32 %v3562_v49 }
0x1d9f   :  { %v3547_v53 = vcvt.s32.f32 %v3545_v55  ;;  %v3546_v45 = vcvt.s32.f32 %v3544_v21 }
0x1da1   :  { %3548 = vmin.xlane.f32.xlu1 %v3547_v53 }
0x1da8   :  { %v8487_v7 = vpop.eup %8486 }
0x1da9   :  { %v3564_v27 = vsel %vm1268_vm11, %v8487_v7, 0.0 }
0x1daa   :  { %3565 = vadd.xlane.f32.xlu0 %v3564_v27 }
0x1e2e   :  { %v3549_v2 = vpop.xlane.xlu1 %3548 }
0x1e2f   :  { %vm3550_vm12 = vcmp.eq.f32.partialorder %v3547_v53, %v3549_v2  ;;  %v3555_v12 = vcvt.f32.s32 %v3549_v2  ;;  %v10498_v53 = vld [vmem:[%s12468_s10] sm:$0xff]  }
0x1e30   :  { %v3551_v9 = vsel %vm3550_vm12, %v3546_v45, inf }
0x1e31   :  { %3552 = vmin.xlane.f32.xlu0 %v3551_v9  ;;  %v3556_v19 = vshll.u32 %v3555_v12, 16 }
0x1e37   :  { %v3566_v15 = vpop.xlane.xlu0 %3565 }
0x1e38   :  { %8488 = vrcp.f32 %v3566_v15 }
0x1e42   :  { %v8489_v23 = vpop.eup %8488 }
0x1e43   :  { %v3568_v54 = vmul.f32 %v8489_v23, %v8487_v7 }
0x1ebe   :  { %v3553_v52 = vpop.xlane.xlu0 %3552 }
0x1ebf   :  { %v3554_v43 = vcvt.f32.s32 %v3553_v52 }
0x1ec1   :  { %v3557_v0 = vadd.s32 %v3556_v19, %v3554_v43 }
0x1ec3   :  { %v3619_v47 = vrot.slane %v3557_v0, %v9343_v38  ;;  %v3623_v59 = vrot.slane %v3557_v0, %v9330_v31  ;;  %v3627_v41 = vrot.slane %v3557_v0, %v9333_v32  ;;  %v3631_v5 = vrot.slane %v3557_v0, %v9351_v42 }
0x1ec4   :  { %v3635_v57 = vrot.slane %v3557_v0, %v9340_v36  ;;  %v3639_v35 = vrot.slane %v3557_v0, %v9356_v44  ;;  %v3643_v33 = vrot.slane %v3557_v0, %v9445_v56  ;;  %v3647_v11 = vrot.slane %v3557_v0, %v9450_v58 }
0x1ec5   :  { %3648 = vst.msk [vmem:[%s12479_s21 + $0x2] sm:$0x1] %vm1387_vm15, %v3619_v47  ;;  %3649 = vst.msk [vmem:[%s12479_s21 + $0xa] sm:$0x1] %vm1387_vm15, %v3623_v59  ;;  %vm3558_vm14 = vcmp.eq.s32.totalorder %v9503_v50, %v3557_v0 }
0x1ec6   :  { %3650 = vst.msk [vmem:[%s12479_s21 + $0x12] sm:$0x1] %vm1387_vm15, %v3627_v41  ;;  %3651 = vst.msk [vmem:[%s12479_s21 + $0x1a] sm:$0x1] %vm1387_vm15, %v3631_v5  ;;  %v10486_v49 = vsel %vm3558_vm14, 1.0, %v12639_v24  ;;  %vm12702_vm14 = vcmp.eq.s32.totalorder %v9503_v50, 2 }
0x1ec7   :  { %3652 = vst.msk [vmem:[%s12479_s21 + $0x22] sm:$0x1] %vm1387_vm15, %v3635_v57  ;;  %3653 = vst.msk [vmem:[%s12479_s21 + $0x2a] sm:$0x1] %vm1387_vm15, %v3639_v35  ;;  %v3569_v8 = vadd.f32 %v10486_v49, %v3568_v54  ;;  %vm3656_vm12 = vcmp.gt.f32.partialorder %v10486_v49, 0.0 }
0x1ec8   :  { %3654 = vst.msk [vmem:[%s12479_s21 + $0x32] sm:$0x1] %vm1387_vm15, %v3643_v33  ;;  %3655 = vst.msk [vmem:[%s12479_s21 + $0x3a] sm:$0x1] %vm1387_vm15, %v3647_v11 }
0x1ec9   :  { %v3570_v55 = vpack.c.bf16 %v3569_v8, %v3569_v8 }
0x1ecb   :  { %8152 = vmatmul.mubr.msk.bf16.vlgmr.msra.gmra.mrb[36].mxu0 %vm1268_vm11, %v3570_v55  ;;  %8158 = vmatmul.mubr.msk.bf16.vlgmr.msra.gmra.mrb[40].mxu1 %vm1268_vm11, %v3570_v55 }
0x1ecc   :  { %8162 = vmatpush3.bf16.msra.mxu0 %v10099_v34  ;;  %8165 = vmatprep.mubr.msk.bf16.mxu0 %vm9021_vm0, %v12639_v24  ;;  %v10508_v34 = vld [vmem:[%s12468_s10 + $0x8] sm:$0xff]  }
0x1ecd   :  { %8163 = vmatprep.subr.bf16.mxu0 %v12639_v24  ;;  %8170 = vmatpush3.bf16.msra.mxu1 %v10498_v53 }
0x1ece   :  { %8171 = vmatprep.subr.bf16.mxu1 %v12639_v24  ;;  %8173 = vmatprep.mubr.msk.bf16.mxu1 %vm9021_vm0, %v12639_v24 }
0x1ed0   :  { %8164 = vmatpush3.bf16.msra.mxu0 %v10112_v18 }
0x1ed1   :  { %8172 = vmatpush3.bf16.msra.mxu1 %v10508_v34  ;;  %8177 = vmatprep.subr.bf16.mxu0 %v12639_v24 }
0x1ed2   :  { %8183 = vmatprep.subr.bf16.mxu1 %v12639_v24 }
0x1ed3   :  { %8166 = vmatmul.mubr.msk.bf16.vlgmr.msra.gmra.mrb[40].mxu0 %vm346_vm1, %v10147_v17 }
0x1ed4   :  { %8178 = vmatpush3.bf16.msra.mxu0 %v10123_v30  ;;  %8179 = vmatprep.mubr.msk.bf16.mxu0 %vm9021_vm0, %v12639_v24 }
0x1ed5   :  { %8191 = vmatprep.subr.bf16.mxu0 %v12639_v24 }
0x1f9e   :  { %v10519_v18 = vpop.f32.mrb[36].mxu0  ;;  %v10521_v7 = vpop.f32.mrb[40].mxu1 }
0x1f9f   :  { %v8153_v27 = vpop.f32.mrb[37].mxu0  ;;  %v8159_v21 = vpop.f32.mrb[41].mxu1 }
0x1fa0   :  { %v3611_v2 = vpop.f32.mrb[38].mxu0  ;;  %v3696_v45 = vpop.f32.mrb[42].mxu1  ;;  %v10542_v27 = vld [vmem:[#allocation16] ss:$0 sm:$0xff] }
0x1fa1   :  { %v8154_v9 = vpop.f32.mrb[39].mxu0  ;;  %v8160_v15 = vpop.f32.mrb[43].mxu1 }
0x1fa6   :  { %v3889_v12 = vpop.f32.mrb[40].mxu0 }
0x1fa7   :  { %v3890_v17 = vadd.f32 %v10136_v16, %v3889_v12  ;;  %v8167_v52 = vpop.f32.mrb[41].mxu0 }
0x1fa8   :  { %v3892_v30 = vpop.f32.mrb[42].mxu0 }
0x1fa9   :  { %8490 = vtanh.f32 %v3890_v17  ;;  %v8168_v19 = vpop.f32.mrb[43].mxu0  ;;  %v3895_v0 = vmul.f32 0.5, %v3890_v17 }
0x1fab   :  { %8492 = vtanh.f32 %v3895_v0 }
0x1fb3   :  { %v8491_v43 = vpop.eup %8490 }
0x1fb4   :  { %3902 = vrot.lane.b32.xlu0 %v8491_v43, %s9022_s29 }
0x1fb5   :  { %v8493_v23 = vpop.eup %8492 }
0x1fb6   :  { %v3897_v47 = vmul.f32 0.5, %v8493_v23 }
0x1fb8   :  { %v3898_v59 = vadd.f32 0.5, %v3897_v47 }
0x1fba   :  { %v3900_v57 = vmul.f32 %v3898_v59, %v10142_v28 }
0x2026   :  { %v3903_v41 = vpop.permute.xlu0 %3902 }
0x2027   :  { %v3905_v5 = vmul.f32 %v3903_v41, %v3898_v59 }
0x2029   :  { %3907 = vrot.lane.b32.xlu1 %v3905_v5, %s9023_s23 }
0x209b   :  { %v3908_v35 = vpop.permute.xlu1 %3907 }
0x209c   :  { %v10527_v16 = vadd.f32 %v3908_v35, %v3900_v57 }
0x209e   :  { %8494 = vtanh.f32 %v10527_v16 }
0x209f   :  { %8496 = vtanh.f32 %v10521_v7 }
0x20a8   :  { %v8495_v33 = vpop.eup %8494 }
0x20a9   :  { %3913 = vrot.lane.b32.xlu1 %v8495_v33, %s9022_s29 }
0x211b   :  { %v3914_v11 = vpop.permute.xlu1 %3913 }
0x211c   :  { %v3916_v54 = vmul.f32 %v3914_v11, %v3898_v59 }
0x211e   :  { %v3917_v8 = vpack.c.bf16 %v3916_v54, %v3916_v54 }
0x2120   :  { %3919 = vrot.lane.b32.xlu0 %v3917_v8, %s9023_s23 }
0x2192   :  { %v10532_v55 = vpop.permute.xlu0 %3919 }
0x2193   :  { %8174 = vmatmul.mubr.msk.bf16.vlgmr.msra.gmra.mrb[44].mxu1 %vm346_vm1, %v10532_v55 }
0x2194   :  { %8184 = vmatpush3.bf16.msra.mxu1 %v10154_v29  ;;  %8187 = vmatprep.mubr.msk.bf16.mxu1 %vm9021_vm0, %v12639_v24 }
0x2195   :  { %8185 = vmatprep.subr.bf16.mxu1 %v12639_v24 }
0x2198   :  { %8186 = vmatpush3.bf16.msra.mxu1 %v10163_v13 }
0x2199   :  { %8201 = vmatprep.subr.bf16.mxu1 %v12639_v24 }
0x2266   :  { %v3958_v28 = vpop.f32.mrb[44].mxu1 }
0x2267   :  { %v10545_v21 = vadd.f32 %v10542_v27, %v3958_v28  ;;  %v8175_v2 = vpop.f32.mrb[45].mxu1 }
0x2268   :  { %v3961_v45 = vpop.f32.mrb[46].mxu1 }
0x2269   :  { %12680 = vst [vmem:[#allocation71_spill] sm:$0xff] %v10545_v21  ;;  %v3965_v29 = vcombine.high %v10545_v21, %v10545_v21  ;;  %v3972_v9 = vrot.slane %v10545_v21, %v9367_v51  ;;  %v8176_v15 = vpop.f32.mrb[47].mxu1 }
0x226b   :  { %v3979_v12 = vrot.slane %v3965_v29, %v9367_v51  ;;  %v3980_v13 = vcombine.high %v3972_v9, %v3972_v9  ;;  %v3988_v17 = vrot.slane %v3972_v9, %v9367_v51 }
0x226d   :  { %v3981_v52 = vcombine.high %v3979_v12, %v3979_v12  ;;  %v10554_v30 = vrot.slane %v3988_v17, %v9343_v38  ;;  %v4002_v19 = vrot.slane %v3980_v13, %v9367_v51  ;;  %v4010_v43 = vcombine.high %v3988_v17, %v3988_v17 }
0x226e   :  { %v3995_v0 = vrot.slane %v3979_v12, %v9367_v51 }
0x226f   :  { %12681 = vst [vmem:[#allocation72_spill] sm:$0xff] %v10554_v30  ;;  %v4054_v23 = vmul.f32 %v10370_v26, %v10554_v30  ;;  %v10561_v47 = vrot.slane %v4002_v19, %v9343_v38  ;;  %v4012_v59 = vcombine.high %v4002_v19, %v4002_v19  ;;  %v10564_v41 = vrot.slane %v4010_v43, %v9343_v38 }
0x2270   :  { %v4009_v5 = vrot.slane %v3981_v52, %v9367_v51  ;;  %v10577_v54 = vrot.slane %v3995_v0, %v9343_v38  ;;  %v4011_v29 = vcombine.high %v3995_v0, %v3995_v0 }
0x2271   :  { %12682 = vst [vmem:[#allocation73_spill] sm:$0xff] %v10561_v47  ;;  %12683 = vst [vmem:[#allocation74_spill] sm:$0xff] %v10564_v41  ;;  %v4062_v57 = vsel %vm346_vm1, %v4054_v23, 0.0  ;;  %v4055_v35 = vmul.f32 %v10360_v63, %v10561_v47  ;;  %v10571_v33 = vrot.slane %v4012_v59, %v9343_v38  ;;  %v4056_v45 = vmul.f32 %v10389_v20, %v10564_v41  ;;  %v8497_v47 = vpop.eup %8496 }
0x2272   :  { %4063 = vadd.xlane.f32.xlu1 %v4062_v57  ;;  %v10574_v11 = vrot.slane %v4009_v5, %v9343_v38  ;;  %12686 = vst [vmem:[#allocation77_spill] sm:$0xff] %v10577_v54  ;;  %v4013_v8 = vcombine.high %v4009_v5, %v4009_v5  ;;  %v4058_v17 = vmul.f32 %v10395_v40, %v10577_v54 }
0x2273   :  { %12684 = vst [vmem:[#allocation75_spill] sm:$0xff] %v10571_v33  ;;  %v4065_v28 = vsel %vm346_vm1, %v4055_v35, 0.0  ;;  %v4057_v2 = vmul.f32 %v10374_v48, %v10571_v33  ;;  %v4068_v13 = vsel %vm346_vm1, %v4056_v45, 0.0  ;;  %v10594_v52 = vrot.slane %v4011_v29, %v9343_v38 }
0x2274   :  { %12685 = vst [vmem:[#allocation76_spill] sm:$0xff] %v10574_v11  ;;  %4066 = vadd.xlane.f32.xlu0 %v4065_v28  ;;  %v4059_v15 = vmul.f32 %v10363_v46, %v10574_v11  ;;  %v10588_v12 = vrot.slane %v4013_v8, %v9343_v38  ;;  %v4074_v46 = vsel %vm346_vm1, %v4058_v17, 0.0 }
0x2275   :  { %v4071_v9 = vsel %vm346_vm1, %v4057_v2, 0.0  ;;  %12688 = vst [vmem:[#allocation79_spill] sm:$0xff] %v10594_v52  ;;  %v4060_v0 = vmul.f32 %v10398_v1, %v10594_v52 }
0x2276   :  { %12687 = vst [vmem:[#allocation78_spill] sm:$0xff] %v10588_v12  ;;  %4072 = vadd.xlane.f32.xlu1 %v4071_v9  ;;  %v4077_v19 = vsel %vm346_vm1, %v4059_v15, 0.0  ;;  %v4061_v43 = vmul.f32 %v10385_v62, %v10588_v12 }
0x2277   :  { %v4080_v59 = vsel %vm346_vm1, %v4060_v0, 0.0 }
0x2278   :  { %4069 = vadd.xlane.f32.xlu0 %v4068_v13  ;;  %v4083_v23 = vsel %vm346_vm1, %v4061_v43, 0.0  ;;  %v12689_v43 = vld [vmem:[#allocation43_spill] sm:$0xff] }
0x227a   :  { %4078 = vadd.xlane.f32.xlu1 %v4077_v19 }
0x227c   :  { %4075 = vadd.xlane.f32.xlu0 %v4074_v46 }
0x227e   :  { %4084 = vadd.xlane.f32.xlu1 %v4083_v23  ;;  %v12690_v23 = vld [vmem:[#allocation42_spill] sm:$0xff] }
0x2280   :  { %4081 = vadd.xlane.f32.xlu0 %v4080_v59 }
0x22ff   :  { %v4064_v5 = vpop.xlane.xlu1 %4063 }
0x2300   :  { %v4086_v57 = vadd.f32 %v4064_v5, %v9456_v61 }
0x2301   :  { %v4067_v35 = vpop.xlane.xlu0 %4066 }
0x2302   :  { %v4087_v8 = vadd.f32 %v4067_v35, %v9454_v60  ;;  %4103 = vperm.xlu0 %8377, %v4086_v57  }
0x2303   :  { %v4073_v28 = vpop.xlane.xlu1 %4072 }
0x2304   :  { %v10607_v2 = vadd.f32 %v4073_v28, %v9460_v4  ;;  %4106 = vperm.xlu1 %8376, %v4087_v8   ;;  %v12691_v28 = vld [vmem:[#allocation45_spill] sm:$0xff] }
0x2305   :  { %v4070_v45 = vpop.xlane.xlu0 %4069 }
0x2306   :  { %v4088_v29 = vadd.f32 %v4070_v45, %v9458_v3  ;;  %4112 = vperm.xlu0 %8377, %v10607_v2  }
0x2307   :  { %v4079_v9 = vpop.xlane.xlu1 %4078 }
0x2308   :  { %v10612_v15 = vadd.f32 %v4079_v9, %v12666_v10  ;;  %4109 = vperm.xlu1 %8376, %v4088_v29  }
0x2309   :  { %v4076_v13 = vpop.xlane.xlu0 %4075 }
0x230a   :  { %v4090_v17 = vadd.f32 %v4076_v13, %v9462_v6  ;;  %4118 = vperm.xlu0 %8377, %v10612_v15  }
0x230b   :  { %v4085_v19 = vpop.xlane.xlu1 %4084 }
0x230c   :  { %v10617_v46 = vadd.f32 %v4085_v19, %v12689_v43  ;;  %4115 = vperm.xlu1 %8376, %v4090_v17  }
0x230d   :  { %v4082_v0 = vpop.xlane.xlu0 %4081 }
0x230e   :  { %v10620_v59 = vadd.f32 %v4082_v0, %v12690_v23  ;;  %4124 = vperm.xlu0 %8377, %v10617_v46  }
0x2310   :  { %4121 = vperm.xlu1 %8376, %v10620_v59  }
0x2381   :  { %v4104_v5 = vpop.permute.xlu0 %4103 }
0x2382   :  { %v4129_v13 = vrot.slane %v4104_v5, %v12691_v28 }
0x2383   :  { %v4107_v35 = vpop.permute.xlu1 %4106 }
0x2384   :  { %v4133_v45 = vrot.slane %v4107_v35, %v12691_v28 }
0x2385   :  { %v4113_v9 = vpop.permute.xlu0 %4112 }
0x2386   :  { %v4158_v54 = vsel %vm734_vm2, %v4133_v45, %v4129_v13  ;;  %v4141_v21 = vrot.slane %v4113_v9, %v12691_v28 }
0x2387   :  { %v4110_v19 = vpop.permute.xlu1 %4109 }
0x2388   :  { %v4137_v52 = vrot.slane %v4110_v19, %v12691_v28 }
0x2389   :  { %v4119_v0 = vpop.permute.xlu0 %4118 }
0x238a   :  { %v4159_v30 = vsel %vm736_vm3, %v4137_v52, %v4158_v54  ;;  %v4149_v5 = vrot.slane %v4119_v0, %v12691_v28 }
0x238b   :  { %v4116_v12 = vpop.permute.xlu1 %4115  ;;  %v4160_v35 = vsel %vm738_vm4, %v4141_v21, %v4159_v30  ;;  %v12692_v21 = vld [vmem:[#allocation67_spill] sm:$0xff] }
0x238c   :  { %v4145_v11 = vrot.slane %v4116_v12, %v12691_v28  ;;  %v3700_v30 = vmul.f32 %v12692_v21, %v8497_v47 }
0x238d   :  { %v4125_v7 = vpop.permute.xlu0 %4124 }
0x238e   :  { %v4161_v33 = vsel %vm740_vm5, %v4145_v11, %v4160_v35  ;;  %v4157_v45 = vrot.slane %v4125_v7, %v12691_v28  ;;  %v3701_v11 = vsel %vm288_vm13, %v3700_v30, 0.0 }
0x238f   :  { %v4122_v41 = vpop.permute.xlu1 %4121  ;;  %v4162_v54 = vsel %vm742_vm6, %v4149_v5, %v4161_v33 }
0x2390   :  { %v4153_v19 = vrot.slane %v4122_v41, %v12691_v28 }
0x2392   :  { %v4163_v52 = vsel %vm744_vm7, %v4153_v19, %v4162_v54 }
0x2393   :  { %v4164_v9 = vsel %vm746_vm8, %v4157_v45, %v4163_v52  ;;  %v12693_v45 = vld [vmem:[#allocation56_spill] sm:$0xff] }
0x2394   :  { %v4166_v12 = vsel %vm749_vm9, %v4164_v9, -inf }
0x2395   :  { %4167 = vmax.xlane.f32.xlu1 %v4166_v12 }
0x2399   :  { %3702 = vadd.xlane.f32.xlu1 %v3701_v11 }
0x2422   :  { %v4168_v13 = vpop.xlane.xlu1 %4167 }
0x2423   :  { %v4173_v41 = vrot.slane %v4168_v13, %v9343_v38  ;;  %v4177_v0 = vrot.slane %v4168_v13, %v9330_v31  ;;  %v4181_v35 = vrot.slane %v4168_v13, %v9333_v32  ;;  %v4185_v47 = vrot.slane %v4168_v13, %v9351_v42 }
0x2424   :  { %v4189_v11 = vrot.slane %v4168_v13, %v9340_v36 }
0x2425   :  { %v4210_v33 = vsub.f32 %v4086_v57, %v4173_v41  ;;  %v4211_v7 = vsub.f32 %v4087_v8, %v4177_v0  ;;  %v4212_v52 = vsub.f32 %v4088_v29, %v4181_v35  ;;  %v4213_v57 = vsub.f32 %v10607_v2, %v4185_v47 }
0x2426   :  { %v3703_v5 = vpop.xlane.xlu1 %3702  ;;  %v4193_v29 = vrot.slane %v4168_v13, %v9356_v44  ;;  %v4214_v0 = vsub.f32 %v4090_v17, %v4189_v11 }
0x2427   :  { %v4218_v19 = vmul.f32 1.442695, %v4210_v33  ;;  %v10647_v54 = vmax.f32 %v12693_v45, %v3703_v5  ;;  %v4220_v9 = vmul.f32 1.442695, %v4211_v7  ;;  %v4222_v30 = vmul.f32 1.442695, %v4212_v52 }
0x2428   :  { %v4224_v35 = vmul.f32 1.442695, %v4213_v57  ;;  %v4197_v7 = vrot.slane %v4168_v13, %v9445_v56  ;;  %v4226_v2 = vmul.f32 1.442695, %v4214_v0  ;;  %v12697_v0 = vld [vmem:[#allocation58_spill] sm:$0xff] }
0x2429   :  { %12694 = vst [vmem:[#allocation67_spill] sm:$0xff] %v10647_v54  ;;  %8498 = vpow2.f32 %v4218_v19  ;;  %v3705_v12 = vsub.f32 %v12693_v45, %v10647_v54  ;;  %v3708_v21 = vsub.f32 %v3703_v5, %v10647_v54  ;;  %v4215_v5 = vsub.f32 %v10612_v15, %v4193_v29 }
0x242a   :  { %8500 = vpow2.f32 %v4220_v9  ;;  %v4201_v45 = vrot.slane %v4168_v13, %v9450_v58  ;;  %v4216_v17 = vsub.f32 %v10620_v59, %v4197_v7 }
0x242b   :  { %v3706_v8 = vmul.f32 1.442695, %v3705_v12  ;;  %v3709_v41 = vmul.f32 1.442695, %v3708_v21  ;;  %8502 = vpow2.f32 %v4222_v30  ;;  %v4228_v52 = vmul.f32 1.442695, %v4215_v5 }
0x242c   :  { %v12695_v12 = vld [vmem:[#allocation57_spill] sm:$0xff]  ;;  %v4217_v30 = vsub.f32 %v10617_v46, %v4201_v45  ;;  %v4230_v11 = vmul.f32 1.442695, %v4216_v17 }
0x242d   :  { %8504 = vpow2.f32 %v3706_v8 }
0x242e   :  { %8506 = vpow2.f32 %v3709_v41  ;;  %v4232_v13 = vmul.f32 1.442695, %v4217_v30 }
0x242f   :  { %8508 = vpow2.f32 %v4224_v35 }
0x2430   :  { %8510 = vpow2.f32 %v4226_v2 }
0x2431   :  { %8512 = vpow2.f32 %v4228_v52 }
0x2432   :  { %8514 = vpow2.f32 %v4230_v11 }
0x2433   :  { %v10656_v33 = vpop.eup %8498 }
0x2434   :  { %4243 = vperm.xlu0 %8377, %v10656_v33   ;;  %v10661_v19 = vpop.eup %8500 }
0x2435   :  { %v10666_v47 = vpop.eup %8502 }
0x2437   :  { %v8505_v9 = vpop.eup %8504 }
0x2438   :  { %4246 = vperm.xlu0 %8377, %v10661_v19   ;;  %v3714_v21 = vmul.f32 %v8505_v9, %v12695_v12  ;;  %v8507_v15 = vpop.eup %8506  ;;  %v3711_v35 = vmul.f32 %v8505_v9, %v12697_v0  ;;  %v12699_v9 = vld [vmem:[#allocation68_spill] sm:$0xff] }
0x2439   :  { %v10673_v8 = vpop.eup %8508  ;;  %v3712_v46 = vmul.f32 %v8507_v15, %v10519_v18 }
0x243a   :  { %v10671_v57 = vadd.f32 %v8507_v15, %v3714_v21  ;;  %v10677_v41 = vpop.eup %8510  ;;  %v12700_v21 = vld [vmem:[#allocation69_spill] sm:$0xff]  ;;  %v12701_v15 = vld [vmem:[#allocation70_spill] sm:$0xff] }
0x243b   :  { %v10680_v29 = vpop.eup %8512  ;;  %v10687_v5 = vadd.f32 %v3712_v46, %v3711_v35 }
0x243c   :  { %4249 = vperm.xlu0 %8377, %v10666_v47   ;;  %12696 = vst [vmem:[#allocation56_spill] sm:$0xff] %v10671_v57  ;;  %v4463_v59 = vmax.f32 %v10671_v57, 1e-20  ;;  %v10685_v7 = vpop.eup %8514 }
0x243d   :  { %12698 = vst [vmem:[#allocation57_spill] sm:$0xff] %v10687_v5 }
0x243e   :  { %8516 = vrcp.f32 %v4463_v59 }
0x243f   :  { %8518 = vpow2.f32 %v4232_v13 }
0x2440   :  { %4252 = vperm.xlu0 %8377, %v10673_v8  }
0x2444   :  { %4255 = vperm.xlu0 %8377, %v10677_v41  }
0x2448   :  { %4258 = vperm.xlu0 %8377, %v10680_v29   ;;  %v8517_v2 = vpop.eup %8516 }
0x2449   :  { %v4465_v45 = vmul.f32 %v8517_v2, %v10687_v5  ;;  %v10691_v17 = vpop.eup %8518 }
0x244b   :  { %v4482_v52 = vadd.f32 %v4465_v45, %v10519_v18 }
0x244c   :  { %4261 = vperm.xlu0 %8377, %v10685_v7  }
0x244d   :  { %v4483_v12 = vpack.c.bf16 %v4482_v52, %v4482_v52 }
0x244f   :  { %8180 = vmatmul.mubr.msk.bf16.vlgmr.msra.gmra.mrb[44].mxu0 %vm288_vm13, %v4483_v12 }
0x2450   :  { %4264 = vperm.xlu0 %8377, %v10691_v17   ;;  %8192 = vmatpush3.bf16.msra.mxu0 %v12699_v9 }
0x2451   :  { %8197 = vmatprep.mubr.msk.bf16.mxu0 %vm9021_vm0, %v12639_v24  ;;  %8193 = vmatprep.subr.bf16.mxu0 %v12639_v24 }
0x2454   :  { %8194 = vmatpush3.bf16.msra.mxu0 %v12700_v21 }
0x2455   :  { %8195 = vmatprep.subr.bf16.mxu0 %v12639_v24 }
0x2458   :  { %8196 = vmatpush3.bf16.msra.mxu0 %v12701_v15 }
0x2459   :  { %8207 = vmatprep.subr.bf16.mxu0 %v12639_v24 }
0x24b3   :  { %v4244_v18 = vpop.permute.xlu0 %4243 }
0x24b4   :  { %v4269_v2 = vrot.slane %v4244_v18, %v12691_v28 }
0x24b7   :  { %v4247_v30 = vpop.permute.xlu0 %4246 }
0x24b8   :  { %v4273_v0 = vrot.slane %v4247_v30, %v12691_v28 }
0x24ba   :  { %v4298_v9 = vsel %vm734_vm2, %v4273_v0, %v4269_v2 }
0x24bb   :  { %v4250_v11 = vpop.permute.xlu0 %4249 }
0x24bc   :  { %v4277_v35 = vrot.slane %v4250_v11, %v12691_v28 }
0x24be   :  { %v4299_v15 = vsel %vm736_vm3, %v4277_v35, %v4298_v9 }
0x24bf   :  { %v4253_v59 = vpop.permute.xlu0 %4252 }
0x24c0   :  { %v4281_v45 = vrot.slane %v4253_v59, %v12691_v28 }
0x24c2   :  { %v4300_v57 = vsel %vm738_vm4, %v4281_v45, %v4299_v15 }
0x24c3   :  { %v4256_v13 = vpop.permute.xlu0 %4255 }
0x24c4   :  { %v4285_v52 = vrot.slane %v4256_v13, %v12691_v28 }
0x24c6   :  { %v4301_v30 = vsel %vm740_vm5, %v4285_v52, %v4300_v57 }
0x24c7   :  { %v4259_v46 = vpop.permute.xlu0 %4258 }
0x24c8   :  { %v4289_v21 = vrot.slane %v4259_v46, %v12691_v28 }
0x24ca   :  { %v4302_v18 = vsel %vm742_vm6, %v4289_v21, %v4301_v30 }
0x24cb   :  { %v4262_v12 = vpop.permute.xlu0 %4261 }
0x24cc   :  { %v4293_v5 = vrot.slane %v4262_v12, %v12691_v28 }
0x24ce   :  { %v4303_v13 = vsel %vm744_vm7, %v4293_v5, %v4302_v18 }
0x24cf   :  { %v4265_v11 = vpop.permute.xlu0 %4264 }
0x24d0   :  { %v4297_v59 = vrot.slane %v4265_v11, %v12691_v28 }
0x24d2   :  { %v4304_v54 = vsel %vm746_vm8, %v4297_v59, %v4303_v13 }
0x24d3   :  { %v4306_v0 = vsel %vm749_vm9, %v4304_v54, 0.0 }
0x24d4   :  { %4307 = vadd.xlane.f32.xlu0 %v4306_v0 }
0x2522   :  { %v10720_v46 = vpop.f32.mrb[44].mxu0 }
0x2523   :  { %v8181_v35 = vpop.f32.mrb[45].mxu0 }
0x2524   :  { %v4524_v2 = vpop.f32.mrb[46].mxu0 }
0x2525   :  { %v8182_v12 = vpop.f32.mrb[47].mxu0 }
0x2561   :  { %v4308_v45 = vpop.xlane.xlu0 %4307 }
0x2562   :  { %8520 = vrcp.f32 %v4308_v45 }
0x256c   :  { %v8521_v57 = vpop.eup %8520 }
0x256d   :  { %v4326_v52 = vrot.slane %v8521_v57, %v9351_v42  ;;  %v4318_v9 = vrot.slane %v8521_v57, %v9330_v31  ;;  %v4322_v15 = vrot.slane %v8521_v57, %v9333_v32  ;;  %v4314_v30 = vrot.slane %v8521_v57, %v9343_v38 }
0x256e   :  { %v4330_v18 = vrot.slane %v8521_v57, %v9340_v36  ;;  %v4338_v13 = vrot.slane %v8521_v57, %v9445_v56  ;;  %v4342_v0 = vrot.slane %v8521_v57, %v9450_v58 }
0x256f   :  { %v4354_v21 = vmul.f32 %v10673_v8, %v4326_v52  ;;  %v4352_v5 = vmul.f32 %v10661_v19, %v4318_v9  ;;  %v4353_v54 = vmul.f32 %v10666_v47, %v4322_v15  ;;  %v4351_v11 = vmul.f32 %v10656_v33, %v4314_v30 }
0x2570   :  { %v4355_v59 = vmul.f32 %v10677_v41, %v4330_v18  ;;  %v4334_v8 = vrot.slane %v8521_v57, %v9356_v44  ;;  %v4357_v47 = vmul.f32 %v10685_v7, %v4338_v13  ;;  %v4358_v33 = vmul.f32 %v10691_v17, %v4342_v0 }
0x2571   :  { %4376 = vperm.xlu0 %8377, %v4354_v21   ;;  %4366 = vperm.xlu1 %8376, %v4352_v5  }
0x2572   :  { %v4356_v19 = vmul.f32 %v10680_v29, %v4334_v8 }
0x2575   :  { %4371 = vperm.xlu1 %8376, %v4353_v54  }
0x2579   :  { %4361 = vperm.xlu1 %8376, %v4351_v11  }
0x257d   :  { %4381 = vperm.xlu1 %8376, %v4355_v59  }
0x2581   :  { %4386 = vperm.xlu1 %8376, %v4356_v19  }
0x2585   :  { %4391 = vperm.xlu1 %8376, %v4357_v47  }
0x2589   :  { %4396 = vperm.xlu1 %8376, %v4358_v33  }
0x25f0   :  { %v4377_v35 = vpop.permute.xlu0 %4376  ;;  %v4367_v2 = vpop.permute.xlu1 %4366 }
0x25f1   :  { %v4402_v41 = vmul.f32 %v10374_v48, %v4377_v35  ;;  %v4400_v12 = vmul.f32 %v10360_v63, %v4367_v2 }
0x25f3   :  { %v4428_v45 = vsel %vm346_vm1, %v4402_v41, 0.0  ;;  %v4414_v29 = vsel %vm346_vm1, %v4400_v12, 0.0 }
0x25f4   :  { %v4415_v52 = vrot.slane %v4414_v29, 4  ;;  %v4372_v9 = vpop.permute.xlu1 %4371  ;;  %v4429_v21 = vrot.slane %v4428_v45, 4 }
0x25f5   :  { %v4401_v7 = vmul.f32 %v10389_v20, %v4372_v9 }
0x25f6   :  { %v4416_v57 = vadd.f32 %v4415_v52, %v4414_v29  ;;  %v4430_v30 = vadd.f32 %v4429_v21, %v4428_v45 }
0x25f7   :  { %v4421_v5 = vsel %vm346_vm1, %v4401_v7, 0.0 }
0x25f8   :  { %v4417_v17 = vrot.slane %v4416_v57, 2  ;;  %v4422_v15 = vrot.slane %v4421_v5, 4  ;;  %v4362_v54 = vpop.permute.xlu1 %4361  ;;  %v4431_v13 = vrot.slane %v4430_v30, 2 }
0x25f9   :  { %v4399_v48 = vmul.f32 %v10370_v26, %v4362_v54  ;;  %v10748_v26 = vld [vmem:[#allocation2 + $0x28] sm:$0xff] }
0x25fa   :  { %v4423_v11 = vadd.f32 %v4422_v15, %v4421_v5  ;;  %v4418_v18 = vadd.f32 %v4417_v17, %v4416_v57  ;;  %v4432_v45 = vadd.f32 %v4431_v13, %v4430_v30 }
0x25fb   :  { %v4407_v63 = vsel %vm346_vm1, %v4399_v48, 0.0 }
0x25fc   :  { %v4424_v59 = vrot.slane %v4423_v11, 2  ;;  %v4408_v8 = vrot.slane %v4407_v63, 4  ;;  %v4382_v19 = vpop.permute.xlu1 %4381  ;;  %v4419_v2 = vrot.slane %v4418_v18, 1  ;;  %v4433_v54 = vrot.slane %v4432_v45, 1 }
0x25fd   :  { %v4403_v47 = vmul.f32 %v10395_v40, %v4382_v19 }
0x25fe   :  { %v4409_v0 = vadd.f32 %v4408_v8, %v4407_v63  ;;  %v4425_v33 = vadd.f32 %v4424_v59, %v4423_v11  ;;  %v4420_v5 = vadd.f32 %v4419_v2, %v4418_v18  ;;  %v4434_v18 = vadd.f32 %v4433_v54, %v4432_v45 }
0x25ff   :  { %v4435_v35 = vsel %vm346_vm1, %v4403_v47, 0.0  ;;  %v10754_v47 = vld [vmem:[#allocation2 + $0x8] sm:$0xff] }
0x2600   :  { %v4410_v41 = vrot.slane %v4409_v0, 2  ;;  %v4387_v12 = vpop.permute.xlu1 %4386  ;;  %v4436_v29 = vrot.slane %v4435_v35, 4  ;;  %v4426_v21 = vrot.slane %v4425_v33, 1 }
0x2601   :  { %v4404_v52 = vmul.f32 %v10748_v26, %v4387_v12 }
0x2602   :  { %v4411_v9 = vadd.f32 %v4410_v41, %v4409_v0  ;;  %v4437_v7 = vadd.f32 %v4436_v29, %v4435_v35  ;;  %v4427_v30 = vadd.f32 %v4426_v21, %v4425_v33  ;;  %v4467_v0 = vadd.f32 %v10754_v47, %v4420_v5 }
0x2603   :  { %v4442_v57 = vsel %vm346_vm1, %v4404_v52, 0.0  ;;  %v10758_v52 = vld [vmem:[#allocation2] sm:$0xff] }
0x2604   :  { %v4412_v17 = vrot.slane %v4411_v9, 1  ;;  %v4392_v15 = vpop.permute.xlu1 %4391  ;;  %v4438_v48 = vrot.slane %v4437_v7, 2  ;;  %v4443_v11 = vrot.slane %v4442_v57, 4  ;;  %v4468_v21 = vadd.f32 %v10389_v20, %v4427_v30 }
0x2605   :  { %v4405_v63 = vmul.f32 %v10398_v1, %v4392_v15  ;;  %v4475_v15 = vpack.c.bf16 %v4467_v0, %v4467_v0 }
0x2606   :  { %v4413_v59 = vadd.f32 %v4412_v17, %v4411_v9  ;;  %v4439_v8 = vadd.f32 %v4438_v48, %v4437_v7  ;;  %v4444_v19 = vadd.f32 %v4443_v11, %v4442_v57  ;;  %v10763_v11 = vld [vmem:[#allocation2 + $0x18] sm:$0xff] }
0x2607   :  { %v4449_v13 = vsel %vm346_vm1, %v4405_v63, 0.0  ;;  %v4469_v45 = vadd.f32 %v10763_v11, %v4434_v18  ;;  %v4536_v20 = vunpack.c.l.b16 %v4475_v15 }
0x2608   :  { %v4450_v35 = vrot.slane %v4449_v13, 4  ;;  %v4397_v41 = vpop.permute.xlu1 %4396  ;;  %v4440_v2 = vrot.slane %v4439_v8, 1  ;;  %v4445_v12 = vrot.slane %v4444_v19, 2  ;;  %v4466_v9 = vadd.f32 %v10758_v52, %v4413_v59 }
0x2609   :  { %v4406_v29 = vmul.f32 %v10385_v62, %v4397_v41  ;;  %v4543_v10 = vrot.slane %v4536_v20, 7 }
0x260a   :  { %v4451_v33 = vadd.f32 %v4450_v35, %v4449_v13  ;;  %v4441_v7 = vadd.f32 %v4440_v2, %v4439_v8  ;;  %v4446_v57 = vadd.f32 %v4445_v12, %v4444_v19  ;;  %v4474_v63 = vpack.c.bf16 %v4466_v9, %v4466_v9 }
0x260b   :  { %v4456_v17 = vsel %vm346_vm1, %v4406_v29, 0.0  ;;  %v4476_v13 = vpack.c.bf16 %v4468_v21, %v4468_v21  ;;  %v4477_v19 = vpack.c.bf16 %v4469_v45, %v4469_v45  ;;  %v10770_v45 = vld [vmem:[#allocation2 + $0x38] sm:$0xff] }
0x260c   :  { %v4452_v5 = vrot.slane %v4451_v33, 2  ;;  %v4457_v48 = vrot.slane %v4456_v17, 4  ;;  %v4470_v62 = vadd.f32 %v10395_v40, %v4441_v7  ;;  %v4447_v54 = vrot.slane %v4446_v57, 1 }
0x260d   :  { %v4535_v12 = vunpack.c.l.b16 %v4474_v63  ;;  %v4537_v43 = vunpack.c.l.b16 %v4476_v13 }
0x260e   :  { %v4453_v41 = vadd.f32 %v4452_v5, %v4451_v33  ;;  %v4458_v59 = vadd.f32 %v4457_v48, %v4456_v17  ;;  %v4448_v35 = vadd.f32 %v4447_v54, %v4446_v57  ;;  %v4478_v2 = vpack.c.bf16 %v4470_v62, %v4470_v62 }
0x260f   :  { %v4538_v33 = vunpack.c.l.b16 %v4477_v19  ;;  %v4544_v21 = vsel %vm734_vm2, %v4543_v10, %v4535_v12  ;;  %v4545_v5 = vrot.slane %v4537_v43, 6 }
0x2610   :  { %v4454_v30 = vrot.slane %v4453_v41, 1  ;;  %v4459_v8 = vrot.slane %v4458_v59, 2  ;;  %v4471_v0 = vadd.f32 %v10748_v26, %v4448_v35  ;;  %v4539_v7 = vunpack.c.l.b16 %v4478_v2 }
0x2611   :  { %v4546_v54 = vsel %vm736_vm3, %v4545_v5, %v4544_v21 }
0x2612   :  { %v4455_v29 = vadd.f32 %v4454_v30, %v4453_v41  ;;  %v4460_v28 = vadd.f32 %v4459_v8, %v4458_v59  ;;  %v4479_v18 = vpack.c.bf16 %v4471_v0, %v4471_v0  ;;  %v4549_v63 = vrot.slane %v4539_v7, 4 }
0x2613   :  { %v4547_v41 = vrot.slane %v4538_v33, 5 }
0x2614   :  { %v4472_v40 = vadd.f32 %v10398_v1, %v4455_v29  ;;  %v4461_v9 = vrot.slane %v4460_v28, 1  ;;  %v4540_v57 = vunpack.c.l.b16 %v4479_v18 }
0x2615   :  { %v4548_v35 = vsel %vm738_vm4, %v4547_v41, %v4546_v54 }
0x2616   :  { %v4480_v17 = vpack.c.bf16 %v4472_v40, %v4472_v40  ;;  %v4462_v15 = vadd.f32 %v4461_v9, %v4460_v28  ;;  %v4551_v59 = vrot.slane %v4540_v57, 3  ;;  %v4550_v10 = vsel %vm740_vm5, %v4549_v63, %v4548_v35 }
0x2618   :  { %v4541_v48 = vunpack.c.l.b16 %v4480_v17  ;;  %v4473_v62 = vadd.f32 %v10770_v45, %v4462_v15  ;;  %v4552_v43 = vsel %vm742_vm6, %v4551_v59, %v4550_v10 }
0x261a   :  { %v4481_v1 = vpack.c.bf16 %v4473_v62, %v4473_v62  ;;  %v4553_v13 = vrot.slane %v4541_v48, 2 }
0x261c   :  { %v4542_v20 = vunpack.c.l.b16 %v4481_v1  ;;  %v4554_v28 = vsel %vm744_vm7, %v4553_v13, %v4552_v43 }
0x261e   :  { %v4555_v30 = vrot.slane %v4542_v20, 1 }
0x2620   :  { %v4556_v8 = vsel %vm746_vm8, %v4555_v30, %v4554_v28 }
0x2621   :  { %v4557_v19 = vpack.c.b16 %v4556_v8, %v4556_v8 }
0x2623   :  { %8188 = vmatmul.mubr.msk.bf16.vlgmr.msra.gmra.mrb[48].mxu1 %vm346_vm1, %v4557_v19 }
0x2624   :  { %8202 = vmatpush3.bf16.msra.mxu1 %v9689_v22  ;;  %8203 = vmatprep.mubr.msk.bf16.mxu1 %vm9021_vm0, %v12639_v24 }
0x2625   :  { %8213 = vmatprep.subr.bf16.mxu1 %v12639_v24 }
0x26f6   :  { %v4595_v2 = vpop.f32.mrb[48].mxu1 }
0x26f7   :  { %v4596_v0 = vadd.f32 %v4595_v2, %v10720_v46  ;;  %v8189_v12 = vpop.f32.mrb[49].mxu1  ;;  %v3657_v46 = vsel %vm3656_vm12, -10000000.0, %v10436_v14 }
0x26f8   :  { %v4598_v29 = vpop.f32.mrb[50].mxu1  ;;  %v10796_v57 = vsel %vm12702_vm14, 0.0, %v3657_v46  ;;  %vm12725_vm14 = vcmask 392192  }
0x26f9   :  { %v4601_v18 = vadd.f32 %v10418_v37, %v4596_v0  ;;  %v8190_v40 = vpop.f32.mrb[51].mxu1 }
0x26fb   :  { %v4602_v9 = vmax.f32 %v4601_v18, 0.0 }
0x26fd   :  { %v4603_v33 = vpack.c.bf16 %v4602_v9, %v4602_v9 }
0x26ff   :  { %8198 = vmatmul.mubr.msk.bf16.vlgmr.msra.gmra.mrb[48].mxu0 %vm12561_vm10, %v4603_v33 }
0x2700   :  { %8208 = vmatpush3.bf16.msra.mxu0 %v9743_v39  ;;  %8209 = vmatprep.mubr.msk.bf16.mxu0 %vm9021_vm0, %v12639_v24 }
0x2701   :  { %8221 = vmatprep.subr.bf16.mxu0 %v12639_v24 }
0x27d2   :  { %v4641_v7 = vpop.f32.mrb[48].mxu0 }
0x27d3   :  { %v4642_v21 = vadd.f32 %v10431_v25, %v4641_v7  ;;  %v8199_v37 = vpop.f32.mrb[49].mxu0 }
0x27d4   :  { %v4644_v17 = vpop.f32.mrb[50].mxu0 }
0x27d5   :  { %v4647_v15 = vadd.f32 %v4642_v21, %v10796_v57  ;;  %v8200_v5 = vpop.f32.mrb[51].mxu0 }
0x27d6   :  { %v10854_v5 = vld [vmem:[%s12466_s8] sm:$0xff]  }
0x27d7   :  { %4725 = vst.msk [vmem:[#allocation19 + $0x18] sm:$0xff] %vm1268_vm11, %v4647_v15  ;;  %v4648_v48 = vsel %vm1268_vm11, %v4647_v15, -inf }
0x27d8   :  { %4649 = vmax.xlane.f32.xlu1 %v4648_v48  ;;  %v10867_v48 = vld [vmem:[%s12466_s8 + $0x8] sm:$0xff]  }
0x2865   :  { %v4650_v49 = vpop.xlane.xlu1 %4649 }
0x2866   :  { %vm4651_vm10 = vcmp.eq.f32.partialorder %v4647_v15, %v4650_v49  ;;  %v4671_v14 = vsub.f32 %v4647_v15, %v4650_v49 }
0x2867   :  { %v4652_v62 = vsel %vm4651_vm10, %v9503_v50, 12 }
0x2868   :  { %v4672_v25 = vmul.f32 1.442695, %v4671_v14  ;;  %v4653_v54 = vsel %vm1268_vm11, %v4652_v62, 2147483647 }
0x2869   :  { %v4655_v63 = vshra.s32 %v4653_v54, 16  ;;  %v4654_v13 = vand.u32 65535, %v4653_v54 }
0x286a   :  { %8522 = vpow2.f32 %v4672_v25 }
0x286b   :  { %v4657_v41 = vcvt.s32.f32 %v4655_v63  ;;  %v4656_v20 = vcvt.s32.f32 %v4654_v13 }
0x286d   :  { %4658 = vmin.xlane.f32.xlu0 %v4657_v41 }
0x2874   :  { %v8523_v59 = vpop.eup %8522 }
0x2875   :  { %v4674_v1 = vsel %vm1268_vm11, %v8523_v59, 0.0 }
0x2876   :  { %4675 = vadd.xlane.f32.xlu1 %v4674_v1 }
0x28fa   :  { %v4659_v35 = vpop.xlane.xlu0 %4658 }
0x28fb   :  { %vm4660_vm12 = vcmp.eq.f32.partialorder %v4657_v41, %v4659_v35  ;;  %v4665_v43 = vcvt.f32.s32 %v4659_v35 }
0x28fc   :  { %v4661_v10 = vsel %vm4660_vm12, %v4656_v20, inf }
0x28fd   :  { %4662 = vmin.xlane.f32.xlu0 %v4661_v10  ;;  %v4666_v8 = vshll.u32 %v4665_v43, 16 }
0x2903   :  { %v4676_v30 = vpop.xlane.xlu1 %4675 }
0x2904   :  { %8524 = vrcp.f32 %v4676_v30 }
0x290e   :  { %v8525_v0 = vpop.eup %8524 }
0x290f   :  { %v4678_v21 = vmul.f32 %v8525_v0, %v8523_v59  ;;  %v10891_v59 = vld [vmem:[%s12467_s9] ss:$0 sm:$0xff] }
0x298a   :  { %v4663_v28 = vpop.xlane.xlu0 %4662 }
0x298b   :  { %v4664_v19 = vcvt.f32.s32 %v4663_v28 }
0x298d   :  { %v4667_v2 = vadd.s32 %v4666_v8, %v4664_v19 }
0x298f   :  { %v4729_v12 = vrot.slane %v4667_v2, %v9343_v38  ;;  %v4733_v29 = vrot.slane %v4667_v2, %v9330_v31  ;;  %v4737_v18 = vrot.slane %v4667_v2, %v9333_v32  ;;  %v4741_v40 = vrot.slane %v4667_v2, %v9351_v42 }
0x2990   :  { %v4745_v9 = vrot.slane %v4667_v2, %v9340_v36  ;;  %v4749_v33 = vrot.slane %v4667_v2, %v9356_v44  ;;  %v4753_v46 = vrot.slane %v4667_v2, %v9445_v56  ;;  %v4757_v7 = vrot.slane %v4667_v2, %v9450_v58 }
0x2991   :  { %4758 = vst.msk [vmem:[%s12479_s21 + $0x3] sm:$0x1] %vm1387_vm15, %v4729_v12  ;;  %4759 = vst.msk [vmem:[%s12479_s21 + $0xb] sm:$0x1] %vm1387_vm15, %v4733_v29  ;;  %vm4668_vm10 = vcmp.eq.s32.totalorder %v9503_v50, %v4667_v2 }
0x2992   :  { %4760 = vst.msk [vmem:[%s12479_s21 + $0x13] sm:$0x1] %vm1387_vm15, %v4737_v18  ;;  %4761 = vst.msk [vmem:[%s12479_s21 + $0x1b] sm:$0x1] %vm1387_vm15, %v4741_v40  ;;  %v10846_v37 = vsel %vm4668_vm10, 1.0, %v12639_v24  ;;  %vm12726_vm10 = vcmp.eq.s32.totalorder %v9503_v50, 2 }
0x2993   :  { %4762 = vst.msk [vmem:[%s12479_s21 + $0x23] sm:$0x1] %vm1387_vm15, %v4745_v9  ;;  %4763 = vst.msk [vmem:[%s12479_s21 + $0x2b] sm:$0x1] %vm1387_vm15, %v4749_v33  ;;  %v4679_v17 = vadd.f32 %v10846_v37, %v4678_v21  ;;  %vm4766_vm12 = vcmp.gt.f32.partialorder %v10846_v37, 0.0 }
0x2994   :  { %4764 = vst.msk [vmem:[%s12479_s21 + $0x33] sm:$0x1] %vm1387_vm15, %v4753_v46  ;;  %4765 = vst.msk [vmem:[%s12479_s21 + $0x3b] sm:$0x1] %vm1387_vm15, %v4757_v7  ;;  %v10918_v7 = vld [vmem:[%s12471_s13 + $0x8] sm:$0xff]  }
0x2995   :  { %v4680_v15 = vpack.c.bf16 %v4679_v17, %v4679_v17 }
0x2997   :  { %8204 = vmatmul.mubr.msk.bf16.vlgmr.msra.gmra.mrb[52].mxu1 %vm1268_vm11, %v4680_v15  ;;  %8210 = vmatmul.mubr.msk.bf16.vlgmr.msra.gmra.mrb[52].mxu0 %vm1268_vm11, %v4680_v15 }
0x2998   :  { %8214 = vmatpush3.bf16.msra.mxu1 %v10854_v5  ;;  %8217 = vmatprep.mubr.msk.bf16.mxu1 %vm9021_vm0, %v12639_v24 }
0x2999   :  { %8215 = vmatprep.subr.bf16.mxu1 %v12639_v24  ;;  %8222 = vmatpush3.bf16.msra.mxu0 %v10498_v53  ;;  %v10878_v53 = vld [vmem:[%s12472_s14] sm:$0xff]  }
0x299a   :  { %8223 = vmatprep.subr.bf16.mxu0 %v12639_v24  ;;  %8225 = vmatprep.mubr.msk.bf16.mxu0 %vm9021_vm0, %v12639_v24 }
0x299c   :  { %8216 = vmatpush3.bf16.msra.mxu1 %v10867_v48 }
0x299d   :  { %8224 = vmatpush3.bf16.msra.mxu0 %v10508_v34  ;;  %8229 = vmatprep.subr.bf16.mxu1 %v12639_v24 }
0x299e   :  { %8235 = vmatprep.subr.bf16.mxu0 %v12639_v24 }
0x299f   :  { %8218 = vmatmul.mubr.msk.bf16.vlgmr.msra.gmra.mrb[56].mxu1 %vm346_vm1, %v10532_v55 }
0x29a0   :  { %8230 = vmatpush3.bf16.msra.mxu1 %v10878_v53  ;;  %8231 = vmatprep.mubr.msk.bf16.mxu1 %vm9021_vm0, %v12639_v24 }
0x29a1   :  { %8243 = vmatprep.subr.bf16.mxu1 %v12639_v24 }
0x2a6a   :  { %v10884_v34 = vpop.f32.mrb[52].mxu1  ;;  %v10886_v49 = vpop.f32.mrb[52].mxu0 }
0x2a6b   :  { %v8205_v14 = vpop.f32.mrb[53].mxu1  ;;  %v8211_v62 = vpop.f32.mrb[53].mxu0 }
0x2a6c   :  { %v4721_v25 = vpop.f32.mrb[54].mxu1  ;;  %v4806_v55 = vpop.f32.mrb[54].mxu0 }
0x2a6d   :  { %v8206_v54 = vpop.f32.mrb[55].mxu1  ;;  %v8212_v63 = vpop.f32.mrb[55].mxu0 }
0x2a72   :  { %v4999_v41 = vpop.f32.mrb[56].mxu1 }
0x2a73   :  { %v5000_v1 = vadd.f32 %v10891_v59, %v4999_v41  ;;  %v8219_v13 = vpop.f32.mrb[57].mxu1 }
0x2a74   :  { %v5002_v35 = vpop.f32.mrb[58].mxu1 }
0x2a75   :  { %8526 = vtanh.f32 %v5000_v1  ;;  %v8220_v20 = vpop.f32.mrb[59].mxu1  ;;  %v5005_v30 = vmul.f32 0.5, %v5000_v1 }
0x2a77   :  { %8528 = vtanh.f32 %v5005_v30 }
0x2a7f   :  { %v8527_v10 = vpop.eup %8526 }
0x2a80   :  { %5012 = vrot.lane.b32.xlu1 %v8527_v10, %s9022_s29 }
0x2a81   :  { %v8529_v43 = vpop.eup %8528 }
0x2a82   :  { %v5007_v28 = vmul.f32 0.5, %v8529_v43 }
0x2a84   :  { %v5008_v8 = vadd.f32 0.5, %v5007_v28 }
0x2a86   :  { %v5010_v0 = vmul.f32 %v5008_v8, %v10527_v16  ;;  %v10909_v16 = vld [vmem:[%s12471_s13] sm:$0xff]  }
0x2af2   :  { %v5013_v19 = vpop.permute.xlu1 %5012 }
0x2af3   :  { %v5015_v2 = vmul.f32 %v5013_v19, %v5008_v8 }
0x2af5   :  { %5017 = vrot.lane.b32.xlu0 %v5015_v2, %s9023_s23 }
0x2b67   :  { %v5018_v12 = vpop.permute.xlu0 %5017 }
0x2b68   :  { %v10897_v29 = vadd.f32 %v5018_v12, %v5010_v0 }
0x2b6a   :  { %8530 = vtanh.f32 %v10897_v29 }
0x2b74   :  { %v8531_v18 = vpop.eup %8530 }
0x2b75   :  { %5023 = vrot.lane.b32.xlu1 %v8531_v18, %s9022_s29  ;;  %v10951_v18 = vld [vmem:[#allocation2 + $0x10] sm:$0xff] }
0x2be7   :  { %v5024_v40 = vpop.permute.xlu1 %5023 }
0x2be8   :  { %v5026_v9 = vmul.f32 %v5024_v40, %v5008_v8 }
0x2bea   :  { %v5027_v33 = vpack.c.bf16 %v5026_v9, %v5026_v9 }
0x2bec   :  { %5029 = vrot.lane.b32.xlu1 %v5027_v33, %s9023_s23 }
0x2c5e   :  { %v10902_v46 = vpop.permute.xlu1 %5029 }
0x2c5f   :  { %8226 = vmatmul.mubr.msk.bf16.vlgmr.msra.gmra.mrb[56].mxu0 %vm346_vm1, %v10902_v46 }
0x2c60   :  { %8236 = vmatpush3.bf16.msra.mxu0 %v10909_v16  ;;  %8239 = vmatprep.mubr.msk.bf16.mxu0 %vm9021_vm0, %v12639_v24 }
0x2c61   :  { %8237 = vmatprep.subr.bf16.mxu0 %v12639_v24 }
0x2c64   :  { %8238 = vmatpush3.bf16.msra.mxu0 %v10918_v7 }
0x2c65   :  { %8253 = vmatprep.subr.bf16.mxu0 %v12639_v24 }
0x2d32   :  { %v5068_v21 = vpop.f32.mrb[56].mxu0 }
0x2d33   :  { %v10923_v17 = vadd.f32 %v10542_v27, %v5068_v21  ;;  %v8227_v15 = vpop.f32.mrb[57].mxu0  ;;  %v10959_v21 = vld [vmem:[#allocation2 + $0x20] sm:$0xff] }
0x2d34   :  { %v5071_v14 = vpop.f32.mrb[58].mxu0 }
0x2d35   :  { %12703 = vst [vmem:[#allocation58_spill] sm:$0xff] %v10923_v17  ;;  %v5075_v62 = vcombine.high %v10923_v17, %v10923_v17  ;;  %v5082_v25 = vrot.slane %v10923_v17, %v9367_v51  ;;  %v8228_v55 = vpop.f32.mrb[59].mxu0 }
0x2d37   :  { %v5089_v54 = vrot.slane %v5075_v62, %v9367_v51  ;;  %v5090_v63 = vcombine.high %v5082_v25, %v5082_v25  ;;  %v5098_v41 = vrot.slane %v5082_v25, %v9367_v51 }
0x2d39   :  { %v5091_v1 = vcombine.high %v5089_v54, %v5089_v54  ;;  %v10932_v13 = vrot.slane %v5098_v41, %v9343_v38  ;;  %v5112_v27 = vrot.slane %v5090_v63, %v9367_v51  ;;  %v5120_v35 = vcombine.high %v5098_v41, %v5098_v41  ;;  %v10973_v41 = vld [vmem:[#allocation2 + $0x30] sm:$0xff] }
0x2d3a   :  { %v5105_v20 = vrot.slane %v5089_v54, %v9367_v51 }
0x2d3b   :  { %12704 = vst [vmem:[#allocation68_spill] sm:$0xff] %v10932_v13  ;;  %v5164_v10 = vmul.f32 %v10758_v52, %v10932_v13  ;;  %v10939_v30 = vrot.slane %v5112_v27, %v9343_v38  ;;  %v10942_v43 = vrot.slane %v5120_v35, %v9343_v38  ;;  %v5122_v28 = vcombine.high %v5112_v27, %v5112_v27 }
0x2d3c   :  { %v10945_v8 = vrot.slane %v5105_v20, %v9343_v38  ;;  %v5121_v19 = vcombine.high %v5105_v20, %v5105_v20  ;;  %v5119_v2 = vrot.slane %v5091_v1, %v9367_v51 }
0x2d3d   :  { %12705 = vst [vmem:[#allocation69_spill] sm:$0xff] %v10939_v30  ;;  %12706 = vst [vmem:[#allocation70_spill] sm:$0xff] %v10942_v43  ;;  %v5172_v0 = vsel %vm346_vm1, %v5164_v10, 0.0  ;;  %v5165_v12 = vmul.f32 %v10754_v47, %v10939_v30  ;;  %v5166_v40 = vmul.f32 %v10951_v18, %v10942_v43  ;;  %v10956_v9 = vrot.slane %v5122_v28, %v9343_v38 }
0x2d3e   :  { %12707 = vst [vmem:[#allocation80_spill] sm:$0xff] %v10945_v8  ;;  %5173 = vadd.xlane.f32.xlu0 %v5172_v0  ;;  %v5168_v15 = vmul.f32 %v10959_v21, %v10945_v8  ;;  %v10964_v14 = vrot.slane %v5121_v19, %v9343_v38  ;;  %v10970_v55 = vrot.slane %v5119_v2, %v9343_v38 }
0x2d3f   :  { %12708 = vst [vmem:[#allocation81_spill] sm:$0xff] %v10956_v9  ;;  %v5175_v33 = vsel %vm346_vm1, %v5165_v12, 0.0  ;;  %v5178_v62 = vsel %vm346_vm1, %v5166_v40, 0.0  ;;  %v5167_v25 = vmul.f32 %v10763_v11, %v10956_v9  ;;  %v5123_v54 = vcombine.high %v5119_v2, %v5119_v2  ;;  %v12714_v9 = vld [vmem:[#allocation45_spill] sm:$0xff] }
0x2d40   :  { %12709 = vst [vmem:[#allocation82_spill] sm:$0xff] %v10964_v14  ;;  %5176 = vadd.xlane.f32.xlu1 %v5175_v33  ;;  %12710 = vst [vmem:[#allocation83_spill] sm:$0xff] %v10970_v55  ;;  %v5184_v63 = vsel %vm346_vm1, %v5168_v15, 0.0  ;;  %v5170_v1 = vmul.f32 %v10973_v41, %v10964_v14  ;;  %v5169_v35 = vmul.f32 %v10748_v26, %v10970_v55 }
0x2d41   :  { %v5181_v27 = vsel %vm346_vm1, %v5167_v25, 0.0  ;;  %v10981_v20 = vrot.slane %v5123_v54, %v9343_v38 }
0x2d42   :  { %5179 = vadd.xlane.f32.xlu0 %v5178_v62  ;;  %v5190_v10 = vsel %vm346_vm1, %v5170_v1, 0.0  ;;  %v5187_v28 = vsel %vm346_vm1, %v5169_v35, 0.0 }
0x2d43   :  { %12711 = vst [vmem:[#allocation84_spill] sm:$0xff] %v10981_v20  ;;  %v5171_v19 = vmul.f32 %v10770_v45, %v10981_v20 }
0x2d44   :  { %5185 = vadd.xlane.f32.xlu1 %v5184_v63 }
0x2d45   :  { %v5193_v2 = vsel %vm346_vm1, %v5171_v19, 0.0 }
0x2d46   :  { %5182 = vadd.xlane.f32.xlu0 %v5181_v27 }
0x2d48   :  { %5191 = vadd.xlane.f32.xlu1 %v5190_v10 }
0x2d4a   :  { %5188 = vadd.xlane.f32.xlu0 %v5187_v28  ;;  %v12712_v28 = vld [vmem:[#allocation41_spill] sm:$0xff] }
0x2d4e   :  { %5194 = vadd.xlane.f32.xlu0 %v5193_v2 }
0x2dcb   :  { %v5174_v0 = vpop.xlane.xlu0 %5173 }
0x2dcc   :  { %v5196_v12 = vadd.f32 %v5174_v0, %v9456_v61  ;;  %v12713_v0 = vld [vmem:[#allocation43_spill] sm:$0xff] }
0x2dcd   :  { %v5177_v40 = vpop.xlane.xlu1 %5176 }
0x2dce   :  { %v5197_v33 = vadd.f32 %v5177_v40, %v9454_v60  ;;  %5213 = vperm.xlu1 %8376, %v5196_v12  }
0x2dcf   :  { %v5180_v15 = vpop.xlane.xlu0 %5179 }
0x2dd0   :  { %v5198_v62 = vadd.f32 %v5180_v15, %v9458_v3  ;;  %5216 = vperm.xlu0 %8377, %v5197_v33  }
0x2dd1   :  { %v5186_v25 = vpop.xlane.xlu1 %5185 }
0x2dd2   :  { %v5200_v54 = vadd.f32 %v5186_v25, %v9462_v6  ;;  %5219 = vperm.xlu1 %8376, %v5198_v62  }
0x2dd3   :  { %v5183_v63 = vpop.xlane.xlu0 %5182 }
0x2dd4   :  { %v5199_v1 = vadd.f32 %v5183_v63, %v9460_v4  ;;  %5225 = vperm.xlu0 %8377, %v5200_v54  }
0x2dd5   :  { %v5192_v27 = vpop.xlane.xlu1 %5191 }
0x2dd6   :  { %v5202_v35 = vadd.f32 %v5192_v27, %v12690_v23  ;;  %5222 = vperm.xlu1 %8376, %v5199_v1  }
0x2dd7   :  { %v5189_v10 = vpop.xlane.xlu0 %5188 }
0x2dd8   :  { %v5201_v19 = vadd.f32 %v5189_v10, %v12712_v28  ;;  %5231 = vperm.xlu0 %8377, %v5202_v35  }
0x2dda   :  { %5228 = vperm.xlu1 %8376, %v5201_v19  }
0x2ddb   :  { %v5195_v2 = vpop.xlane.xlu0 %5194 }
0x2ddc   :  { %v5203_v40 = vadd.f32 %v5195_v2, %v12713_v0 }
0x2dde   :  { %5234 = vperm.xlu1 %8376, %v5203_v40  }
0x2e4d   :  { %v5214_v15 = vpop.permute.xlu1 %5213 }
0x2e4e   :  { %v5239_v63 = vrot.slane %v5214_v15, %v12714_v9 }
0x2e4f   :  { %v5217_v25 = vpop.permute.xlu0 %5216 }
0x2e50   :  { %v5243_v43 = vrot.slane %v5217_v25, %v12714_v9 }
0x2e51   :  { %v5220_v13 = vpop.permute.xlu1 %5219 }
0x2e52   :  { %v5247_v20 = vrot.slane %v5220_v13, %v12714_v9  ;;  %v5268_v27 = vsel %vm734_vm2, %v5243_v43, %v5239_v63 }
0x2e53   :  { %v5226_v14 = vpop.permute.xlu0 %5225 }
0x2e54   :  { %v5269_v8 = vsel %vm736_vm3, %v5247_v20, %v5268_v27  ;;  %v5255_v30 = vrot.slane %v5226_v14, %v12714_v9 }
0x2e55   :  { %v5223_v55 = vpop.permute.xlu1 %5222 }
0x2e56   :  { %v5251_v10 = vrot.slane %v5223_v55, %v12714_v9 }
0x2e57   :  { %v5232_v23 = vpop.permute.xlu0 %5231 }
0x2e58   :  { %v5270_v2 = vsel %vm738_vm4, %v5251_v10, %v5269_v8  ;;  %v5263_v43 = vrot.slane %v5232_v23, %v12714_v9 }
0x2e59   :  { %v5229_v17 = vpop.permute.xlu1 %5228  ;;  %v5271_v15 = vsel %vm740_vm5, %v5255_v30, %v5270_v2 }
0x2e5a   :  { %v5259_v25 = vrot.slane %v5229_v17, %v12714_v9 }
0x2e5c   :  { %v5272_v13 = vsel %vm742_vm6, %v5259_v25, %v5271_v15 }
0x2e5d   :  { %v5235_v63 = vpop.permute.xlu1 %5234  ;;  %v5273_v55 = vsel %vm744_vm7, %v5263_v43, %v5272_v13 }
0x2e5e   :  { %v5267_v0 = vrot.slane %v5235_v63, %v12714_v9 }
0x2e60   :  { %v5274_v20 = vsel %vm746_vm8, %v5267_v0, %v5273_v55 }
0x2e61   :  { %v5276_v8 = vsel %vm749_vm9, %v5274_v20, -inf }
0x2e62   :  { %5277 = vmax.xlane.f32.xlu0 %v5276_v8 }
0x2eef   :  { %v5278_v14 = vpop.xlane.xlu0 %5277 }
0x2ef0   :  { %v5283_v27 = vrot.slane %v5278_v14, %v9343_v38  ;;  %v5287_v17 = vrot.slane %v5278_v14, %v9330_v31  ;;  %v5291_v30 = vrot.slane %v5278_v14, %v9333_v32  ;;  %v5295_v25 = vrot.slane %v5278_v14, %v9351_v42 }
0x2ef1   :  { %v5299_v0 = vrot.slane %v5278_v14, %v9340_v36  ;;  %v5303_v55 = vrot.slane %v5278_v14, %v9356_v44 }
0x2ef2   :  { %v5320_v10 = vsub.f32 %v5196_v12, %v5283_v27  ;;  %v5321_v2 = vsub.f32 %v5197_v33, %v5287_v17  ;;  %v5322_v15 = vsub.f32 %v5198_v62, %v5291_v30  ;;  %v5323_v43 = vsub.f32 %v5199_v1, %v5295_v25 }
0x2ef3   :  { %v5324_v20 = vsub.f32 %v5200_v54, %v5299_v0  ;;  %v5307_v12 = vrot.slane %v5278_v14, %v9445_v56  ;;  %v5325_v33 = vsub.f32 %v5201_v19, %v5303_v55  ;;  %v5311_v1 = vrot.slane %v5278_v14, %v9450_v58 }
0x2ef4   :  { %v5328_v23 = vmul.f32 1.442695, %v5320_v10  ;;  %v5330_v13 = vmul.f32 1.442695, %v5321_v2  ;;  %v5332_v63 = vmul.f32 1.442695, %v5322_v15 }
0x2ef5   :  { %v5334_v8 = vmul.f32 1.442695, %v5323_v43  ;;  %v5336_v62 = vmul.f32 1.442695, %v5324_v20  ;;  %v5326_v17 = vsub.f32 %v5202_v35, %v5307_v12  ;;  %v5338_v54 = vmul.f32 1.442695, %v5325_v33 }
0x2ef6   :  { %8532 = vpow2.f32 %v5328_v23  ;;  %v5327_v10 = vsub.f32 %v5203_v40, %v5311_v1 }
0x2ef7   :  { %8534 = vpow2.f32 %v5330_v13  ;;  %v5340_v2 = vmul.f32 1.442695, %v5326_v17  ;;  %v11045_v13 = vld [vmem:[#allocation17] ss:$0 sm:$0xff] }
0x2ef8   :  { %8536 = vpow2.f32 %v5332_v63  ;;  %v5342_v19 = vmul.f32 1.442695, %v5327_v10  ;;  %12715 = vst [vmem:[#allocation41_spill] sm:$0xff] %v11045_v13 }
0x2ef9   :  { %8538 = vpow2.f32 %v5334_v8 }
0x2efa   :  { %8540 = vpow2.f32 %v5336_v62 }
0x2efb   :  { %8542 = vpow2.f32 %v5338_v54 }
0x2efc   :  { %8544 = vpow2.f32 %v5340_v2 }
0x2efd   :  { %8546 = vpow2.f32 %v5342_v19 }
0x2efe   :  { %8548 = vtanh.f32 %v10886_v49 }
0x2f00   :  { %v11018_v6 = vpop.eup %8532 }
0x2f01   :  { %5353 = vperm.xlu1 %8376, %v11018_v6   ;;  %v11022_v27 = vpop.eup %8534 }
0x2f02   :  { %v11026_v30 = vpop.eup %8536 }
0x2f03   :  { %v11029_v23 = vpop.eup %8538 }
0x2f04   :  { %v11032_v25 = vpop.eup %8540 }
0x2f05   :  { %5356 = vperm.xlu1 %8376, %v11022_v27   ;;  %v11035_v35 = vpop.eup %8542 }
0x2f06   :  { %v11038_v14 = vpop.eup %8544 }
0x2f07   :  { %v11041_v40 = vpop.eup %8546 }
0x2f08   :  { %v8549_v15 = vpop.eup %8548 }
0x2f09   :  { %5359 = vperm.xlu1 %8376, %v11026_v30   ;;  %v4810_v0 = vmul.f32 %v11045_v13, %v8549_v15 }
0x2f0b   :  { %v4811_v43 = vsel %vm288_vm13, %v4810_v0, 0.0 }
0x2f0d   :  { %5362 = vperm.xlu1 %8376, %v11029_v23  }
0x2f11   :  { %5365 = vperm.xlu1 %8376, %v11032_v25  }
0x2f15   :  { %5368 = vperm.xlu1 %8376, %v11035_v35  }
0x2f19   :  { %5371 = vperm.xlu1 %8376, %v11038_v14  }
0x2f1d   :  { %5374 = vperm.xlu1 %8376, %v11041_v40  }
0x2f41   :  { %4812 = vadd.xlane.f32.xlu1 %v4811_v43 }
0x2f80   :  { %v5354_v63 = vpop.permute.xlu1 %5353 }
0x2f81   :  { %v5379_v49 = vrot.slane %v5354_v63, %v12714_v9 }
0x2f84   :  { %v5357_v55 = vpop.permute.xlu1 %5356 }
0x2f85   :  { %v5383_v62 = vrot.slane %v5357_v55, %v12714_v9 }
0x2f87   :  { %v5408_v2 = vsel %vm734_vm2, %v5383_v62, %v5379_v49 }
0x2f88   :  { %v5360_v20 = vpop.permute.xlu1 %5359 }
0x2f89   :  { %v5387_v1 = vrot.slane %v5360_v20, %v12714_v9 }
0x2f8b   :  { %v5409_v15 = vsel %vm736_vm3, %v5387_v1, %v5408_v2  ;;  %v12716_v1 = vld [vmem:[#allocation67_spill] sm:$0xff] }
0x2f8c   :  { %v5363_v8 = vpop.permute.xlu1 %5362 }
0x2f8d   :  { %v5391_v17 = vrot.slane %v5363_v8, %v12714_v9 }
0x2f8f   :  { %v5410_v43 = vsel %vm738_vm4, %v5391_v17, %v5409_v15  ;;  %v12718_v15 = vld [vmem:[#allocation56_spill] sm:$0xff] }
0x2f90   :  { %v5366_v12 = vpop.permute.xlu1 %5365 }
0x2f91   :  { %v5395_v54 = vrot.slane %v5366_v12, %v12714_v9 }
0x2f93   :  { %v5411_v55 = vsel %vm740_vm5, %v5395_v54, %v5410_v43 }
0x2f94   :  { %v5369_v33 = vpop.permute.xlu1 %5368 }
0x2f95   :  { %v5399_v19 = vrot.slane %v5369_v33, %v12714_v9 }
0x2f97   :  { %v5412_v63 = vsel %vm742_vm6, %v5399_v19, %v5411_v55 }
0x2f98   :  { %v5372_v10 = vpop.permute.xlu1 %5371 }
0x2f99   :  { %v5403_v0 = vrot.slane %v5372_v10, %v12714_v9 }
0x2f9b   :  { %v5413_v12 = vsel %vm744_vm7, %v5403_v0, %v5412_v63  ;;  %v12720_v63 = vld [vmem:[#allocation57_spill] sm:$0xff] }
0x2f9c   :  { %v5375_v20 = vpop.permute.xlu1 %5374 }
0x2f9d   :  { %v5407_v8 = vrot.slane %v5375_v20, %v12714_v9 }
0x2f9f   :  { %v5414_v13 = vsel %vm746_vm8, %v5407_v8, %v5413_v12 }
0x2fa0   :  { %v5416_v62 = vsel %vm749_vm9, %v5414_v13, 0.0 }
0x2fa1   :  { %5417 = vadd.xlane.f32.xlu0 %v5416_v62 }
0x2fce   :  { %v4813_v33 = vpop.xlane.xlu1 %4812 }
0x2fcf   :  { %v11066_v49 = vmax.f32 %v12716_v1, %v4813_v33 }
0x2fd1   :  { %12717 = vst [vmem:[#allocation67_spill] sm:$0xff] %v11066_v49  ;;  %v4815_v17 = vsub.f32 %v12716_v1, %v11066_v49  ;;  %v4818_v54 = vsub.f32 %v4813_v33, %v11066_v49 }
0x2fd3   :  { %v4816_v10 = vmul.f32 1.442695, %v4815_v17  ;;  %v4819_v2 = vmul.f32 1.442695, %v4818_v54  ;;  %v11085_v54 = vld [vmem:[%s12474_s16] sm:$0xff]  }
0x2fd4   :  { %12722 = vst [vmem:[#allocation85_spill] sm:$0xff] %v11085_v54 }
0x2fd5   :  { %8550 = vpow2.f32 %v4816_v10  ;;  %v11094_v10 = vld [vmem:[%s12474_s16 + $0x8] sm:$0xff]  }
0x2fd6   :  { %8552 = vpow2.f32 %v4819_v2  ;;  %12723 = vst [vmem:[#allocation86_spill] sm:$0xff] %v11094_v10 }
0x2fdf   :  { %v8551_v19 = vpop.eup %8550 }
0x2fe0   :  { %v4824_v0 = vmul.f32 %v8551_v19, %v12718_v15  ;;  %v8553_v43 = vpop.eup %8552  ;;  %v4821_v8 = vmul.f32 %v8551_v19, %v12720_v63 }
0x2fe1   :  { %v4822_v20 = vmul.f32 %v8553_v43, %v10884_v34 }
0x2fe2   :  { %v11072_v55 = vadd.f32 %v8553_v43, %v4824_v0 }
0x2fe3   :  { %v11077_v12 = vadd.f32 %v4822_v20, %v4821_v8 }
0x2fe4   :  { %12719 = vst [vmem:[#allocation56_spill] sm:$0xff] %v11072_v55  ;;  %v5573_v13 = vmax.f32 %v11072_v55, 1e-20 }
0x2fe5   :  { %12721 = vst [vmem:[#allocation57_spill] sm:$0xff] %v11077_v12 }
0x2fe6   :  { %8554 = vrcp.f32 %v5573_v13 }
0x2ff0   :  { %v8555_v62 = vpop.eup %8554 }
0x2ff1   :  { %v5575_v33 = vmul.f32 %v8555_v62, %v11077_v12 }
0x2ff3   :  { %v5592_v1 = vadd.f32 %v5575_v33, %v10884_v34  ;;  %v11101_v34 = vld [vmem:[%s12474_s16 + $0x10] sm:$0xff]  }
0x2ff4   :  { %12724 = vst [vmem:[#allocation87_spill] sm:$0xff] %v11101_v34 }
0x2ff5   :  { %v5593_v17 = vpack.c.bf16 %v5592_v1, %v5592_v1 }
0x2ff7   :  { %8232 = vmatmul.mubr.msk.bf16.vlgmr.msra.gmra.mrb[60].mxu1 %vm288_vm13, %v5593_v17 }
0x2ff8   :  { %8244 = vmatpush3.bf16.msra.mxu1 %v11085_v54  ;;  %8249 = vmatprep.mubr.msk.bf16.mxu1 %vm9021_vm0, %v12639_v24 }
0x2ff9   :  { %8245 = vmatprep.subr.bf16.mxu1 %v12639_v24 }
0x2ffc   :  { %8246 = vmatpush3.bf16.msra.mxu1 %v11094_v10 }
0x2ffd   :  { %8247 = vmatprep.subr.bf16.mxu1 %v12639_v24 }
0x3000   :  { %8248 = vmatpush3.bf16.msra.mxu1 %v11101_v34 }
0x3001   :  { %8259 = vmatprep.subr.bf16.mxu1 %v12639_v24 }
0x302e   :  { %v5418_v2 = vpop.xlane.xlu0 %5417 }
0x302f   :  { %8556 = vrcp.f32 %v5418_v2 }
0x3039   :  { %v8557_v19 = vpop.eup %8556 }
0x303a   :  { %v5444_v15 = vrot.slane %v8557_v19, %v9356_v44  ;;  %v5428_v0 = vrot.slane %v8557_v19, %v9330_v31  ;;  %v5432_v20 = vrot.slane %v8557_v19, %v9333_v32  ;;  %v5424_v8 = vrot.slane %v8557_v19, %v9343_v38 }
0x303b   :  { %v5436_v33 = vrot.slane %v8557_v19, %v9351_v42  ;;  %v5448_v17 = vrot.slane %v8557_v19, %v9445_v56  ;;  %v5452_v2 = vrot.slane %v8557_v19, %v9450_v58 }
0x303c   :  { %v5466_v43 = vmul.f32 %v11035_v35, %v5444_v15  ;;  %v5462_v13 = vmul.f32 %v11022_v27, %v5428_v0  ;;  %v5463_v63 = vmul.f32 %v11026_v30, %v5432_v20  ;;  %v5461_v62 = vmul.f32 %v11018_v6, %v5424_v8 }
0x303d   :  { %v5464_v1 = vmul.f32 %v11029_v23, %v5436_v33  ;;  %v5440_v35 = vrot.slane %v8557_v19, %v9340_v36  ;;  %v5467_v30 = vmul.f32 %v11038_v14, %v5448_v17  ;;  %v5468_v6 = vmul.f32 %v11041_v40, %v5452_v2 }
0x303e   :  { %5496 = vperm.xlu1 %8376, %v5466_v43   ;;  %5476 = vperm.xlu0 %8377, %v5462_v13  }
0x303f   :  { %v5465_v27 = vmul.f32 %v11032_v25, %v5440_v35 }
0x3042   :  { %5481 = vperm.xlu0 %8377, %v5463_v63  }
0x3046   :  { %5471 = vperm.xlu0 %8377, %v5461_v62  }
0x304a   :  { %5486 = vperm.xlu0 %8377, %v5464_v1  }
0x304e   :  { %5491 = vperm.xlu0 %8377, %v5465_v27  }
0x3052   :  { %5501 = vperm.xlu0 %8377, %v5467_v30  }
0x3056   :  { %5506 = vperm.xlu0 %8377, %v5468_v6  }
0x30bd   :  { %v5477_v15 = vpop.permute.xlu0 %5476  ;;  %v5497_v0 = vpop.permute.xlu1 %5496 }
0x30be   :  { %v5510_v23 = vmul.f32 %v10754_v47, %v5477_v15  ;;  %v5514_v43 = vmul.f32 %v10748_v26, %v5497_v0 }
0x30c0   :  { %v5524_v13 = vsel %vm346_vm1, %v5510_v23, 0.0  ;;  %v5552_v63 = vsel %vm346_vm1, %v5514_v43, 0.0 }
0x30c1   :  { %v5525_v25 = vrot.slane %v5524_v13, 4  ;;  %v5482_v20 = vpop.permute.xlu0 %5481  ;;  %v5553_v40 = vrot.slane %v5552_v63, 4 }
0x30c2   :  { %v5511_v14 = vmul.f32 %v10951_v18, %v5482_v20 }
0x30c3   :  { %v5526_v8 = vadd.f32 %v5525_v25, %v5524_v13  ;;  %v5554_v30 = vadd.f32 %v5553_v40, %v5552_v63 }
0x30c4   :  { %v5531_v19 = vsel %vm346_vm1, %v5511_v14, 0.0 }
0x30c5   :  { %v5527_v62 = vrot.slane %v5526_v8, 2  ;;  %v5532_v33 = vrot.slane %v5531_v19, 4  ;;  %v5472_v1 = vpop.permute.xlu0 %5471 }
0x30c6   :  { %v5509_v35 = vmul.f32 %v10758_v52, %v5472_v1  ;;  %v5555_v1 = vrot.slane %v5554_v30, 2 }
0x30c7   :  { %v5533_v27 = vadd.f32 %v5532_v33, %v5531_v19  ;;  %v5528_v17 = vadd.f32 %v5527_v62, %v5526_v8 }
0x30c8   :  { %v5517_v26 = vsel %vm346_vm1, %v5509_v35, 0.0 }
0x30c9   :  { %v5534_v2 = vrot.slane %v5533_v27, 2  ;;  %v5518_v6 = vrot.slane %v5517_v26, 4  ;;  %v5487_v15 = vpop.permute.xlu0 %5486  ;;  %v5529_v34 = vrot.slane %v5528_v17, 1 }
0x30ca   :  { %v5512_v0 = vmul.f32 %v10763_v11, %v5487_v15  ;;  %v11130_v23 = vpop.f32.mrb[60].mxu1 }
0x30cb   :  { %v5519_v43 = vadd.f32 %v5518_v6, %v5517_v26  ;;  %v8233_v13 = vpop.f32.mrb[61].mxu1  ;;  %v5535_v25 = vadd.f32 %v5534_v2, %v5533_v27  ;;  %v5530_v54 = vadd.f32 %v5529_v34, %v5528_v17  ;;  %v5556_v26 = vadd.f32 %v5555_v1, %v5554_v30 }
0x30cc   :  { %v5538_v20 = vsel %vm346_vm1, %v5512_v0, 0.0  ;;  %v5634_v14 = vpop.f32.mrb[62].mxu1 }
0x30cd   :  { %v5520_v19 = vrot.slane %v5519_v43, 2  ;;  %v5492_v33 = vpop.permute.xlu0 %5491  ;;  %v8234_v35 = vpop.f32.mrb[63].mxu1  ;;  %v5539_v8 = vrot.slane %v5538_v20, 4  ;;  %v5536_v40 = vrot.slane %v5535_v25, 1 }
0x30ce   :  { %v5513_v63 = vmul.f32 %v10959_v21, %v5492_v33 }
0x30cf   :  { %v5521_v62 = vadd.f32 %v5520_v19, %v5519_v43  ;;  %v5540_v10 = vadd.f32 %v5539_v8, %v5538_v20  ;;  %v5537_v12 = vadd.f32 %v5536_v40, %v5535_v25  ;;  %v5577_v43 = vadd.f32 %v10754_v47, %v5530_v54 }
0x30d0   :  { %v5545_v15 = vsel %vm346_vm1, %v5513_v63, 0.0  ;;  %v5557_v19 = vrot.slane %v5556_v26, 1 }
0x30d1   :  { %v5522_v6 = vrot.slane %v5521_v62, 1  ;;  %v5502_v27 = vpop.permute.xlu0 %5501  ;;  %v5541_v2 = vrot.slane %v5540_v10, 2  ;;  %v5546_v0 = vrot.slane %v5545_v15, 4  ;;  %v5578_v63 = vadd.f32 %v10951_v18, %v5537_v12 }
0x30d2   :  { %v5515_v13 = vmul.f32 %v10973_v41, %v5502_v27  ;;  %v5585_v40 = vpack.c.bf16 %v5577_v43, %v5577_v43 }
0x30d3   :  { %v5523_v14 = vadd.f32 %v5522_v6, %v5521_v62  ;;  %v5542_v55 = vadd.f32 %v5541_v2, %v5540_v10  ;;  %v5547_v35 = vadd.f32 %v5546_v0, %v5545_v15  ;;  %v5558_v15 = vadd.f32 %v5557_v19, %v5556_v26 }
0x30d4   :  { %v5559_v49 = vsel %vm346_vm1, %v5515_v13, 0.0 }
0x30d5   :  { %v5560_v20 = vrot.slane %v5559_v49, 4  ;;  %v5507_v33 = vpop.permute.xlu0 %5506  ;;  %v5543_v8 = vrot.slane %v5542_v55, 1  ;;  %v5548_v34 = vrot.slane %v5547_v35, 2  ;;  %v5576_v30 = vadd.f32 %v10758_v52, %v5523_v14  ;;  %v11143_v14 = vld [vmem:[#allocation2 + $0x28] sm:$0xff] }
0x30d6   :  { %v5516_v17 = vmul.f32 %v10770_v45, %v5507_v33  ;;  %v5586_v33 = vpack.c.bf16 %v5578_v63, %v5578_v63 }
0x30d7   :  { %v5561_v1 = vadd.f32 %v5560_v20, %v5559_v49  ;;  %v5544_v62 = vadd.f32 %v5543_v8, %v5542_v55  ;;  %v5549_v25 = vadd.f32 %v5548_v34, %v5547_v35  ;;  %v5584_v2 = vpack.c.bf16 %v5576_v30, %v5576_v30 }
0x30d8   :  { %v5566_v10 = vsel %vm346_vm1, %v5516_v17, 0.0  ;;  %v5646_v49 = vunpack.c.l.b16 %v5585_v40  ;;  %v5581_v55 = vadd.f32 %v11143_v14, %v5558_v15  ;;  %v5647_v8 = vunpack.c.l.b16 %v5586_v33 }
0x30d9   :  { %v5562_v6 = vrot.slane %v5561_v1, 2  ;;  %v5567_v47 = vrot.slane %v5566_v10, 4  ;;  %v5579_v54 = vadd.f32 %v10763_v11, %v5544_v62  ;;  %v5550_v27 = vrot.slane %v5549_v25, 1 }
0x30da   :  { %v5645_v43 = vunpack.c.l.b16 %v5584_v2  ;;  %v5653_v17 = vrot.slane %v5646_v49, 7  ;;  %v5589_v30 = vpack.c.bf16 %v5581_v55, %v5581_v55 }
0x30db   :  { %v5563_v0 = vadd.f32 %v5562_v6, %v5561_v1  ;;  %v5568_v13 = vadd.f32 %v5567_v47, %v5566_v10  ;;  %v5587_v9 = vpack.c.bf16 %v5579_v54, %v5579_v54  ;;  %v5551_v52 = vadd.f32 %v5550_v27, %v5549_v25 }
0x30dc   :  { %v5654_v25 = vsel %vm734_vm2, %v5653_v17, %v5645_v43  ;;  %v5655_v6 = vrot.slane %v5647_v8, 6  ;;  %v5650_v54 = vunpack.c.l.b16 %v5589_v30 }
0x30dd   :  { %v5564_v12 = vrot.slane %v5563_v0, 1  ;;  %v5569_v35 = vrot.slane %v5568_v13, 2  ;;  %v5580_v26 = vadd.f32 %v10959_v21, %v5551_v52  ;;  %v5648_v19 = vunpack.c.l.b16 %v5587_v9 }
0x30de   :  { %v5656_v2 = vsel %vm736_vm3, %v5655_v6, %v5654_v25  ;;  %v5661_v49 = vrot.slane %v5650_v54, 3 }
0x30df   :  { %v5565_v20 = vadd.f32 %v5564_v12, %v5563_v0  ;;  %v5570_v11 = vadd.f32 %v5569_v35, %v5568_v13  ;;  %v5588_v34 = vpack.c.bf16 %v5580_v26, %v5580_v26  ;;  %v5657_v10 = vrot.slane %v5648_v19, 5 }
0x30e1   :  { %v5582_v1 = vadd.f32 %v10973_v41, %v5565_v20  ;;  %v5571_v63 = vrot.slane %v5570_v11, 1  ;;  %v5649_v62 = vunpack.c.l.b16 %v5588_v34  ;;  %v5658_v0 = vsel %vm738_vm4, %v5657_v10, %v5656_v2  ;;  %v8691_v34 = vld [vmem:[%s12473_s15] ss:$0 sm:$0xff] }
0x30e3   :  { %v5590_v40 = vpack.c.bf16 %v5582_v1, %v5582_v1  ;;  %v5572_v15 = vadd.f32 %v5571_v63, %v5570_v11  ;;  %v5659_v47 = vrot.slane %v5649_v62, 4  ;;  %v8692_v62 = vld [vmem:[%s12475_s17] ss:$0 sm:$0xff] }
0x30e5   :  { %v5651_v27 = vunpack.c.l.b16 %v5590_v40  ;;  %v5583_v9 = vadd.f32 %v10770_v45, %v5572_v15  ;;  %v5660_v33 = vsel %vm740_vm5, %v5659_v47, %v5658_v0 }
0x30e6   :  { %v5662_v35 = vsel %vm742_vm6, %v5661_v49, %v5660_v33 }
0x30e7   :  { %v5591_v13 = vpack.c.bf16 %v5583_v9, %v5583_v9  ;;  %v5663_v52 = vrot.slane %v5651_v27, 2 }
0x30e9   :  { %v5652_v55 = vunpack.c.l.b16 %v5591_v13  ;;  %v5664_v26 = vsel %vm744_vm7, %v5663_v52, %v5662_v35 }
0x30eb   :  { %v5665_v12 = vrot.slane %v5652_v55, 1 }
0x30ed   :  { %v5666_v43 = vsel %vm746_vm8, %v5665_v12, %v5664_v26 }
0x30ee   :  { %v5667_v19 = vpack.c.b16 %v5666_v43, %v5666_v43 }
0x30f0   :  { %8240 = vmatmul.mubr.msk.bf16.vlgmr.msra.gmra.mrb[60].mxu0 %vm346_vm1, %v5667_v19 }
0x30f1   :  { %8254 = vmatpush3.bf16.msra.mxu0 %v9689_v22  ;;  %8255 = vmatprep.mubr.msk.bf16.mxu0 %vm9021_vm0, %v12639_v24  ;;  %v4767_v22 = vsel %vm4766_vm12, -10000000.0, %v10796_v57 }
0x30f2   :  { %8265 = vmatprep.subr.bf16.mxu0 %v12639_v24  ;;  %v11177_v40 = vsel %vm12726_vm10, 0.0, %v4767_v22 }
0x31c3   :  { %v5705_v45 = vpop.f32.mrb[60].mxu0 }
0x31c4   :  { %v5706_v20 = vadd.f32 %v5705_v45, %v11130_v23  ;;  %v8241_v11 = vpop.f32.mrb[61].mxu0 }
0x31c5   :  { %v5708_v8 = vpop.f32.mrb[62].mxu0 }
0x31c6   :  { %v5711_v17 = vadd.f32 %v8691_v34, %v5706_v20  ;;  %v8242_v30 = vpop.f32.mrb[63].mxu0 }
0x31c8   :  { %v5712_v1 = vmax.f32 %v5711_v17, 0.0 }
0x31ca   :  { %v5713_v63 = vpack.c.bf16 %v5712_v1, %v5712_v1 }
0x31cc   :  { %8250 = vmatmul.mubr.msk.bf16.vlgmr.msra.gmra.mrb[64].mxu1 %vm12725_vm14, %v5713_v63 }
0x31cd   :  { %8260 = vmatpush3.bf16.msra.mxu1 %v9743_v39  ;;  %8261 = vmatprep.mubr.msk.bf16.mxu1 %vm9021_vm0, %v12639_v24 }
0x31ce   :  { %8273 = vmatprep.subr.bf16.mxu1 %v12639_v24 }
0x329f   :  { %v5751_v23 = vpop.f32.mrb[64].mxu1 }
0x32a0   :  { %v5752_v25 = vadd.f32 %v8692_v62, %v5751_v23  ;;  %v8251_v10 = vpop.f32.mrb[65].mxu1 }
0x32a1   :  { %v5754_v39 = vpop.f32.mrb[66].mxu1 }
0x32a2   :  { %v5757_v15 = vadd.f32 %v5752_v25, %v11177_v40  ;;  %v8252_v6 = vpop.f32.mrb[67].mxu1 }
0x32a4   :  { %5835 = vst.msk [vmem:[#allocation19 + $0x20] sm:$0xff] %vm1268_vm11, %v5757_v15  ;;  %v5758_v37 = vsel %vm1268_vm11, %v5757_v15, -inf }
0x32a5   :  { %5759 = vmax.xlane.f32.xlu0 %v5758_v37 }
0x3332   :  { %v5760_v57 = vpop.xlane.xlu0 %5759 }
0x3333   :  { %vm5761_vm14 = vcmp.eq.f32.partialorder %v5757_v15, %v5760_v57  ;;  %v5781_v47 = vsub.f32 %v5757_v15, %v5760_v57  ;;  %v8693_v15 = vld [vmem:[%s12468_s10] sm:$0xff]  }
0x3334   :  { %v5762_v54 = vsel %vm5761_vm14, %v9503_v50, 12 }
0x3335   :  { %v5782_v27 = vmul.f32 1.442695, %v5781_v47  ;;  %v5763_v9 = vsel %vm1268_vm11, %v5762_v54, 2147483647 }
0x3336   :  { %v5765_v2 = vshra.s32 %v5763_v9, 16  ;;  %v5764_v52 = vand.u32 65535, %v5763_v9 }
0x3337   :  { %8558 = vpow2.f32 %v5782_v27 }
0x3338   :  { %v5767_v0 = vcvt.s32.f32 %v5765_v2  ;;  %v5766_v55 = vcvt.s32.f32 %v5764_v52 }
0x333a   :  { %5768 = vmin.xlane.f32.xlu1 %v5767_v0 }
0x3341   :  { %v8559_v13 = vpop.eup %8558 }
0x3342   :  { %v5784_v33 = vsel %vm1268_vm11, %v8559_v13, 0.0 }
0x3343   :  { %5785 = vadd.xlane.f32.xlu0 %v5784_v33 }
0x33c7   :  { %v5769_v49 = vpop.xlane.xlu1 %5768 }
0x33c8   :  { %vm5770_vm12 = vcmp.eq.f32.partialorder %v5767_v0, %v5769_v49  ;;  %v5775_v26 = vcvt.f32.s32 %v5769_v49 }
0x33c9   :  { %v5771_v12 = vsel %vm5770_vm12, %v5766_v55, inf  ;;  %vm12767_vm12 = vcmp.eq.s32.totalorder %v9503_v50, 2 }
0x33ca   :  { %5772 = vmin.xlane.f32.xlu0 %v5771_v12  ;;  %v5776_v19 = vshll.u32 %v5775_v26, 16 }
0x33d0   :  { %v5786_v35 = vpop.xlane.xlu0 %5785 }
0x33d1   :  { %8560 = vrcp.f32 %v5786_v35 }
0x33db   :  { %v8561_v11 = vpop.eup %8560 }
0x33dc   :  { %v5788_v62 = vmul.f32 %v8561_v11, %v8559_v13 }
0x3457   :  { %v5773_v43 = vpop.xlane.xlu0 %5772 }
0x3458   :  { %v5774_v45 = vcvt.f32.s32 %v5773_v43 }
0x345a   :  { %v5777_v20 = vadd.s32 %v5776_v19, %v5774_v45 }
0x345c   :  { %v5839_v8 = vrot.slane %v5777_v20, %v9343_v38  ;;  %v5843_v34 = vrot.slane %v5777_v20, %v9330_v31  ;;  %v5847_v17 = vrot.slane %v5777_v20, %v9333_v32  ;;  %v5851_v30 = vrot.slane %v5777_v20, %v9351_v42 }
0x345d   :  { %v5855_v1 = vrot.slane %v5777_v20, %v9340_v36  ;;  %v5859_v63 = vrot.slane %v5777_v20, %v9356_v44  ;;  %v5863_v22 = vrot.slane %v5777_v20, %v9445_v56  ;;  %v5867_v23 = vrot.slane %v5777_v20, %v9450_v58 }
0x345e   :  { %5868 = vst.msk [vmem:[%s12479_s21 + $0x4] sm:$0x1] %vm1387_vm15, %v5839_v8  ;;  %5869 = vst.msk [vmem:[%s12479_s21 + $0xc] sm:$0x1] %vm1387_vm15, %v5843_v34  ;;  %vm5778_vm10 = vcmp.eq.s32.totalorder %v9503_v50, %v5777_v20 }
0x345f   :  { %5870 = vst.msk [vmem:[%s12479_s21 + $0x14] sm:$0x1] %vm1387_vm15, %v5847_v17  ;;  %5871 = vst.msk [vmem:[%s12479_s21 + $0x1c] sm:$0x1] %vm1387_vm15, %v5851_v30  ;;  %v11227_v25 = vsel %vm5778_vm10, 1.0, %v12639_v24 }
0x3460   :  { %5872 = vst.msk [vmem:[%s12479_s21 + $0x24] sm:$0x1] %vm1387_vm15, %v5855_v1  ;;  %5873 = vst.msk [vmem:[%s12479_s21 + $0x2c] sm:$0x1] %vm1387_vm15, %v5859_v63  ;;  %v5789_v10 = vadd.f32 %v11227_v25, %v5788_v62  ;;  %v8695_v17 = vld [vmem:[#allocation16] ss:$0 sm:$0xff] }
0x3461   :  { %5874 = vst.msk [vmem:[%s12479_s21 + $0x34] sm:$0x1] %vm1387_vm15, %v5863_v22  ;;  %5875 = vst.msk [vmem:[%s12479_s21 + $0x3c] sm:$0x1] %vm1387_vm15, %v5867_v23  ;;  %vm5876_vm14 = vcmp.gt.f32.partialorder %v11227_v25, 0.0 }
0x3462   :  { %v5790_v39 = vpack.c.bf16 %v5789_v10, %v5789_v10 }
0x3464   :  { %8256 = vmatmul.mubr.msk.bf16.vlgmr.msra.gmra.mrb[64].mxu0 %vm1268_vm11, %v5790_v39  ;;  %8262 = vmatmul.mubr.msk.bf16.vlgmr.msra.gmra.mrb[68].mxu1 %vm1268_vm11, %v5790_v39 }
0x3465   :  { %8266 = vmatpush3.bf16.msra.mxu0 %v10854_v5  ;;  %8269 = vmatprep.mubr.msk.bf16.mxu0 %vm9021_vm0, %v12639_v24  ;;  %v8694_v5 = vld [vmem:[%s12468_s10 + $0x8] sm:$0xff]   ;;  %s9027_s10 = smov 96  }
0x3466   :  { %8267 = vmatprep.subr.bf16.mxu0 %v12639_v24  ;;  %8274 = vmatpush3.bf16.msra.mxu1 %v8693_v15 }
0x3467   :  { %8275 = vmatprep.subr.bf16.mxu1 %v12639_v24  ;;  %8277 = vmatprep.mubr.msk.bf16.mxu1 %vm9021_vm0, %v12639_v24 }
0x3469   :  { %8268 = vmatpush3.bf16.msra.mxu0 %v10867_v48 }
0x346a   :  { %8276 = vmatpush3.bf16.msra.mxu1 %v8694_v5  ;;  %8281 = vmatprep.subr.bf16.mxu0 %v12639_v24 }
0x346b   :  { %8287 = vmatprep.subr.bf16.mxu1 %v12639_v24 }
0x346c   :  { %8270 = vmatmul.mubr.msk.bf16.vlgmr.msra.gmra.mrb[68].mxu0 %vm346_vm1, %v10902_v46 }
0x346d   :  { %8282 = vmatpush3.bf16.msra.mxu0 %v10878_v53  ;;  %8283 = vmatprep.mubr.msk.bf16.mxu0 %vm9021_vm0, %v12639_v24 }
0x346e   :  { %8295 = vmatprep.subr.bf16.mxu0 %v12639_v24 }
0x3537   :  { %v11254_v48 = vpop.f32.mrb[64].mxu0  ;;  %v11256_v6 = vpop.f32.mrb[68].mxu1 }
0x3538   :  { %v8257_v37 = vpop.f32.mrb[65].mxu0  ;;  %v8263_v57 = vpop.f32.mrb[69].mxu1 }
0x3539   :  { %v5831_v47 = vpop.f32.mrb[66].mxu0  ;;  %v5916_v54 = vpop.f32.mrb[70].mxu1 }
0x353a   :  { %v8258_v27 = vpop.f32.mrb[67].mxu0  ;;  %v8264_v9 = vpop.f32.mrb[71].mxu1  ;;  %v11284_v47 = vld [vmem:[#allocation2] sm:$0xff] }
0x353f   :  { %v6109_v2 = vpop.f32.mrb[68].mxu0 }
0x3540   :  { %v6110_v46 = vadd.f32 %v10891_v59, %v6109_v2  ;;  %v8271_v0 = vpop.f32.mrb[69].mxu0 }
0x3541   :  { %v6112_v53 = vpop.f32.mrb[70].mxu0 }
0x3542   :  { %8562 = vtanh.f32 %v6110_v46  ;;  %v8272_v13 = vpop.f32.mrb[71].mxu0  ;;  %v6115_v52 = vmul.f32 0.5, %v6110_v46  ;;  %v11296_v53 = vld [vmem:[#allocation2 + $0x8] sm:$0xff] }
0x3544   :  { %8564 = vtanh.f32 %v6115_v52 }
0x354c   :  { %v8563_v33 = vpop.eup %8562 }
0x354d   :  { %6122 = vrot.lane.b32.xlu0 %v8563_v33, %s9022_s29 }
0x354e   :  { %v8565_v49 = vpop.eup %8564 }
0x354f   :  { %v6117_v55 = vmul.f32 0.5, %v8565_v49 }
0x3551   :  { %v6118_v12 = vadd.f32 0.5, %v6117_v55 }
0x3553   :  { %v6120_v43 = vmul.f32 %v6118_v12, %v10897_v29 }
0x35bf   :  { %v6123_v35 = vpop.permute.xlu0 %6122 }
0x35c0   :  { %v6125_v26 = vmul.f32 %v6123_v35, %v6118_v12 }
0x35c2   :  { %6127 = vrot.lane.b32.xlu1 %v6125_v26, %s9023_s23 }
0x3634   :  { %v6128_v19 = vpop.permute.xlu1 %6127 }
0x3635   :  { %v6130_v59 = vadd.f32 %v6128_v19, %v6120_v43 }
0x3637   :  { %8566 = vtanh.f32 %v6130_v59 }
0x3638   :  { %8568 = vtanh.f32 %v11256_v6 }
0x3641   :  { %v8567_v45 = vpop.eup %8566 }
0x3642   :  { %6133 = vrot.lane.b32.xlu1 %v8567_v45, %s9022_s29 }
0x36b4   :  { %v6134_v20 = vpop.permute.xlu1 %6133 }
0x36b5   :  { %v6136_v11 = vmul.f32 %v6134_v20, %v6118_v12  ;;  %v11310_v12 = vld [vmem:[#allocation2 + $0x18] sm:$0xff] }
0x36b7   :  { %v6137_v8 = vpack.c.bf16 %v6136_v11, %v6136_v11 }
0x36b9   :  { %6139 = vrot.lane.b32.xlu0 %v6137_v8, %s9023_s23 }
0x372b   :  { %v6140_v34 = vpop.permute.xlu0 %6139 }
0x372c   :  { %8278 = vmatmul.mubr.msk.bf16.vlgmr.msra.gmra.mrb[72].mxu1 %vm346_vm1, %v6140_v34  ;;  %v11329_v34 = vld [vmem:[#allocation2 + $0x38] sm:$0xff] }
0x372d   :  { %8288 = vmatpush3.bf16.msra.mxu1 %v10909_v16  ;;  %8291 = vmatprep.mubr.msk.bf16.mxu1 %vm9021_vm0, %v12639_v24 }
0x372e   :  { %8289 = vmatprep.subr.bf16.mxu1 %v12639_v24 }
0x3731   :  { %8290 = vmatpush3.bf16.msra.mxu1 %v10918_v7 }
0x3732   :  { %8305 = vmatprep.subr.bf16.mxu1 %v12639_v24 }
0x37ff   :  { %v6178_v29 = vpop.f32.mrb[72].mxu1 }
0x3800   :  { %v11271_v30 = vadd.f32 %v8695_v17, %v6178_v29  ;;  %v8279_v1 = vpop.f32.mrb[73].mxu1 }
0x3801   :  { %v6181_v63 = vpop.f32.mrb[74].mxu1 }
0x3802   :  { %v6185_v22 = vcombine.high %v11271_v30, %v11271_v30  ;;  %v6192_v16 = vrot.slane %v11271_v30, %v9367_v51  ;;  %v8280_v23 = vpop.f32.mrb[75].mxu1 }
0x3804   :  { %v6199_v62 = vrot.slane %v6185_v22, %v9367_v51  ;;  %v6200_v10 = vcombine.high %v6192_v16, %v6192_v16  ;;  %v6208_v7 = vrot.slane %v6192_v16, %v9367_v51 }
0x3806   :  { %v6201_v39 = vcombine.high %v6199_v62, %v6199_v62  ;;  %v11280_v15 = vrot.slane %v6208_v7, %v9343_v38  ;;  %v6222_v5 = vrot.slane %v6200_v10, %v9367_v51  ;;  %v6230_v37 = vcombine.high %v6208_v7, %v6208_v7 }
0x3807   :  { %v6215_v57 = vrot.slane %v6199_v62, %v9367_v51 }
0x3808   :  { %12727 = vst [vmem:[#allocation88_spill] sm:$0xff] %v11280_v15  ;;  %v6274_v54 = vmul.f32 %v11284_v47, %v11280_v15  ;;  %v11289_v27 = vrot.slane %v6222_v5, %v9343_v38  ;;  %v6232_v9 = vcombine.high %v6222_v5, %v6222_v5  ;;  %v11292_v2 = vrot.slane %v6230_v37, %v9343_v38 }
0x3809   :  { %v6229_v46 = vrot.slane %v6201_v39, %v9367_v51  ;;  %v11307_v49 = vrot.slane %v6215_v57, %v9343_v38  ;;  %v6231_v43 = vcombine.high %v6215_v57, %v6215_v57  ;;  %v12734_v57 = vld [vmem:[#allocation40_spill] sm:$0xff] }
0x380a   :  { %12728 = vst [vmem:[#allocation89_spill] sm:$0xff] %v11289_v27  ;;  %12729 = vst [vmem:[#allocation90_spill] sm:$0xff] %v11292_v2  ;;  %v6282_v0 = vsel %vm346_vm1, %v6274_v54, 0.0  ;;  %v6275_v13 = vmul.f32 %v11296_v53, %v11289_v27  ;;  %v11301_v33 = vrot.slane %v6232_v9, %v9343_v38  ;;  %v6276_v26 = vmul.f32 %v10951_v18, %v11292_v2  ;;  %v12735_v9 = vld [vmem:[#allocation43_spill] sm:$0xff] }
0x380b   :  { %6283 = vadd.xlane.f32.xlu1 %v6282_v0  ;;  %v11304_v52 = vrot.slane %v6229_v46, %v9343_v38  ;;  %12732 = vst [vmem:[#allocation93_spill] sm:$0xff] %v11307_v49  ;;  %v6233_v55 = vcombine.high %v6229_v46, %v6229_v46  ;;  %v6278_v11 = vmul.f32 %v10959_v21, %v11307_v49  ;;  %v12736_v0 = vld [vmem:[#allocation42_spill] sm:$0xff] }
0x380c   :  { %12730 = vst [vmem:[#allocation91_spill] sm:$0xff] %v11301_v33  ;;  %v6285_v51 = vsel %vm346_vm1, %v6275_v13, 0.0  ;;  %v6277_v35 = vmul.f32 %v11310_v12, %v11301_v33  ;;  %v6288_v20 = vsel %vm346_vm1, %v6276_v26, 0.0  ;;  %v11326_v8 = vrot.slane %v6231_v43, %v9343_v38  ;;  %v11718_v49 = vld [vmem:[#allocation14 + $0x20] sm:$0xff] }
0x380d   :  { %12731 = vst [vmem:[#allocation92_spill] sm:$0xff] %v11304_v52  ;;  %6286 = vadd.xlane.f32.xlu0 %v6285_v51  ;;  %v6279_v59 = vmul.f32 %v11143_v14, %v11304_v52  ;;  %v11320_v45 = vrot.slane %v6233_v55, %v9343_v38  ;;  %v6294_v17 = vsel %vm346_vm1, %v6278_v11, 0.0  ;;  %v12737_v55 = vld [vmem:[#allocation45_spill] sm:$0xff]  ;;  %v7105_v27 = vmul.f32 %v11718_v49, %v11718_v49 }
0x380e   :  { %v6291_v19 = vsel %vm346_vm1, %v6277_v35, 0.0  ;;  %v6280_v1 = vmul.f32 %v10973_v41, %v11326_v8 }
0x380f   :  { %12733 = vst [vmem:[#allocation94_spill] sm:$0xff] %v11320_v45  ;;  %6292 = vadd.xlane.f32.xlu1 %v6291_v19  ;;  %v6297_v18 = vsel %vm346_vm1, %v6279_v59, 0.0  ;;  %v6281_v29 = vmul.f32 %v11329_v34, %v11320_v45 }
0x3810   :  { %v6300_v63 = vsel %vm346_vm1, %v6280_v1, 0.0 }
0x3811   :  { %6289 = vadd.xlane.f32.xlu0 %v6288_v20  ;;  %v6303_v21 = vsel %vm346_vm1, %v6281_v29, 0.0 }
0x3813   :  { %6298 = vadd.xlane.f32.xlu1 %v6297_v18 }
0x3815   :  { %6295 = vadd.xlane.f32.xlu0 %v6294_v17 }
0x3817   :  { %6304 = vadd.xlane.f32.xlu1 %v6303_v21 }
0x3819   :  { %6301 = vadd.xlane.f32.xlu0 %v6300_v63 }
0x3898   :  { %v6284_v22 = vpop.xlane.xlu1 %6283 }
0x3899   :  { %v6306_v16 = vadd.f32 %v6284_v22, %v9456_v61 }
0x389a   :  { %v6287_v23 = vpop.xlane.xlu0 %6286 }
0x389b   :  { %v6307_v62 = vadd.f32 %v6287_v23, %v9454_v60  ;;  %6323 = vperm.xlu0 %8377, %v6306_v16  }
0x389c   :  { %v6293_v10 = vpop.xlane.xlu1 %6292 }
0x389d   :  { %v11341_v7 = vadd.f32 %v6293_v10, %v9460_v4  ;;  %6326 = vperm.xlu1 %8376, %v6307_v62   ;;  %v8569_v10 = vpop.eup %8568 }
0x389e   :  { %v6290_v41 = vpop.xlane.xlu0 %6289 }
0x389f   :  { %v6308_v39 = vadd.f32 %v6290_v41, %v9458_v3  ;;  %6332 = vperm.xlu0 %8377, %v11341_v7  }
0x38a0   :  { %v6299_v5 = vpop.xlane.xlu1 %6298 }
0x38a1   :  { %v11346_v37 = vadd.f32 %v6299_v5, %v12712_v28  ;;  %6329 = vperm.xlu1 %8376, %v6308_v39  }
0x38a2   :  { %v6296_v61 = vpop.xlane.xlu0 %6295 }
0x38a3   :  { %v6310_v54 = vadd.f32 %v6296_v61, %v12734_v57  ;;  %6338 = vperm.xlu0 %8377, %v11346_v37  }
0x38a4   :  { %v6305_v60 = vpop.xlane.xlu1 %6304 }
0x38a5   :  { %v11351_v4 = vadd.f32 %v6305_v60, %v12735_v9  ;;  %6335 = vperm.xlu1 %8376, %v6310_v54   ;;  %v12738_v9 = vld [vmem:[#allocation41_spill] sm:$0xff] }
0x38a6   :  { %v6302_v46 = vpop.xlane.xlu0 %6301 }
0x38a7   :  { %v11354_v3 = vadd.f32 %v6302_v46, %v12736_v0  ;;  %6344 = vperm.xlu0 %8377, %v11351_v4   ;;  %v5920_v46 = vmul.f32 %v12738_v9, %v8569_v10 }
0x38a9   :  { %6341 = vperm.xlu1 %8376, %v11354_v3   ;;  %v5921_v0 = vsel %vm288_vm13, %v5920_v46, 0.0 }
0x391a   :  { %v6324_v28 = vpop.permute.xlu0 %6323 }
0x391b   :  { %v6349_v26 = vrot.slane %v6324_v28, %v12737_v55 }
0x391c   :  { %v6327_v13 = vpop.permute.xlu1 %6326 }
0x391d   :  { %v6353_v51 = vrot.slane %v6327_v13, %v12737_v55 }
0x391e   :  { %v6333_v35 = vpop.permute.xlu0 %6332 }
0x391f   :  { %v6378_v59 = vsel %vm734_vm2, %v6353_v51, %v6349_v26  ;;  %v6361_v18 = vrot.slane %v6333_v35, %v12737_v55 }
0x3920   :  { %v6330_v43 = vpop.permute.xlu1 %6329 }
0x3921   :  { %v6357_v19 = vrot.slane %v6330_v43, %v12737_v55 }
0x3922   :  { %v6339_v20 = vpop.permute.xlu0 %6338 }
0x3923   :  { %v6379_v11 = vsel %vm736_vm3, %v6357_v19, %v6378_v59  ;;  %v6369_v63 = vrot.slane %v6339_v20, %v12737_v55  ;;  %v12739_v20 = vld [vmem:[#allocation67_spill] sm:$0xff] }
0x3924   :  { %v6336_v29 = vpop.permute.xlu1 %6335  ;;  %v6380_v1 = vsel %vm738_vm4, %v6361_v18, %v6379_v11 }
0x3925   :  { %v6365_v17 = vrot.slane %v6336_v29, %v12737_v55 }
0x3926   :  { %v6345_v6 = vpop.permute.xlu0 %6344 }
0x3927   :  { %v6381_v21 = vsel %vm740_vm5, %v6365_v17, %v6380_v1  ;;  %v6377_v41 = vrot.slane %v6345_v6, %v12737_v55 }
0x3928   :  { %v6342_v22 = vpop.permute.xlu1 %6341  ;;  %v6382_v5 = vsel %vm742_vm6, %v6369_v63, %v6381_v21 }
0x3929   :  { %v6373_v23 = vrot.slane %v6342_v22, %v12737_v55 }
0x392b   :  { %v6383_v61 = vsel %vm744_vm7, %v6373_v23, %v6382_v5 }
0x392c   :  { %v6384_v57 = vsel %vm746_vm8, %v6377_v41, %v6383_v61 }
0x392d   :  { %v6386_v60 = vsel %vm749_vm9, %v6384_v57, -inf }
0x392e   :  { %6387 = vmax.xlane.f32.xlu1 %v6386_v60 }
0x3932   :  { %5922 = vadd.xlane.f32.xlu1 %v5921_v0 }
0x39bb   :  { %v6388_v28 = vpop.xlane.xlu1 %6387 }
0x39bc   :  { %v6393_v13 = vrot.slane %v6388_v28, %v9343_v38  ;;  %v6397_v51 = vrot.slane %v6388_v28, %v9330_v31  ;;  %v6401_v35 = vrot.slane %v6388_v28, %v9333_v32  ;;  %v6405_v29 = vrot.slane %v6388_v28, %v9351_v42 }
0x39bd   :  { %v6409_v63 = vrot.slane %v6388_v28, %v9340_v36  ;;  %v6413_v23 = vrot.slane %v6388_v28, %v9356_v44  ;;  %v6417_v5 = vrot.slane %v6388_v28, %v9445_v56  ;;  %v6421_v60 = vrot.slane %v6388_v28, %v9450_v58 }
0x39be   :  { %v6430_v26 = vsub.f32 %v6306_v16, %v6393_v13  ;;  %v6431_v43 = vsub.f32 %v6307_v62, %v6397_v51  ;;  %v6432_v18 = vsub.f32 %v6308_v39, %v6401_v35  ;;  %v6433_v22 = vsub.f32 %v11341_v7, %v6405_v29  ;;  %v12740_v13 = vld [vmem:[#allocation56_spill] sm:$0xff] }
0x39bf   :  { %v5923_v19 = vpop.xlane.xlu1 %5922  ;;  %v6434_v10 = vsub.f32 %v6310_v54, %v6409_v63  ;;  %v6435_v61 = vsub.f32 %v11346_v37, %v6413_v23  ;;  %v6436_v54 = vsub.f32 %v11354_v3, %v6417_v5  ;;  %v6437_v35 = vsub.f32 %v11351_v4, %v6421_v60  ;;  %v12744_v23 = vld [vmem:[#allocation87_spill] sm:$0xff] }
0x39c0   :  { %v6438_v59 = vmul.f32 1.442695, %v6430_v26  ;;  %v5924_v11 = vmax.f32 %v12739_v20, %v5923_v19  ;;  %v6440_v17 = vmul.f32 1.442695, %v6431_v43  ;;  %v6442_v6 = vmul.f32 1.442695, %v6432_v18 }
0x39c1   :  { %v6444_v39 = vmul.f32 1.442695, %v6433_v22  ;;  %v6446_v7 = vmul.f32 1.442695, %v6434_v10  ;;  %v6448_v9 = vmul.f32 1.442695, %v6435_v61 }
0x39c2   :  { %8570 = vpow2.f32 %v6438_v59  ;;  %v5925_v1 = vsub.f32 %v12739_v20, %v5924_v11  ;;  %v5928_v21 = vsub.f32 %v5923_v19, %v5924_v11  ;;  %v6450_v26 = vmul.f32 1.442695, %v6436_v54  ;;  %v12741_v11 = vld [vmem:[#allocation57_spill] sm:$0xff] }
0x39c3   :  { %8572 = vpow2.f32 %v6440_v17  ;;  %v6452_v3 = vmul.f32 1.442695, %v6437_v35 }
0x39c4   :  { %v5926_v16 = vmul.f32 1.442695, %v5925_v1  ;;  %v5929_v62 = vmul.f32 1.442695, %v5928_v21  ;;  %8574 = vpow2.f32 %v6442_v6 }
0x39c6   :  { %8576 = vpow2.f32 %v5926_v16  ;;  %v12742_v16 = vld [vmem:[#allocation85_spill] sm:$0xff] }
0x39c7   :  { %8578 = vpow2.f32 %v5929_v62  ;;  %v12743_v62 = vld [vmem:[#allocation86_spill] sm:$0xff] }
0x39c8   :  { %8580 = vpow2.f32 %v6444_v39 }
0x39c9   :  { %8582 = vpow2.f32 %v6446_v7 }
0x39ca   :  { %8584 = vpow2.f32 %v6448_v9 }
0x39cb   :  { %8586 = vpow2.f32 %v6450_v26 }
0x39cc   :  { %v11386_v41 = vpop.eup %8570 }
0x39cd   :  { %6463 = vperm.xlu0 %8377, %v11386_v41   ;;  %v11391_v57 = vpop.eup %8572 }
0x39ce   :  { %v11396_v46 = vpop.eup %8574 }
0x39d0   :  { %v8577_v0 = vpop.eup %8576 }
0x39d1   :  { %6466 = vperm.xlu0 %8377, %v11391_v57   ;;  %v5934_v51 = vmul.f32 %v8577_v0, %v12740_v13  ;;  %v8579_v37 = vpop.eup %8578  ;;  %v5931_v4 = vmul.f32 %v8577_v0, %v12741_v11 }
0x39d2   :  { %v11401_v19 = vpop.eup %8580  ;;  %v5932_v18 = vmul.f32 %v8579_v37, %v11254_v48 }
0x39d3   :  { %v5935_v43 = vadd.f32 %v8579_v37, %v5934_v51  ;;  %v11404_v59 = vpop.eup %8582 }
0x39d4   :  { %v11407_v20 = vpop.eup %8584  ;;  %v5933_v17 = vadd.f32 %v5932_v18, %v5931_v4 }
0x39d5   :  { %6469 = vperm.xlu0 %8377, %v11396_v46   ;;  %v6683_v28 = vmax.f32 %v5935_v43, 1e-20  ;;  %v11412_v29 = vpop.eup %8586 }
0x39d7   :  { %8588 = vrcp.f32 %v6683_v28 }
0x39d8   :  { %8590 = vpow2.f32 %v6452_v3 }
0x39d9   :  { %6472 = vperm.xlu0 %8377, %v11401_v19  }
0x39dd   :  { %6475 = vperm.xlu0 %8377, %v11404_v59  }
0x39e1   :  { %6478 = vperm.xlu0 %8377, %v11407_v20   ;;  %v8589_v1 = vpop.eup %8588 }
0x39e2   :  { %v6685_v21 = vmul.f32 %v8589_v1, %v5933_v17  ;;  %v11415_v6 = vpop.eup %8590 }
0x39e4   :  { %v6702_v63 = vadd.f32 %v6685_v21, %v11254_v48 }
0x39e5   :  { %6481 = vperm.xlu0 %8377, %v11412_v29  }
0x39e6   :  { %v6703_v22 = vpack.c.bf16 %v6702_v63, %v6702_v63 }
0x39e8   :  { %8284 = vmatmul.mubr.msk.bf16.vlgmr.msra.gmra.mrb[72].mxu0 %vm288_vm13, %v6703_v22 }
0x39e9   :  { %6484 = vperm.xlu0 %8377, %v11415_v6   ;;  %8296 = vmatpush3.bf16.msra.mxu0 %v12742_v16 }
0x39ea   :  { %8301 = vmatprep.mubr.msk.bf16.mxu0 %vm9021_vm0, %v12639_v24  ;;  %8297 = vmatprep.subr.bf16.mxu0 %v12639_v24 }
0x39ed   :  { %8298 = vmatpush3.bf16.msra.mxu0 %v12743_v62 }
0x39ee   :  { %8299 = vmatprep.subr.bf16.mxu0 %v12639_v24 }
0x39f1   :  { %8300 = vmatpush3.bf16.msra.mxu0 %v12744_v23 }
0x39f2   :  { %8311 = vmatprep.subr.bf16.mxu0 %v12639_v24 }
0x3a4c   :  { %v6464_v48 = vpop.permute.xlu0 %6463 }
0x3a4d   :  { %v6489_v9 = vrot.slane %v6464_v48, %v12737_v55 }
0x3a50   :  { %v6467_v10 = vpop.permute.xlu0 %6466 }
0x3a51   :  { %v6493_v60 = vrot.slane %v6467_v10, %v12737_v55 }
0x3a53   :  { %v6518_v37 = vsel %vm734_vm2, %v6493_v60, %v6489_v9 }
0x3a54   :  { %v6470_v39 = vpop.permute.xlu0 %6469 }
0x3a55   :  { %v6497_v54 = vrot.slane %v6470_v39, %v12737_v55 }
0x3a57   :  { %v6519_v26 = vsel %vm736_vm3, %v6497_v54, %v6518_v37 }
0x3a58   :  { %v6473_v5 = vpop.permute.xlu0 %6472 }
0x3a59   :  { %v6501_v0 = vrot.slane %v6473_v5, %v12737_v55 }
0x3a5b   :  { %v6520_v28 = vsel %vm738_vm4, %v6501_v0, %v6519_v26  ;;  %v11466_v26 = vld [vmem:[#allocation13 + $0x18] sm:$0xff] }
0x3a5c   :  { %v6476_v61 = vpop.permute.xlu0 %6475 }
0x3a5d   :  { %v6505_v13 = vrot.slane %v6476_v61, %v12737_v55 }
0x3a5f   :  { %v6521_v3 = vsel %vm740_vm5, %v6505_v13, %v6520_v28  ;;  %v11471_v28 = vld [vmem:[#allocation13 + $0x28] sm:$0xff] }
0x3a60   :  { %v6479_v7 = vpop.permute.xlu0 %6478 }
0x3a61   :  { %v6509_v35 = vrot.slane %v6479_v7, %v12737_v55 }
0x3a63   :  { %v6522_v4 = vsel %vm742_vm6, %v6509_v35, %v6521_v3  ;;  %v11461_v35 = vld [vmem:[#allocation13 + $0x8] sm:$0xff]  ;;  %v285_v3 = vmul.f32 %v11471_v28, %v11471_v28 }
0x3a64   :  { %v6482_v51 = vpop.permute.xlu0 %6481 }
0x3a65   :  { %v6513_v43 = vrot.slane %v6482_v51, %v12737_v55 }
0x3a67   :  { %v6523_v17 = vsel %vm744_vm7, %v6513_v43, %v6522_v4  ;;  %v283_v43 = vmul.f32 %v11466_v26, %v11466_v26 }
0x3a68   :  { %v6485_v11 = vpop.permute.xlu0 %6484 }
0x3a69   :  { %v6517_v18 = vrot.slane %v6485_v11, %v12737_v55  ;;  %v304_v11 = vsel %vm288_vm13, %v285_v3, 0.0 }
0x3a6b   :  { %v6524_v1 = vsel %vm746_vm8, %v6517_v18, %v6523_v17  ;;  %v11482_v17 = vld [vmem:[#allocation13] sm:$0xff] }
0x3a6c   :  { %v6526_v21 = vsel %vm749_vm9, %v6524_v1, 0.0  ;;  %v280_v1 = vmul.f32 %v11482_v17, %v11482_v17 }
0x3a6d   :  { %6527 = vadd.xlane.f32.xlu0 %v6526_v21  ;;  %v11486_v21 = vld [vmem:[#allocation13 + $0x10] sm:$0xff] }
0x3abb   :  { %v11444_v63 = vpop.f32.mrb[72].mxu0 }
0x3abc   :  { %v8285_v22 = vpop.f32.mrb[73].mxu0 }
0x3abd   :  { %v6744_v16 = vpop.f32.mrb[74].mxu0  ;;  %v289_v22 = vsel %vm288_vm13, %v280_v1, 0.0 }
0x3abe   :  { %v8286_v62 = vpop.f32.mrb[75].mxu0  ;;  %v282_v16 = vmul.f32 %v11486_v21, %v11486_v21 }
0x3abf   :  { %v11491_v62 = vld [vmem:[#allocation13 + $0x20] sm:$0xff] }
0x3afa   :  { %v6528_v23 = vpop.xlane.xlu0 %6527 }
0x3afb   :  { %8592 = vrcp.f32 %v6528_v23  ;;  %v295_v23 = vsel %vm288_vm13, %v282_v16, 0.0 }
0x3b05   :  { %v8593_v48 = vpop.eup %8592 }
0x3b06   :  { %v6546_v10 = vrot.slane %v8593_v48, %v9351_v42  ;;  %v6538_v39 = vrot.slane %v8593_v48, %v9330_v31  ;;  %v6542_v7 = vrot.slane %v8593_v48, %v9333_v32  ;;  %v6534_v54 = vrot.slane %v8593_v48, %v9343_v38 }
0x3b07   :  { %v6550_v0 = vrot.slane %v8593_v48, %v9340_v36  ;;  %v6558_v51 = vrot.slane %v8593_v48, %v9445_v56  ;;  %v6562_v37 = vrot.slane %v8593_v48, %v9450_v58 }
0x3b08   :  { %v6574_v5 = vmul.f32 %v11401_v19, %v6546_v10  ;;  %v6572_v61 = vmul.f32 %v11391_v57, %v6538_v39  ;;  %v6573_v60 = vmul.f32 %v11396_v46, %v6542_v7  ;;  %v6571_v9 = vmul.f32 %v11386_v41, %v6534_v54  ;;  %v11496_v10 = vld [vmem:[#allocation13 + $0x30] sm:$0xff] }
0x3b09   :  { %v6575_v13 = vmul.f32 %v11404_v59, %v6550_v0  ;;  %v6554_v19 = vrot.slane %v8593_v48, %v9356_v44  ;;  %v6577_v46 = vmul.f32 %v11412_v29, %v6558_v51  ;;  %v6578_v41 = vmul.f32 %v11415_v6, %v6562_v37  ;;  %v11476_v6 = vld [vmem:[#allocation13 + $0x38] sm:$0xff] }
0x3b0a   :  { %6596 = vperm.xlu0 %8377, %v6574_v5   ;;  %6586 = vperm.xlu1 %8376, %v6572_v61   ;;  %v281_v59 = vmul.f32 %v11461_v35, %v11461_v35  ;;  %v298_v29 = vsel %vm288_vm13, %v283_v43, 0.0  ;;  %v287_v4 = vmul.f32 %v11476_v6, %v11476_v6  ;;  %v284_v48 = vmul.f32 %v11491_v62, %v11491_v62 }
0x3b0b   :  { %v6576_v57 = vmul.f32 %v11407_v20, %v6554_v19  ;;  %v286_v5 = vmul.f32 %v11496_v10, %v11496_v10 }
0x3b0c   :  { %v292_v20 = vsel %vm288_vm13, %v281_v59, 0.0  ;;  %v310_v18 = vsel %vm288_vm13, %v287_v4, 0.0  ;;  %v301_v39 = vsel %vm288_vm13, %v284_v48, 0.0 }
0x3b0d   :  { %v307_v61 = vsel %vm288_vm13, %v286_v5, 0.0 }
0x3b0e   :  { %6591 = vperm.xlu1 %8376, %v6573_v60  }
0x3b12   :  { %6581 = vperm.xlu1 %8376, %v6571_v9  }
0x3b16   :  { %6601 = vperm.xlu1 %8376, %v6575_v13  }
0x3b1a   :  { %6606 = vperm.xlu1 %8376, %v6576_v57  }
0x3b1e   :  { %6611 = vperm.xlu1 %8376, %v6577_v46   ;;  %v8700_v46 = vld [vmem:[#allocation2 + $0x10] sm:$0xff] }
0x3b22   :  { %6616 = vperm.xlu1 %8376, %v6578_v41  }
0x3b29   :  { %293 = vadd.xlane.f32.xlu0 %v292_v20 }
0x3b2d   :  { %299 = vadd.xlane.f32.xlu0 %v298_v29 }
0x3b31   :  { %305 = vadd.xlane.f32.xlu0 %v304_v11 }
0x3b35   :  { %311 = vadd.xlane.f32.xlu0 %v310_v18 }
0x3b46   :  { %290 = vadd.xlane.f32.xlu1 %v289_v22 }
0x3b4a   :  { %296 = vadd.xlane.f32.xlu1 %v295_v23 }
0x3b4b   :  { %1474 = vrot.lane.b32.xlu0 %v11461_v35, %s9023_s23 }
0x3b4e   :  { %302 = vadd.xlane.f32.xlu1 %v301_v39  ;;  %v8701_v39 = vld [vmem:[#allocation2 + $0x20] sm:$0xff] }
0x3b4f   :  { %1480 = vrot.lane.b32.xlu0 %v11491_v62, %s9023_s23 }
0x3b52   :  { %308 = vadd.xlane.f32.xlu1 %v307_v61 }
0x3b53   :  { %1484 = vrot.lane.b32.xlu0 %v11496_v10, %s9023_s23 }
0x3b63   :  { %1472 = vrot.lane.b32.xlu1 %v11482_v17, %s9023_s23 }
0x3b67   :  { %1476 = vrot.lane.b32.xlu1 %v11486_v21, %s9023_s23 }
0x3b6b   :  { %1478 = vrot.lane.b32.xlu1 %v11466_v26, %s9023_s23 }
0x3b6f   :  { %1482 = vrot.lane.b32.xlu1 %v11471_v28, %s9023_s23 }
0x3b73   :  { %1486 = vrot.lane.b32.xlu1 %v11476_v6, %s9023_s23 }
0x3b89   :  { %v6597_v7 = vpop.permute.xlu0 %6596  ;;  %v6587_v60 = vpop.permute.xlu1 %6586 }
0x3b8a   :  { %v6622_v54 = vmul.f32 %v11310_v12, %v6597_v7  ;;  %v6620_v9 = vmul.f32 %v11296_v53, %v6587_v60 }
0x3b8c   :  { %v6648_v0 = vsel %vm346_vm1, %v6622_v54, 0.0  ;;  %v6634_v13 = vsel %vm346_vm1, %v6620_v9, 0.0 }
0x3b8d   :  { %v6635_v19 = vrot.slane %v6634_v13, 4  ;;  %v6592_v57 = vpop.permute.xlu1 %6591  ;;  %v6649_v51 = vrot.slane %v6648_v0, 4 }
0x3b8e   :  { %v6621_v37 = vmul.f32 %v8700_v46, %v6592_v57 }
0x3b8f   :  { %v6636_v41 = vadd.f32 %v6635_v19, %v6634_v13  ;;  %v6650_v3 = vadd.f32 %v6649_v51, %v6648_v0 }
0x3b90   :  { %v6641_v59 = vsel %vm346_vm1, %v6621_v37, 0.0 }
0x3b91   :  { %v6637_v20 = vrot.slane %v6636_v41, 2  ;;  %v6642_v43 = vrot.slane %v6641_v59, 4  ;;  %v6582_v29 = vpop.permute.xlu1 %6581  ;;  %v6651_v48 = vrot.slane %v6650_v3, 2 }
0x3b92   :  { %v6619_v11 = vmul.f32 %v11284_v47, %v6582_v29 }
0x3b93   :  { %v6643_v4 = vadd.f32 %v6642_v43, %v6641_v59  ;;  %v6638_v1 = vadd.f32 %v6637_v20, %v6636_v41  ;;  %v6652_v0 = vadd.f32 %v6651_v48, %v6650_v3 }
0x3b94   :  { %v6627_v18 = vsel %vm346_vm1, %v6619_v11, 0.0 }
0x3b95   :  { %v6644_v22 = vrot.slane %v6643_v4, 2  ;;  %v6628_v16 = vrot.slane %v6627_v18, 4  ;;  %v6602_v23 = vpop.permute.xlu1 %6601  ;;  %v6639_v54 = vrot.slane %v6638_v1, 1  ;;  %v6653_v11 = vrot.slane %v6652_v0, 1 }
0x3b96   :  { %v6623_v5 = vmul.f32 %v8701_v39, %v6602_v23 }
0x3b97   :  { %v6629_v61 = vadd.f32 %v6628_v16, %v6627_v18  ;;  %v6645_v7 = vadd.f32 %v6644_v22, %v6643_v4  ;;  %v6640_v20 = vadd.f32 %v6639_v54, %v6638_v1  ;;  %v8702_v22 = vld [vmem:[#allocation2 + $0x30] sm:$0xff] }
0x3b98   :  { %v6655_v60 = vsel %vm346_vm1, %v6623_v5, 0.0 }
0x3b99   :  { %v6630_v9 = vrot.slane %v6629_v61, 2  ;;  %v6607_v13 = vpop.permute.xlu1 %6606  ;;  %v6656_v19 = vrot.slane %v6655_v60, 4  ;;  %v6646_v37 = vrot.slane %v6645_v7, 1 }
0x3b9a   :  { %v6624_v57 = vmul.f32 %v11143_v14, %v6607_v13  ;;  %v6687_v14 = vadd.f32 %v11296_v53, %v6640_v20 }
0x3b9b   :  { %v6631_v51 = vadd.f32 %v6630_v9, %v6629_v61  ;;  %v6657_v41 = vadd.f32 %v6656_v19, %v6655_v60  ;;  %v6647_v5 = vadd.f32 %v6646_v37, %v6645_v7  ;;  %v6654_v9 = vadd.f32 %v6653_v11, %v6652_v0 }
0x3b9c   :  { %v6662_v59 = vsel %vm346_vm1, %v6624_v57, 0.0  ;;  %v6695_v37 = vpack.c.bf16 %v6687_v14, %v6687_v14 }
0x3b9d   :  { %v6632_v43 = vrot.slane %v6631_v51, 1  ;;  %v6612_v29 = vpop.permute.xlu1 %6611  ;;  %v6658_v18 = vrot.slane %v6657_v41, 2  ;;  %v6663_v4 = vrot.slane %v6662_v59, 4  ;;  %v6688_v45 = vadd.f32 %v8700_v46, %v6647_v5  ;;  %v8703_v5 = vld [vmem:[#allocation2 + $0x28] sm:$0xff] }
0x3b9e   :  { %v6625_v16 = vmul.f32 %v8702_v22, %v6612_v29  ;;  %v6689_v53 = vadd.f32 %v11310_v12, %v6654_v9 }
0x3b9f   :  { %v6633_v23 = vadd.f32 %v6632_v43, %v6631_v51  ;;  %v6659_v55 = vadd.f32 %v6658_v18, %v6657_v41  ;;  %v6664_v3 = vadd.f32 %v6663_v4, %v6662_v59  ;;  %v6696_v4 = vpack.c.bf16 %v6688_v45, %v6688_v45 }
0x3ba0   :  { %v6669_v48 = vsel %vm346_vm1, %v6625_v16, 0.0  ;;  %v6697_v46 = vpack.c.bf16 %v6689_v53, %v6689_v53 }
0x3ba1   :  { %v6670_v61 = vrot.slane %v6669_v48, 4  ;;  %v6617_v60 = vpop.permute.xlu1 %6616  ;;  %v6660_v13 = vrot.slane %v6659_v55, 1  ;;  %v6665_v1 = vrot.slane %v6664_v3, 2  ;;  %v6686_v19 = vadd.f32 %v11284_v47, %v6633_v23 }
0x3ba2   :  { %v6626_v54 = vmul.f32 %v11329_v34, %v6617_v60  ;;  %v6756_v60 = vunpack.c.l.b16 %v6695_v37 }
0x3ba3   :  { %v6671_v57 = vadd.f32 %v6670_v61, %v6669_v48  ;;  %v6661_v29 = vadd.f32 %v6660_v13, %v6659_v55  ;;  %v6666_v51 = vadd.f32 %v6665_v1, %v6664_v3  ;;  %v6694_v0 = vpack.c.bf16 %v6686_v19, %v6686_v19 }
0x3ba4   :  { %v6676_v7 = vsel %vm346_vm1, %v6626_v54, 0.0  ;;  %v6757_v13 = vunpack.c.l.b16 %v6696_v4  ;;  %v6763_v12 = vrot.slane %v6756_v60, 7  ;;  %v6758_v54 = vunpack.c.l.b16 %v6697_v46 }
0x3ba5   :  { %v6672_v41 = vrot.slane %v6671_v57, 2  ;;  %v6677_v59 = vrot.slane %v6676_v7, 4  ;;  %v6690_v20 = vadd.f32 %v8701_v39, %v6661_v29  ;;  %v6667_v43 = vrot.slane %v6666_v51, 1 }
0x3ba6   :  { %v6755_v48 = vunpack.c.l.b16 %v6694_v0 }
0x3ba7   :  { %v6673_v11 = vadd.f32 %v6672_v41, %v6671_v57  ;;  %v6678_v18 = vadd.f32 %v6677_v59, %v6676_v7  ;;  %v6668_v16 = vadd.f32 %v6667_v43, %v6666_v51  ;;  %v6698_v55 = vpack.c.bf16 %v6690_v20, %v6690_v20 }
0x3ba8   :  { %v6764_v45 = vsel %vm734_vm2, %v6763_v12, %v6755_v48  ;;  %v6765_v7 = vrot.slane %v6757_v13, 6  ;;  %v6767_v20 = vrot.slane %v6758_v54, 5  ;;  %v12746_v54 = vld [vmem:[#allocation32_spill] sm:$0xff] }
0x3ba9   :  { %v6674_v47 = vrot.slane %v6673_v11, 1  ;;  %v6679_v23 = vrot.slane %v6678_v18, 2  ;;  %v6691_v3 = vadd.f32 %v8703_v5, %v6668_v16  ;;  %v6759_v19 = vunpack.c.l.b16 %v6698_v55 }
0x3baa   :  { %v6766_v59 = vsel %vm736_vm3, %v6765_v7, %v6764_v45 }
0x3bab   :  { %v6675_v14 = vadd.f32 %v6674_v47, %v6673_v11  ;;  %v6680_v61 = vadd.f32 %v6679_v23, %v6678_v18  ;;  %v6699_v1 = vpack.c.bf16 %v6691_v3, %v6691_v3  ;;  %v6769_v53 = vrot.slane %v6759_v19, 4 }
0x3bad   :  { %v6692_v39 = vadd.f32 %v8702_v22, %v6675_v14  ;;  %v6681_v9 = vrot.slane %v6680_v61, 1  ;;  %v6760_v57 = vunpack.c.l.b16 %v6699_v1  ;;  %v6768_v22 = vsel %vm738_vm4, %v6767_v20, %v6766_v59  ;;  %v12745_v14 = vld [vmem:[#allocation33_spill] sm:$0xff]  ;;  %v12750_v59 = vld [vmem:[#allocation35_spill] sm:$0xff] }
0x3bae   :  { %v6770_v4 = vsel %vm740_vm5, %v6769_v53, %v6768_v22  ;;  %v12753_v22 = vld [vmem:[#allocation36_spill] sm:$0xff] }
0x3baf   :  { %v6700_v29 = vpack.c.bf16 %v6692_v39, %v6692_v39  ;;  %v6682_v51 = vadd.f32 %v6681_v9, %v6680_v61  ;;  %v6771_v43 = vrot.slane %v6760_v57, 3 }
0x3bb1   :  { %v6761_v37 = vunpack.c.l.b16 %v6700_v29  ;;  %v6693_v41 = vadd.f32 %v11329_v34, %v6682_v51  ;;  %v6772_v47 = vsel %vm742_vm6, %v6771_v43, %v6770_v4  ;;  %v12748_v29 = vld [vmem:[#allocation34_spill] sm:$0xff] }
0x3bb3   :  { %v6701_v0 = vpack.c.bf16 %v6693_v41, %v6693_v41  ;;  %v6773_v11 = vrot.slane %v6761_v37, 2  ;;  %v12749_v37 = vld [vmem:[#allocation37_spill] sm:$0xff] }
0x3bb5   :  { %v6762_v18 = vunpack.c.l.b16 %v6701_v0  ;;  %v6774_v23 = vsel %vm744_vm7, %v6773_v11, %v6772_v47  ;;  %v12752_v0 = vld [vmem:[#allocation39_spill] sm:$0xff] }
0x3bb6   :  { %v11539_v16 = vpop.xlane.xlu0 %293 }
0x3bb7   :  { %v6775_v60 = vrot.slane %v6762_v18, 1 }
0x3bb9   :  { %v6776_v34 = vsel %vm746_vm8, %v6775_v60, %v6774_v23  ;;  %v12755_v60 = vld [vmem:[#allocation38_spill] sm:$0xff] }
0x3bba   :  { %v11544_v46 = vpop.xlane.xlu0 %299  ;;  %v6777_v55 = vpack.c.b16 %v6776_v34, %v6776_v34 }
0x3bbc   :  { %8292 = vmatmul.mubr.msk.bf16.vlgmr.msra.gmra.mrb[76].mxu1 %vm346_vm1, %v6777_v55  ;;  %vm12762_vm1 = vcmask 392192  }
0x3bbd   :  { %8307 = vmatprep.mubr.msk.bf16.mxu1 %vm9021_vm0, %v12639_v24 }
0x3bbe   :  { %v11549_v5 = vpop.xlane.xlu0 %305 }
0x3bc2   :  { %v11551_v3 = vpop.xlane.xlu0 %311 }
0x3bc6   :  { %v11553_v48 = vpop.permute.xlu0 %1474 }
0x3bc7   :  { %v1497_v61 = vmul.f32 %v11553_v48, %v12745_v14 }
0x3bc9   :  { %1514 = vrot.lane.b32.xlu1 %v1497_v61, %s9027_s10 }
0x3bca   :  { %v11571_v45 = vpop.permute.xlu0 %1480 }
0x3bcb   :  { %12747 = vst [vmem:[#allocation40_spill] sm:$0xff] %v11571_v45  ;;  %v1500_v41 = vmul.f32 %v11571_v45, %v12749_v37 }
0x3bce   :  { %v11584_v20 = vpop.permute.xlu0 %1484 }
0x3bcf   :  { %v1502_v11 = vmul.f32 %v11584_v20, %v12752_v0 }
0x3bd3   :  { %v11558_v13 = vpop.xlane.xlu1 %290 }
0x3bd7   :  { %v11560_v1 = vpop.xlane.xlu1 %296 }
0x3bdb   :  { %v11562_v12 = vpop.xlane.xlu1 %302 }
0x3bdf   :  { %v11564_v39 = vpop.xlane.xlu1 %308 }
0x3be3   :  { %v11566_v9 = vpop.permute.xlu1 %1472 }
0x3be4   :  { %v1496_v19 = vmul.f32 %v11566_v9, %v12746_v54 }
0x3be6   :  { %1512 = vrot.lane.b32.xlu0 %v1496_v19, %s9027_s10 }
0x3be7   :  { %v11573_v57 = vpop.permute.xlu1 %1476 }
0x3be8   :  { %v1498_v51 = vmul.f32 %v11573_v57, %v12748_v29 }
0x3bea   :  { %1516 = vrot.lane.b32.xlu0 %v1498_v51, %s9027_s10 }
0x3beb   :  { %v11578_v7 = vpop.permute.xlu1 %1478 }
0x3bec   :  { %v1499_v53 = vmul.f32 %v11578_v7, %v12750_v59 }
0x3bee   :  { %1520 = vrot.lane.b32.xlu0 %v1500_v41, %s9027_s10  ;;  %1518 = vrot.lane.b32.xlu1 %v1499_v53, %s9027_s10 }
0x3bef   :  { %v11588_v43 = vpop.permute.xlu1 %1482 }
0x3bf0   :  { %12751 = vst [vmem:[#allocation43_spill] sm:$0xff] %v11588_v43  ;;  %v1501_v18 = vmul.f32 %v11588_v43, %v12753_v22 }
0x3bf2   :  { %1524 = vrot.lane.b32.xlu0 %v1502_v11, %s9027_s10  ;;  %1522 = vrot.lane.b32.xlu1 %v1501_v18, %s9027_s10  ;;  %v12756_v18 = vld [vmem:[#allocation31_spill] sm:$0xff] }
0x3bf3   :  { %v11596_v4 = vpop.permute.xlu1 %1486 }
0x3bf4   :  { %12754 = vst [vmem:[#allocation42_spill] sm:$0xff] %v11596_v4  ;;  %v1503_v47 = vmul.f32 %v11596_v4, %v12755_v60  ;;  %v1560_v60 = vmul.f32 %v12756_v18, %v12756_v18 }
0x3bf6   :  { %1526 = vrot.lane.b32.xlu1 %v1503_v47, %s9027_s10  ;;  %v12757_v47 = vld [vmem:[#allocation49_spill] sm:$0xff] }
0x3c3b   :  { %v1515_v23 = vpop.permute.xlu1 %1514 }
0x3c3c   :  { %v1539_v34 = vsel %vm288_vm13, %v1515_v23, 0.0  ;;  %v2607_v23 = vmul.f32 %v12757_v47, %v11553_v48  ;;  %v211_v47 = vld [vmem:[#allocation14] sm:$0xff] }
0x3c3d   :  { %1540 = vadd.xlane.f32.xlu1 %v1539_v34  ;;  %v12758_v34 = vld [vmem:[#allocation50_spill] sm:$0xff] }
0x3c58   :  { %v1513_v55 = vpop.permute.xlu0 %1512 }
0x3c59   :  { %v1536_v14 = vsel %vm288_vm13, %v1513_v55, 0.0  ;;  %v2608_v55 = vmul.f32 %v12758_v34, %v11573_v57  ;;  %v11634_v34 = vld [vmem:[#allocation14 + $0x18] sm:$0xff] }
0x3c5a   :  { %1537 = vadd.xlane.f32.xlu0 %v1536_v14  ;;  %v12759_v14 = vld [vmem:[#allocation52_spill] sm:$0xff] }
0x3c5c   :  { %v1517_v61 = vpop.permute.xlu0 %1516 }
0x3c5d   :  { %v1542_v54 = vsel %vm288_vm13, %v1517_v61, 0.0  ;;  %v2609_v61 = vmul.f32 %v12759_v14, %v11578_v7  ;;  %v11639_v14 = vld [vmem:[#allocation14 + $0x28] sm:$0xff] }
0x3c5e   :  { %1543 = vadd.xlane.f32.xlu0 %v1542_v54  ;;  %v12760_v54 = vld [vmem:[#allocation53_spill] sm:$0xff] }
0x3c60   :  { %v1521_v19 = vpop.permute.xlu0 %1520  ;;  %v1519_v29 = vpop.permute.xlu1 %1518 }
0x3c61   :  { %v1548_v51 = vsel %vm288_vm13, %v1521_v19, 0.0  ;;  %v1545_v37 = vsel %vm288_vm13, %v1519_v29, 0.0  ;;  %v2611_v19 = vmul.f32 %v12760_v54, %v11588_v43  ;;  %v12761_v29 = vld [vmem:[#allocation55_spill] sm:$0xff]  ;;  %v7106_v54 = vmul.f32 %v11639_v14, %v11639_v14 }
0x3c62   :  { %1549 = vadd.xlane.f32.xlu1 %v1548_v51  ;;  %1546 = vadd.xlane.f32.xlu0 %v1545_v37  ;;  %v2613_v51 = vmul.f32 %v12761_v29, %v11596_v4 }
0x3c64   :  { %v1525_v41 = vpop.permute.xlu0 %1524  ;;  %v1523_v59 = vpop.permute.xlu1 %1522 }
0x3c65   :  { %v1554_v53 = vsel %vm288_vm13, %v1525_v41, 0.0  ;;  %v1551_v0 = vsel %vm288_vm13, %v1523_v59, 0.0 }
0x3c66   :  { %1555 = vadd.xlane.f32.xlu1 %v1554_v53  ;;  %1552 = vadd.xlane.f32.xlu0 %v1551_v0  ;;  %v8704_v0 = vld [vmem:[%s12473_s15] ss:$0 sm:$0xff] }
0x3c68   :  { %v1527_v11 = vpop.permute.xlu1 %1526 }
0x3c69   :  { %v1557_v22 = vsel %vm288_vm13, %v1527_v11, 0.0 }
0x3c6a   :  { %1558 = vadd.xlane.f32.xlu0 %v1557_v22 }
0x3c77   :  { %1562 = vrot.lane.b32.xlu1 %v1560_v60, %s9027_s10 }
0x3c7b   :  { %2624 = vrot.lane.b32.xlu1 %v2607_v23, %s9027_s10  ;;  %v7101_v23 = vmul.f32 %v211_v47, %v211_v47 }
0x3c7f   :  { %2626 = vrot.lane.b32.xlu1 %v2608_v55, %s9027_s10  ;;  %v7104_v55 = vmul.f32 %v11634_v34, %v11634_v34 }
0x3c83   :  { %2628 = vrot.lane.b32.xlu1 %v2609_v61, %s9027_s10  ;;  %v7118_v61 = vsel %vm288_vm13, %v7104_v55, 0.0  ;;  %v12764_v55 = vld [vmem:[#allocation51_spill] sm:$0xff] }
0x3c87   :  { %2632 = vrot.lane.b32.xlu1 %v2611_v19, %s9027_s10  ;;  %v7124_v19 = vsel %vm288_vm13, %v7106_v54, 0.0  ;;  %v12765_v54 = vld [vmem:[#allocation54_spill] sm:$0xff] }
0x3c8b   :  { %2636 = vrot.lane.b32.xlu1 %v2613_v51, %s9027_s10 }
0x3c8f   :  { %v6815_v37 = vpop.f32.mrb[76].mxu1 }
0x3c90   :  { %v6816_v41 = vadd.f32 %v6815_v37, %v11444_v63  ;;  %v8293_v59 = vpop.f32.mrb[77].mxu1  ;;  %v7109_v63 = vsel %vm288_vm13, %v7101_v23, 0.0 }
0x3c91   :  { %v6818_v53 = vpop.f32.mrb[78].mxu1 }
0x3c92   :  { %v6821_v11 = vadd.f32 %v8704_v0, %v6816_v41  ;;  %v8294_v22 = vpop.f32.mrb[79].mxu1 }
0x3c93   :  { %v11655_v22 = vld [vmem:[#allocation14 + $0x38] sm:$0xff] }
0x3c94   :  { %v6822_v18 = vmax.f32 %v6821_v11, 0.0  ;;  %v7108_v23 = vmul.f32 %v11655_v22, %v11655_v22 }
0x3c96   :  { %v6823_v60 = vpack.c.bf16 %v6822_v18, %v6822_v18  ;;  %v12763_v18 = vld [vmem:[#allocation48_spill] sm:$0xff] }
0x3c98   :  { %8302 = vmatmul.mubr.msk.bf16.vlgmr.msra.gmra.mrb[76].mxu0 %vm12762_vm1, %v6823_v60  ;;  %v2606_v60 = vmul.f32 %v12763_v18, %v11566_v9 }
0x3c99   :  { %8313 = vmatprep.mubr.msk.bf16.mxu0 %vm9021_vm0, %v12639_v24 }
0x3caf   :  { %7110 = vadd.xlane.f32.xlu1 %v7109_v63  ;;  %v7130_v63 = vsel %vm288_vm13, %v7108_v23, 0.0 }
0x3cb3   :  { %7119 = vadd.xlane.f32.xlu1 %v7118_v61  ;;  %v2610_v61 = vmul.f32 %v12764_v55, %v11571_v45 }
0x3cb7   :  { %7125 = vadd.xlane.f32.xlu1 %v7124_v19  ;;  %v2612_v19 = vmul.f32 %v12765_v54, %v11584_v20 }
0x3cca   :  { %v11645_v29 = vpop.xlane.xlu1 %1540 }
0x3cef   :  { %v11647_v51 = vpop.xlane.xlu1 %1549 }
0x3cf3   :  { %v11649_v37 = vpop.xlane.xlu1 %1555 }
0x3cf7   :  { %v1563_v41 = vpop.permute.xlu1 %1562 }
0x3cf8   :  { %v1565_v59 = vsel %vm288_vm13, %v1563_v41, 0.0 }
0x3cf9   :  { %1566 = vadd.xlane.f32.xlu0 %v1565_v59 }
0x3cfb   :  { %v11652_v53 = vpop.permute.xlu1 %2624 }
0x3cff   :  { %v2627_v0 = vpop.permute.xlu1 %2626 }
0x3d00   :  { %v2652_v11 = vsel %vm288_vm13, %v2627_v0, 0.0 }
0x3d01   :  { %2653 = vadd.xlane.f32.xlu1 %v2652_v11 }
0x3d03   :  { %v11669_v41 = vpop.permute.xlu1 %2628 }
0x3d05   :  { %7131 = vadd.xlane.f32.xlu1 %v7130_v63 }
0x3d07   :  { %v11671_v59 = vpop.permute.xlu1 %2632 }
0x3d0b   :  { %v11673_v0 = vpop.permute.xlu1 %2636 }
0x3d0f   :  { %2622 = vrot.lane.b32.xlu0 %v2606_v60, %s9027_s10  ;;  %v313_v60 = vmax.f32 %v11558_v13, 1e-16  ;;  %v11686_v13 = vpop.xlane.xlu0 %1537 }
0x3d13   :  { %2630 = vrot.lane.b32.xlu0 %v2610_v61, %s9027_s10 }
0x3d17   :  { %2634 = vrot.lane.b32.xlu0 %v2612_v19, %s9027_s10 }
0x3d3c   :  { %v7111_v11 = vpop.xlane.xlu1 %7110 }
0x3d3d   :  { %v7133_v18 = vmax.f32 %v7111_v11, 1e-16 }
0x3d3f   :  { %8594 = vrsqrt.f32 %v7133_v18  ;;  %v8705_v18 = vld [vmem:[%s12475_s17] ss:$0 sm:$0xff]  ;;  %s9028_s17 = smov [#allocation20]  }
0x3d40   :  { %8596 = vrsqrt.f32 %v313_v60  ;;  %s7777_s26 = sshll.u32 %s9028_s17, 4  ;;  %s7778_s26 = int_to_ptr.vmem [resolvable:$true] %s7777_s26 }
0x3d41   :  { %s8926_s27 = scalar_lea.vmem %s7778_s26, 128  ;;  %p8931_p11 = scmp.lt.s32.totalorder %s7778_s26, %s7778_s26 }
0x3d42   :  { %p8927_p10 = scmp.ne.s32.totalorder %s7778_s26, %s8926_s27  ;;  %p8932_p12 = scmp.lt.s32.totalorder %s8926_s27, %s8926_s27 }
0x3d44   :  { %p8933_p13 = por %p8932_p12, %p8931_p11 }
0x3d46   :  { %p8934_p0 = pnand %p8933_p13, %p8927_p10 }
0x3d49   :  { %v8595_v23 = vpop.eup %8594 }
0x3d4a   :  { %v7149_v63 = vmul.f32 %v8595_v23, %v211_v47  ;;  %v11676_v61 = vpop.eup %8596  ;;  %v5877_v47 = vsel %vm5876_vm14, -10000000.0, %v11177_v40 }
0x3d4b   :  { %12766 = vst [vmem:[#allocation41_spill] sm:$0xff] %v11676_v61  ;;  %v7085_v19 = vmul.f32 %v11676_v61, %v11482_v17  ;;  %v5878_v23 = vsel %vm12767_vm12, 0.0, %v5877_v47 }
0x3d4c   :  { %v7157_v55 = vpack.c.bf16 %v7149_v63, %v7149_v63 }
0x3d4d   :  { %v7093_v52 = vpack.c.bf16 %v7085_v19, %v7085_v19 }
0x3d4e   :  { %v7169_v54 = vsel %vm288_vm13, %v7157_v55, 0 }
0x3d4f   :  { %8306 = vmatpush3.bf16.xpose.msra.mxu1 %v7169_v54  ;;  %v11696_v54 = vpop.xlane.xlu0 %1543 }
0x3d50   :  { %8317 = vmatprep.subr.bf16.mxu1 %v12639_v24 }
0x3d53   :  { %v11700_v40 = vpop.xlane.xlu0 %1546 }
0x3d56   :  { %8308 = vmatmul.mubr.msk.bf16.vlgmr.msra.gmra.mrb[80].mxu1 %vm288_vm13, %v7093_v52 }
0x3d57   :  { %8319 = vmatprep.mubr.msk.bf16.mxu1 %vm9021_vm0, %v12639_v24  ;;  %v11702_v25 = vpop.xlane.xlu0 %1552 }
0x3d58   :  { %12769 = vst [vmem:[#allocation56_spill] sm:$0xff] %v11702_v25 }
0x3d5b   :  { %v11704_v19 = vpop.xlane.xlu0 %1558 }
0x3d5c   :  { %12770 = vst [vmem:[#allocation57_spill] sm:$0xff] %v11704_v19 }
0x3d6b   :  { %v6861_v11 = vpop.f32.mrb[76].mxu0 }
0x3d6c   :  { %v6862_v17 = vadd.f32 %v8705_v18, %v6861_v11  ;;  %v8303_v60 = vpop.f32.mrb[77].mxu0  ;;  %v11708_v18 = vld [vmem:[#allocation14 + $0x8] sm:$0xff] }
0x3d6d   :  { %v6864_v52 = vpop.f32.mrb[78].mxu0  ;;  %v7102_v47 = vmul.f32 %v11708_v18, %v11708_v18  ;;  %v11712_v60 = vld [vmem:[#allocation14 + $0x10] sm:$0xff] }
0x3d6e   :  { %v11694_v63 = vadd.f32 %v6862_v17, %v5878_v23  ;;  %v8304_v55 = vpop.f32.mrb[79].mxu0 }
0x3d6f   :  { %v7112_v52 = vsel %vm288_vm13, %v7102_v47, 0.0  ;;  %v7103_v55 = vmul.f32 %v11712_v60, %v11712_v60  ;;  %v7121_v47 = vsel %vm288_vm13, %v7105_v27, 0.0  ;;  %v2661_v27 = vsel %vm288_vm13, %v11671_v59, 0.0  ;;  %v12775_v59 = vld [vmem:[#allocation65_spill] sm:$0xff] }
0x3d70   :  { %12768 = vst [vmem:[#allocation67_spill] sm:$0xff] %v11694_v63  ;;  %6889 = vst.msk [vmem:[#allocation19 + $0x28] sm:$0xff] %vm1268_vm11, %v11694_v63 }
0x3d71   :  { %v7115_v2 = vsel %vm288_vm13, %v7103_v55, 0.0  ;;  %v12771_v55 = vld [vmem:[#allocation47_spill] sm:$0xff] }
0x3d86   :  { %v11706_v11 = vpop.xlane.xlu0 %1566 }
0x3d8a   :  { %v2623_v17 = vpop.permute.xlu0 %2622 }
0x3d8b   :  { %v2646_v23 = vsel %vm288_vm13, %v2623_v17, 0.0 }
0x3d8c   :  { %2647 = vadd.xlane.f32.xlu0 %v2646_v23  ;;  %v11726_v23 = vld [vmem:[#allocation14 + $0x30] sm:$0xff] }
0x3d8e   :  { %v2631_v50 = vpop.permute.xlu0 %2630 }
0x3d8f   :  { %v2658_v33 = vsel %vm288_vm13, %v2631_v50, 0.0  ;;  %v7107_v50 = vmul.f32 %v11726_v23, %v11726_v23 }
0x3d90   :  { %7113 = vadd.xlane.f32.xlu0 %v7112_v52  ;;  %2659 = vadd.xlane.f32.xlu1 %v2658_v33  ;;  %v2649_v33 = vsel %vm288_vm13, %v11652_v53, 0.0  ;;  %v2667_v53 = vsel %vm288_vm13, %v11673_v0, 0.0  ;;  %v7120_v0 = vpop.xlane.xlu1 %7119 }
0x3d91   :  { %v7127_v52 = vsel %vm288_vm13, %v7107_v50, 0.0  ;;  %v12773_v50 = vld [vmem:[#allocation61_spill] sm:$0xff] }
0x3d92   :  { %v2635_v15 = vpop.permute.xlu0 %2634 }
0x3d93   :  { %v2664_v17 = vsel %vm288_vm13, %v2635_v15, 0.0  ;;  %v2670_v15 = vmul.f32 %v12771_v55, %v12771_v55  ;;  %v3721_v55 = vmul.f32 %v12775_v59, %v11588_v43  ;;  %v314_v59 = vmax.f32 %v11539_v16, 1e-16 }
0x3d94   :  { %7116 = vadd.xlane.f32.xlu0 %v7115_v2  ;;  %2665 = vadd.xlane.f32.xlu1 %v2664_v17  ;;  %v2655_v2 = vsel %vm288_vm13, %v11669_v41, 0.0  ;;  %v12772_v17 = vld [vmem:[#allocation60_spill] sm:$0xff]  ;;  %v12774_v41 = vld [vmem:[#allocation63_spill] sm:$0xff]  ;;  %v316_v16 = vmax.f32 %v11544_v46, 1e-16 }
0x3d98   :  { %7122 = vadd.xlane.f32.xlu0 %v7121_v47  ;;  %v3717_v47 = vmul.f32 %v12772_v17, %v11553_v48 }
0x3d9c   :  { %2650 = vadd.xlane.f32.xlu0 %v2649_v33  ;;  %v3718_v33 = vmul.f32 %v12773_v50, %v11573_v57 }
0x3da0   :  { %7128 = vadd.xlane.f32.xlu0 %v7127_v52  ;;  %v3719_v52 = vmul.f32 %v12774_v41, %v11578_v7  ;;  %v7136_v41 = vmax.f32 %v7120_v0, 1e-16 }
0x3da4   :  { %2656 = vadd.xlane.f32.xlu0 %v2655_v2 }
0x3da5   :  { %2672 = vrot.lane.b32.xlu1 %v2670_v15, %s9027_s10  ;;  %v12776_v15 = vld [vmem:[#allocation66_spill] sm:$0xff] }
0x3da6   :  { %v3723_v2 = vmul.f32 %v12776_v15, %v11596_v4 }
0x3da8   :  { %2662 = vadd.xlane.f32.xlu0 %v2661_v27  ;;  %v7126_v27 = vpop.xlane.xlu1 %7125 }
0x3da9   :  { %3734 = vrot.lane.b32.xlu1 %v3717_v47, %s9027_s10 }
0x3dac   :  { %2668 = vadd.xlane.f32.xlu0 %v2667_v53  ;;  %v11757_v17 = vpop.xlane.xlu1 %2653 }
0x3dad   :  { %3736 = vrot.lane.b32.xlu1 %v3718_v33, %s9027_s10  ;;  %12777 = vst [vmem:[#allocation85_spill] sm:$0xff] %v11757_v17 }
0x3db0   :  { %v7132_v47 = vpop.xlane.xlu1 %7131 }
0x3db1   :  { %3738 = vrot.lane.b32.xlu1 %v3719_v52, %s9027_s10 }
0x3db5   :  { %3742 = vrot.lane.b32.xlu1 %v3721_v55, %s9027_s10 }
0x3db9   :  { %3746 = vrot.lane.b32.xlu1 %v3723_v2, %s9027_s10  ;;  %v315_v2 = vmax.f32 %v11560_v1, 1e-16 }
0x3e19   :  { %v11759_v53 = vpop.xlane.xlu0 %2647 }
0x3e1a   :  { %12778 = vst [vmem:[#allocation86_spill] sm:$0xff] %v11759_v53  ;;  %v7138_v53 = vmax.f32 %v7126_v27, 1e-16 }
0x3e1d   :  { %v7114_v50 = vpop.xlane.xlu0 %7113  ;;  %v11761_v33 = vpop.xlane.xlu1 %2659 }
0x3e1e   :  { %12779 = vst [vmem:[#allocation87_spill] sm:$0xff] %v11761_v33  ;;  %v7134_v52 = vmax.f32 %v7114_v50, 1e-16 }
0x3e20   :  { %8598 = vrsqrt.f32 %v7134_v52 }
0x3e21   :  { %v7117_v55 = vpop.xlane.xlu0 %7116  ;;  %v11764_v61 = vpop.xlane.xlu1 %2665  ;;  %8600 = vrsqrt.f32 %v7136_v41 }
0x3e22   :  { %v7135_v15 = vmax.f32 %v7117_v55, 1e-16  ;;  %8602 = vrsqrt.f32 %v314_v59  ;;  %v317_v59 = vmax.f32 %v11562_v12, 1e-16 }
0x3e24   :  { %8604 = vrsqrt.f32 %v7135_v15 }
0x3e25   :  { %v7123_v17 = vpop.xlane.xlu0 %7122  ;;  %v2673_v19 = vpop.permute.xlu1 %2672  ;;  %8606 = vrsqrt.f32 %v315_v2 }
0x3e26   :  { %v7137_v25 = vmax.f32 %v7123_v17, 1e-16  ;;  %v2675_v33 = vsel %vm288_vm13, %v2673_v19, 0.0 }
0x3e27   :  { %2676 = vadd.xlane.f32.xlu0 %v2675_v33 }
0x3e28   :  { %8608 = vrsqrt.f32 %v7137_v25 }
0x3e29   :  { %v11769_v0 = vpop.xlane.xlu0 %2650  ;;  %v3735_v50 = vpop.permute.xlu1 %3734  ;;  %8610 = vrsqrt.f32 %v7138_v53  ;;  %v7140_v53 = vmax.f32 %v7132_v47, 1e-16 }
0x3e2a   :  { %12780 = vst [vmem:[#allocation33_spill] sm:$0xff] %v11769_v0  ;;  %v8599_v41 = vpop.eup %8598  ;;  %v3759_v52 = vsel %vm288_vm13, %v3735_v50, 0.0  ;;  %v11772_v1 = vpop.f32.mrb[80].mxu1  ;;  %8612 = vrsqrt.f32 %v316_v16 }
0x3e2b   :  { %12781 = vst [vmem:[#allocation32_spill] sm:$0xff] %v11772_v1  ;;  %v8309_v27 = vpop.f32.mrb[81].mxu1  ;;  %3760 = vadd.xlane.f32.xlu1 %v3759_v52  ;;  %v7150_v19 = vmul.f32 %v8599_v41, %v11708_v18  ;;  %v8601_v17 = vpop.eup %8600  ;;  %8614 = vrsqrt.f32 %v317_v59  ;;  %v318_v18 = vmax.f32 %v11549_v5, 1e-16  ;;  %v319_v5 = vmax.f32 %v11564_v39, 1e-16 }
0x3e2c   :  { %v7208_v33 = vpop.f32.mrb[82].mxu1  ;;  %v11776_v46 = vpop.eup %8602  ;;  %v7152_v52 = vmul.f32 %v8601_v17, %v11634_v34 }
0x3e2d   :  { %v8310_v25 = vpop.f32.mrb[83].mxu1  ;;  %v7129_v55 = vpop.xlane.xlu0 %7128  ;;  %v7158_v15 = vpack.c.bf16 %v7150_v19, %v7150_v19  ;;  %v7086_v27 = vmul.f32 %v11776_v46, %v11461_v35 }
0x3e2e   :  { %v8605_v2 = vpop.eup %8604  ;;  %v7139_v0 = vmax.f32 %v7129_v55, 1e-16  ;;  %v7160_v19 = vpack.c.bf16 %v7152_v52, %v7152_v52  ;;  %v320_v55 = vmax.f32 %v11551_v3, 1e-16  ;;  %v12782_v3 = vld [vmem:[#allocation59_spill] sm:$0xff] }
0x3e2f   :  { %v7215_v50 = vsel %vm288_vm13, %v7158_v15, 0  ;;  %v7151_v12 = vmul.f32 %v8605_v2, %v11712_v60  ;;  %v11782_v16 = vpop.eup %8606 }
0x3e30   :  { %8616 = vrsqrt.f32 %v7139_v0  ;;  %8312 = vmatpush3.bf16.xpose.msra.mxu0 %v7215_v50  ;;  %v7094_v0 = vpack.c.bf16 %v7086_v27, %v7086_v27  ;;  %v7087_v17 = vmul.f32 %v11782_v16, %v11486_v21  ;;  %v7307_v25 = vsel %vm288_vm13, %v7160_v19, 0 }
0x3e31   :  { %v7159_v41 = vpack.c.bf16 %v7151_v12, %v7151_v12  ;;  %8323 = vmatprep.subr.bf16.mxu0 %v12639_v24  ;;  %8618 = vrsqrt.f32 %v7140_v53 }
0x3e32   :  { %v8609_v47 = vpop.eup %8608  ;;  %8620 = vrsqrt.f32 %v318_v18  ;;  %v7095_v21 = vpack.c.bf16 %v7087_v17, %v7087_v17 }
0x3e33   :  { %v7261_v59 = vsel %vm288_vm13, %v7159_v41, 0  ;;  %v7153_v60 = vmul.f32 %v8609_v47, %v11718_v49  ;;  %v8611_v34 = vpop.eup %8610  ;;  %8622 = vrsqrt.f32 %v319_v5  ;;  %v12783_v47 = vld [vmem:[#allocation62_spill] sm:$0xff] }
0x3e34   :  { %8318 = vmatpush3.bf16.xpose.msra.mxu1 %v7261_v59  ;;  %v11793_v33 = vpop.eup %8612  ;;  %v7154_v49 = vmul.f32 %v8611_v34, %v11639_v14  ;;  %v3716_v14 = vmul.f32 %v12782_v3, %v11566_v9  ;;  %8624 = vrsqrt.f32 %v320_v55  ;;  %v3720_v59 = vmul.f32 %v12783_v47, %v11571_v45 }
0x3e35   :  { %8329 = vmatprep.subr.bf16.mxu1 %v12639_v24  ;;  %v7161_v35 = vpack.c.bf16 %v7153_v60, %v7153_v60  ;;  %v11801_v39 = vpop.eup %8614  ;;  %v7088_v2 = vmul.f32 %v11793_v33, %v11466_v26 }
0x3e36   :  { %v7162_v50 = vpack.c.bf16 %v7154_v49, %v7154_v49  ;;  %v7089_v18 = vmul.f32 %v11801_v39, %v11491_v62 }
0x3e37   :  { %8314 = vmatmul.mubr.msk.bf16.vlgmr.msra.gmra.mrb[80].mxu0 %vm288_vm13, %v7094_v0  ;;  %v7353_v15 = vsel %vm288_vm13, %v7161_v35, 0  ;;  %v7096_v26 = vpack.c.bf16 %v7088_v2, %v7088_v2  ;;  %v1568_v2 = vmax.f32 %v11706_v11, 1e-16 }
0x3e38   :  { %8324 = vmatpush3.bf16.xpose.msra.mxu0 %v7307_v25  ;;  %8325 = vmatprep.mubr.msk.bf16.mxu0 %vm9021_vm0, %v12639_v24  ;;  %v7097_v62 = vpack.c.bf16 %v7089_v18, %v7089_v18 }
0x3e39   :  { %8335 = vmatprep.subr.bf16.mxu0 %v12639_v24  ;;  %8626 = vrsqrt.f32 %v1568_v2 }
0x3e3a   :  { %v8617_v53 = vpop.eup %8616 }
0x3e3b   :  { %8320 = vmatmul.mubr.msk.bf16.vlgmr.msra.gmra.mrb[84].mxu1 %vm288_vm13, %v7095_v21  ;;  %v7155_v12 = vmul.f32 %v8617_v53, %v11726_v23  ;;  %v8619_v52 = vpop.eup %8618  ;;  %v7399_v23 = vsel %vm288_vm13, %v7162_v50, 0 }
0x3e3c   :  { %8330 = vmatpush3.bf16.xpose.msra.mxu1 %v7353_v15  ;;  %8331 = vmatprep.mubr.msk.bf16.mxu1 %vm9021_vm0, %v12639_v24  ;;  %v11817_v27 = vpop.eup %8620  ;;  %v7156_v19 = vmul.f32 %v8619_v52, %v11655_v22  ;;  %v12784_v22 = vld [vmem:[#allocation64_spill] sm:$0xff] }
0x3e3d   :  { %3732 = vrot.lane.b32.xlu0 %v3716_v14, %s9027_s10  ;;  %8341 = vmatprep.subr.bf16.mxu1 %v12639_v24  ;;  %v7163_v41 = vpack.c.bf16 %v7155_v12, %v7155_v12  ;;  %v7090_v34 = vmul.f32 %v11817_v27, %v11471_v28  ;;  %v11831_v5 = vpop.eup %8622  ;;  %v3722_v0 = vmul.f32 %v12784_v22, %v11584_v20  ;;  %v3737_v14 = vpop.permute.xlu1 %3736 }
0x3e3e   :  { %v7164_v17 = vpack.c.bf16 %v7156_v19, %v7156_v19  ;;  %v7091_v28 = vmul.f32 %v11831_v5, %v11496_v10  ;;  %v11841_v25 = vpop.eup %8624  ;;  %v11851_v10 = vpop.xlane.xlu0 %2656  ;;  %v3762_v11 = vsel %vm288_vm13, %v3737_v14, 0.0  ;;  %v12785_v14 = vld [vmem:[#allocation46_spill] sm:$0xff] }
0x3e3f   :  { %8326 = vmatmul.mubr.msk.bf16.vlgmr.msra.gmra.mrb[84].mxu0 %vm288_vm13, %v7096_v26  ;;  %v7445_v60 = vsel %vm288_vm13, %v7163_v41, 0  ;;  %v7098_v35 = vpack.c.bf16 %v7090_v34, %v7090_v34  ;;  %v7092_v21 = vmul.f32 %v11841_v25, %v11476_v6 }
0x3e40   :  { %8336 = vmatpush3.bf16.xpose.msra.mxu0 %v7399_v23  ;;  %8337 = vmatprep.mubr.msk.bf16.mxu0 %vm9021_vm0, %v12639_v24  ;;  %v7491_v49 = vsel %vm288_vm13, %v7164_v17, 0  ;;  %v7099_v55 = vpack.c.bf16 %v7091_v28, %v7091_v28 }
0x3e41   :  { %3740 = vrot.lane.b32.xlu0 %v3720_v59, %s9027_s10  ;;  %8347 = vmatprep.subr.bf16.mxu0 %v12639_v24  ;;  %v7100_v15 = vpack.c.bf16 %v7092_v21, %v7092_v21  ;;  %v3739_v26 = vpop.permute.xlu1 %3738 }
0x3e42   :  { %v11854_v53 = vpop.xlane.xlu0 %2662 }
0x3e43   :  { %8332 = vmatmul.mubr.msk.bf16.vlgmr.msra.gmra.mrb[88].mxu1 %vm288_vm13, %v7097_v62  ;;  %v11856_v12 = vpop.eup %8626 }
0x3e44   :  { %8342 = vmatpush3.bf16.xpose.msra.mxu1 %v7445_v60  ;;  %8343 = vmatprep.mubr.msk.bf16.mxu1 %vm9021_vm0, %v12639_v24  ;;  %v1598_v18 = vrot.slane %v11856_v12, %v9445_v56  ;;  %v3765_v60 = vsel %vm288_vm13, %v3739_v26, 0.0 }
0x3e45   :  { %3744 = vrot.lane.b32.xlu0 %v3722_v0, %s9027_s10  ;;  %v3743_v59 = vpop.permute.xlu1 %3742 }
0x3e46   :  { %v2669_v3 = vpop.xlane.xlu0 %2668  ;;  %v1617_v47 = vmul.f32 %v1598_v18, %v11649_v37  ;;  %v3771_v37 = vsel %vm288_vm13, %v3743_v59, 0.0  ;;  %v12789_v18 = vld [vmem:[#allocation76_spill] sm:$0xff] }
0x3e47   :  { %8338 = vmatmul.mubr.msk.bf16.vlgmr.msra.gmra.mrb[88].mxu0 %vm288_vm13, %v7098_v35 }
0x3e48   :  { %8348 = vmatpush3.bf16.xpose.msra.mxu0 %v7491_v49  ;;  %8349 = vmatprep.mubr.msk.bf16.mxu0 %vm9021_vm0, %v12639_v24  ;;  %v1625_v22 = vmul.f32 %v11831_v5, %v1617_v47  ;;  %v12791_v47 = vld [vmem:[#allocation71_spill] sm:$0xff] }
0x3e49   :  { %v3747_v28 = vpop.permute.xlu1 %3746  ;;  %v4890_v59 = vmul.f32 %v12791_v47, %v12791_v47 }
0x3e4b   :  { %8344 = vmatmul.mubr.msk.bf16.vlgmr.msra.gmra.mrb[92].mxu1 %vm288_vm13, %v7099_v55  ;;  %v1633_v55 = vmax.f32 %v1625_v22, -2.0  ;;  %v12793_v22 = vld [vmem:[#allocation69_spill] sm:$0xff] }
0x3e4f   :  { %8350 = vmatmul.mubr.msk.bf16.vlgmr.msra.gmra.mrb[92].mxu0 %vm288_vm13, %v7100_v15  ;;  %v3777_v15 = vsel %vm288_vm13, %v3747_v28, 0.0 }
0x3eb4   :  { %v2677_v50 = vpop.xlane.xlu0 %2676 }
0x3eb5   :  { %v2678_v24 = vmax.f32 %v2677_v50, 1e-16  ;;  %v3780_v50 = vmul.f32 %v12785_v14, %v12785_v14 }
0x3eb7   :  { %8628 = vrsqrt.f32 %v2678_v24  ;;  %v12786_v24 = vld [vmem:[#allocation73_spill] sm:$0xff] }
0x3eb8   :  { %v3733_v6 = vpop.permute.xlu0 %3732 }
0x3eb9   :  { %v3756_v52 = vsel %vm288_vm13, %v3733_v6, 0.0 }
0x3eba   :  { %3757 = vadd.xlane.f32.xlu0 %v3756_v52  ;;  %v12788_v52 = vld [vmem:[#allocation75_spill] sm:$0xff] }
0x3ebb   :  { %v4829_v26 = vmul.f32 %v12788_v52, %v11578_v7 }
0x3ebc   :  { %v3741_v41 = vpop.permute.xlu0 %3740 }
0x3ebd   :  { %v3768_v23 = vsel %vm288_vm13, %v3741_v41, 0.0  ;;  %v4831_v41 = vmul.f32 %v12789_v18, %v11588_v43 }
0x3ebe   :  { %3769 = vadd.xlane.f32.xlu1 %v3768_v23  ;;  %3763 = vadd.xlane.f32.xlu0 %v3762_v11  ;;  %v12790_v11 = vld [vmem:[#allocation78_spill] sm:$0xff] }
0x3ebf   :  { %v4833_v23 = vmul.f32 %v12790_v11, %v11596_v4 }
0x3ec0   :  { %v3745_v19 = vpop.permute.xlu0 %3744 }
0x3ec1   :  { %v11864_v62 = vpop.eup %8628  ;;  %v3774_v34 = vsel %vm288_vm13, %v3745_v19, 0.0  ;;  %v12792_v19 = vld [vmem:[#allocation58_spill] sm:$0xff] }
0x3ec2   :  { %3775 = vadd.xlane.f32.xlu1 %v3774_v34  ;;  %3766 = vadd.xlane.f32.xlu0 %v3765_v60  ;;  %v2708_v0 = vrot.slane %v11864_v62, %v9445_v56  ;;  %v2712_v17 = vrot.slane %v11864_v62, %v9450_v58  ;;  %v6000_v60 = vmul.f32 %v12792_v19, %v12792_v19 }
0x3ec3   :  { %v6994_v34 = vmul.f32 %v11271_v30, %v11271_v30 }
0x3ec4   :  { %v2727_v35 = vmul.f32 %v2708_v0, %v11764_v61  ;;  %v11875_v49 = vmul.f32 %v2712_v17, %v2669_v3  ;;  %v4827_v61 = vmul.f32 %v12786_v24, %v11553_v48  ;;  %v12787_v3 = vld [vmem:[#allocation74_spill] sm:$0xff]  ;;  %v5937_v0 = vmul.f32 %v12793_v22, %v11553_v48  ;;  %v12794_v17 = vld [vmem:[#allocation80_spill] sm:$0xff] }
0x3ec5   :  { %v4828_v6 = vmul.f32 %v12787_v3, %v11573_v57 }
0x3ec6   :  { %3772 = vadd.xlane.f32.xlu0 %v3771_v37  ;;  %v2735_v21 = vmul.f32 %v11831_v5, %v2727_v35  ;;  %v5940_v37 = vmul.f32 %v12794_v17, %v11571_v45  ;;  %v12795_v35 = vld [vmem:[#allocation83_spill] sm:$0xff] }
0x3ec7   :  { %v5941_v28 = vmul.f32 %v12795_v35, %v11588_v43 }
0x3ec8   :  { %v11879_v2 = vmax.f32 %v1633_v55, %v2735_v21  ;;  %v12796_v55 = vld [vmem:[#allocation82_spill] sm:$0xff]  ;;  %v12797_v21 = vld [vmem:[#allocation84_spill] sm:$0xff] }
0x3ec9   :  { %v5942_v30 = vmul.f32 %v12796_v55, %v11584_v20 }
0x3eca   :  { %3778 = vadd.xlane.f32.xlu0 %v3777_v15  ;;  %v5943_v15 = vmul.f32 %v12797_v21, %v11596_v4  ;;  %v12815_v4 = vld [vmem:[#allocation33_spill] sm:$0xff] }
0x3ed3   :  { %3782 = vrot.lane.b32.xlu1 %v3780_v50, %s9027_s10 }
0x3ed7   :  { %4844 = vrot.lane.b32.xlu1 %v4827_v61, %s9027_s10 }
0x3edb   :  { %4846 = vrot.lane.b32.xlu1 %v4828_v6, %s9027_s10 }
0x3edf   :  { %4848 = vrot.lane.b32.xlu1 %v4829_v26, %s9027_s10 }
0x3ee3   :  { %4852 = vrot.lane.b32.xlu1 %v4831_v41, %s9027_s10 }
0x3ee7   :  { %4856 = vrot.lane.b32.xlu1 %v4833_v23, %s9027_s10 }
0x3eeb   :  { %4892 = vrot.lane.b32.xlu1 %v4890_v59, %s9027_s10 }
0x3eef   :  { %6002 = vrot.lane.b32.xlu1 %v6000_v60, %s9027_s10 }
0x3ef3   :  { %6996 = vrot.lane.b32.xlu1 %v6994_v34, %s9027_s10 }
0x3ef7   :  { %5954 = vrot.lane.b32.xlu1 %v5937_v0, %s9027_s10 }
0x3efb   :  { %5960 = vrot.lane.b32.xlu1 %v5940_v37, %s9027_s10 }
0x3eff   :  { %5962 = vrot.lane.b32.xlu1 %v5941_v28, %s9027_s10 }
0x3f03   :  { %5964 = vrot.lane.b32.xlu1 %v5942_v30, %s9027_s10 }
0x3f07   :  { %5966 = vrot.lane.b32.xlu1 %v5943_v15, %s9027_s10 }
0x3f0a   :  { %v11923_v14 = vpop.f32.mrb[80].mxu0 }
0x3f0b   :  { %12798 = vst [vmem:[#allocation34_spill] sm:$0xff] %v11923_v14  ;;  %v8315_v50 = vpop.f32.mrb[81].mxu0  ;;  %v2700_v14 = vrot.slane %v11864_v62, %v9340_v36 }
0x3f0c   :  { %v7254_v24 = vpop.f32.mrb[82].mxu0 }
0x3f0d   :  { %v8316_v61 = vpop.f32.mrb[83].mxu0  ;;  %v6868_v24 = vsel %vm1268_vm11, %v11694_v63, -inf  ;;  %v2692_v63 = vrot.slane %v11864_v62, %v9333_v32 }
0x3f0e   :  { %v11925_v3 = vpop.f32.mrb[84].mxu1  ;;  %v6936_v61 = vmul.f32 %v11326_v8, %v11584_v20  ;;  %v12808_v8 = vld [vmem:[#allocation72_spill] sm:$0xff] }
0x3f0f   :  { %12799 = vst [vmem:[#allocation37_spill] sm:$0xff] %v11925_v3  ;;  %v8321_v6 = vpop.f32.mrb[85].mxu1 }
0x3f10   :  { %v7300_v52 = vpop.f32.mrb[86].mxu1  ;;  %v11942_v6 = vpop.xlane.xlu1 %3760 }
0x3f11   :  { %v8322_v26 = vpop.f32.mrb[87].mxu1 }
0x3f12   :  { %v11927_v18 = vpop.f32.mrb[84].mxu0 }
0x3f13   :  { %12800 = vst [vmem:[#allocation35_spill] sm:$0xff] %v11927_v18  ;;  %v8327_v41 = vpop.f32.mrb[85].mxu0 }
0x3f14   :  { %v7346_v11 = vpop.f32.mrb[86].mxu0 }
0x3f15   :  { %v8328_v23 = vpop.f32.mrb[87].mxu0 }
0x3f16   :  { %v11929_v47 = vpop.f32.mrb[88].mxu1 }
0x3f17   :  { %12801 = vst [vmem:[#allocation39_spill] sm:$0xff] %v11929_v47  ;;  %v8333_v59 = vpop.f32.mrb[89].mxu1 }
0x3f18   :  { %v7392_v19 = vpop.f32.mrb[90].mxu1 }
0x3f19   :  { %v8334_v60 = vpop.f32.mrb[91].mxu1 }
0x3f1a   :  { %v11931_v34 = vpop.f32.mrb[88].mxu0 }
0x3f1b   :  { %12802 = vst [vmem:[#allocation36_spill] sm:$0xff] %v11931_v34  ;;  %v8339_v22 = vpop.f32.mrb[89].mxu0  ;;  %v2684_v34 = vrot.slane %v11864_v62, %v9343_v38 }
0x3f1c   :  { %v7438_v0 = vpop.f32.mrb[90].mxu0 }
0x3f1d   :  { %v8340_v17 = vpop.f32.mrb[91].mxu0  ;;  %v4826_v0 = vmul.f32 %v12808_v8, %v11566_v9 }
0x3f1e   :  { %v11933_v37 = vpop.f32.mrb[92].mxu1 }
0x3f1f   :  { %12803 = vst [vmem:[#allocation38_spill] sm:$0xff] %v11933_v37  ;;  %v8345_v35 = vpop.f32.mrb[93].mxu1 }
0x3f20   :  { %v7484_v28 = vpop.f32.mrb[94].mxu1 }
0x3f21   :  { %v8346_v55 = vpop.f32.mrb[95].mxu1  ;;  %v12809_v28 = vld [vmem:[#allocation77_spill] sm:$0xff] }
0x3f22   :  { %v11935_v30 = vpop.f32.mrb[92].mxu0  ;;  %v4830_v55 = vmul.f32 %v12809_v28, %v11571_v45  ;;  %v1578_v28 = vrot.slane %v11856_v12, %v9330_v31  ;;  %v12816_v45 = vld [vmem:[#allocation86_spill] sm:$0xff] }
0x3f23   :  { %12804 = vst [vmem:[#allocation31_spill] sm:$0xff] %v11935_v30  ;;  %v8351_v21 = vpop.f32.mrb[93].mxu0  ;;  %v2696_v30 = vrot.slane %v11864_v62, %v9351_v42 }
0x3f24   :  { %v7530_v15 = vpop.f32.mrb[94].mxu0  ;;  %v1612_v37 = vmul.f32 %v1578_v28, %v11645_v29  ;;  %v2721_v29 = vmul.f32 %v2684_v34, %v12816_v45  ;;  %v12817_v28 = vld [vmem:[#allocation85_spill] sm:$0xff] }
0x3f25   :  { %v8352_v50 = vpop.f32.mrb[95].mxu0 }
0x3f26   :  { %v12811_v50 = vld [vmem:[#allocation79_spill] sm:$0xff] }
0x3f2b   :  { %6869 = vmax.xlane.f32.xlu1 %v6868_v24  ;;  %v4832_v24 = vmul.f32 %v12811_v50, %v11584_v20  ;;  %v1590_v50 = vrot.slane %v11856_v12, %v9340_v36 }
0x3f3c   :  { %6958 = vrot.lane.b32.xlu1 %v6936_v61, %s9027_s10 }
0x3f4b   :  { %v11944_v52 = vpop.xlane.xlu1 %3769 }
0x3f4f   :  { %v11946_v26 = vpop.xlane.xlu1 %3775 }
0x3f53   :  { %v3783_v41 = vpop.permute.xlu1 %3782 }
0x3f54   :  { %v3785_v11 = vsel %vm288_vm13, %v3783_v41, 0.0 }
0x3f55   :  { %3786 = vadd.xlane.f32.xlu0 %v3785_v11 }
0x3f57   :  { %v4845_v23 = vpop.permute.xlu1 %4844 }
0x3f58   :  { %v4869_v15 = vsel %vm288_vm13, %v4845_v23, 0.0 }
0x3f5b   :  { %v11949_v59 = vpop.permute.xlu1 %4846 }
0x3f5c   :  { %12805 = vst [vmem:[#allocation49_spill] sm:$0xff] %v11949_v59  ;;  %v12814_v59 = vld [vmem:[#allocation57_spill] sm:$0xff] }
0x3f5f   :  { %v4849_v19 = vpop.permute.xlu1 %4848 }
0x3f60   :  { %v4875_v41 = vsel %vm288_vm13, %v4849_v19, 0.0  ;;  %v1586_v19 = vrot.slane %v11856_v12, %v9351_v42 }
0x3f62   :  { %v1614_v47 = vmul.f32 %v1586_v19, %v11700_v40  ;;  %v12818_v19 = vld [vmem:[#allocation87_spill] sm:$0xff] }
0x3f63   :  { %v11951_v60 = vpop.permute.xlu1 %4852 }
0x3f64   :  { %12806 = vst [vmem:[#allocation50_spill] sm:$0xff] %v11951_v60 }
0x3f67   :  { %v11953_v22 = vpop.permute.xlu1 %4856 }
0x3f68   :  { %12807 = vst [vmem:[#allocation52_spill] sm:$0xff] %v11953_v22  ;;  %v12813_v22 = vld [vmem:[#allocation56_spill] sm:$0xff] }
0x3f6b   :  { %4842 = vrot.lane.b32.xlu0 %v4826_v0, %s9027_s10  ;;  %v4893_v17 = vpop.permute.xlu1 %4892  ;;  %v11972_v0 = vpop.xlane.xlu0 %3757 }
0x3f6c   :  { %v4895_v35 = vsel %vm288_vm13, %v4893_v17, 0.0 }
0x3f6d   :  { %4896 = vadd.xlane.f32.xlu1 %v4895_v35 }
0x3f6f   :  { %4850 = vrot.lane.b32.xlu0 %v4830_v55, %s9027_s10  ;;  %v11962_v21 = vpop.permute.xlu1 %6002  ;;  %v11974_v17 = vpop.xlane.xlu0 %3763  ;;  %v1574_v55 = vrot.slane %v11856_v12, %v9343_v38 }
0x3f70   :  { %12810 = vst [vmem:[#allocation53_spill] sm:$0xff] %v11962_v21 }
0x3f71   :  { %4870 = vadd.xlane.f32.xlu1 %v4869_v15  ;;  %v1582_v15 = vrot.slane %v11856_v12, %v9333_v32  ;;  %v1611_v3 = vmul.f32 %v1574_v55, %v11686_v13  ;;  %v2723_v13 = vmul.f32 %v2692_v63, %v12817_v28 }
0x3f73   :  { %4854 = vrot.lane.b32.xlu0 %v4832_v24, %s9027_s10  ;;  %v11968_v61 = vpop.permute.xlu1 %6996  ;;  %v11976_v23 = vpop.xlane.xlu0 %3766  ;;  %v1594_v24 = vrot.slane %v11856_v12, %v9356_v44  ;;  %v1613_v1 = vmul.f32 %v1582_v15, %v11696_v54  ;;  %v2725_v54 = vmul.f32 %v2700_v14, %v12818_v19 }
0x3f74   :  { %12812 = vst [vmem:[#allocation55_spill] sm:$0xff] %v11968_v61 }
0x3f75   :  { %4876 = vadd.xlane.f32.xlu1 %v4875_v41  ;;  %v1602_v41 = vrot.slane %v11856_v12, %v9450_v58  ;;  %v2704_v12 = vrot.slane %v11864_v62, %v9356_v44  ;;  %v1616_v60 = vmul.f32 %v1594_v24, %v12813_v22  ;;  %v12819_v22 = vld [vmem:[#allocation41_spill] sm:$0xff] }
0x3f76   :  { %v1619_v55 = vmul.f32 %v12819_v22, %v1611_v3 }
0x3f77   :  { %v5955_v11 = vpop.permute.xlu1 %5954  ;;  %v11978_v35 = vpop.xlane.xlu0 %3772  ;;  %v1618_v61 = vmul.f32 %v1602_v41, %v12814_v59  ;;  %v1622_v59 = vmul.f32 %v11793_v33, %v1614_v47  ;;  %v1624_v45 = vmul.f32 %v11817_v27, %v1616_v60  ;;  %v2733_v47 = vmul.f32 %v11801_v39, %v2725_v54 }
0x3f78   :  { %v5979_v8 = vsel %vm288_vm13, %v5955_v11, 0.0  ;;  %v1627_v60 = vmax.f32 %v1619_v55, -2.0 }
0x3f79   :  { %5980 = vadd.xlane.f32.xlu1 %v5979_v8  ;;  %v2688_v8 = vrot.slane %v11864_v62, %v9330_v31  ;;  %v2724_v62 = vmul.f32 %v2696_v30, %v11851_v10  ;;  %v1626_v34 = vmul.f32 %v11841_v25, %v1618_v61 }
0x3f7b   :  { %v11980_v20 = vpop.xlane.xlu0 %3778  ;;  %v2722_v43 = vmul.f32 %v2688_v8, %v12815_v4  ;;  %v1621_v4 = vmul.f32 %v11782_v16, %v1613_v1  ;;  %v2732_v14 = vmul.f32 %v11793_v33, %v2724_v62  ;;  %v2736_v1 = vmul.f32 %v11841_v25, %v11875_v49 }
0x3f7d   :  { %v2730_v63 = vmul.f32 %v11776_v46, %v2722_v43  ;;  %v1629_v15 = vmax.f32 %v1621_v4, -2.0  ;;  %v1634_v43 = vmax.f32 %v1626_v34, -2.0 }
0x3f7f   :  { %v12049_v49 = vmax.f32 %v1634_v43, %v2736_v1  ;;  %v12821_v43 = vld [vmem:[#allocation70_spill] sm:$0xff] }
0x3fe2   :  { %v3787_v11 = vpop.xlane.xlu0 %3786 }
0x3fe3   :  { %v3788_v18 = vmax.f32 %v3787_v11, 1e-16  ;;  %v1615_v11 = vmul.f32 %v1590_v50, %v11647_v51  ;;  %v1620_v51 = vmul.f32 %v11776_v46, %v1612_v37  ;;  %v2731_v37 = vmul.f32 %v11782_v16, %v2723_v13 }
0x3fe4   :  { %v1632_v50 = vmax.f32 %v1624_v45, -2.0 }
0x3fe5   :  { %8630 = vrsqrt.f32 %v3788_v18  ;;  %v2726_v18 = vmul.f32 %v2704_v12, %v11854_v53  ;;  %v1623_v10 = vmul.f32 %v11801_v39, %v1615_v11  ;;  %v2729_v53 = vmul.f32 %v12819_v22, %v2721_v29 }
0x3fe6   :  { %v4843_v21 = vpop.permute.xlu0 %4842  ;;  %v1628_v30 = vmax.f32 %v1620_v51, -2.0  ;;  %v12043_v11 = vmax.f32 %v1629_v15, %v2731_v37 }
0x3fe7   :  { %v4866_v40 = vsel %vm288_vm13, %v4843_v21, 0.0  ;;  %v2734_v3 = vmul.f32 %v11817_v27, %v2726_v18  ;;  %v1630_v21 = vmax.f32 %v1622_v59, -2.0  ;;  %v1631_v61 = vmax.f32 %v1623_v10, -2.0 }
0x3fe8   :  { %4867 = vadd.xlane.f32.xlu0 %v4866_v40  ;;  %v12037_v24 = vmax.f32 %v1628_v30, %v2730_v63  ;;  %v12041_v8 = vmax.f32 %v1627_v60, %v2729_v53 }
0x3fe9   :  { %v12039_v41 = vmax.f32 %v1630_v21, %v2732_v14  ;;  %v12045_v62 = vmax.f32 %v1631_v61, %v2733_v47  ;;  %v12047_v29 = vmax.f32 %v1632_v50, %v2734_v3  ;;  %v12820_v61 = vld [vmem:[#allocation68_spill] sm:$0xff] }
0x3fea   :  { %v5936_v50 = vmul.f32 %v12820_v61, %v11566_v9  ;;  %v12834_v61 = vld [vmem:[#allocation55_spill] sm:$0xff] }
0x3fef   :  { %v8631_v12 = vpop.eup %8630 }
0x3ff0   :  { %v3798_v40 = vrot.slane %v8631_v12, %v9330_v31  ;;  %v3806_v28 = vrot.slane %v8631_v12, %v9351_v42  ;;  %v3794_v13 = vrot.slane %v8631_v12, %v9343_v38  ;;  %v3802_v19 = vrot.slane %v8631_v12, %v9333_v32 }
0x3ff1   :  { %v3810_v54 = vrot.slane %v8631_v12, %v9340_v36  ;;  %v3814_v18 = vrot.slane %v8631_v12, %v9356_v44  ;;  %v3818_v51 = vrot.slane %v8631_v12, %v9445_v56  ;;  %v3822_v59 = vrot.slane %v8631_v12, %v9450_v58  ;;  %v12822_v12 = vld [vmem:[#allocation81_spill] sm:$0xff] }
0x3ff2   :  { %v3832_v55 = vmul.f32 %v3798_v40, %v11942_v6  ;;  %v3834_v4 = vmul.f32 %v3806_v28, %v11976_v23  ;;  %v3831_v10 = vmul.f32 %v3794_v13, %v11972_v0  ;;  %v3833_v45 = vmul.f32 %v3802_v19, %v11974_v17  ;;  %v12823_v28 = vld [vmem:[#allocation88_spill] sm:$0xff]  ;;  %v12824_v19 = vld [vmem:[#allocation89_spill] sm:$0xff] }
0x3ff3   :  { %v3835_v34 = vmul.f32 %v3810_v54, %v11944_v52  ;;  %v3836_v63 = vmul.f32 %v3814_v18, %v11978_v35  ;;  %v3837_v14 = vmul.f32 %v3818_v51, %v11946_v26  ;;  %v3838_v53 = vmul.f32 %v3822_v59, %v11980_v20  ;;  %v12825_v18 = vld [vmem:[#allocation90_spill] sm:$0xff]  ;;  %v12826_v59 = vld [vmem:[#allocation91_spill] sm:$0xff] }
0x3ff4   :  { %v12068_v37 = vmul.f32 %v11776_v46, %v3832_v55  ;;  %v12071_v47 = vmul.f32 %v11793_v33, %v3834_v4  ;;  %v3839_v6 = vmul.f32 %v12819_v22, %v3831_v10  ;;  %v12075_v0 = vmul.f32 %v11782_v16, %v3833_v45  ;;  %v12827_v4 = vld [vmem:[#allocation40_spill] sm:$0xff]  ;;  %v12828_v10 = vld [vmem:[#allocation93_spill] sm:$0xff]  ;;  %v12829_v45 = vld [vmem:[#allocation43_spill] sm:$0xff] }
0x3ff5   :  { %v12078_v17 = vmul.f32 %v11801_v39, %v3835_v34  ;;  %v12081_v52 = vmul.f32 %v11817_v27, %v3836_v63  ;;  %v12084_v26 = vmul.f32 %v11831_v5, %v3837_v14  ;;  %v12087_v23 = vmul.f32 %v11841_v25, %v3838_v53  ;;  %v12830_v34 = vld [vmem:[#allocation92_spill] sm:$0xff]  ;;  %v12831_v63 = vld [vmem:[#allocation42_spill] sm:$0xff]  ;;  %v12833_v53 = vld [vmem:[#allocation53_spill] sm:$0xff] }
0x3ff6   :  { %v3848_v35 = vmax.f32 %v12037_v24, %v12068_v37  ;;  %v3847_v3 = vmax.f32 %v12041_v8, %v3839_v6  ;;  %v3849_v1 = vmax.f32 %v12043_v11, %v12075_v0  ;;  %v5938_v8 = vmul.f32 %v12821_v43, %v11573_v57  ;;  %v12832_v14 = vld [vmem:[#allocation94_spill] sm:$0xff]  ;;  %v5961_v6 = vpop.permute.xlu1 %5960 }
0x3ff7   :  { %v5939_v40 = vmul.f32 %v12822_v12, %v11578_v7  ;;  %v6930_v13 = vmul.f32 %v12823_v28, %v11566_v9  ;;  %v6931_v54 = vmul.f32 %v12824_v19, %v11553_v48  ;;  %v6932_v51 = vmul.f32 %v12825_v18, %v11573_v57 }
0x3ff8   :  { %v6933_v55 = vmul.f32 %v12826_v59, %v11578_v7  ;;  %v6934_v9 = vmul.f32 %v12828_v10, %v12827_v4  ;;  %v6935_v48 = vmul.f32 %v12830_v34, %v12829_v45  ;;  %v6937_v57 = vmul.f32 %v12832_v14, %v12831_v63 }
0x3ff9   :  { %v6005_v7 = vsel %vm288_vm13, %v12833_v53, 0.0 }
0x3ffa   :  { %v5963_v43 = vpop.permute.xlu1 %5962 }
0x3ffe   :  { %5952 = vrot.lane.b32.xlu0 %v5936_v50, %s9027_s10  ;;  %v6999_v50 = vsel %vm288_vm13, %v12834_v61, 0.0  ;;  %v12836_v61 = vld [vmem:[#allocation50_spill] sm:$0xff] }
0x4002   :  { %5956 = vrot.lane.b32.xlu0 %v5938_v8, %s9027_s10  ;;  %v12835_v8 = vld [vmem:[#allocation49_spill] sm:$0xff] }
0x4003   :  { %v4872_v12 = vsel %vm288_vm13, %v12835_v8, 0.0 }
0x4006   :  { %5958 = vrot.lane.b32.xlu0 %v5939_v40, %s9027_s10  ;;  %v5965_v40 = vpop.permute.xlu1 %5964 }
0x400a   :  { %6946 = vrot.lane.b32.xlu0 %v6930_v13, %s9027_s10  ;;  %v5967_v28 = vpop.permute.xlu1 %5966 }
0x400e   :  { %6948 = vrot.lane.b32.xlu0 %v6931_v54, %s9027_s10  ;;  %v12140_v13 = vpop.xlane.xlu1 %6869 }
0x4012   :  { %6950 = vrot.lane.b32.xlu0 %v6932_v51, %s9027_s10  ;;  %v6959_v19 = vpop.permute.xlu1 %6958  ;;  %v4851_v51 = vpop.permute.xlu0 %4850 }
0x4016   :  { %6952 = vrot.lane.b32.xlu0 %v6933_v55, %s9027_s10  ;;  %v4897_v54 = vpop.xlane.xlu1 %4896  ;;  %v4855_v55 = vpop.permute.xlu0 %4854 }
0x4017   :  { %v4898_v18 = vmax.f32 %v4897_v54, 1e-16 }
0x4019   :  { %8632 = vrsqrt.f32 %v4898_v18  ;;  %v4884_v18 = vsel %vm288_vm13, %v4855_v55, 0.0 }
0x401a   :  { %6954 = vrot.lane.b32.xlu0 %v6934_v9, %s9027_s10 }
0x401e   :  { %6956 = vrot.lane.b32.xlu0 %v6935_v48, %s9027_s10 }
0x4022   :  { %6960 = vrot.lane.b32.xlu0 %v6937_v57, %s9027_s10  ;;  %v4878_v57 = vsel %vm288_vm13, %v4851_v51, 0.0 }
0x4023   :  { %v12142_v59 = vpop.eup %8632 }
0x4024   :  { %v4904_v4 = vrot.slane %v12142_v59, %v9343_v38 }
0x4041   :  { %6006 = vadd.xlane.f32.xlu0 %v6005_v7 }
0x4045   :  { %7000 = vadd.xlane.f32.xlu0 %v6999_v50  ;;  %v4881_v50 = vsel %vm288_vm13, %v12836_v61, 0.0 }
0x4049   :  { %4873 = vadd.xlane.f32.xlu0 %v4872_v12 }
0x4075   :  { %v4868_v10 = vpop.xlane.xlu0 %4867 }
0x4076   :  { %v4941_v9 = vmul.f32 %v4904_v4, %v4868_v10  ;;  %v5988_v10 = vsel %vm288_vm13, %v5961_v6, 0.0 }
0x4078   :  { %v4949_v45 = vmul.f32 %v12819_v22, %v4941_v9 }
0x4079   :  { %v5953_v34 = vpop.permute.xlu0 %5952 }
0x407a   :  { %v12147_v48 = vmax.f32 %v3847_v3, %v4949_v45  ;;  %v5976_v63 = vsel %vm288_vm13, %v5953_v34, 0.0  ;;  %v12837_v34 = vld [vmem:[#allocation52_spill] sm:$0xff] }
0x407b   :  { %5977 = vadd.xlane.f32.xlu0 %v5976_v63  ;;  %v4887_v63 = vsel %vm288_vm13, %v12837_v34, 0.0 }
0x407d   :  { %v5957_v14 = vpop.permute.xlu0 %5956 }
0x407e   :  { %v5982_v53 = vsel %vm288_vm13, %v5957_v14, 0.0  ;;  %v5991_v14 = vsel %vm288_vm13, %v5963_v43, 0.0 }
0x407f   :  { %4879 = vadd.xlane.f32.xlu0 %v4878_v57  ;;  %5983 = vadd.xlane.f32.xlu1 %v5982_v53  ;;  %v5994_v57 = vsel %vm288_vm13, %v5965_v40, 0.0 }
0x4081   :  { %v5959_v7 = vpop.permute.xlu0 %5958 }
0x4082   :  { %v5985_v8 = vsel %vm288_vm13, %v5959_v7, 0.0  ;;  %v5997_v7 = vsel %vm288_vm13, %v5967_v28, 0.0 }
0x4083   :  { %4882 = vadd.xlane.f32.xlu0 %v4881_v50  ;;  %5986 = vadd.xlane.f32.xlu1 %v5985_v8  ;;  %v6988_v50 = vsel %vm288_vm13, %v6959_v19, 0.0  ;;  %v12841_v19 = vld [vmem:[#allocation38_spill] sm:$0xff] }
0x4085   :  { %v6947_v3 = vpop.permute.xlu0 %6946 }
0x4086   :  { %v6970_v12 = vsel %vm288_vm13, %v6947_v3, 0.0  ;;  %v12838_v3 = vld [vmem:[#allocation32_spill] sm:$0xff] }
0x4087   :  { %6971 = vadd.xlane.f32.xlu0 %v6970_v12  ;;  %v7533_v12 = vsel %vm749_vm9, %v12838_v3, -inf }
0x4089   :  { %v6949_v54 = vpop.permute.xlu0 %6948 }
0x408a   :  { %v6973_v51 = vsel %vm288_vm13, %v6949_v54, 0.0  ;;  %v12839_v54 = vld [vmem:[#allocation37_spill] sm:$0xff] }
0x408b   :  { %4885 = vadd.xlane.f32.xlu0 %v4884_v18  ;;  %6974 = vadd.xlane.f32.xlu1 %v6973_v51  ;;  %v7539_v28 = vsel %vm749_vm9, %v12839_v54, -inf  ;;  %v12840_v18 = vld [vmem:[#allocation39_spill] sm:$0xff] }
0x408c   :  { %v7545_v51 = vsel %vm749_vm9, %v12840_v18, -inf }
0x408d   :  { %v6951_v4 = vpop.permute.xlu0 %6950 }
0x408e   :  { %v6976_v9 = vsel %vm288_vm13, %v6951_v4, 0.0  ;;  %v7551_v4 = vsel %vm749_vm9, %v12841_v19, -inf }
0x408f   :  { %6977 = vadd.xlane.f32.xlu0 %v6976_v9  ;;  %5989 = vadd.xlane.f32.xlu1 %v5988_v10 }
0x4091   :  { %v6953_v45 = vpop.permute.xlu0 %6952 }
0x4092   :  { %v6979_v53 = vsel %vm288_vm13, %v6953_v45, 0.0  ;;  %v4871_v45 = vpop.xlane.xlu1 %4870 }
0x4093   :  { %5992 = vadd.xlane.f32.xlu0 %v5991_v14  ;;  %4888 = vadd.xlane.f32.xlu1 %v4887_v63 }
0x4095   :  { %v6955_v55 = vpop.permute.xlu0 %6954 }
0x4096   :  { %v6982_v61 = vsel %vm288_vm13, %v6955_v55, 0.0  ;;  %v4877_v14 = vpop.xlane.xlu1 %4876 }
0x4097   :  { %5995 = vadd.xlane.f32.xlu0 %v5994_v57  ;;  %6980 = vadd.xlane.f32.xlu1 %v6979_v53 }
0x4099   :  { %v6957_v6 = vpop.permute.xlu0 %6956 }
0x409a   :  { %v6985_v43 = vsel %vm288_vm13, %v6957_v6, 0.0  ;;  %v5981_v6 = vpop.xlane.xlu1 %5980 }
0x409b   :  { %5998 = vadd.xlane.f32.xlu0 %v5997_v7  ;;  %6983 = vadd.xlane.f32.xlu1 %v6982_v61  ;;  %v4908_v7 = vrot.slane %v12142_v59, %v9330_v31 }
0x409d   :  { %v6961_v8 = vpop.permute.xlu0 %6960 }
0x409e   :  { %v6991_v40 = vsel %vm288_vm13, %v6961_v8, 0.0 }
0x409f   :  { %6986 = vadd.xlane.f32.xlu1 %v6985_v43  ;;  %6989 = vadd.xlane.f32.xlu0 %v6988_v50 }
0x40a3   :  { %6992 = vadd.xlane.f32.xlu1 %v6991_v40 }
0x40a7   :  { %7534 = vmax.xlane.f32.xlu1 %v7533_v12 }
0x40ab   :  { %7540 = vmax.xlane.f32.xlu1 %v7539_v28  ;;  %v4942_v28 = vmul.f32 %v4908_v7, %v4871_v45  ;;  %v4928_v45 = vrot.slane %v12142_v59, %v9445_v56 }
0x40af   :  { %7546 = vmax.xlane.f32.xlu1 %v7545_v51 }
0x40b3   :  { %7552 = vmax.xlane.f32.xlu1 %v7551_v4  ;;  %v4912_v4 = vrot.slane %v12142_v59, %v9333_v32 }
0x40ce   :  { %v6007_v10 = vpop.xlane.xlu0 %6006 }
0x40cf   :  { %v6008_v9 = vmax.f32 %v6007_v10, 1e-16 }
0x40d1   :  { %8634 = vrsqrt.f32 %v6008_v9 }
0x40d2   :  { %v7001_v34 = vpop.xlane.xlu0 %7000 }
0x40d3   :  { %v7002_v63 = vmax.f32 %v7001_v34, 1e-16 }
0x40d5   :  { %8636 = vrsqrt.f32 %v7002_v63  ;;  %v4950_v63 = vmul.f32 %v11776_v46, %v4942_v28 }
0x40d6   :  { %v4874_v55 = vpop.xlane.xlu0 %4873 }
0x40d7   :  { %v4943_v15 = vmul.f32 %v4912_v4, %v4874_v55  ;;  %v4958_v55 = vmax.f32 %v3848_v35, %v4950_v63 }
0x40d9   :  { %v4951_v4 = vmul.f32 %v11782_v16, %v4943_v15 }
0x40db   :  { %v12178_v53 = vpop.eup %8634  ;;  %v4959_v35 = vmax.f32 %v3849_v1, %v4951_v4 }
0x40dc   :  { %v6014_v50 = vrot.slane %v12178_v53, %v9343_v38  ;;  %v6018_v8 = vrot.slane %v12178_v53, %v9330_v31 }
0x40de   :  { %v6052_v10 = vmul.f32 %v6018_v8, %v5981_v6 }
0x40df   :  { %v12186_v12 = vpop.eup %8636 }
0x40e0   :  { %v7008_v34 = vrot.slane %v12186_v12, %v9343_v38  ;;  %v6060_v7 = vmul.f32 %v11776_v46, %v6052_v10  ;;  %v7012_v28 = vrot.slane %v12186_v12, %v9330_v31 }
0x4108   :  { %v5978_v57 = vpop.xlane.xlu0 %5977 }
0x4109   :  { %v6051_v40 = vmul.f32 %v6014_v50, %v5978_v57  ;;  %v6022_v57 = vrot.slane %v12178_v53, %v9333_v32 }
0x410b   :  { %v6059_v9 = vmul.f32 %v12819_v22, %v6051_v40 }
0x410c   :  { %v4880_v61 = vpop.xlane.xlu0 %4879  ;;  %v5984_v43 = vpop.xlane.xlu1 %5983 }
0x410d   :  { %v6067_v6 = vmax.f32 %v12147_v48, %v6059_v9  ;;  %v6053_v8 = vmul.f32 %v6022_v57, %v5984_v43  ;;  %v6068_v43 = vmax.f32 %v4958_v55, %v6060_v7 }
0x410f   :  { %v6061_v9 = vmul.f32 %v11782_v16, %v6053_v8 }
0x4110   :  { %v4883_v51 = vpop.xlane.xlu0 %4882  ;;  %v5987_v21 = vpop.xlane.xlu1 %5986 }
0x4114   :  { %v6972_v30 = vpop.xlane.xlu0 %6971 }
0x4115   :  { %v7045_v50 = vmul.f32 %v7008_v34, %v6972_v30  ;;  %v4916_v30 = vrot.slane %v12142_v59, %v9351_v42 }
0x4117   :  { %v7053_v40 = vmul.f32 %v12819_v22, %v7045_v50  ;;  %v7016_v22 = vrot.slane %v12186_v12, %v9333_v32  ;;  %v4944_v37 = vmul.f32 %v4916_v30, %v4877_v14  ;;  %v6069_v14 = vmax.f32 %v4959_v35, %v6061_v9 }
0x4118   :  { %v4886_v34 = vpop.xlane.xlu0 %4885  ;;  %v6975_v20 = vpop.xlane.xlu1 %6974  ;;  %v4924_v30 = vrot.slane %v12142_v59, %v9356_v44 }
0x4119   :  { %v7061_v10 = vmax.f32 %v6067_v6, %v7053_v40  ;;  %v4947_v60 = vmul.f32 %v4928_v45, %v4886_v34  ;;  %v7046_v48 = vmul.f32 %v7012_v28, %v6975_v20  ;;  %v6026_v20 = vrot.slane %v12178_v53, %v9351_v42 }
0x411a   :  { %v12842_v45 = vmax.f32 %v11879_v2, %v12084_v26  ;;  %v4952_v55 = vmul.f32 %v11793_v33, %v4944_v37  ;;  %v6030_v26 = vrot.slane %v12178_v53, %v9340_v36 }
0x411b   :  { %v4955_v57 = vmul.f32 %v11831_v5, %v4947_v60  ;;  %v7054_v24 = vmul.f32 %v11776_v46, %v7046_v48  ;;  %vm7069_vm0 = vcmp.lt.f32.partialorder %v7061_v10, 0.0  ;;  %v4920_v46 = vrot.slane %v12142_v59, %v9340_v36 }
0x411c   :  { %v6978_v15 = vpop.xlane.xlu0 %6977  ;;  %v5990_v63 = vpop.xlane.xlu1 %5989  ;;  %v7077_v50 = vsel %vm7069_vm0, 0.0, %v7061_v10  ;;  %v6054_v11 = vmul.f32 %v6026_v20, %v5987_v21  ;;  %v6038_v21 = vrot.slane %v12178_v53, %v9445_v56  ;;  %v4946_v10 = vmul.f32 %v4924_v30, %v4883_v51 }
0x411d   :  { %v12222_v7 = vmax.f32 %v12842_v45, %v4955_v57  ;;  %v7062_v60 = vmax.f32 %v6068_v43, %v7054_v24  ;;  %v7047_v6 = vmul.f32 %v7016_v22, %v6978_v15  ;;  %7591 = vperm.xlu1 %8376, %v7077_v50   ;;  %v4945_v1 = vmul.f32 %v4920_v46, %v4880_v61 }
0x411e   :  { %v6055_v4 = vmul.f32 %v6030_v26, %v5990_v63  ;;  %v7020_v61 = vrot.slane %v12186_v12, %v9351_v42  ;;  %v6034_v48 = vrot.slane %v12178_v53, %v9356_v44  ;;  %v12843_v57 = vmax.f32 %v12039_v41, %v12071_v47 }
0x411f   :  { %v7055_v0 = vmul.f32 %v11782_v16, %v7047_v6  ;;  %vm7070_vm13 = vcmp.lt.f32.partialorder %v7062_v60, 0.0  ;;  %v6062_v16 = vmul.f32 %v11793_v33, %v6054_v11  ;;  %v4953_v34 = vmul.f32 %v11801_v39, %v4945_v1 }
0x4120   :  { %v5993_v8 = vpop.xlane.xlu0 %5992  ;;  %v4889_v40 = vpop.xlane.xlu1 %4888  ;;  %v7078_v28 = vsel %vm7070_vm13, 0.0, %v7062_v60  ;;  %v4960_v24 = vmax.f32 %v12843_v57, %v4952_v55  ;;  %v4932_v63 = vrot.slane %v12142_v59, %v9450_v58  ;;  %v7024_v51 = vrot.slane %v12186_v12, %v9340_v36 }
0x4121   :  { %v7063_v2 = vmax.f32 %v6069_v14, %v7055_v0  ;;  %7596 = vperm.xlu0 %8377, %v7078_v28   ;;  %v6056_v15 = vmul.f32 %v6034_v48, %v5993_v8  ;;  %v6063_v20 = vmul.f32 %v11801_v39, %v6055_v4  ;;  %v12844_v41 = vmax.f32 %v12045_v62, %v12078_v17 }
0x4122   :  { %v6070_v50 = vmax.f32 %v4960_v24, %v6062_v16  ;;  %v4954_v6 = vmul.f32 %v11817_v27, %v4946_v10  ;;  %v6042_v46 = vrot.slane %v12178_v53, %v9450_v58  ;;  %v4948_v11 = vmul.f32 %v4932_v63, %v4889_v40 }
0x4123   :  { %vm7071_vm10 = vcmp.lt.f32.partialorder %v7063_v2, 0.0  ;;  %v4961_v47 = vmax.f32 %v12844_v41, %v4953_v34  ;;  %v6064_v28 = vmul.f32 %v11817_v27, %v6056_v15  ;;  %v7028_v62 = vrot.slane %v12186_v12, %v9356_v44 }
0x4124   :  { %v5996_v43 = vpop.xlane.xlu0 %5995  ;;  %v6981_v22 = vpop.xlane.xlu1 %6980  ;;  %v7079_v9 = vsel %vm7071_vm10, 0.0, %v7063_v2  ;;  %v12845_v53 = vmax.f32 %v12047_v29, %v12081_v52  ;;  %v7036_v10 = vrot.slane %v12186_v12, %v9450_v58 }
0x4125   :  { %v6057_v37 = vmul.f32 %v6038_v21, %v5996_v43  ;;  %v7048_v35 = vmul.f32 %v7020_v61, %v6981_v22  ;;  %7601 = vperm.xlu1 %8376, %v7079_v9   ;;  %v6071_v17 = vmax.f32 %v4961_v47, %v6063_v20  ;;  %v4956_v21 = vmul.f32 %v11841_v25, %v4948_v11  ;;  %v12850_v20 = vld [vmem:[#allocation44_spill] sm:$0xff] }
0x4126   :  { %v4962_v40 = vmax.f32 %v12845_v53, %v4954_v6  ;;  %v12846_v22 = vmax.f32 %v12049_v49, %v12087_v23  ;;  %v12848_v49 = vld [vmem:[#allocation67_spill] sm:$0xff] }
0x4127   :  { %v6065_v45 = vmul.f32 %v11831_v5, %v6057_v37  ;;  %v7056_v60 = vmul.f32 %v11793_v33, %v7048_v35  ;;  %v7032_v33 = vrot.slane %v12186_v12, %v9445_v56  ;;  %vm6871_vm13 = vcmp.eq.f32.partialorder %v12848_v49, %v12140_v13  ;;  %v12849_v23 = vld [vmem:[#allocation35_spill] sm:$0xff] }
0x4128   :  { %v5999_v59 = vpop.xlane.xlu0 %5998  ;;  %v6984_v14 = vpop.xlane.xlu1 %6983  ;;  %v6072_v34 = vmax.f32 %v4962_v40, %v6064_v28  ;;  %v4964_v9 = vmax.f32 %v12846_v22, %v4956_v21  ;;  %v12852_v6 = vld [vmem:[#allocation31_spill] sm:$0xff] }
0x4129   :  { %v6073_v0 = vmax.f32 %v12222_v7, %v6065_v45  ;;  %v7064_v1 = vmax.f32 %v6070_v50, %v7056_v60  ;;  %v7049_v8 = vmul.f32 %v7024_v51, %v6984_v14  ;;  %v6058_v55 = vmul.f32 %v6042_v46, %v5999_v59  ;;  %v12851_v60 = vld [vmem:[#allocation36_spill] sm:$0xff] }
0x412a   :  { %v7542_v50 = vsel %vm749_vm9, %v12849_v23, -inf  ;;  %v6872_v45 = vsel %vm6871_vm13, %v12850_v20, 12  ;;  %v7548_v41 = vsel %vm749_vm9, %v12851_v60, -inf  ;;  %v7554_v46 = vsel %vm749_vm9, %v12852_v6, -inf }
0x412b   :  { %v7057_v2 = vmul.f32 %v11801_v39, %v7049_v8  ;;  %vm7072_vm1 = vcmp.lt.f32.partialorder %v7064_v1, 0.0  ;;  %v6066_v39 = vmul.f32 %v11841_v25, %v6058_v55 }
0x412c   :  { %v6990_v7 = vpop.xlane.xlu0 %6989  ;;  %v6987_v26 = vpop.xlane.xlu1 %6986  ;;  %v7080_v30 = vsel %vm7072_vm1, 0.0, %v7064_v1 }
0x412d   :  { %v7065_v16 = vmax.f32 %v6071_v17, %v7057_v2  ;;  %v7051_v4 = vmul.f32 %v7032_v33, %v6990_v7  ;;  %v7050_v61 = vmul.f32 %v7028_v62, %v6987_v26  ;;  %7606 = vperm.xlu1 %8376, %v7080_v30   ;;  %v6074_v35 = vmax.f32 %v4964_v9, %v6066_v39 }
0x412f   :  { %v7059_v48 = vmul.f32 %v11831_v5, %v7051_v4  ;;  %v7058_v29 = vmul.f32 %v11817_v27, %v7050_v61  ;;  %vm7073_vm14 = vcmp.lt.f32.partialorder %v7065_v16, 0.0  ;;  %v12847_v5 = vld [vmem:[#allocation34_spill] sm:$0xff] }
0x4130   :  { %v6993_v52 = vpop.xlane.xlu1 %6992  ;;  %v7081_v43 = vsel %vm7073_vm14, 0.0, %v7065_v16  ;;  %v7536_v51 = vsel %vm749_vm9, %v12847_v5, -inf }
0x4131   :  { %v7067_v57 = vmax.f32 %v6073_v0, %v7059_v48  ;;  %v7066_v24 = vmax.f32 %v6072_v34, %v7058_v29  ;;  %v7052_v37 = vmul.f32 %v7036_v10, %v6993_v52  ;;  %7611 = vperm.xlu0 %8377, %v7081_v43  }
0x4133   :  { %v7060_v12 = vmul.f32 %v11841_v25, %v7052_v37  ;;  %vm7074_vm12 = vcmp.lt.f32.partialorder %v7066_v24, 0.0  ;;  %v12284_v25 = vsel %vm1268_vm11, %v6872_v45, 2147483647  ;;  %vm7075_vm10 = vcmp.lt.f32.partialorder %v7067_v57, 0.0 }
0x4134   :  { %v7082_v15 = vsel %vm7074_vm12, 0.0, %v7066_v24  ;;  %v6875_v47 = vshra.s32 %v12284_v25, 16  ;;  %v7083_v59 = vsel %vm7075_vm10, 0.0, %v7067_v57  ;;  %v7535_v14 = vpop.xlane.xlu1 %7534  ;;  %v6874_v9 = vand.u32 65535, %v12284_v25 }
0x4135   :  { %v7068_v63 = vmax.f32 %v6074_v35, %v7060_v12  ;;  %7616 = vperm.xlu1 %8376, %v7082_v15   ;;  %vm7557_vm11 = vcmp.lt.f32.partialorder %v12838_v3, %v7535_v14 }
0x4136   :  { %v12291_v13 = vcvt.s32.f32 %v6875_v47  ;;  %v7565_v8 = vsel %vm7557_vm11, 0.0, %v12838_v3  ;;  %v6876_v20 = vcvt.s32.f32 %v6874_v9 }
0x4137   :  { %vm7076_vm0 = vcmp.lt.f32.partialorder %v7068_v63, 0.0  ;;  %vm7573_vm14 = vcmp.lt.f32.partialorder %v7565_v8, 0.8 }
0x4138   :  { %v7084_v27 = vsel %vm7076_vm0, 0.0, %v7068_v63  ;;  %v7541_v11 = vpop.xlane.xlu1 %7540  ;;  %v7581_v62 = vsel %vm7573_vm14, 0.0, %v7565_v8 }
0x4139   :  { %7626 = vperm.xlu1 %8376, %v7084_v27   ;;  %vm7559_vm1 = vcmp.lt.f32.partialorder %v12839_v54, %v7541_v11 }
0x413a   :  { %v7567_v28 = vsel %vm7559_vm1, 0.0, %v12839_v54 }
0x413b   :  { %vm7575_vm0 = vcmp.lt.f32.partialorder %v7567_v28, 0.8 }
0x413c   :  { %v7547_v0 = vpop.xlane.xlu1 %7546  ;;  %v7583_v40 = vsel %vm7575_vm0, 0.0, %v7567_v28 }
0x413d   :  { %vm7561_vm12 = vcmp.lt.f32.partialorder %v12840_v18, %v7547_v0 }
0x413e   :  { %v7569_v17 = vsel %vm7561_vm12, 0.0, %v12840_v18 }
0x413f   :  { %vm7577_vm13 = vcmp.lt.f32.partialorder %v7569_v17, 0.8 }
0x4140   :  { %v7553_v1 = vpop.xlane.xlu1 %7552  ;;  %v7585_v26 = vsel %vm7577_vm13, 0.0, %v7569_v17 }
0x4141   :  { %vm7563_vm12 = vcmp.lt.f32.partialorder %v12841_v19, %v7553_v1  ;;  %v12853_v1 = vld [vmem:[#allocation45_spill] sm:$0xff] }
0x4142   :  { %v7571_v47 = vsel %vm7563_vm12, 0.0, %v12841_v19 }
0x4150   :  { %7537 = vmax.xlane.f32.xlu0 %v7536_v51 }
0x4154   :  { %7543 = vmax.xlane.f32.xlu0 %v7542_v50 }
0x4158   :  { %7549 = vmax.xlane.f32.xlu0 %v7548_v41 }
0x415c   :  { %7555 = vmax.xlane.f32.xlu0 %v7554_v46 }
0x4160   :  { %6878 = vmin.xlane.f32.xlu0 %v12291_v13 }
0x4176   :  { %7621 = vperm.xlu0 %8377, %v7083_v59  }
0x419c   :  { %v12298_v33 = vpop.permute.xlu1 %7591 }
0x419d   :  { %v7629_v53 = vmul.f32 %v12298_v33, %v7581_v62  ;;  %v7698_v8 = vrot.slane %v12298_v33, %v12853_v1 }
0x419f   :  { %v7637_v7 = vsel %vm749_vm9, %v7629_v53, 0.0 }
0x41a0   :  { %v12302_v55 = vpop.permute.xlu0 %7596  ;;  %v7638_v18 = vrot.slane %v7637_v7, 4 }
0x41a2   :  { %v7639_v34 = vadd.f32 %v7638_v18, %v7637_v7 }
0x41a4   :  { %v12304_v2 = vpop.permute.xlu1 %7601  ;;  %v7640_v43 = vrot.slane %v7639_v34, 2 }
0x41a5   :  { %v7631_v3 = vmul.f32 %v12304_v2, %v7583_v40 }
0x41a7   :  { %v7651_v30 = vsel %vm749_vm9, %v7631_v3, 0.0 }
0x41a8   :  { %v7652_v16 = vrot.slane %v7651_v30, 4 }
0x41aa   :  { %v7653_v39 = vadd.f32 %v7652_v16, %v7651_v30 }
0x41ac   :  { %v12319_v57 = vpop.permute.xlu1 %7606  ;;  %v7654_v37 = vrot.slane %v7653_v39, 2 }
0x41ae   :  { %v7655_v45 = vadd.f32 %v7654_v37, %v7653_v39 }
0x41b0   :  { %v12308_v54 = vpop.permute.xlu0 %7611  ;;  %v7656_v19 = vrot.slane %v7655_v45, 1 }
0x41b1   :  { %v7633_v21 = vmul.f32 %v12308_v54, %v7585_v26 }
0x41b2   :  { %v7657_v39 = vadd.f32 %v7656_v19, %v7655_v45 }
0x41b3   :  { %v7665_v4 = vsel %vm749_vm9, %v7633_v21, 0.0 }
0x41b4   :  { %v7666_v48 = vrot.slane %v7665_v4, 4  ;;  %v12326_v49 = vpop.permute.xlu1 %7616 }
0x41b6   :  { %v7667_v35 = vadd.f32 %v7666_v48, %v7665_v4  ;;  %v7710_v48 = vrot.slane %v12319_v57, %v12853_v1 }
0x41b8   :  { %v7668_v25 = vrot.slane %v7667_v35, 2  ;;  %v7627_v7 = vpop.permute.xlu1 %7626 }
0x41ba   :  { %v7669_v40 = vadd.f32 %v7668_v25, %v7667_v35 }
0x41dd   :  { %v7538_v61 = vpop.xlane.xlu0 %7537 }
0x41de   :  { %vm7558_vm10 = vcmp.lt.f32.partialorder %v12847_v5, %v7538_v61 }
0x41df   :  { %v7566_v10 = vsel %vm7558_vm10, 0.0, %v12847_v5  ;;  %v7641_v5 = vadd.f32 %v7640_v43, %v7639_v34 }
0x41e0   :  { %vm7574_vm11 = vcmp.lt.f32.partialorder %v7566_v10, 0.8 }
0x41e1   :  { %v7582_v29 = vsel %vm7574_vm11, 0.0, %v7566_v10  ;;  %v7544_v52 = vpop.xlane.xlu0 %7543  ;;  %v7642_v0 = vrot.slane %v7641_v5, 1 }
0x41e2   :  { %v7630_v22 = vmul.f32 %v12302_v55, %v7582_v29  ;;  %vm7560_vm1 = vcmp.lt.f32.partialorder %v12849_v23, %v7544_v52  ;;  %v7670_v29 = vrot.slane %v7669_v40, 1 }
0x41e3   :  { %v7568_v24 = vsel %vm7560_vm1, 0.0, %v12849_v23  ;;  %v7643_v16 = vadd.f32 %v7642_v0, %v7641_v5  ;;  %v7693_v5 = vld [vmem:[#allocation10] sm:$0xff] }
0x41e4   :  { %v7644_v12 = vsel %vm749_vm9, %v7630_v22, 0.0  ;;  %vm7576_vm14 = vcmp.lt.f32.partialorder %v7568_v24, 0.8 }
0x41e5   :  { %v7645_v15 = vrot.slane %v7644_v12, 4  ;;  %v7584_v63 = vsel %vm7576_vm14, 0.0, %v7568_v24  ;;  %v7550_v27 = vpop.xlane.xlu0 %7549  ;;  %vm7579_vm14 = vcmp.lt.f32.partialorder %v7571_v47, 0.8 }
0x41e6   :  { %v7632_v51 = vmul.f32 %v12319_v57, %v7584_v63  ;;  %vm7562_vm0 = vcmp.lt.f32.partialorder %v12851_v60, %v7550_v27  ;;  %v7718_v57 = vrot.slane %v12326_v49, %v12853_v1  ;;  %v7671_v63 = vadd.f32 %v7670_v29, %v7669_v40 }
0x41e7   :  { %v7646_v50 = vadd.f32 %v7645_v15, %v7644_v12  ;;  %v7570_v23 = vsel %vm7562_vm0, 0.0, %v12851_v60  ;;  %v7702_v60 = vrot.slane %v12302_v55, %v12853_v1  ;;  %v7706_v55 = vrot.slane %v12304_v2, %v12853_v1 }
0x41e8   :  { %v7658_v41 = vsel %vm749_vm9, %v7632_v51, 0.0  ;;  %vm7578_vm13 = vcmp.lt.f32.partialorder %v7570_v23, 0.8  ;;  %v7587_v51 = vsel %vm7579_vm14, 0.0, %v7571_v47 }
0x41e9   :  { %v7647_v46 = vrot.slane %v7646_v50, 2  ;;  %v7659_v59 = vrot.slane %v7658_v41, 4  ;;  %v7586_v14 = vsel %vm7578_vm13, 0.0, %v7570_v23  ;;  %v7556_v11 = vpop.xlane.xlu0 %7555  ;;  %v7727_v37 = vsel %vm734_vm2, %v7702_v60, %v7698_v8 }
0x41ea   :  { %v7634_v28 = vmul.f32 %v12326_v49, %v7586_v14  ;;  %vm7564_vm10 = vcmp.lt.f32.partialorder %v12852_v6, %v7556_v11  ;;  %v7728_v15 = vsel %vm736_vm3, %v7706_v55, %v7727_v37 }
0x41eb   :  { %v7648_v62 = vadd.f32 %v7647_v46, %v7646_v50  ;;  %v7660_v17 = vadd.f32 %v7659_v59, %v7658_v41  ;;  %v7572_v53 = vsel %vm7564_vm10, 0.0, %v12852_v6  ;;  %v7729_v50 = vsel %vm738_vm4, %v7710_v48, %v7728_v15 }
0x41ec   :  { %v7672_v3 = vsel %vm749_vm9, %v7634_v28, 0.0  ;;  %vm7580_vm11 = vcmp.lt.f32.partialorder %v7572_v53, 0.8  ;;  %v7726_v59 = vrot.slane %v7627_v7, %v12853_v1 }
0x41ed   :  { %v7649_v26 = vrot.slane %v7648_v62, 1  ;;  %v7661_v30 = vrot.slane %v7660_v17, 2  ;;  %v7673_v33 = vrot.slane %v7672_v3, 4  ;;  %v7588_v21 = vsel %vm7580_vm11, 0.0, %v7572_v53  ;;  %v12339_v18 = vpop.xlane.xlu0 %6878 }
0x41ee   :  { %v7636_v4 = vmul.f32 %v7627_v7, %v7588_v21  ;;  %vm6880_vm1 = vcmp.eq.f32.partialorder %v12291_v13, %v12339_v18  ;;  %v7714_v13 = vrot.slane %v12308_v54, %v12853_v1  ;;  %v7737_v7 = vld [vmem:[#allocation11] sm:$0xff] }
0x41ef   :  { %v7650_v6 = vadd.f32 %v7649_v26, %v7648_v62  ;;  %v7662_v61 = vadd.f32 %v7661_v30, %v7660_v17  ;;  %v7674_v34 = vadd.f32 %v7673_v33, %v7672_v3  ;;  %v6881_v10 = vsel %vm6880_vm1, %v6876_v20, inf }
0x41f0   :  { %v7686_v52 = vsel %vm749_vm9, %v7636_v4, 0.0  ;;  %6882 = vmin.xlane.f32.xlu0 %v6881_v10  ;;  %v7730_v45 = vsel %vm740_vm5, %v7714_v13, %v7729_v50 }
0x41f1   :  { %v7747_v43 = vsel %vm734_vm2, %v7650_v6, %v7643_v16  ;;  %v7663_v22 = vrot.slane %v7662_v61, 1  ;;  %v7675_v2 = vrot.slane %v7674_v34, 2  ;;  %v7687_v9 = vrot.slane %v7686_v52, 4 }
0x41f2   :  { %v7748_v24 = vsel %vm736_vm3, %v7657_v39, %v7747_v43  ;;  %v7731_v46 = vsel %vm742_vm6, %v7718_v57, %v7730_v45  ;;  %vm7694_vm2 = vcmp.gt.f32.partialorder %v7693_v5, 0.0  ;;  %vm7738_vm3 = vcmp.gt.f32.partialorder %v7737_v7, 0.0 }
0x41f3   :  { %v7664_v35 = vadd.f32 %v7663_v22, %v7662_v61  ;;  %v7676_v12 = vadd.f32 %v7675_v2, %v7674_v34  ;;  %v7688_v27 = vadd.f32 %v7687_v9, %v7686_v52 }
0x41f5   :  { %v7749_v23 = vsel %vm738_vm4, %v7664_v35, %v7748_v24  ;;  %v7677_v54 = vrot.slane %v7676_v12, 1  ;;  %v7622_v20 = vpop.permute.xlu0 %7621  ;;  %v7689_v47 = vrot.slane %v7688_v27, 2 }
0x41f6   :  { %v7635_v25 = vmul.f32 %v7622_v20, %v7587_v51  ;;  %v7722_v41 = vrot.slane %v7622_v20, %v12853_v1  ;;  %v7750_v49 = vsel %vm740_vm5, %v7671_v63, %v7749_v23 }
0x41f7   :  { %v7678_v14 = vadd.f32 %v7677_v54, %v7676_v12  ;;  %v7690_v53 = vadd.f32 %v7689_v47, %v7688_v27 }
0x41f8   :  { %v7679_v11 = vsel %vm749_vm9, %v7635_v25, 0.0  ;;  %v7732_v0 = vsel %vm744_vm7, %v7722_v41, %v7731_v46 }
0x41f9   :  { %v7680_v8 = vrot.slane %v7679_v11, 4  ;;  %v7733_v28 = vsel %vm746_vm8, %v7726_v59, %v7732_v0  ;;  %v7751_v60 = vsel %vm742_vm6, %v7678_v14, %v7750_v49  ;;  %v7691_v1 = vrot.slane %v7690_v53, 1 }
0x41fa   :  { %v7735_v62 = vsel %vm7694_vm2, %v7733_v28, -1.0 }
0x41fb   :  { %v7681_v17 = vadd.f32 %v7680_v8, %v7679_v11  ;;  %7736 = vst.msk [vmem:[#allocation20] sm:$0xff] %vm749_vm9, %v7735_v62  ;;  %v7692_v30 = vadd.f32 %v7691_v1, %v7690_v53 }
0x41fd   :  { %v7682_v19 = vrot.slane %v7681_v17, 2 }
0x41ff   :  { %v7683_v40 = vadd.f32 %v7682_v19, %v7681_v17 }
0x4201   :  { %v7684_v3 = vrot.slane %v7683_v40, 1 }
0x4203   :  { %v7685_v26 = vadd.f32 %v7684_v3, %v7683_v40 }
0x4205   :  { %v7752_v33 = vsel %vm744_vm7, %v7685_v26, %v7751_v60 }
0x4206   :  { %v7753_v21 = vsel %vm746_vm8, %v7692_v30, %v7752_v33 }
0x4207   :  { %v7755_v16 = vsel %vm7738_vm3, %v7753_v21, -1.0 }
0x4208   :  { %8937 = shalt.err (!%p8934_p0)
}
0x4209   :  { %s12854_s1 = sld [smem:[#allocation104_spill]] }
0x420f   :  { %s8938_s28 = scalar_lea.hbm %s12854_s1, 128 }
0x4210   :  { %p8939_p1 = scmp.ne.s32.totalorder %s12854_s1, %s8938_s28  ;;  %p8942_p2 = scmp.lt.u32.totalorder %s8938_s28, %s12854_s1 }
0x4212   :  { %p8944_p3 = pnand %p8942_p2, %p8939_p1 }
0x4214   :  { %8947 = shalt.err (!%p8944_p3)
}
0x4215   :  { %7780 = dma.vmem_to_hbm [thread:$0]  %s7778_s26, 128, %s12854_s1, [#allocation21]   ;;  %7756 = vst.msk [vmem:[#allocation22] sm:$0xff] %vm749_vm9, %v7755_v16 }
0x4216   :  { %s8948_s4 = scalar_lea.vmem %s12370_s12, 768  ;;  %p8953_p5 = scmp.lt.s32.totalorder %s12370_s12, %s12370_s12 }
0x4217   :  { %p8949_p4 = scmp.ne.s32.totalorder %s12370_s12, %s8948_s4  ;;  %p8954_p6 = scmp.lt.s32.totalorder %s8948_s4, %s8948_s4 }
0x4219   :  { %p8955_p7 = por %p8954_p6, %p8953_p5 }
0x421b   :  { %p8956_p8 = pnand %p8955_p7, %p8949_p4 }
0x421d   :  { %8959 = shalt.err (!%p8956_p8)
}
0x421e   :  { %s12855_s5 = sld [smem:[#allocation103_spill]] }
0x4224   :  { %s8960_s18 = scalar_lea.hbm %s12855_s5, 768 }
0x4225   :  { %p8961_p9 = scmp.ne.s32.totalorder %s12855_s5, %s8960_s18  ;;  %p8964_p10 = scmp.lt.u32.totalorder %s8960_s18, %s12855_s5 }
0x4227   :  { %p8966_p11 = pnand %p8964_p10, %p8961_p9 }
0x4229   :  { %8969 = shalt.err (!%p8966_p11)
}
0x422a   :  { %7768 = dma.vmem_to_hbm [thread:$0]  %s12370_s12, 768, %s12855_s5, [#allocation4], %s9013_s24, %s9013_s24, %s9014_s25  }
0x422b   :  { %s9030_s15 = smov [#allocation22]  }
0x422c   :  { %s7787_s11 = sshll.u32 %s9030_s15, 4  ;;  %s7788_s11 = int_to_ptr.vmem [resolvable:$true] %s7787_s11 }
0x422d   :  { %s8970_s17 = scalar_lea.vmem %s7788_s11, 128  ;;  %p8975_p13 = scmp.lt.s32.totalorder %s7788_s11, %s7788_s11 }
0x422e   :  { %p8971_p12 = scmp.ne.s32.totalorder %s7788_s11, %s8970_s17  ;;  %p8976_p0 = scmp.lt.s32.totalorder %s8970_s17, %s8970_s17 }
0x4230   :  { %p8977_p1 = por %p8976_p0, %p8975_p13 }
0x4232   :  { %p8978_p2 = pnand %p8977_p1, %p8971_p12 }
0x4234   :  { %8981 = shalt.err (!%p8978_p2)
}
0x4235   :  { %s12856_s27 = sld [smem:[#allocation105_spill]] }
0x423b   :  { %s8982_s7 = scalar_lea.hbm %s12856_s27, 128 }
0x423c   :  { %p8983_p3 = scmp.ne.s32.totalorder %s12856_s27, %s8982_s7  ;;  %p8986_p4 = scmp.lt.u32.totalorder %s8982_s7, %s12856_s27 }
0x423e   :  { %p8988_p5 = pnand %p8986_p4, %p8983_p3 }
0x4240   :  { %8991 = shalt.err (!%p8988_p5)
}
0x4241   :  { %7790 = dma.vmem_to_hbm [thread:$0]  %s7788_s11, 128, %s12856_s27, [#allocation21]   ;;  %v6885_v55 = vcvt.f32.s32 %v12339_v18 }
0x4243   :  { %v6886_v6 = vshll.u32 %v6885_v55, 16 }
0x427d   :  { %v6883_v4 = vpop.xlane.xlu0 %6882 }
0x427e   :  { %v6884_v61 = vcvt.f32.s32 %v6883_v4 }
0x4280   :  { %v6887_v34 = vadd.s32 %v6886_v6, %v6884_v61 }
0x4282   :  { %v6893_v10 = vrot.slane %v6887_v34, %v9343_v38  ;;  %v6897_v39 = vrot.slane %v6887_v34, %v9330_v31  ;;  %v6901_v48 = vrot.slane %v6887_v34, %v9333_v32  ;;  %v6905_v29 = vrot.slane %v6887_v34, %v9351_v42 }
0x4283   :  { %v6909_v52 = vrot.slane %v6887_v34, %v9340_v36  ;;  %v6913_v43 = vrot.slane %v6887_v34, %v9356_v44  ;;  %v6917_v22 = vrot.slane %v6887_v34, %v9445_v56  ;;  %v6921_v18 = vrot.slane %v6887_v34, %v9450_v58 }
0x4284   :  { %6922 = vst.msk [vmem:[%s12479_s21 + $0x5] sm:$0x1] %vm1387_vm15, %v6893_v10  ;;  %6923 = vst.msk [vmem:[%s12479_s21 + $0xd] sm:$0x1] %vm1387_vm15, %v6897_v39 }
0x4285   :  { %6924 = vst.msk [vmem:[%s12479_s21 + $0x15] sm:$0x1] %vm1387_vm15, %v6901_v48  ;;  %6925 = vst.msk [vmem:[%s12479_s21 + $0x1d] sm:$0x1] %vm1387_vm15, %v6905_v29 }
0x4286   :  { %6926 = vst.msk [vmem:[%s12479_s21 + $0x25] sm:$0x1] %vm1387_vm15, %v6909_v52  ;;  %6927 = vst.msk [vmem:[%s12479_s21 + $0x2d] sm:$0x1] %vm1387_vm15, %v6913_v43 }
0x4287   :  { %6928 = vst.msk [vmem:[%s12479_s21 + $0x35] sm:$0x1] %vm1387_vm15, %v6917_v22  ;;  %6929 = vst.msk [vmem:[%s12479_s21 + $0x3d] sm:$0x1] %vm1387_vm15, %v6921_v18 }
0x4288   :  { %9004 = dma.done.wait [#allocation4], 768  }
0x4289   :  { %9005 = vsyncadd [#allocation4], 4294966528 }
0x428a   :  { %9006 = dma.done.wait [#allocation21], 256  }
0x428b   :  { %9007 = vsyncadd [#allocation21], 4294967040 }
0x428c   :  { %7802 = vsyncpa [#allocation3], 1 }
0x428d   :  { %7803 = vsyncpa [#allocation6], 1 }
0x428e   :  { %7804 = vsyncpa [#allocation9], 1 }
0x428f   :  { %7805 = vsyncpa [#allocation12], 1 }
0x4290   :  { %7806 = vsyncpa [#allocation15], 1 }
0x4291   :  { %7807 = vsyncpa [#allocation18], 1 }
0x4292   :  { %7808 = vsyncpa [#allocation4], 1 }
0x4293   :  { %7809 = vsyncpa [#allocation21], 1 }

</bundles_post_ra>
